<compile_context>
chip_gen: v7x
topology: tpu7x:2x2x1
jax: 0.10.0
libtpu: 0.0.40
codegen_flags: <defaults>
</compile_context>

<pallas_src>
import jax
import jax.numpy as jnp
from jax import lax
from jax.experimental import pallas as pl
from jax.experimental.pallas import tpu as pltpu


_NEG_LARGE = -1e30  # finite stand-in for -inf on masked (padded) vocab columns


def _round_up(x, m):
    return (x + m - 1) // m * m


def _resolve_tiles(vocab, dim, batch, tb, tv, num_cores):
    tb = max(16, _round_up(int(tb), 16))          # multiple of 16 (bf16 packing)
    tb = min(tb, _round_up(batch, 16))            # don't over-tile tiny batches
    if num_cores > 1 and batch >= 2 * 16:
        # Keep >= num_cores batch tiles so the "parallel" axis can split
        # across TensorCores (v7x has 2 TCs per chip).
        tb = min(tb, _round_up(-(-batch // num_cores), 16))
    tv = max(128, _round_up(int(tv), 128))
    tv = min(tv, _round_up(vocab, 128))
    b_padded = _round_up(batch, tb)
    v_padded = _round_up(vocab, tv)
    d_padded = _round_up(dim, 128)                # clean MXU K feeds
    return tb, tv, b_padded, v_padded, d_padded


def prepare_embedding(emb_matrix, *, tv=2048, compute_dtype=jnp.float32):
    """Cast / pad the (V, D) embedding once; reuse across forward calls."""
    vocab, dim = emb_matrix.shape
    tv = min(max(128, _round_up(int(tv), 128)), _round_up(vocab, 128))
    v_padded = _round_up(vocab, tv)
    d_padded = _round_up(dim, 128)
    emb_c = emb_matrix.astype(compute_dtype)
    if (v_padded, d_padded) != (vocab, dim):
        emb_c = jnp.pad(emb_c, ((0, v_padded - vocab), (0, d_padded - dim)))
    return emb_c


def _make_kernel(mask_needed, cache_logits):
    """Build the kernel for a fixed static (mask, cache) configuration."""

    def kernel(*refs):
        it = iter(refs)
        sel_ref = next(it)             # (tb, Dp) selected rows, resident per batch tile
        emb_ref = next(it)             # (tv, Dp) one vocab tile of the embedding matrix
        bias_ref = next(it) if mask_needed else None   # (1, tv) additive mask bias
        out_ref = next(it)             # (tb, tv) log-softmax output tile
        m_ref = next(it)               # (tb, 1)  running row max
        l_ref = next(it)               # (tb, 1)  running row sum-exp
        lse_ref = next(it)             # (tb, 1)  hoisted log-sum-exp (pass 1)
        cache_ref = next(it) if cache_logits else None  # (n_vt, tb, tv) logits cache

        p = pl.program_id(1)           # 0 = softmax-stats pass, 1 = output pass
        j = pl.program_id(2)           # vocab-tile index

        def compute_logits():
            # (tb, Dp) x (tv, Dp) contracted on D: transposed contraction on
            # the MXU (no emb.T relayout), f32 accumulation.
            return lax.dot_general(
                sel_ref[...], emb_ref[...],
                dimension_numbers=(((1,), (1,)), ((), ())),
                preferred_element_type=jnp.float32)

        @pl.when(jnp.logical_and(p == 0, j == 0))
        def _init():
            m_ref[...] = jnp.full_like(m_ref, -jnp.inf)
            l_ref[...] = jnp.zeros_like(l_ref)

        @pl.when(p == 0)
        def _stats():
            logits = compute_logits()
            if cache_logits:
                cache_ref[j] = logits
            if mask_needed:
                s = logits + bias_ref[...]       # one vadd; padded cols -> -1e30
            else:
                s = logits
            m_prev = m_ref[...]
            m_new = jnp.maximum(m_prev, jnp.max(s, axis=1, keepdims=True))
            l_ref[...] = (l_ref[...] * jnp.exp(m_prev - m_new)
                          + jnp.sum(jnp.exp(s - m_new), axis=1, keepdims=True))
            m_ref[...] = m_new

        @pl.when(jnp.logical_and(p == 1, j == 0))
        def _finalize():
            # Hoisted: computed once per batch tile, reused for every j.
            lse_ref[...] = m_ref[...] + jnp.log(l_ref[...])

        @pl.when(p == 1)
        def _write():
            logits = cache_ref[j] if cache_logits else compute_logits()
            # Padded vocab columns are NOT re-masked here: they are sliced off
            # by the wrapper (out[:batch, :vocab]).
            out_ref[...] = (logits - lse_ref[...]).astype(out_ref.dtype)

    return kernel


def single_matrix_skipgram_forward(inputs, emb_matrix, *, tb=512, tv=2048,
                                   compute_dtype=jnp.float32,
                                   out_dtype=jnp.float32,
                                   num_cores=1,
                                   vmem_budget_bytes=32 * 1024 * 1024,
                                   emb_prepared=None):
    """Pallas forward pass of SingleMatrixSkipGram.

    inputs       : (B,) int token ids
    emb_matrix   : (V, D) float32 embedding / output-projection matrix
    emb_prepared : optional pre-cast/padded matrix from prepare_embedding()
                   (avoids re-materializing the (V, D) matrix on every call)
    returns      : (B, V) out_dtype log-probabilities (LogSoftmax over dim=1)
    """
    vocab, dim = emb_matrix.shape
    batch = inputs.shape[0]
    tb, tv, b_padded, v_padded, d_padded = _resolve_tiles(
        vocab, dim, batch, tb, tv, num_cores)
    n_vt = v_padded // tv
    mask_needed = v_padded != vocab

    # --- glue: cast/pad embedding (once, if not supplied) + row gather ------
    if emb_prepared is None:
        emb_prepared = prepare_embedding(emb_matrix, tv=tv,
                                         compute_dtype=compute_dtype)
    assert emb_prepared.shape == (v_padded, d_padded), (
        emb_prepared.shape, (v_padded, d_padded))
    sel = jnp.take(emb_prepared, inputs.astype(jnp.int32), axis=0)   # (B, Dp)
    if b_padded != batch:
        sel = jnp.pad(sel, ((0, b_padded - batch), (0, 0)))
    # TODO(synk): fuse the row gather in-kernel via scalar prefetch + manual DMA.

    # --- VMEM budgeting: cache pass-0 logits when they fit ------------------
    cbytes = jnp.dtype(compute_dtype).itemsize
    obytes = jnp.dtype(out_dtype).itemsize
    vmem_fixed = (2 * tb * d_padded * cbytes          # sel  (double-buffered)
                  + 2 * tv * d_padded * cbytes        # emb  (double-buffered)
                  + 2 * tb * tv * obytes              # out  (double-buffered)
                  + (2 * tv * 4 if mask_needed else 0)  # bias
                  + 3 * tb * 128 * 4)                 # m/l/lse scratch (lane-padded)
    cache_bytes = n_vt * tb * tv * 4
    cache_logits = (vmem_fixed + cache_bytes) <= vmem_budget_bytes
    vmem_used = vmem_fixed + (cache_bytes if cache_logits else 0)
    # Explicit scoped-VMEM limit with headroom; stays below v7x's 64 MiB.
    vmem_limit = int(min(max(vmem_used + (4 << 20), 32 << 20), 56 << 20))

    # --- specs ---------------------------------------------------------------
    in_specs = [
        # selected rows: resident across both passes & all vocab tiles
        pl.BlockSpec((tb, d_padded), lambda i, p, j: (i, 0)),
    ]
    if cache_logits:
        # emb index pinned in pass 1: emb streamed from HBM once per batch tile.
        emb_spec = pl.BlockSpec((tv, d_padded), lambda i, p, j: (j * (1 - p), 0))
    else:
        emb_spec = pl.BlockSpec((tv, d_padded), lambda i, p, j: (j, 0))
    in_specs.append(emb_spec)
    # TODO(synk): consider pipeline_mode=pl.Buffered(3) on emb_spec if profiling
    # shows exposed DMA at the pass / batch-tile transitions.

    operands = [sel, emb_prepared]
    if mask_needed:
        col = lax.broadcasted_iota(jnp.int32, (1, v_padded), 1)
        bias = jnp.where(col < vocab, 0.0, _NEG_LARGE).astype(jnp.float32)
        # streamed over j in pass 0 only (pinned to tile 0 / unused in pass 1)
        in_specs.append(pl.BlockSpec((1, tv), lambda i, p, j: (0, j * (1 - p))))
        operands.append(bias)

    scratch_shapes = [
        pltpu.VMEM((tb, 1), jnp.float32),   # running max
        pltpu.VMEM((tb, 1), jnp.float32),   # running sum-exp
        pltpu.VMEM((tb, 1), jnp.float32),   # hoisted log-sum-exp
    ]
    if cache_logits:
        scratch_shapes.append(pltpu.VMEM((n_vt, tb, tv), jnp.float32))

    grid = (b_padded // tb, 2, n_vt)   # (batch tiles, pass, vocab tiles)

    out = pl.pallas_call(
        _make_kernel(mask_needed, cache_logits),
        out_shape=jax.ShapeDtypeStruct((b_padded, v_padded), out_dtype),
        grid_spec=pltpu.PrefetchScalarGridSpec(
            num_scalar_prefetch=0,
            grid=grid,
            in_specs=in_specs,
            # (i, j*p): pinned to (i, 0) during the stats pass so each output
            # tile is DMA'd back to HBM exactly once (written in pass 1).
            out_specs=pl.BlockSpec((tb, tv), lambda i, p, j: (i, j * p)),
            scratch_shapes=scratch_shapes,
        ),
        compiler_params=pltpu.CompilerParams(
            dimension_semantics=("parallel", "arbitrary", "arbitrary"),
            vmem_limit_bytes=vmem_limit,
        ),
    )(*operands)

    return out[:batch, :vocab]


if __name__ == "__main__":
    # Small shapes consistent with the module; deliberately non-multiples of
    # the tile sizes to exercise the padding / masking paths.
    vocab_size = 1000
    embedding_dim = 100
    batch = 300

    key = jax.random.PRNGKey(0)
    emb_key, in_key = jax.random.split(key)
    # torch.manual_seed(42) -> randn analogue for the parameter matrix.
    emb_matrix = jax.random.normal(
        emb_key, (vocab_size, embedding_dim), dtype=jnp.float32)
    inputs = jax.random.randint(
        in_key, (batch,), 0, vocab_size, dtype=jnp.int32)

    out = single_matrix_skipgram_forward(inputs, emb_matrix)
    out = jax.block_until_ready(out)
    assert out.shape == (batch, vocab_size), out.shape

    # Pure-JAX f32 reference: gather -> matmul -> log_softmax(dim=1).
    selected = jnp.take(emb_matrix, inputs, axis=0)
    ref_logits = jnp.dot(selected, emb_matrix.T,
                         preferred_element_type=jnp.float32,
                         precision=lax.Precision.HIGHEST)
    ref = jax.nn.log_softmax(ref_logits, axis=1)

    max_err = float(jnp.max(jnp.abs(out - ref)))
    assert jnp.allclose(out, ref, atol=1e-2, rtol=1e-2), max_err

    print("KERNEL_OK")
</pallas_src>

<mosaic_0001>
module attributes {stable_mosaic.version = 11 : i64} {
  func.func @kernel(%arg0: i32, %arg1: i32, %arg2: i32, %arg3: memref<304x128xf32, #tpu.memory_space<vmem>>, %arg4: memref<1024x128xf32, #tpu.memory_space<vmem>>, %arg5: memref<1x1024xf32, #tpu.memory_space<vmem>>, %arg6: memref<304x1024xf32, #tpu.memory_space<vmem>>, %arg7: memref<304x1xf32, #tpu.memory_space<vmem>>, %arg8: memref<304x1xf32, #tpu.memory_space<vmem>>, %arg9: memref<304x1xf32, #tpu.memory_space<vmem>>, %arg10: memref<1x304x1024xf32, #tpu.memory_space<vmem>>) attributes {dimension_semantics = [#tpu.dimension_semantics<parallel>, #tpu.dimension_semantics<arbitrary>, #tpu.dimension_semantics<arbitrary>], iteration_bounds = array<i64: 1, 2, 1>, scalar_prefetch = 0 : i64, scratch_operands = 4 : i64, tpu.core_type = #tpu.core_type<tc>, window_params = [{transform_indices = @transform_0, window_bounds = array<i64: 304, 128>}, {transform_indices = @transform_1, window_bounds = array<i64: 1024, 128>}, {transform_indices = @transform_2, window_bounds = array<i64: 1, 1024>}, {transform_indices = @transform_3, window_bounds = array<i64: 304, 1024>}]} {
    %c0_i32 = arith.constant 0 : i32
    %0 = arith.cmpi eq, %arg1, %c0_i32 : i32
    %c0_i32_0 = arith.constant 0 : i32
    %1 = arith.cmpi eq, %arg2, %c0_i32_0 : i32
    %2 = arith.andi %0, %1 : i1
    %3 = arith.extui %2 : i1 to i32
    %c0_i32_1 = arith.constant 0 : i32
    %4 = arith.cmpi ne, %3, %c0_i32_1 : i32
    scf.if %4 {
      %cst = arith.constant 0xFF800000 : f32
      %16 = vector.broadcast %cst : f32 to vector<304x1xf32>
      %c0 = arith.constant 0 : index
      %c0_8 = arith.constant 0 : index
      %17 = vector.load %arg7[%c0, %c0_8] : memref<304x1xf32, #tpu.memory_space<vmem>>, vector<304x1xf32>
      tpu.vector_store %arg7[%c0, %c0_8], %16 {strides = array<i32>} : memref<304x1xf32, #tpu.memory_space<vmem>>, vector<304x1xf32>,
      %cst_9 = arith.constant 0.000000e+00 : f32
      %18 = vector.broadcast %cst_9 : f32 to vector<304x1xf32>
      %c0_10 = arith.constant 0 : index
      %c0_11 = arith.constant 0 : index
      %19 = vector.load %arg8[%c0_10, %c0_11] : memref<304x1xf32, #tpu.memory_space<vmem>>, vector<304x1xf32>
      tpu.vector_store %arg8[%c0_10, %c0_11], %18 {strides = array<i32>} : memref<304x1xf32, #tpu.memory_space<vmem>>, vector<304x1xf32>,
    } else {
    }
    %c0_i32_2 = arith.constant 0 : i32
    %5 = arith.cmpi eq, %arg1, %c0_i32_2 : i32
    %6 = arith.extui %5 : i1 to i32
    %c0_i32_3 = arith.constant 0 : i32
    %7 = arith.cmpi ne, %6, %c0_i32_3 : i32
    scf.if %7 {
      %c0 = arith.constant 0 : index
      %c0_8 = arith.constant 0 : index
      %16 = vector.load %arg3[%c0, %c0_8] : memref<304x128xf32, #tpu.memory_space<vmem>>, vector<304x128xf32>
      %c0_9 = arith.constant 0 : index
      %c0_10 = arith.constant 0 : index
      %17 = vector.load %arg4[%c0_9, %c0_10] : memref<1024x128xf32, #tpu.memory_space<vmem>>, vector<1024x128xf32>
      %cst = arith.constant dense<0.000000e+00> : vector<304x1024xf32>
      %18 = tpu.matmul %16, %17, %cst {dimension_numbers = #tpu.dot_dimension_numbers<[1], [1], [0], [0], [0, 0, 1, 0], [], []>} : vector<304x128xf32>, vector<1024x128xf32>, vector<304x1024xf32> -> vector<304x1024xf32>
      %19 = arith.index_cast %arg2 : i32 to index
      %c0_11 = arith.constant 0 : index
      %c0_12 = arith.constant 0 : index
      %20 = vector.load %arg10[%19, %c0_11, %c0_12] : memref<1x304x1024xf32, #tpu.memory_space<vmem>>, vector<1x304x1024xf32>
      %21 = vector.shape_cast %20 : vector<1x304x1024xf32> to vector<304x1024xf32>
      %22 = vector.shape_cast %18 : vector<304x1024xf32> to vector<1x304x1024xf32>
      tpu.vector_store %arg10[%19, %c0_11, %c0_12], %22 {strides = array<i32>} : memref<1x304x1024xf32, #tpu.memory_space<vmem>>, vector<1x304x1024xf32>,
      %c0_13 = arith.constant 0 : index
      %c0_14 = arith.constant 0 : index
      %23 = vector.load %arg5[%c0_13, %c0_14] : memref<1x1024xf32, #tpu.memory_space<vmem>>, vector<1x1024xf32>
      %24 = vector.broadcast %23 : vector<1x1024xf32> to vector<304x1024xf32>
      %25 = arith.addf %18, %24 : vector<304x1024xf32>
      %c0_15 = arith.constant 0 : index
      %c0_16 = arith.constant 0 : index
      %26 = vector.load %arg7[%c0_15, %c0_16] : memref<304x1xf32, #tpu.memory_space<vmem>>, vector<304x1xf32>
      %cst_17 = arith.constant dense<0xFF800000> : vector<304xf32>
      %27 = vector.multi_reduction <maximumf>, %25, %cst_17 [1] : vector<304x1024xf32> to vector<304xf32>
      %28 = vector.shape_cast %27 : vector<304xf32> to vector<304x1xf32>
      %29 = arith.maximumf %26, %28 : vector<304x1xf32>
      %c0_18 = arith.constant 0 : index
      %c0_19 = arith.constant 0 : index
      %30 = vector.load %arg8[%c0_18, %c0_19] : memref<304x1xf32, #tpu.memory_space<vmem>>, vector<304x1xf32>
      %31 = arith.subf %26, %29 : vector<304x1xf32>
      %32 = math.exp %31 : vector<304x1xf32>
      %33 = arith.mulf %30, %32 : vector<304x1xf32>
      %34 = vector.broadcast %29 : vector<304x1xf32> to vector<304x1024xf32>
      %35 = arith.subf %25, %34 : vector<304x1024xf32>
      %36 = math.exp %35 : vector<304x1024xf32>
      %cst_20 = arith.constant dense<0.000000e+00> : vector<304xf32>
      %37 = vector.multi_reduction <add>, %36, %cst_20 [1] : vector<304x1024xf32> to vector<304xf32>
      %38 = vector.shape_cast %37 : vector<304xf32> to vector<304x1xf32>
      %39 = arith.addf %33, %38 : vector<304x1xf32>
      %c0_21 = arith.constant 0 : index
      %c0_22 = arith.constant 0 : index
      %40 = vector.load %arg8[%c0_21, %c0_22] : memref<304x1xf32, #tpu.memory_space<vmem>>, vector<304x1xf32>
      tpu.vector_store %arg8[%c0_21, %c0_22], %39 {strides = array<i32>} : memref<304x1xf32, #tpu.memory_space<vmem>>, vector<304x1xf32>,
      %c0_23 = arith.constant 0 : index
      %c0_24 = arith.constant 0 : index
      %41 = vector.load %arg7[%c0_23, %c0_24] : memref<304x1xf32, #tpu.memory_space<vmem>>, vector<304x1xf32>
      tpu.vector_store %arg7[%c0_23, %c0_24], %29 {strides = array<i32>} : memref<304x1xf32, #tpu.memory_space<vmem>>, vector<304x1xf32>,
    } else {
    }
    %c1_i32 = arith.constant 1 : i32
    %8 = arith.cmpi eq, %arg1, %c1_i32 : i32
    %c0_i32_4 = arith.constant 0 : i32
    %9 = arith.cmpi eq, %arg2, %c0_i32_4 : i32
    %10 = arith.andi %8, %9 : i1
    %11 = arith.extui %10 : i1 to i32
    %c0_i32_5 = arith.constant 0 : i32
    %12 = arith.cmpi ne, %11, %c0_i32_5 : i32
    scf.if %12 {
      %c0 = arith.constant 0 : index
      %c0_8 = arith.constant 0 : index
      %16 = vector.load %arg7[%c0, %c0_8] : memref<304x1xf32, #tpu.memory_space<vmem>>, vector<304x1xf32>
      %c0_9 = arith.constant 0 : index
      %c0_10 = arith.constant 0 : index
      %17 = vector.load %arg8[%c0_9, %c0_10] : memref<304x1xf32, #tpu.memory_space<vmem>>, vector<304x1xf32>
      %18 = math.log %17 : vector<304x1xf32>
      %19 = arith.addf %16, %18 : vector<304x1xf32>
      %c0_11 = arith.constant 0 : index
      %c0_12 = arith.constant 0 : index
      %20 = vector.load %arg9[%c0_11, %c0_12] : memref<304x1xf32, #tpu.memory_space<vmem>>, vector<304x1xf32>
      tpu.vector_store %arg9[%c0_11, %c0_12], %19 {strides = array<i32>} : memref<304x1xf32, #tpu.memory_space<vmem>>, vector<304x1xf32>,
    } else {
    }
    %c1_i32_6 = arith.constant 1 : i32
    %13 = arith.cmpi eq, %arg1, %c1_i32_6 : i32
    %14 = arith.extui %13 : i1 to i32
    %c0_i32_7 = arith.constant 0 : i32
    %15 = arith.cmpi ne, %14, %c0_i32_7 : i32
    scf.if %15 {
      %16 = arith.index_cast %arg2 : i32 to index
      %c0 = arith.constant 0 : index
      %c0_8 = arith.constant 0 : index
      %17 = vector.load %arg10[%16, %c0, %c0_8] : memref<1x304x1024xf32, #tpu.memory_space<vmem>>, vector<1x304x1024xf32>
      %18 = vector.shape_cast %17 : vector<1x304x1024xf32> to vector<304x1024xf32>
      %c0_9 = arith.constant 0 : index
      %c0_10 = arith.constant 0 : index
      %19 = vector.load %arg9[%c0_9, %c0_10] : memref<304x1xf32, #tpu.memory_space<vmem>>, vector<304x1xf32>
      %20 = vector.broadcast %19 : vector<304x1xf32> to vector<304x1024xf32>
      %21 = arith.subf %18, %20 : vector<304x1024xf32>
      %c0_11 = arith.constant 0 : index
      %c0_12 = arith.constant 0 : index
      %22 = vector.load %arg6[%c0_11, %c0_12] : memref<304x1024xf32, #tpu.memory_space<vmem>>, vector<304x1024xf32>
      tpu.vector_store %arg6[%c0_11, %c0_12], %21 {strides = array<i32>} : memref<304x1024xf32, #tpu.memory_space<vmem>>, vector<304x1024xf32>,
    } else {
    }
    return
  }
  func.func @transform_0(%arg0: i32, %arg1: i32, %arg2: i32) -> (i32, i32) {
    %c0_i32 = arith.constant 0 : i32
    %c0_i32_0 = arith.constant 0 : i32
    return %arg0, %c0_i32 : i32, i32
  }
  func.func @transform_1(%arg0: i32, %arg1: i32, %arg2: i32) -> (i32, i32) {
    %c1_i32 = arith.constant 1 : i32
    %0 = arith.subi %c1_i32, %arg1 : i32
    %1 = arith.muli %arg2, %0 : i32
    %c0_i32 = arith.constant 0 : i32
    %c0_i32_0 = arith.constant 0 : i32
    return %1, %c0_i32 : i32, i32
  }
  func.func @transform_2(%arg0: i32, %arg1: i32, %arg2: i32) -> (i32, i32) {
    %c1_i32 = arith.constant 1 : i32
    %0 = arith.subi %c1_i32, %arg1 : i32
    %1 = arith.muli %arg2, %0 : i32
    %c0_i32 = arith.constant 0 : i32
    %c0_i32_0 = arith.constant 0 : i32
    return %c0_i32, %1 : i32, i32
  }
  func.func @transform_3(%arg0: i32, %arg1: i32, %arg2: i32) -> (i32, i32) {
    %0 = arith.muli %arg2, %arg1 : i32
    %c0_i32 = arith.constant 0 : i32
    return %arg0, %0 : i32, i32
  }
}

</mosaic_0001>

<bundles_post_ra>
// kernel: tpu_custom_call.1
= control target key start
LH: loop header
LB: loop body
LE: loop exit
PB: predicated region body
PF: predicated region fallthrough
CT: control target
= control target key end

     0   :  { %8 = vsyncpa [#allocation7], 0  ;;  %s12775_s0 = inlined_call_operand.hbm [shape: f32[304,128], index: 0, kind: input, shape index: {}]   ;;  %s12776_s1 = inlined_call_operand.hbm [shape: f32[1024,128], index: 1, kind: input, shape index: {}]   ;;  %s12777_s2 = inlined_call_operand.hbm [shape: f32[1,1024], index: 2, kind: input, shape index: {}]   ;;  %s12778_s3 = inlined_call_operand.hbm [shape: f32[304,1024], index: 3, kind: output, shape index: {}]  }
   0x1   :  { %9 = vsyncpa [#allocation10], 0 }
   0x2   :  { %11 = vsyncpa [#allocation10 + $0x1], 0 }
   0x3   :  { %12 = vsyncpa [#allocation8], 0 }
   0x4   :  { %14 = vsyncpa [#allocation8 + $0x1], 0  ;;  %s7756_s12 = smov 0   ;;  %s7758_s13 = smov 0  }
   0x5   :  { %s7760_s14 = smov 0  }
   0x6 LB: > { %s6060_s15 = sadd.s32 4294967294, %s7722_s14   ;;  %p6672_p1 = scmp.lt.s32.totalorder %s7722_s14, 2  ;;  %s7722_s14 = sphi %s7760_s14, %s20_s14   ;;  %s7718_s13 = sphi %s7758_s13, %s13983_s13   ;;  %s7714_s12 = sphi %s7756_s12, %s13982_s12  }
   0x7   : > { %p6673_p2 = scmp.eq.s32.totalorder %s7722_s14, 0  ;;  %s189_s16 = sand.u32 1, %s7722_s14  }
   0x8   : > { %s7724_s17 = smov [#allocation9]   ;;  %s7780_s20 = scalar_lea.sflag [#allocation10], %s189_s16 }
   0x9   : > { %s202_s18 = sshll.u32 %s7724_s17, 4  ;;  %p7776_p3 = pnand %p6673_p2, %p6672_p1  ;;  %s203_s18 = int_to_ptr.vmem [resolvable:$true] %s202_s18 }
   0xa   : > { %s7578_s23 = scalar_lea.hbm %s12776_s1, 16384 }
   0xb   : > { %p7579_p4 = scmp.ne.s32.totalorder %s12776_s1, %s7578_s23  ;;  %p7580_p5 = pneg %p7776_p3 }
   0xc   : > { %p7585_p8 = scmp.lt.u32.totalorder %s7578_s23, %s12776_s1 }
   0xd   : > { %p7581_p6 = pnand %p7580_p5, %p7579_p4 }
   0xf   : > { %p7582_p7 = pneg %p7581_p6 }
  0x11   : > { %p7587_p9 = pnand %p7585_p8, %p7582_p7 }
  0x13   : > { %7590 = shalt.err (!%p7587_p9)
}
  0x14   : > { %s7591_s28 = scalar_lea.vmem %s203_s18, 16384  ;;  %s7598_s29 = scalar_lea.vmem %s203_s18, 32768 }
  0x15   : > { %p7592_p10 = scmp.ne.s32.totalorder %s203_s18, %s7591_s28  ;;  %p7599_p13 = scmp.lt.s32.totalorder %s203_s18, %s203_s18 }
  0x16   : > { %p7600_p1 = scmp.lt.s32.totalorder %s7598_s29, %s7591_s28 }
  0x17   : > { %p7594_p11 = pnand %p7592_p10, %p7580_p5 }
  0x18   : > { %p7601_p2 = por %p7600_p1, %p7599_p13 }
  0x19   : > { %p7595_p12 = pneg %p7594_p11 }
  0x1b   : > { %p7602_p0 = pnand %p7601_p2, %p7595_p12 }
  0x1d   : > { %7605 = shalt.err (!%p7602_p0)
}
  0x1e   : > { %s7725_s30 = smov 128   ;;  %s7726_s4 = smov 8  }
  0x1f   : > { %6663 = dma.hbm_to_vmem [thread:$0]  (!%p7776_p3), %s12776_s1, 16384, %s203_s18, %s7780_s20, %s7725_s30, %s7725_s30, %s7726_s4  }
  0x20   : > { %s7809_s7 = sadd.s32 4294967295, %s7722_s14   ;;  %s35_s8 = sadd.s32 1, %s7718_s13 }
  0x21   : > { %p37_p0 = scmp.ge.s32.totalorder %s35_s8, 2  ;;  %p6061_p4 = scmp.ge.s32.totalorder %s7722_s14, 1 }
  0x22   : > { %p160_p6 = scmp.lt.s32.totalorder %s7722_s14, 3  ;;  %p12779_p8 = scmp.eq.s32.totalorder %s7809_s7, 0 }
  0x23   : > { %s13985_s8 = smov (%p37_p0, %s35_s8), 0  ;;  %s7727_s10 = smov [#allocation6]  }
  0x24   : > { %p7816_p7 = pnand %p6061_p4, %p160_p6  ;;  %s175_s11 = sshll.u32 %s7727_s10, 4  ;;  %s7823_s11 = int_to_ptr.vmem [resolvable:$true] %s175_s11 }
  0x25   : > { %s7728_s16 = smov [#allocation11]   ;;  %s7606_s23 = scalar_lea.hbm %s12777_s2, 128 }
  0x26   : > { %s13144_s9 = scalar_select %p7816_p7, 1, 0 }
  0x27   : > { %p6656_p9 = pneg %p7816_p7  ;;  %s226_s17 = sshll.u32 %s7728_s16, 4  ;;  %s227_s17 = int_to_ptr.vmem [resolvable:$true] %s226_s17 }
  0x28   : > { %p7607_p11 = scmp.ne.s32.totalorder %s12777_s2, %s7606_s23  ;;  %p7613_p1 = scmp.lt.u32.totalorder %s7606_s23, %s12777_s2 }
  0x29   : > { %p7827_p10 = pnand %p12779_p8, %p6656_p9 }
  0x2a   : > { %p7609_p12 = pnand %p7607_p11, %p7580_p5 }
  0x2b   : > { %s13145_s18 = scalar_select %p7827_p10, 1, 0 }
  0x2c   : > { %p7610_p13 = pneg %p7609_p12 }
  0x2e   : > { %p7615_p2 = pnand %p7613_p1, %p7610_p13 }
  0x30   : > { %7618 = shalt.err (!%p7615_p2)
}
  0x31   : > { %s7619_s28 = scalar_lea.vmem %s227_s17, 128  ;;  %s7626_s29 = scalar_lea.vmem %s227_s17, 256 }
  0x32   : > { %p7620_p0 = scmp.ne.s32.totalorder %s227_s17, %s7619_s28  ;;  %p7627_p9 = scmp.lt.s32.totalorder %s227_s17, %s227_s17 }
  0x33   : > { %p7628_p8 = scmp.lt.s32.totalorder %s7626_s29, %s7619_s28 }
  0x34   : > { %p7622_p4 = pnand %p7620_p0, %p7580_p5 }
  0x35   : > { %p7629_p7 = por %p7628_p8, %p7627_p9 }
  0x36   : > { %p7623_p6 = pneg %p7622_p4 }
  0x38   : > { %p7630_p10 = pnand %p7629_p7, %p7623_p6 }
  0x3a   : > { %7633 = shalt.err (!%p7630_p10)
}
  0x3b   : > { %6666 = dma.hbm_to_vmem [thread:$0]  (!%p7776_p3), %s12777_s2, 128, %s227_s17, %s7780_s20  }
  0x3c   : > { %s7634_s21 = scalar_lea.hbm %s12775_s0, 4864  ;;  %p13146_p11 = scmp.ne.s32.totalorder %s13145_s18, 0 }
  0x3d   : > { %p7635_p5 = scmp.ne.s32.totalorder %s12775_s0, %s7634_s21  ;;  %p7641_p12 = scmp.lt.u32.totalorder %s7634_s21, %s12775_s0 }
  0x3e   : > { %p7636_p8 = pneg %p13146_p11 }
  0x40   : > { %p7637_p7 = pnand %p7636_p8, %p7635_p5 }
  0x42   : > { %p7638_p10 = pneg %p7637_p7 }
  0x44   : > { %p7643_p13 = pnand %p7641_p12, %p7638_p10 }
  0x46   : > { %7646 = shalt.err (!%p7643_p13)
}
  0x47   : > { %s7647_s20 = scalar_lea.vmem %s7823_s11, 4864  ;;  %p7655_p0 = scmp.lt.s32.totalorder %s7823_s11, %s7823_s11 }
  0x48   : > { %p7648_p3 = scmp.ne.s32.totalorder %s7823_s11, %s7647_s20  ;;  %p7656_p4 = scmp.lt.s32.totalorder %s7647_s20, %s7647_s20 }
  0x4a   : > { %p7650_p1 = pnand %p7648_p3, %p7636_p8  ;;  %p7657_p6 = por %p7656_p4, %p7655_p0 }
  0x4c   : > { %p7651_p2 = pneg %p7650_p1 }
  0x4e   : > { %p7658_p9 = pnand %p7657_p6, %p7651_p2 }
  0x50   : > { %7661 = shalt.err (!%p7658_p9)
}
  0x51   : > { %6659 = dma.hbm_to_vmem [thread:$0]  (!%p13146_p11), %s12775_s0, 4864, %s7823_s11, [#allocation7], %s7725_s30, %s7725_s30, %s7726_s4  }
  0x52   : > { %p13147_p5 = scmp.ne.s32.totalorder %s13144_s9, 0 }
  0x53   : > { %p13148_p8 = scmp.eq.s32.totalorder (!%p13147_p5), %s7809_s7, 0 }
  0x54   : > { %235 = sbr.rel (%p13147_p5) target bundleno = 1769 (0x6e9), region = 32 }
  0x5b   : > { %7701 = dma.done.wait (%p13148_p8), [#allocation7], 4864   ;;  %p13149_p7 = pmov %p13148_p8 }
  0x5c   : > { %s241_s18 = sand.u32 1, %s7809_s7  }
  0x5d   : > { %7703 = vsyncadd (%p13149_p7), [#allocation7], 4294962432  ;;  %s242_s26 = scalar_lea.sflag [#allocation10], %s241_s18  ;;  %p13150_p10 = pmov %p13149_p7 }
  0x5e   : > { %p13151_p12 = pmov %p13149_p7 }
  0x5f   : > { %7705 = dma.done.wait (%p13150_p10), %s242_s26, 16512  }
  0x60   : > { %7707 = vsyncadd (%p13151_p12), %s242_s26, 4294950784  ;;  %p292_p11 = scmp.eq.s32.totalorder %s7714_s12, 0 }
  0x61   : > { %vm298_vm0 = vcmask (%p292_p11), 7168   ;;  %v7729_v0 = vmov (%p292_p11), -inf   ;;  %v7730_v1 = vmov (%p292_p11), 0.0  }
  0x62   : > { %297 = sbr.rel (!%p292_p11) target bundleno = 136 (0x88), region = 48  ;;  %299 = vst.msk [vmem:[#allocation2] sm:$0xff] (%p292_p11), %vm298_vm0, %v7729_v0  ;;  %300 = vst.msk [vmem:[#allocation2 + $0x8] sm:$0xff] (%p292_p11), %vm298_vm0, %v7729_v0 }
  0x63   : > { %301 = vst.msk [vmem:[#allocation2 + $0x10] sm:$0xff] (%p292_p11), %vm298_vm0, %v7729_v0  ;;  %302 = vst.msk [vmem:[#allocation2 + $0x18] sm:$0xff] (%p292_p11), %vm298_vm0, %v7729_v0 }
  0x64   : > { %303 = vst.msk [vmem:[#allocation2 + $0x20] sm:$0xff] (%p292_p11), %vm298_vm0, %v7729_v0  ;;  %304 = vst.msk [vmem:[#allocation2 + $0x28] sm:$0xff] (%p292_p11), %vm298_vm0, %v7729_v0 }
  0x65   : > { %305 = vst.msk [vmem:[#allocation2 + $0x30] sm:$0xff] (%p292_p11), %vm298_vm0, %v7729_v0  ;;  %306 = vst.msk [vmem:[#allocation2 + $0x38] sm:$0xff] (%p292_p11), %vm298_vm0, %v7729_v0 }
  0x66   : > { %307 = vst.msk [vmem:[#allocation2 + $0x40] sm:$0xff] (%p292_p11), %vm298_vm0, %v7729_v0  ;;  %308 = vst.msk [vmem:[#allocation2 + $0x48] sm:$0xff] (%p292_p11), %vm298_vm0, %v7729_v0 }
  0x67   : > { %309 = vst.msk [vmem:[#allocation2 + $0x50] sm:$0xff] (%p292_p11), %vm298_vm0, %v7729_v0  ;;  %310 = vst.msk [vmem:[#allocation2 + $0x58] sm:$0xff] (%p292_p11), %vm298_vm0, %v7729_v0 }
  0x68   : > { %311 = vst.msk [vmem:[#allocation2 + $0x60] sm:$0xff] (%p292_p11), %vm298_vm0, %v7729_v0  ;;  %312 = vst.msk [vmem:[#allocation2 + $0x68] sm:$0xff] (%p292_p11), %vm298_vm0, %v7729_v0 }
  0x69   : > { %313 = vst.msk [vmem:[#allocation2 + $0x70] sm:$0xff] %vm298_vm0, %v7729_v0  ;;  %314 = vst.msk [vmem:[#allocation2 + $0x78] sm:$0xff] %vm298_vm0, %v7729_v0 }
  0x6a   : > { %315 = vst.msk [vmem:[#allocation2 + $0x80] sm:$0xff] %vm298_vm0, %v7729_v0  ;;  %316 = vst.msk [vmem:[#allocation2 + $0x88] sm:$0xff] %vm298_vm0, %v7729_v0 }
  0x6b   : > { %317 = vst.msk [vmem:[#allocation2 + $0x90] sm:$0xff] %vm298_vm0, %v7729_v0  ;;  %318 = vst.msk [vmem:[#allocation2 + $0x98] sm:$0xff] %vm298_vm0, %v7729_v0 }
  0x6c   : > { %319 = vst.msk [vmem:[#allocation2 + $0xa0] sm:$0xff] %vm298_vm0, %v7729_v0  ;;  %320 = vst.msk [vmem:[#allocation2 + $0xa8] sm:$0xff] %vm298_vm0, %v7729_v0 }
  0x6d   : > { %321 = vst.msk [vmem:[#allocation2 + $0xb0] sm:$0xff] %vm298_vm0, %v7729_v0  ;;  %322 = vst.msk [vmem:[#allocation2 + $0xb8] sm:$0xff] %vm298_vm0, %v7729_v0 }
  0x6e   : > { %323 = vst.msk [vmem:[#allocation2 + $0xc0] sm:$0xff] %vm298_vm0, %v7729_v0  ;;  %324 = vst.msk [vmem:[#allocation2 + $0xc8] sm:$0xff] %vm298_vm0, %v7729_v0 }
  0x6f   : > { %325 = vst.msk [vmem:[#allocation2 + $0xd0] sm:$0xff] %vm298_vm0, %v7729_v0  ;;  %326 = vst.msk [vmem:[#allocation2 + $0xd8] sm:$0xff] %vm298_vm0, %v7729_v0 }
  0x70   : > { %327 = vst.msk [vmem:[#allocation2 + $0xe0] sm:$0xff] %vm298_vm0, %v7729_v0  ;;  %328 = vst.msk [vmem:[#allocation2 + $0xe8] sm:$0xff] %vm298_vm0, %v7729_v0 }
  0x71   : > { %329 = vst.msk [vmem:[#allocation2 + $0xf0] sm:$0xff] %vm298_vm0, %v7729_v0  ;;  %330 = vst.msk [vmem:[#allocation2 + $0xf8] sm:$0xff] %vm298_vm0, %v7729_v0 }
  0x72   : > { %331 = vst.msk [vmem:[#allocation2 + $0x100] sm:$0xff] %vm298_vm0, %v7729_v0  ;;  %332 = vst.msk [vmem:[#allocation2 + $0x108] sm:$0xff] %vm298_vm0, %v7729_v0 }
  0x73   : > { %333 = vst.msk [vmem:[#allocation2 + $0x110] sm:$0xff] %vm298_vm0, %v7729_v0  ;;  %334 = vst.msk [vmem:[#allocation2 + $0x118] sm:$0xff] %vm298_vm0, %v7729_v0 }
  0x74   : > { %335 = vst.msk [vmem:[#allocation2 + $0x120] sm:$0xff] %vm298_vm0, %v7729_v0  ;;  %336 = vst.msk [vmem:[#allocation2 + $0x128] sm:$0xff] %vm298_vm0, %v7729_v0 }
  0x75   : > { %337 = vst.msk [vmem:[#allocation3] sm:$0xff] %vm298_vm0, %v7730_v1  ;;  %338 = vst.msk [vmem:[#allocation3 + $0x8] sm:$0xff] %vm298_vm0, %v7730_v1 }
  0x76   : > { %339 = vst.msk [vmem:[#allocation3 + $0x10] sm:$0xff] %vm298_vm0, %v7730_v1  ;;  %340 = vst.msk [vmem:[#allocation3 + $0x18] sm:$0xff] %vm298_vm0, %v7730_v1 }
  0x77   : > { %341 = vst.msk [vmem:[#allocation3 + $0x20] sm:$0xff] %vm298_vm0, %v7730_v1  ;;  %342 = vst.msk [vmem:[#allocation3 + $0x28] sm:$0xff] %vm298_vm0, %v7730_v1 }
  0x78   : > { %343 = vst.msk [vmem:[#allocation3 + $0x30] sm:$0xff] %vm298_vm0, %v7730_v1  ;;  %344 = vst.msk [vmem:[#allocation3 + $0x38] sm:$0xff] %vm298_vm0, %v7730_v1 }
  0x79   : > { %345 = vst.msk [vmem:[#allocation3 + $0x40] sm:$0xff] %vm298_vm0, %v7730_v1  ;;  %346 = vst.msk [vmem:[#allocation3 + $0x48] sm:$0xff] %vm298_vm0, %v7730_v1 }
  0x7a   : > { %347 = vst.msk [vmem:[#allocation3 + $0x50] sm:$0xff] %vm298_vm0, %v7730_v1  ;;  %348 = vst.msk [vmem:[#allocation3 + $0x58] sm:$0xff] %vm298_vm0, %v7730_v1 }
  0x7b   : > { %349 = vst.msk [vmem:[#allocation3 + $0x60] sm:$0xff] %vm298_vm0, %v7730_v1  ;;  %350 = vst.msk [vmem:[#allocation3 + $0x68] sm:$0xff] %vm298_vm0, %v7730_v1 }
  0x7c   : > { %351 = vst.msk [vmem:[#allocation3 + $0x70] sm:$0xff] %vm298_vm0, %v7730_v1  ;;  %352 = vst.msk [vmem:[#allocation3 + $0x78] sm:$0xff] %vm298_vm0, %v7730_v1 }
  0x7d   : > { %353 = vst.msk [vmem:[#allocation3 + $0x80] sm:$0xff] %vm298_vm0, %v7730_v1  ;;  %354 = vst.msk [vmem:[#allocation3 + $0x88] sm:$0xff] %vm298_vm0, %v7730_v1 }
  0x7e   : > { %355 = vst.msk [vmem:[#allocation3 + $0x90] sm:$0xff] %vm298_vm0, %v7730_v1  ;;  %356 = vst.msk [vmem:[#allocation3 + $0x98] sm:$0xff] %vm298_vm0, %v7730_v1 }
  0x7f   : > { %357 = vst.msk [vmem:[#allocation3 + $0xa0] sm:$0xff] %vm298_vm0, %v7730_v1  ;;  %358 = vst.msk [vmem:[#allocation3 + $0xa8] sm:$0xff] %vm298_vm0, %v7730_v1 }
  0x80   : > { %359 = vst.msk [vmem:[#allocation3 + $0xb0] sm:$0xff] %vm298_vm0, %v7730_v1  ;;  %360 = vst.msk [vmem:[#allocation3 + $0xb8] sm:$0xff] %vm298_vm0, %v7730_v1 }
  0x81   : > { %361 = vst.msk [vmem:[#allocation3 + $0xc0] sm:$0xff] %vm298_vm0, %v7730_v1  ;;  %362 = vst.msk [vmem:[#allocation3 + $0xc8] sm:$0xff] %vm298_vm0, %v7730_v1 }
  0x82   : > { %363 = vst.msk [vmem:[#allocation3 + $0xd0] sm:$0xff] %vm298_vm0, %v7730_v1  ;;  %364 = vst.msk [vmem:[#allocation3 + $0xd8] sm:$0xff] %vm298_vm0, %v7730_v1 }
  0x83   : > { %365 = vst.msk [vmem:[#allocation3 + $0xe0] sm:$0xff] %vm298_vm0, %v7730_v1  ;;  %366 = vst.msk [vmem:[#allocation3 + $0xe8] sm:$0xff] %vm298_vm0, %v7730_v1 }
  0x84   : > { %367 = vst.msk [vmem:[#allocation3 + $0xf0] sm:$0xff] %vm298_vm0, %v7730_v1  ;;  %368 = vst.msk [vmem:[#allocation3 + $0xf8] sm:$0xff] %vm298_vm0, %v7730_v1 }
  0x85   : > { %369 = vst.msk [vmem:[#allocation3 + $0x100] sm:$0xff] %vm298_vm0, %v7730_v1  ;;  %370 = vst.msk [vmem:[#allocation3 + $0x108] sm:$0xff] %vm298_vm0, %v7730_v1 }
  0x86   : > { %371 = vst.msk [vmem:[#allocation3 + $0x110] sm:$0xff] %vm298_vm0, %v7730_v1  ;;  %372 = vst.msk [vmem:[#allocation3 + $0x118] sm:$0xff] %vm298_vm0, %v7730_v1 }
  0x87   : > { %373 = vst.msk [vmem:[#allocation3 + $0x120] sm:$0xff] %vm298_vm0, %v7730_v1  ;;  %374 = vst.msk [vmem:[#allocation3 + $0x128] sm:$0xff] %vm298_vm0, %v7730_v1 }
  0x88 PF: > { %p6071_p13 = scmp.ne.s32.totalorder %s7714_s12, 0 }
  0x8a   : > { %377 = sbr.rel (%p6071_p13) target bundleno = 1405 (0x57d), region = 52 }
  0x91   : > { %v432_v2 = vld [vmem:[#allocation9 + $0x80] sm:$0xff]  ;;  %v433_v3 = vld [vmem:[#allocation9 + $0x88] sm:$0xff]  ;;  %v434_v13 = vld [vmem:[#allocation9 + $0x90] sm:$0xff]  ;;  %vm4459_vm1 = vcmask 7168  }
  0x92   : > { %v416_v4 = vld [vmem:[#allocation9] sm:$0xff]  ;;  %v6512_v5 = vpack.c.bf16 %v433_v3, %v432_v2  ;;  %v417_v6 = vld [vmem:[#allocation9 + $0x8] sm:$0xff]  ;;  %v435_v15 = vld [vmem:[#allocation9 + $0x98] sm:$0xff] }
  0x93   : > { %v464_v7 = vld [vmem:[#allocation9 + $0x180] sm:$0xff]  ;;  %v465_v8 = vld [vmem:[#allocation9 + $0x188] sm:$0xff]  ;;  %v6514_v9 = vpack.c.bf16 %v417_v6, %v416_v4  ;;  %v6516_v16 = vpack.c.bf16 %v435_v15, %v434_v13  ;;  %v466_v17 = vld [vmem:[#allocation9 + $0x190] sm:$0xff] }
  0x94   : > { %v6544_v10 = vpack.c.bf16 %v465_v8, %v464_v7  ;;  %v448_v11 = vld [vmem:[#allocation9 + $0x100] sm:$0xff]  ;;  %v449_v12 = vld [vmem:[#allocation9 + $0x108] sm:$0xff]  ;;  %6513 = vmatprep.subr.bf16.mxu0 %v6512_v5  ;;  %v467_v18 = vld [vmem:[#allocation9 + $0x198] sm:$0xff] }
  0x95   : > { %v6546_v14 = vpack.c.bf16 %v449_v12, %v448_v11  ;;  %6515 = vmatpush3.bf16.xpose.msra.mxu0 %v6514_v9  ;;  %v418_v19 = vld [vmem:[#allocation9 + $0x10] sm:$0xff]  ;;  %v419_v20 = vld [vmem:[#allocation9 + $0x18] sm:$0xff]  ;;  %v6548_v21 = vpack.c.bf16 %v467_v18, %v466_v17  ;;  %v436_v24 = vld [vmem:[#allocation9 + $0xa0] sm:$0xff] }
  0x96   : > { %6545 = vmatprep.subr.bf16.mxu1 %v6544_v10  ;;  %v450_v22 = vld [vmem:[#allocation9 + $0x110] sm:$0xff]  ;;  %6517 = vmatprep.subr.bf16.mxu0 %v6516_v16  ;;  %v451_v23 = vld [vmem:[#allocation9 + $0x118] sm:$0xff]  ;;  %v437_v25 = vld [vmem:[#allocation9 + $0xa8] sm:$0xff]  ;;  %v6518_v28 = vpack.c.bf16 %v419_v20, %v418_v19 }
  0x97   : > { %6547 = vmatpush3.bf16.xpose.msra.mxu1 %v6546_v14  ;;  %v468_v26 = vld [vmem:[#allocation9 + $0x1a0] sm:$0xff]  ;;  %v469_v27 = vld [vmem:[#allocation9 + $0x1a8] sm:$0xff]  ;;  %v6550_v29 = vpack.c.bf16 %v451_v23, %v450_v22  ;;  %v6520_v30 = vpack.c.bf16 %v437_v25, %v436_v24  ;;  %v438_v36 = vld [vmem:[#allocation9 + $0xb0] sm:$0xff] }
  0x98   : > { %6549 = vmatprep.subr.bf16.mxu1 %v6548_v21  ;;  %v6552_v31 = vpack.c.bf16 %v469_v27, %v468_v26  ;;  %v420_v32 = vld [vmem:[#allocation9 + $0x20] sm:$0xff]  ;;  %v421_v33 = vld [vmem:[#allocation9 + $0x28] sm:$0xff]  ;;  %v439_v37 = vld [vmem:[#allocation9 + $0xb8] sm:$0xff] }
  0x99   : > { %v452_v34 = vld [vmem:[#allocation9 + $0x120] sm:$0xff]  ;;  %v453_v35 = vld [vmem:[#allocation9 + $0x128] sm:$0xff]  ;;  %v470_v38 = vld [vmem:[#allocation9 + $0x1b0] sm:$0xff]  ;;  %v6522_v40 = vpack.c.bf16 %v421_v33, %v420_v32  ;;  %v6524_v42 = vpack.c.bf16 %v439_v37, %v438_v36 }
  0x9a   : > { %v471_v39 = vld [vmem:[#allocation9 + $0x1b8] sm:$0xff]  ;;  %v6554_v41 = vpack.c.bf16 %v453_v35, %v452_v34  ;;  %v422_v44 = vld [vmem:[#allocation9 + $0x30] sm:$0xff]  ;;  %v440_v49 = vld [vmem:[#allocation9 + $0xc0] sm:$0xff] }
  0x9b   : > { %v6556_v43 = vpack.c.bf16 %v471_v39, %v470_v38  ;;  %v423_v45 = vld [vmem:[#allocation9 + $0x38] sm:$0xff]  ;;  %v454_v46 = vld [vmem:[#allocation9 + $0x130] sm:$0xff]  ;;  %v441_v50 = vld [vmem:[#allocation9 + $0xc8] sm:$0xff] }
  0x9c   : > { %v7965_v47 = vld [vmem:[#allocation6] sm:$0xff]  ;;  %v455_v48 = vld [vmem:[#allocation9 + $0x138] sm:$0xff]  ;;  %v472_v51 = vld [vmem:[#allocation9 + $0x1c0] sm:$0xff]  ;;  %v6526_v53 = vpack.c.bf16 %v423_v45, %v422_v44  ;;  %v6528_v55 = vpack.c.bf16 %v441_v50, %v440_v49 }
  0x9d   : > { %6519 = vmatpush3.bf16.xpose.msra.mxu0 %v6518_v28  ;;  %6112 = vmatprep.mubr.f32.mxu0 %v7965_v47  ;;  %v473_v52 = vld [vmem:[#allocation9 + $0x1c8] sm:$0xff]  ;;  %v6558_v54 = vpack.c.bf16 %v455_v48, %v454_v46  ;;  %v424_v57 = vld [vmem:[#allocation9 + $0x40] sm:$0xff]  ;;  %v442_v61 = vld [vmem:[#allocation9 + $0xd0] sm:$0xff] }
  0x9e   : > { %6521 = vmatprep.subr.bf16.mxu0 %v6520_v30  ;;  %6220 = vmatprep.mubr.f32.mxu1 %v7965_v47  ;;  %v6560_v56 = vpack.c.bf16 %v473_v52, %v472_v51  ;;  %v425_v58 = vld [vmem:[#allocation9 + $0x48] sm:$0xff]  ;;  %v456_v59 = vld [vmem:[#allocation9 + $0x140] sm:$0xff]  ;;  %v443_v62 = vld [vmem:[#allocation9 + $0xd8] sm:$0xff] }
  0x9f   : > { %6551 = vmatpush3.bf16.xpose.msra.mxu1 %v6550_v29  ;;  %v457_v60 = vld [vmem:[#allocation9 + $0x148] sm:$0xff]  ;;  %v474_v63 = vld [vmem:[#allocation9 + $0x1d0] sm:$0xff]  ;;  %v475_v0 = vld [vmem:[#allocation9 + $0x1d8] sm:$0xff]  ;;  %v6530_v1 = vpack.c.bf16 %v425_v58, %v424_v57  ;;  %v6532_v3 = vpack.c.bf16 %v443_v62, %v442_v61 }
  0xa0   : > { %6553 = vmatprep.subr.bf16.mxu1 %v6552_v31  ;;  %v6562_v2 = vpack.c.bf16 %v457_v60, %v456_v59  ;;  %v6564_v4 = vpack.c.bf16 %v475_v0, %v474_v63  ;;  %v426_v5 = vld [vmem:[#allocation9 + $0x50] sm:$0xff]  ;;  %v427_v6 = vld [vmem:[#allocation9 + $0x58] sm:$0xff]  ;;  %v444_v9 = vld [vmem:[#allocation9 + $0xe0] sm:$0xff] }
  0xa1   : > { %v458_v7 = vld [vmem:[#allocation9 + $0x150] sm:$0xff]  ;;  %v459_v8 = vld [vmem:[#allocation9 + $0x158] sm:$0xff]  ;;  %v445_v10 = vld [vmem:[#allocation9 + $0xe8] sm:$0xff]  ;;  %v6534_v13 = vpack.c.bf16 %v427_v6, %v426_v5 }
  0xa2   : > { %v476_v11 = vld [vmem:[#allocation9 + $0x1e0] sm:$0xff]  ;;  %v477_v12 = vld [vmem:[#allocation9 + $0x1e8] sm:$0xff]  ;;  %v6566_v14 = vpack.c.bf16 %v459_v8, %v458_v7  ;;  %v6536_v15 = vpack.c.bf16 %v445_v10, %v444_v9  ;;  %v446_v21 = vld [vmem:[#allocation9 + $0xf0] sm:$0xff] }
  0xa3   : > { %v6568_v16 = vpack.c.bf16 %v477_v12, %v476_v11  ;;  %v428_v17 = vld [vmem:[#allocation9 + $0x60] sm:$0xff]  ;;  %v429_v18 = vld [vmem:[#allocation9 + $0x68] sm:$0xff]  ;;  %v447_v22 = vld [vmem:[#allocation9 + $0xf8] sm:$0xff] }
  0xa4   : > { %v460_v19 = vld [vmem:[#allocation9 + $0x160] sm:$0xff]  ;;  %v461_v20 = vld [vmem:[#allocation9 + $0x168] sm:$0xff]  ;;  %v478_v23 = vld [vmem:[#allocation9 + $0x1f0] sm:$0xff]  ;;  %v6538_v25 = vpack.c.bf16 %v429_v18, %v428_v17  ;;  %v6540_v27 = vpack.c.bf16 %v447_v22, %v446_v21 }
  0xa5   : > { %6523 = vmatpush3.bf16.xpose.msra.mxu0 %v6522_v40  ;;  %v479_v24 = vld [vmem:[#allocation9 + $0x1f8] sm:$0xff]  ;;  %v6570_v26 = vpack.c.bf16 %v461_v20, %v460_v19  ;;  %v430_v29 = vld [vmem:[#allocation9 + $0x70] sm:$0xff]  ;;  %v496_v33 = vld [vmem:[#allocation9 + $0x280] sm:$0xff] }
  0xa6   : > { %6525 = vmatprep.subr.bf16.mxu0 %v6524_v42  ;;  %v6572_v28 = vpack.c.bf16 %v479_v24, %v478_v23  ;;  %v431_v30 = vld [vmem:[#allocation9 + $0x78] sm:$0xff]  ;;  %v462_v31 = vld [vmem:[#allocation9 + $0x170] sm:$0xff]  ;;  %v497_v34 = vld [vmem:[#allocation9 + $0x288] sm:$0xff] }
  0xa7   : > { %6555 = vmatpush3.bf16.xpose.msra.mxu1 %v6554_v41  ;;  %v463_v32 = vld [vmem:[#allocation9 + $0x178] sm:$0xff]  ;;  %v528_v35 = vld [vmem:[#allocation9 + $0x380] sm:$0xff]  ;;  %v529_v36 = vld [vmem:[#allocation9 + $0x388] sm:$0xff]  ;;  %v6542_v37 = vpack.c.bf16 %v431_v30, %v430_v29  ;;  %v6576_v39 = vpack.c.bf16 %v497_v34, %v496_v33 }
  0xa8   : > { %6557 = vmatprep.subr.bf16.mxu1 %v6556_v43  ;;  %v6574_v38 = vpack.c.bf16 %v463_v32, %v462_v31  ;;  %v6608_v40 = vpack.c.bf16 %v529_v36, %v528_v35  ;;  %v480_v41 = vld [vmem:[#allocation9 + $0x200] sm:$0xff]  ;;  %v481_v42 = vld [vmem:[#allocation9 + $0x208] sm:$0xff]  ;;  %v498_v43 = vld [vmem:[#allocation9 + $0x290] sm:$0xff] }
  0xa9   : > { %v499_v44 = vld [vmem:[#allocation9 + $0x298] sm:$0xff]  ;;  %v512_v45 = vld [vmem:[#allocation9 + $0x300] sm:$0xff]  ;;  %v513_v46 = vld [vmem:[#allocation9 + $0x308] sm:$0xff]  ;;  %v6578_v48 = vpack.c.bf16 %v481_v42, %v480_v41 }
  0xaa   : > { %v530_v49 = vld [vmem:[#allocation9 + $0x390] sm:$0xff]  ;;  %v531_v50 = vld [vmem:[#allocation9 + $0x398] sm:$0xff]  ;;  %v6580_v52 = vpack.c.bf16 %v499_v44, %v498_v43  ;;  %v500_v58 = vld [vmem:[#allocation9 + $0x2a0] sm:$0xff] }
  0xab   : > { %v7969_v51 = vld [vmem:[#allocation6 + $0x8] sm:$0xff]  ;;  %v501_v59 = vld [vmem:[#allocation9 + $0x2a8] sm:$0xff]  ;;  %v514_v60 = vld [vmem:[#allocation9 + $0x310] sm:$0xff] }
  0xac   : > { %v483_v57 = vld [vmem:[#allocation9 + $0x218] sm:$0xff]  ;;  %v532_v63 = vld [vmem:[#allocation9 + $0x3a0] sm:$0xff]  ;;  %v533_v0 = vld [vmem:[#allocation9 + $0x3a8] sm:$0xff] }
  0xad   : > { %6527 = vmatpush3.bf16.xpose.msra.mxu0 %v6526_v53  ;;  %v6610_v53 = vpack.c.bf16 %v513_v46, %v512_v45  ;;  %v515_v61 = vld [vmem:[#allocation9 + $0x318] sm:$0xff]  ;;  %v7986_v5 = vld [vmem:[#allocation6 + $0x20] sm:$0xff]  ;;  %v484_v6 = vld [vmem:[#allocation9 + $0x220] sm:$0xff] }
  0xae   : > { %6529 = vmatprep.subr.bf16.mxu0 %v6528_v55  ;;  %v7974_v55 = vld [vmem:[#allocation6 + $0x10] sm:$0xff]  ;;  %v485_v7 = vld [vmem:[#allocation9 + $0x228] sm:$0xff]  ;;  %v502_v8 = vld [vmem:[#allocation9 + $0x2b0] sm:$0xff] }
  0xaf   : > { %6559 = vmatpush3.bf16.xpose.msra.mxu1 %v6558_v54  ;;  %v6612_v54 = vpack.c.bf16 %v531_v50, %v530_v49  ;;  %v503_v9 = vld [vmem:[#allocation9 + $0x2b8] sm:$0xff]  ;;  %v516_v10 = vld [vmem:[#allocation9 + $0x320] sm:$0xff]  ;;  %v517_v11 = vld [vmem:[#allocation9 + $0x328] sm:$0xff]  ;;  %v6586_v12 = vpack.c.bf16 %v485_v7, %v484_v6 }
  0xb0   : > { %6561 = vmatprep.subr.bf16.mxu1 %v6560_v56  ;;  %v482_v56 = vld [vmem:[#allocation9 + $0x210] sm:$0xff]  ;;  %v6618_v17 = vpack.c.bf16 %v517_v11, %v516_v10  ;;  %v7998_v19 = vld [vmem:[#allocation6 + $0x30] sm:$0xff]  ;;  %v487_v21 = vld [vmem:[#allocation9 + $0x238] sm:$0xff] }
  0xb1   : > { %v6582_v62 = vpack.c.bf16 %v483_v57, %v482_v56  ;;  %v486_v20 = vld [vmem:[#allocation9 + $0x230] sm:$0xff]  ;;  %v504_v22 = vld [vmem:[#allocation9 + $0x2c0] sm:$0xff]  ;;  %v505_v23 = vld [vmem:[#allocation9 + $0x2c8] sm:$0xff] }
  0xb2   : > { %v518_v24 = vld [vmem:[#allocation9 + $0x330] sm:$0xff]  ;;  %v8004_v29 = vld [vmem:[#allocation6 + $0x38] sm:$0xff]  ;;  %v6592_v30 = vpack.c.bf16 %v505_v23, %v504_v22  ;;  %v488_v34 = vld [vmem:[#allocation9 + $0x240] sm:$0xff] }
  0xb3   : > { %v8010_v33 = vld [vmem:[#allocation6 + $0x40] sm:$0xff]  ;;  %v489_v35 = vld [vmem:[#allocation9 + $0x248] sm:$0xff]  ;;  %v539_v42 = vld [vmem:[#allocation9 + $0x3d8] sm:$0xff] }
  0xb4   : > { %v506_v36 = vld [vmem:[#allocation9 + $0x2d0] sm:$0xff]  ;;  %v8016_v43 = vld [vmem:[#allocation6 + $0x48] sm:$0xff]  ;;  %v524_v7 = vld [vmem:[#allocation9 + $0x360] sm:$0xff] }
  0xb5   : > { %6531 = vmatpush3.bf16.xpose.msra.mxu0 %v6530_v1  ;;  %v7980_v1 = vld [vmem:[#allocation6 + $0x18] sm:$0xff]  ;;  %v538_v41 = vld [vmem:[#allocation9 + $0x3d0] sm:$0xff]  ;;  %v491_v50 = vld [vmem:[#allocation9 + $0x258] sm:$0xff] }
  0xb6   : > { %6533 = vmatprep.subr.bf16.mxu0 %v6532_v3  ;;  %v6614_v3 = vpack.c.bf16 %v515_v61, %v514_v60  ;;  %v6628_v46 = vpack.c.bf16 %v539_v42, %v538_v41  ;;  %v490_v49 = vld [vmem:[#allocation9 + $0x250] sm:$0xff]  ;;  %v523_v56 = vld [vmem:[#allocation9 + $0x358] sm:$0xff]  ;;  %v8028_v60 = vld [vmem:[#allocation6 + $0x58] sm:$0xff] }
  0xb7   : > { %6563 = vmatpush3.bf16.xpose.msra.mxu1 %v6562_v2  ;;  %v6584_v2 = vpack.c.bf16 %v501_v59, %v500_v58  ;;  %v6598_v57 = vpack.c.bf16 %v491_v50, %v490_v49  ;;  %v540_v58 = vld [vmem:[#allocation9 + $0x3e0] sm:$0xff]  ;;  %v541_v59 = vld [vmem:[#allocation9 + $0x3e8] sm:$0xff]  ;;  %v511_v6 = vld [vmem:[#allocation9 + $0x2f8] sm:$0xff] }
  0xb8   : > { %6565 = vmatprep.subr.bf16.mxu1 %v6564_v4  ;;  %v6616_v4 = vpack.c.bf16 %v533_v0, %v532_v63  ;;  %v6632_v63 = vpack.c.bf16 %v541_v59, %v540_v58  ;;  %v8034_v0 = vld [vmem:[#allocation6 + $0x60] sm:$0xff]  ;;  %v543_v11 = vld [vmem:[#allocation9 + $0x3f8] sm:$0xff]  ;;  %v8142_v42 = vld [vmem:[#allocation6 + $0xf0] sm:$0xff] }
  0xb9   : > { %v542_v10 = vld [vmem:[#allocation9 + $0x3f0] sm:$0xff]  ;;  %v527_v22 = vld [vmem:[#allocation9 + $0x378] sm:$0xff]  ;;  %v8166_v49 = vld [vmem:[#allocation6 + $0x110] sm:$0xff] }
  0xba   : > { %v8136_v41 = vld [vmem:[#allocation6 + $0xe8] sm:$0xff]  ;;  %v8172_v50 = vld [vmem:[#allocation6 + $0x118] sm:$0xff] }
  0xbd   : > { %6535 = vmatpush3.bf16.xpose.msra.mxu0 %v6534_v13  ;;  %v534_v13 = vld [vmem:[#allocation9 + $0x3b0] sm:$0xff] }
  0xbe   : > { %6537 = vmatprep.subr.bf16.mxu0 %v6536_v15  ;;  %v7992_v15 = vld [vmem:[#allocation6 + $0x28] sm:$0xff] }
  0xbf   : > { %6567 = vmatpush3.bf16.xpose.msra.mxu1 %v6566_v14  ;;  %v535_v14 = vld [vmem:[#allocation9 + $0x3b8] sm:$0xff] }
  0xc0   : > { %6569 = vmatprep.subr.bf16.mxu1 %v6568_v16  ;;  %v6588_v16 = vpack.c.bf16 %v503_v9, %v502_v8  ;;  %v6620_v18 = vpack.c.bf16 %v535_v14, %v534_v13  ;;  %v525_v8 = vld [vmem:[#allocation9 + $0x368] sm:$0xff] }
  0xc1   : > { %v6634_v14 = vpack.c.bf16 %v525_v8, %v524_v7 }
  0xc5   : > { %6539 = vmatpush3.bf16.xpose.msra.mxu0 %v6538_v25  ;;  %v519_v25 = vld [vmem:[#allocation9 + $0x338] sm:$0xff] }
  0xc6   : > { %6541 = vmatprep.subr.bf16.mxu0 %v6540_v27  ;;  %v536_v27 = vld [vmem:[#allocation9 + $0x3c0] sm:$0xff]  ;;  %v6622_v31 = vpack.c.bf16 %v519_v25, %v518_v24  ;;  %v8052_v24 = vld [vmem:[#allocation6 + $0x78] sm:$0xff] }
  0xc7   : > { %6571 = vmatpush3.bf16.xpose.msra.mxu1 %v6570_v26  ;;  %v6590_v26 = vpack.c.bf16 %v487_v21, %v486_v20  ;;  %v495_v20 = vld [vmem:[#allocation9 + $0x278] sm:$0xff]  ;;  %v526_v21 = vld [vmem:[#allocation9 + $0x370] sm:$0xff] }
  0xc8   : > { %6573 = vmatprep.subr.bf16.mxu1 %v6572_v28  ;;  %v537_v28 = vld [vmem:[#allocation9 + $0x3c8] sm:$0xff]  ;;  %v6638_v25 = vpack.c.bf16 %v527_v22, %v526_v21 }
  0xc9   : > { %v6624_v32 = vpack.c.bf16 %v537_v28, %v536_v27  ;;  %v8064_v27 = vld [vmem:[#allocation6 + $0x88] sm:$0xff]  ;;  %v8070_v28 = vld [vmem:[#allocation6 + $0x90] sm:$0xff] }
  0xcd   : > { %6543 = vmatpush3.bf16.xpose.msra.mxu0 %v6542_v37  ;;  %v507_v37 = vld [vmem:[#allocation9 + $0x2d8] sm:$0xff] }
  0xce   : > { %6577 = vmatprep.subr.bf16.mxu0 %v6576_v39  ;;  %v521_v39 = vld [vmem:[#allocation9 + $0x348] sm:$0xff]  ;;  %v6596_v44 = vpack.c.bf16 %v507_v37, %v506_v36  ;;  %v8106_v36 = vld [vmem:[#allocation6 + $0xc0] sm:$0xff]  ;;  %v8112_v37 = vld [vmem:[#allocation6 + $0xc8] sm:$0xff] }
  0xcf   : > { %6575 = vmatpush3.bf16.xpose.msra.mxu1 %v6574_v38  ;;  %v520_v38 = vld [vmem:[#allocation9 + $0x340] sm:$0xff] }
  0xd0   : > { %6609 = vmatprep.subr.bf16.mxu1 %v6608_v40  ;;  %v6594_v40 = vpack.c.bf16 %v489_v35, %v488_v34  ;;  %v6626_v45 = vpack.c.bf16 %v521_v39, %v520_v38  ;;  %v8094_v34 = vld [vmem:[#allocation6 + $0xb0] sm:$0xff]  ;;  %v8100_v35 = vld [vmem:[#allocation6 + $0xb8] sm:$0xff] }
  0xd1   : > { %v8118_v38 = vld [vmem:[#allocation6 + $0xd0] sm:$0xff]  ;;  %v8124_v39 = vld [vmem:[#allocation6 + $0xd8] sm:$0xff] }
  0xd4   : > { %6113 = vmatmul.mubr.f32.vlgmr.msra.gmra.mrb[0].mxu0 %v7965_v47 }
  0xd5   : > { %6579 = vmatpush3.bf16.xpose.msra.mxu0 %v6578_v48  ;;  %6114 = vmatprep.mubr.f32.mxu0 %v7969_v51  ;;  %v8022_v48 = vld [vmem:[#allocation6 + $0x50] sm:$0xff] }
  0xd6   : > { %6221 = vmatmul.mubr.f32.vlgmr.msra.gmra.mrb[0].mxu1 %v7965_v47  ;;  %6581 = vmatprep.subr.bf16.mxu0 %v6580_v52  ;;  %v508_v52 = vld [vmem:[#allocation9 + $0x2e0] sm:$0xff] }
  0xd7   : > { %6611 = vmatpush3.bf16.xpose.msra.mxu1 %v6610_v53  ;;  %6222 = vmatprep.mubr.f32.mxu1 %v7969_v51  ;;  %v509_v53 = vld [vmem:[#allocation9 + $0x2e8] sm:$0xff] }
  0xd8   : > { %6115 = vmatmul.mubr.f32.gmra.mrb[2].mxu0 %v7969_v51  ;;  %6613 = vmatprep.subr.bf16.mxu1 %v6612_v54  ;;  %v522_v54 = vld [vmem:[#allocation9 + $0x350] sm:$0xff]  ;;  %v6600_v61 = vpack.c.bf16 %v509_v53, %v508_v52  ;;  %v8184_v53 = vld [vmem:[#allocation6 + $0x128] sm:$0xff] }
  0xd9   : > { %6116 = vmatprep.mubr.f32.mxu0 %v7974_v55  ;;  %v8178_v52 = vld [vmem:[#allocation6 + $0x120] sm:$0xff] }
  0xda   : > { %6223 = vmatmul.mubr.f32.gmra.mrb[2].mxu1 %v7969_v51 }
  0xdb   : > { %6224 = vmatprep.mubr.f32.mxu1 %v7974_v55 }
  0xdc   : > { %6117 = vmatmul.mubr.f32.gmra.mrb[4].mxu0 %v7974_v55 }
  0xdd   : > { %6118 = vmatprep.mubr.f32.mxu0 %v7980_v1  ;;  %6583 = vmatpush3.bf16.xpose.msra.mxu0 %v6582_v62  ;;  %v6630_v62 = vpack.c.bf16 %v523_v56, %v522_v54 }
  0xde   : > { %6225 = vmatmul.mubr.f32.gmra.mrb[4].mxu1 %v7974_v55  ;;  %6585 = vmatprep.subr.bf16.mxu0 %v6584_v2  ;;  %v492_v2 = vld [vmem:[#allocation9 + $0x260] sm:$0xff] }
  0xdf   : > { %6226 = vmatprep.mubr.f32.mxu1 %v7980_v1  ;;  %6615 = vmatpush3.bf16.xpose.msra.mxu1 %v6614_v3  ;;  %v493_v3 = vld [vmem:[#allocation9 + $0x268] sm:$0xff] }
  0xe0   : > { %6119 = vmatmul.mubr.f32.gmra.mrb[6].mxu0 %v7980_v1  ;;  %6617 = vmatprep.subr.bf16.mxu1 %v6616_v4  ;;  %v510_v4 = vld [vmem:[#allocation9 + $0x2f0] sm:$0xff]  ;;  %v6602_v9 = vpack.c.bf16 %v493_v3, %v492_v2 }
  0xe1   : > { %6120 = vmatprep.mubr.f32.mxu0 %v7986_v5  ;;  %v6604_v13 = vpack.c.bf16 %v511_v6, %v510_v4 }
  0xe2   : > { %6227 = vmatmul.mubr.f32.gmra.mrb[6].mxu1 %v7980_v1 }
  0xe3   : > { %6228 = vmatprep.mubr.f32.mxu1 %v7986_v5 }
  0xe4   : > { %6121 = vmatmul.mubr.f32.gmra.mrb[8].mxu0 %v7986_v5 }
  0xe5   : > { %6122 = vmatprep.mubr.f32.mxu0 %v7992_v15  ;;  %6587 = vmatpush3.bf16.xpose.msra.mxu0 %v6586_v12  ;;  %v8040_v12 = vld [vmem:[#allocation6 + $0x68] sm:$0xff] }
  0xe6   : > { %6229 = vmatmul.mubr.f32.gmra.mrb[8].mxu1 %v7986_v5  ;;  %6589 = vmatprep.subr.bf16.mxu0 %v6588_v16  ;;  %v6636_v16 = vpack.c.bf16 %v543_v11, %v542_v10 }
  0xe7   : > { %6230 = vmatprep.mubr.f32.mxu1 %v7992_v15  ;;  %6619 = vmatpush3.bf16.xpose.msra.mxu1 %v6618_v17  ;;  %v8046_v17 = vld [vmem:[#allocation6 + $0x70] sm:$0xff] }
  0xe8   : > { %6123 = vmatmul.mubr.f32.gmra.mrb[10].mxu0 %v7992_v15  ;;  %6621 = vmatprep.subr.bf16.mxu1 %v6620_v18  ;;  %v494_v18 = vld [vmem:[#allocation9 + $0x270] sm:$0xff] }
  0xe9   : > { %6124 = vmatprep.mubr.f32.mxu0 %v7998_v19  ;;  %v6606_v23 = vpack.c.bf16 %v495_v20, %v494_v18 }
  0xea   : > { %6231 = vmatmul.mubr.f32.gmra.mrb[10].mxu1 %v7992_v15 }
  0xeb   : > { %6232 = vmatprep.mubr.f32.mxu1 %v7998_v19 }
  0xec   : > { %6125 = vmatmul.mubr.f32.gmra.mrb[12].mxu0 %v7998_v19 }
  0xed   : > { %6126 = vmatprep.mubr.f32.mxu0 %v8004_v29  ;;  %6591 = vmatpush3.bf16.xpose.msra.mxu0 %v6590_v26  ;;  %v8058_v26 = vld [vmem:[#allocation6 + $0x80] sm:$0xff] }
  0xee   : > { %6233 = vmatmul.mubr.f32.gmra.mrb[12].mxu1 %v7998_v19  ;;  %6593 = vmatprep.subr.bf16.mxu0 %v6592_v30  ;;  %v8076_v30 = vld [vmem:[#allocation6 + $0x98] sm:$0xff] }
  0xef   : > { %6234 = vmatprep.mubr.f32.mxu1 %v8004_v29  ;;  %6623 = vmatpush3.bf16.xpose.msra.mxu1 %v6622_v31  ;;  %v8082_v31 = vld [vmem:[#allocation6 + $0xa0] sm:$0xff] }
  0xf0   : > { %6127 = vmatmul.mubr.f32.gmra.mrb[14].mxu0 %v8004_v29  ;;  %6625 = vmatprep.subr.bf16.mxu1 %v6624_v32  ;;  %v8088_v32 = vld [vmem:[#allocation6 + $0xa8] sm:$0xff] }
  0xf1   : > { %6128 = vmatprep.mubr.f32.mxu0 %v8010_v33 }
  0xf2   : > { %6235 = vmatmul.mubr.f32.gmra.mrb[14].mxu1 %v8004_v29 }
  0xf3   : > { %6236 = vmatprep.mubr.f32.mxu1 %v8010_v33 }
  0xf4   : > { %6129 = vmatmul.mubr.f32.gmra.mrb[16].mxu0 %v8010_v33 }
  0xf5   : > { %6130 = vmatprep.mubr.f32.mxu0 %v8016_v43  ;;  %6595 = vmatpush3.bf16.xpose.msra.mxu0 %v6594_v40  ;;  %v8130_v40 = vld [vmem:[#allocation6 + $0xe0] sm:$0xff] }
  0xf6   : > { %6237 = vmatmul.mubr.f32.gmra.mrb[16].mxu1 %v8010_v33  ;;  %6597 = vmatprep.subr.bf16.mxu0 %v6596_v44  ;;  %v8148_v44 = vld [vmem:[#allocation6 + $0xf8] sm:$0xff] }
  0xf7   : > { %6238 = vmatprep.mubr.f32.mxu1 %v8016_v43  ;;  %6627 = vmatpush3.bf16.xpose.msra.mxu1 %v6626_v45  ;;  %v8154_v45 = vld [vmem:[#allocation6 + $0x100] sm:$0xff] }
  0xf8   : > { %6131 = vmatmul.mubr.f32.gmra.mrb[18].mxu0 %v8016_v43  ;;  %6629 = vmatprep.subr.bf16.mxu1 %v6628_v46  ;;  %v8160_v46 = vld [vmem:[#allocation6 + $0x108] sm:$0xff] }
  0xf9   : > { %6132 = vmatprep.mubr.f32.mxu0 %v8022_v48 }
  0xfa   : > { %6239 = vmatmul.mubr.f32.gmra.mrb[18].mxu1 %v8016_v43 }
  0xfb   : > { %6240 = vmatprep.mubr.f32.mxu1 %v8022_v48 }
  0xfc   : > { %6133 = vmatmul.mubr.f32.gmra.mrb[20].mxu0 %v8022_v48 }
  0xfd   : > { %6134 = vmatprep.mubr.f32.mxu0 %v8028_v60  ;;  %6599 = vmatpush3.bf16.xpose.msra.mxu0 %v6598_v57 }
  0xfe   : > { %6241 = vmatmul.mubr.f32.gmra.mrb[20].mxu1 %v8022_v48  ;;  %6601 = vmatprep.subr.bf16.mxu0 %v6600_v61 }
  0xff   : > { %6242 = vmatprep.mubr.f32.mxu1 %v8028_v60  ;;  %6631 = vmatpush3.bf16.xpose.msra.mxu1 %v6630_v62 }
 0x100   : > { %6135 = vmatmul.mubr.f32.gmra.mrb[22].mxu0 %v8028_v60  ;;  %6633 = vmatprep.subr.bf16.mxu1 %v6632_v63 }
 0x101   : > { %6136 = vmatprep.mubr.f32.mxu0 %v8034_v0 }
 0x102   : > { %6243 = vmatmul.mubr.f32.gmra.mrb[22].mxu1 %v8028_v60 }
 0x103   : > { %6244 = vmatprep.mubr.f32.mxu1 %v8034_v0 }
 0x104   : > { %6137 = vmatmul.mubr.f32.gmra.mrb[24].mxu0 %v8034_v0 }
 0x105   : > { %6138 = vmatprep.mubr.f32.mxu0 %v8040_v12  ;;  %6603 = vmatpush3.bf16.xpose.msra.mxu0 %v6602_v9 }
 0x106   : > { %6245 = vmatmul.mubr.f32.gmra.mrb[24].mxu1 %v8034_v0  ;;  %6605 = vmatprep.subr.bf16.mxu0 %v6604_v13 }
 0x107   : > { %6246 = vmatprep.mubr.f32.mxu1 %v8040_v12  ;;  %6635 = vmatpush3.bf16.xpose.msra.mxu1 %v6634_v14 }
 0x108   : > { %6139 = vmatmul.mubr.f32.gmra.mrb[26].mxu0 %v8040_v12  ;;  %6637 = vmatprep.subr.bf16.mxu1 %v6636_v16 }
 0x109   : > { %6140 = vmatprep.mubr.f32.mxu0 %v8046_v17 }
 0x10a   : > { %6247 = vmatmul.mubr.f32.gmra.mrb[26].mxu1 %v8040_v12 }
 0x10b   : > { %6248 = vmatprep.mubr.f32.mxu1 %v8046_v17 }
 0x10c   : > { %6141 = vmatmul.mubr.f32.gmra.mrb[28].mxu0 %v8046_v17 }
 0x10d   : > { %6142 = vmatprep.mubr.f32.mxu0 %v8052_v24  ;;  %6607 = vmatpush3.bf16.xpose.msra.mxu0 %v6606_v23 }
 0x10e   : > { %6249 = vmatmul.mubr.f32.gmra.mrb[28].mxu1 %v8046_v17 }
 0x10f   : > { %6250 = vmatprep.mubr.f32.mxu1 %v8052_v24  ;;  %6639 = vmatpush3.bf16.xpose.msra.mxu1 %v6638_v25 }
 0x110   : > { %6143 = vmatmul.mubr.f32.gmra.mrb[30].mxu0 %v8052_v24 }
 0x111   : > { %6144 = vmatprep.mubr.f32.mxu0 %v8058_v26 }
 0x112   : > { %6251 = vmatmul.mubr.f32.gmra.mrb[30].mxu1 %v8052_v24 }
 0x113   : > { %6252 = vmatprep.mubr.f32.mxu1 %v8058_v26 }
 0x114   : > { %6145 = vmatmul.mubr.f32.gmra.mrb[32].mxu0 %v8058_v26 }
 0x115   : > { %6146 = vmatprep.mubr.f32.mxu0 %v8064_v27 }
 0x116   : > { %6253 = vmatmul.mubr.f32.gmra.mrb[32].mxu1 %v8058_v26 }
 0x117   : > { %6254 = vmatprep.mubr.f32.mxu1 %v8064_v27 }
 0x118   : > { %6147 = vmatmul.mubr.f32.gmra.mrb[34].mxu0 %v8064_v27 }
 0x119   : > { %6148 = vmatprep.mubr.f32.mxu0 %v8070_v28 }
 0x11a   : > { %6255 = vmatmul.mubr.f32.gmra.mrb[34].mxu1 %v8064_v27 }
 0x11b   : > { %6256 = vmatprep.mubr.f32.mxu1 %v8070_v28 }
 0x11c   : > { %6149 = vmatmul.mubr.f32.gmra.mrb[36].mxu0 %v8070_v28 }
 0x11d   : > { %6150 = vmatprep.mubr.f32.mxu0 %v8076_v30 }
 0x11e   : > { %6257 = vmatmul.mubr.f32.gmra.mrb[36].mxu1 %v8070_v28 }
 0x11f   : > { %6258 = vmatprep.mubr.f32.mxu1 %v8076_v30 }
 0x120   : > { %6151 = vmatmul.mubr.f32.gmra.mrb[38].mxu0 %v8076_v30 }
 0x121   : > { %6152 = vmatprep.mubr.f32.mxu0 %v8082_v31 }
 0x122   : > { %6259 = vmatmul.mubr.f32.gmra.mrb[38].mxu1 %v8076_v30 }
 0x123   : > { %6260 = vmatprep.mubr.f32.mxu1 %v8082_v31 }
 0x124   : > { %6153 = vmatmul.mubr.f32.gmra.mrb[40].mxu0 %v8082_v31 }
 0x125   : > { %6154 = vmatprep.mubr.f32.mxu0 %v8088_v32 }
 0x126   : > { %6261 = vmatmul.mubr.f32.gmra.mrb[40].mxu1 %v8082_v31 }
 0x127   : > { %6262 = vmatprep.mubr.f32.mxu1 %v8088_v32 }
 0x128   : > { %6155 = vmatmul.mubr.f32.gmra.mrb[42].mxu0 %v8088_v32 }
 0x129   : > { %6156 = vmatprep.mubr.f32.mxu0 %v8094_v34 }
 0x12a   : > { %6263 = vmatmul.mubr.f32.gmra.mrb[42].mxu1 %v8088_v32 }
 0x12b   : > { %6264 = vmatprep.mubr.f32.mxu1 %v8094_v34 }
 0x12c   : > { %6157 = vmatmul.mubr.f32.gmra.mrb[44].mxu0 %v8094_v34 }
 0x12d   : > { %6158 = vmatprep.mubr.f32.mxu0 %v8100_v35 }
 0x12e   : > { %6265 = vmatmul.mubr.f32.gmra.mrb[44].mxu1 %v8094_v34 }
 0x12f   : > { %6266 = vmatprep.mubr.f32.mxu1 %v8100_v35 }
 0x130   : > { %6159 = vmatmul.mubr.f32.gmra.mrb[46].mxu0 %v8100_v35 }
 0x131   : > { %6160 = vmatprep.mubr.f32.mxu0 %v8106_v36 }
 0x132   : > { %6267 = vmatmul.mubr.f32.gmra.mrb[46].mxu1 %v8100_v35 }
 0x133   : > { %6268 = vmatprep.mubr.f32.mxu1 %v8106_v36 }
 0x134   : > { %6161 = vmatmul.mubr.f32.gmra.mrb[48].mxu0 %v8106_v36 }
 0x135   : > { %6162 = vmatprep.mubr.f32.mxu0 %v8112_v37 }
 0x136   : > { %6269 = vmatmul.mubr.f32.gmra.mrb[48].mxu1 %v8106_v36 }
 0x137   : > { %6270 = vmatprep.mubr.f32.mxu1 %v8112_v37 }
 0x138   : > { %6163 = vmatmul.mubr.f32.gmra.mrb[50].mxu0 %v8112_v37 }
 0x139   : > { %6164 = vmatprep.mubr.f32.mxu0 %v8118_v38 }
 0x13a   : > { %6271 = vmatmul.mubr.f32.gmra.mrb[50].mxu1 %v8112_v37 }
 0x13b   : > { %6272 = vmatprep.mubr.f32.mxu1 %v8118_v38 }
 0x13c   : > { %6165 = vmatmul.mubr.f32.gmra.mrb[52].mxu0 %v8118_v38 }
 0x13d   : > { %6166 = vmatprep.mubr.f32.mxu0 %v8124_v39 }
 0x13e   : > { %6273 = vmatmul.mubr.f32.gmra.mrb[52].mxu1 %v8118_v38 }
 0x13f   : > { %6274 = vmatprep.mubr.f32.mxu1 %v8124_v39 }
 0x140   : > { %6167 = vmatmul.mubr.f32.gmra.mrb[54].mxu0 %v8124_v39 }
 0x141   : > { %6168 = vmatprep.mubr.f32.mxu0 %v8130_v40 }
 0x142   : > { %6275 = vmatmul.mubr.f32.gmra.mrb[54].mxu1 %v8124_v39 }
 0x143   : > { %6276 = vmatprep.mubr.f32.mxu1 %v8130_v40 }
 0x144   : > { %6169 = vmatmul.mubr.f32.gmra.mrb[56].mxu0 %v8130_v40 }
 0x145   : > { %6170 = vmatprep.mubr.f32.mxu0 %v8136_v41 }
 0x146   : > { %6277 = vmatmul.mubr.f32.gmra.mrb[56].mxu1 %v8130_v40 }
 0x147   : > { %6278 = vmatprep.mubr.f32.mxu1 %v8136_v41 }
 0x148   : > { %6171 = vmatmul.mubr.f32.gmra.mrb[58].mxu0 %v8136_v41 }
 0x149   : > { %6172 = vmatprep.mubr.f32.mxu0 %v8142_v42 }
 0x14a   : > { %6279 = vmatmul.mubr.f32.gmra.mrb[58].mxu1 %v8136_v41 }
 0x14b   : > { %6280 = vmatprep.mubr.f32.mxu1 %v8142_v42 }
 0x14c   : > { %6173 = vmatmul.mubr.f32.gmra.mrb[60].mxu0 %v8142_v42 }
 0x14d   : > { %6174 = vmatprep.mubr.f32.mxu0 %v8148_v44 }
 0x14e   : > { %6281 = vmatmul.mubr.f32.gmra.mrb[60].mxu1 %v8142_v42 }
 0x14f   : > { %6282 = vmatprep.mubr.f32.mxu1 %v8148_v44 }
 0x150   : > { %6175 = vmatmul.mubr.f32.gmra.mrb[62].mxu0 %v8148_v44 }
 0x151   : > { %6176 = vmatprep.mubr.f32.mxu0 %v8154_v45 }
 0x152   : > { %6283 = vmatmul.mubr.f32.gmra.mrb[62].mxu1 %v8148_v44 }
 0x153   : > { %6284 = vmatprep.mubr.f32.mxu1 %v8154_v45 }
 0x154   : > { %6177 = vmatmul.mubr.f32.gmra.mrb[64].mxu0 %v8154_v45 }
 0x155   : > { %6178 = vmatprep.mubr.f32.mxu0 %v8160_v46 }
 0x156   : > { %6285 = vmatmul.mubr.f32.gmra.mrb[64].mxu1 %v8154_v45 }
 0x157   : > { %6286 = vmatprep.mubr.f32.mxu1 %v8160_v46 }
 0x158   : > { %6179 = vmatmul.mubr.f32.gmra.mrb[66].mxu0 %v8160_v46 }
 0x159   : > { %6180 = vmatprep.mubr.f32.mxu0 %v8166_v49 }
 0x15a   : > { %6287 = vmatmul.mubr.f32.gmra.mrb[66].mxu1 %v8160_v46 }
 0x15b   : > { %6288 = vmatprep.mubr.f32.mxu1 %v8166_v49 }
 0x15c   : > { %6181 = vmatmul.mubr.f32.gmra.mrb[68].mxu0 %v8166_v49 }
 0x15d   : > { %6182 = vmatprep.mubr.f32.mxu0 %v8172_v50 }
 0x15e   : > { %6289 = vmatmul.mubr.f32.gmra.mrb[68].mxu1 %v8166_v49 }
 0x15f   : > { %6290 = vmatprep.mubr.f32.mxu1 %v8172_v50 }
 0x160   : > { %6183 = vmatmul.mubr.f32.gmra.mrb[70].mxu0 %v8172_v50 }
 0x161   : > { %6184 = vmatprep.mubr.f32.mxu0 %v8178_v52 }
 0x162   : > { %6291 = vmatmul.mubr.f32.gmra.mrb[70].mxu1 %v8172_v50 }
 0x163   : > { %6292 = vmatprep.mubr.f32.mxu1 %v8178_v52 }
 0x164   : > { %6185 = vmatmul.mubr.f32.gmra.mrb[72].mxu0 %v8178_v52 }
 0x165   : > { %6186 = vmatprep.mubr.f32.mxu0 %v8184_v53 }
 0x166   : > { %6293 = vmatmul.mubr.f32.gmra.mrb[72].mxu1 %v8178_v52 }
 0x167   : > { %6294 = vmatprep.mubr.f32.mxu1 %v8184_v53 }
 0x168   : > { %6187 = vmatmul.mubr.f32.gmra.mrb[74].mxu0 %v8184_v53 }
 0x169   : > { %6328 = vmatprep.mubr.f32.mxu0 %v7965_v47 }
 0x16a   : > { %6295 = vmatmul.mubr.f32.gmra.mrb[74].mxu1 %v8184_v53 }
 0x16b   : > { %6436 = vmatprep.mubr.f32.mxu1 %v7965_v47 }
 0x16c   : > { %6329 = vmatmul.mubr.f32.vlgmr.msra.gmra.mrb[76].mxu0 %v7965_v47 }
 0x16d   : > { %6330 = vmatprep.mubr.f32.mxu0 %v7969_v51 }
 0x16e   : > { %6437 = vmatmul.mubr.f32.vlgmr.msra.gmra.mrb[76].mxu1 %v7965_v47 }
 0x16f   : > { %6438 = vmatprep.mubr.f32.mxu1 %v7969_v51 }
 0x170   : > { %6331 = vmatmul.mubr.f32.gmra.mrb[78].mxu0 %v7969_v51 }
 0x171   : > { %6332 = vmatprep.mubr.f32.mxu0 %v7974_v55 }
 0x172   : > { %6439 = vmatmul.mubr.f32.gmra.mrb[78].mxu1 %v7969_v51 }
 0x173   : > { %6440 = vmatprep.mubr.f32.mxu1 %v7974_v55 }
 0x174   : > { %6333 = vmatmul.mubr.f32.gmra.mrb[80].mxu0 %v7974_v55 }
 0x175   : > { %6334 = vmatprep.mubr.f32.mxu0 %v7980_v1 }
 0x176   : > { %6441 = vmatmul.mubr.f32.gmra.mrb[80].mxu1 %v7974_v55 }
 0x177   : > { %6442 = vmatprep.mubr.f32.mxu1 %v7980_v1 }
 0x178   : > { %6335 = vmatmul.mubr.f32.gmra.mrb[82].mxu0 %v7980_v1 }
 0x179   : > { %6336 = vmatprep.mubr.f32.mxu0 %v7986_v5 }
 0x17a   : > { %6443 = vmatmul.mubr.f32.gmra.mrb[82].mxu1 %v7980_v1 }
 0x17b   : > { %6444 = vmatprep.mubr.f32.mxu1 %v7986_v5 }
 0x17c   : > { %6337 = vmatmul.mubr.f32.gmra.mrb[84].mxu0 %v7986_v5 }
 0x17d   : > { %6338 = vmatprep.mubr.f32.mxu0 %v7992_v15 }
 0x17e   : > { %6445 = vmatmul.mubr.f32.gmra.mrb[84].mxu1 %v7986_v5 }
 0x17f   : > { %6446 = vmatprep.mubr.f32.mxu1 %v7992_v15 }
 0x180   : > { %6339 = vmatmul.mubr.f32.gmra.mrb[86].mxu0 %v7992_v15 }
 0x181   : > { %6340 = vmatprep.mubr.f32.mxu0 %v7998_v19 }
 0x182   : > { %6447 = vmatmul.mubr.f32.gmra.mrb[86].mxu1 %v7992_v15 }
 0x183   : > { %6448 = vmatprep.mubr.f32.mxu1 %v7998_v19 }
 0x184   : > { %6341 = vmatmul.mubr.f32.gmra.mrb[88].mxu0 %v7998_v19 }
 0x185   : > { %6342 = vmatprep.mubr.f32.mxu0 %v8004_v29 }
 0x186   : > { %6449 = vmatmul.mubr.f32.gmra.mrb[88].mxu1 %v7998_v19 }
 0x187   : > { %6450 = vmatprep.mubr.f32.mxu1 %v8004_v29 }
 0x188   : > { %6343 = vmatmul.mubr.f32.gmra.mrb[90].mxu0 %v8004_v29 }
 0x189   : > { %6344 = vmatprep.mubr.f32.mxu0 %v8010_v33 }
 0x18a   : > { %6451 = vmatmul.mubr.f32.gmra.mrb[90].mxu1 %v8004_v29 }
 0x18b   : > { %6452 = vmatprep.mubr.f32.mxu1 %v8010_v33 }
 0x18c   : > { %6345 = vmatmul.mubr.f32.gmra.mrb[92].mxu0 %v8010_v33 }
 0x18d   : > { %6346 = vmatprep.mubr.f32.mxu0 %v8016_v43 }
 0x18e   : > { %6453 = vmatmul.mubr.f32.gmra.mrb[92].mxu1 %v8010_v33 }
 0x18f   : > { %6454 = vmatprep.mubr.f32.mxu1 %v8016_v43 }
 0x190   : > { %6347 = vmatmul.mubr.f32.gmra.mrb[94].mxu0 %v8016_v43 }
 0x191   : > { %6348 = vmatprep.mubr.f32.mxu0 %v8022_v48 }
 0x192   : > { %6455 = vmatmul.mubr.f32.gmra.mrb[94].mxu1 %v8016_v43 }
 0x193   : > { %6456 = vmatprep.mubr.f32.mxu1 %v8022_v48 }
 0x194   : > { %6349 = vmatmul.mubr.f32.gmra.mrb[96].mxu0 %v8022_v48 }
 0x195   : > { %6350 = vmatprep.mubr.f32.mxu0 %v8028_v60 }
 0x196   : > { %6457 = vmatmul.mubr.f32.gmra.mrb[96].mxu1 %v8022_v48 }
 0x197   : > { %6458 = vmatprep.mubr.f32.mxu1 %v8028_v60 }
 0x198   : > { %6351 = vmatmul.mubr.f32.gmra.mrb[98].mxu0 %v8028_v60 }
 0x199   : > { %6352 = vmatprep.mubr.f32.mxu0 %v8034_v0 }
 0x19a   : > { %6459 = vmatmul.mubr.f32.gmra.mrb[98].mxu1 %v8028_v60 }
 0x19b   : > { %6460 = vmatprep.mubr.f32.mxu1 %v8034_v0 }
 0x19c   : > { %6353 = vmatmul.mubr.f32.gmra.mrb[100].mxu0 %v8034_v0 }
 0x19d   : > { %6354 = vmatprep.mubr.f32.mxu0 %v8040_v12 }
 0x19e   : > { %6461 = vmatmul.mubr.f32.gmra.mrb[100].mxu1 %v8034_v0 }
 0x19f   : > { %6462 = vmatprep.mubr.f32.mxu1 %v8040_v12 }
 0x1a0   : > { %6355 = vmatmul.mubr.f32.gmra.mrb[102].mxu0 %v8040_v12 }
 0x1a1   : > { %6356 = vmatprep.mubr.f32.mxu0 %v8046_v17 }
 0x1a2   : > { %6463 = vmatmul.mubr.f32.gmra.mrb[102].mxu1 %v8040_v12 }
 0x1a3   : > { %6464 = vmatprep.mubr.f32.mxu1 %v8046_v17 }
 0x1a4   : > { %6357 = vmatmul.mubr.f32.gmra.mrb[104].mxu0 %v8046_v17 }
 0x1a5   : > { %6358 = vmatprep.mubr.f32.mxu0 %v8052_v24 }
 0x1a6   : > { %6465 = vmatmul.mubr.f32.gmra.mrb[104].mxu1 %v8046_v17 }
 0x1a7   : > { %v8254_v47 = vpop.f32.mrb[0].mxu0  ;;  %6466 = vmatprep.mubr.f32.mxu1 %v8052_v24 }
 0x1a8   : > { %1719 = vst [vmem:[#allocation5] sm:$0xff] %v8254_v47  ;;  %v8258_v51 = vpop.f32.mrb[1].mxu0  ;;  %6359 = vmatmul.mubr.f32.gmra.mrb[106].mxu0 %v8052_v24 }
 0x1a9   : > { %1720 = vst [vmem:[#allocation5 + $0x8] sm:$0xff] %v8258_v51  ;;  %v8262_v55 = vpop.f32.mrb[0].mxu1  ;;  %6360 = vmatprep.mubr.f32.mxu0 %v8058_v26 }
 0x1aa   : > { %1721 = vst [vmem:[#allocation5 + $0x10] sm:$0xff] %v8262_v55  ;;  %v8266_v1 = vpop.f32.mrb[1].mxu1  ;;  %6467 = vmatmul.mubr.f32.gmra.mrb[106].mxu1 %v8052_v24 }
 0x1ab   : > { %v8269_v5 = vpop.f32.mrb[2].mxu0  ;;  %1722 = vst [vmem:[#allocation5 + $0x18] sm:$0xff] %v8266_v1  ;;  %6468 = vmatprep.mubr.f32.mxu1 %v8058_v26 }
 0x1ac   : > { %1727 = vst [vmem:[#allocation5 + $0x40] sm:$0xff] %v8269_v5  ;;  %v8274_v15 = vpop.f32.mrb[3].mxu0  ;;  %6361 = vmatmul.mubr.f32.gmra.mrb[108].mxu0 %v8058_v26 }
 0x1ad   : > { %1728 = vst [vmem:[#allocation5 + $0x48] sm:$0xff] %v8274_v15  ;;  %v8278_v19 = vpop.f32.mrb[2].mxu1  ;;  %6362 = vmatprep.mubr.f32.mxu0 %v8064_v27 }
 0x1ae   : > { %1729 = vst [vmem:[#allocation5 + $0x50] sm:$0xff] %v8278_v19  ;;  %v8282_v29 = vpop.f32.mrb[3].mxu1  ;;  %6469 = vmatmul.mubr.f32.gmra.mrb[108].mxu1 %v8058_v26 }
 0x1af   : > { %v8285_v33 = vpop.f32.mrb[4].mxu0  ;;  %1730 = vst [vmem:[#allocation5 + $0x58] sm:$0xff] %v8282_v29  ;;  %6470 = vmatprep.mubr.f32.mxu1 %v8064_v27 }
 0x1b0   : > { %1735 = vst [vmem:[#allocation5 + $0x80] sm:$0xff] %v8285_v33  ;;  %v8290_v43 = vpop.f32.mrb[5].mxu0  ;;  %6363 = vmatmul.mubr.f32.gmra.mrb[110].mxu0 %v8064_v27 }
 0x1b1   : > { %1736 = vst [vmem:[#allocation5 + $0x88] sm:$0xff] %v8290_v43  ;;  %v8294_v48 = vpop.f32.mrb[4].mxu1  ;;  %6364 = vmatprep.mubr.f32.mxu0 %v8070_v28 }
 0x1b2   : > { %1737 = vst [vmem:[#allocation5 + $0x90] sm:$0xff] %v8294_v48  ;;  %v8298_v54 = vpop.f32.mrb[5].mxu1  ;;  %6471 = vmatmul.mubr.f32.gmra.mrb[110].mxu1 %v8064_v27 }
 0x1b3   : > { %v8301_v56 = vpop.f32.mrb[6].mxu0  ;;  %1738 = vst [vmem:[#allocation5 + $0x98] sm:$0xff] %v8298_v54  ;;  %6472 = vmatprep.mubr.f32.mxu1 %v8070_v28 }
 0x1b4   : > { %1743 = vst [vmem:[#allocation5 + $0xc0] sm:$0xff] %v8301_v56  ;;  %v8306_v57 = vpop.f32.mrb[7].mxu0  ;;  %6365 = vmatmul.mubr.f32.gmra.mrb[112].mxu0 %v8070_v28 }
 0x1b5   : > { %1744 = vst [vmem:[#allocation5 + $0xc8] sm:$0xff] %v8306_v57  ;;  %v8310_v58 = vpop.f32.mrb[6].mxu1  ;;  %6366 = vmatprep.mubr.f32.mxu0 %v8076_v30 }
 0x1b6   : > { %1745 = vst [vmem:[#allocation5 + $0xd0] sm:$0xff] %v8310_v58  ;;  %v8314_v59 = vpop.f32.mrb[7].mxu1  ;;  %6473 = vmatmul.mubr.f32.gmra.mrb[112].mxu1 %v8070_v28 }
 0x1b7   : > { %v8317_v60 = vpop.f32.mrb[8].mxu0  ;;  %1746 = vst [vmem:[#allocation5 + $0xd8] sm:$0xff] %v8314_v59  ;;  %6474 = vmatprep.mubr.f32.mxu1 %v8076_v30 }
 0x1b8   : > { %1751 = vst [vmem:[#allocation5 + $0x100] sm:$0xff] %v8317_v60  ;;  %v8322_v61 = vpop.f32.mrb[9].mxu0  ;;  %6367 = vmatmul.mubr.f32.gmra.mrb[114].mxu0 %v8076_v30 }
 0x1b9   : > { %1752 = vst [vmem:[#allocation5 + $0x108] sm:$0xff] %v8322_v61  ;;  %v8326_v62 = vpop.f32.mrb[8].mxu1  ;;  %6368 = vmatprep.mubr.f32.mxu0 %v8082_v31 }
 0x1ba   : > { %1753 = vst [vmem:[#allocation5 + $0x110] sm:$0xff] %v8326_v62  ;;  %v8330_v63 = vpop.f32.mrb[9].mxu1  ;;  %6475 = vmatmul.mubr.f32.gmra.mrb[114].mxu1 %v8076_v30 }
 0x1bb   : > { %v8333_v0 = vpop.f32.mrb[10].mxu0  ;;  %1754 = vst [vmem:[#allocation5 + $0x118] sm:$0xff] %v8330_v63  ;;  %6476 = vmatprep.mubr.f32.mxu1 %v8082_v31 }
 0x1bc   : > { %1759 = vst [vmem:[#allocation5 + $0x140] sm:$0xff] %v8333_v0  ;;  %v8338_v2 = vpop.f32.mrb[11].mxu0  ;;  %6369 = vmatmul.mubr.f32.gmra.mrb[116].mxu0 %v8082_v31 }
 0x1bd   : > { %1760 = vst [vmem:[#allocation5 + $0x148] sm:$0xff] %v8338_v2  ;;  %v8342_v3 = vpop.f32.mrb[10].mxu1  ;;  %6370 = vmatprep.mubr.f32.mxu0 %v8088_v32 }
 0x1be   : > { %1761 = vst [vmem:[#allocation5 + $0x150] sm:$0xff] %v8342_v3  ;;  %v8346_v4 = vpop.f32.mrb[11].mxu1  ;;  %6477 = vmatmul.mubr.f32.gmra.mrb[116].mxu1 %v8082_v31 }
 0x1bf   : > { %v8349_v6 = vpop.f32.mrb[12].mxu0  ;;  %1762 = vst [vmem:[#allocation5 + $0x158] sm:$0xff] %v8346_v4  ;;  %6478 = vmatprep.mubr.f32.mxu1 %v8088_v32 }
 0x1c0   : > { %1767 = vst [vmem:[#allocation5 + $0x180] sm:$0xff] %v8349_v6  ;;  %v8354_v7 = vpop.f32.mrb[13].mxu0  ;;  %6371 = vmatmul.mubr.f32.gmra.mrb[118].mxu0 %v8088_v32 }
 0x1c1   : > { %1768 = vst [vmem:[#allocation5 + $0x188] sm:$0xff] %v8354_v7  ;;  %v8358_v8 = vpop.f32.mrb[12].mxu1  ;;  %6372 = vmatprep.mubr.f32.mxu0 %v8094_v34 }
 0x1c2   : > { %1769 = vst [vmem:[#allocation5 + $0x190] sm:$0xff] %v8358_v8  ;;  %v8362_v9 = vpop.f32.mrb[13].mxu1  ;;  %6479 = vmatmul.mubr.f32.gmra.mrb[118].mxu1 %v8088_v32 }
 0x1c3   : > { %v8365_v10 = vpop.f32.mrb[14].mxu0  ;;  %1770 = vst [vmem:[#allocation5 + $0x198] sm:$0xff] %v8362_v9  ;;  %6480 = vmatprep.mubr.f32.mxu1 %v8094_v34 }
 0x1c4   : > { %1775 = vst [vmem:[#allocation5 + $0x1c0] sm:$0xff] %v8365_v10  ;;  %v8370_v11 = vpop.f32.mrb[15].mxu0  ;;  %6373 = vmatmul.mubr.f32.gmra.mrb[120].mxu0 %v8094_v34 }
 0x1c5   : > { %1776 = vst [vmem:[#allocation5 + $0x1c8] sm:$0xff] %v8370_v11  ;;  %v8374_v12 = vpop.f32.mrb[14].mxu1  ;;  %6374 = vmatprep.mubr.f32.mxu0 %v8100_v35 }
 0x1c6   : > { %1777 = vst [vmem:[#allocation5 + $0x1d0] sm:$0xff] %v8374_v12  ;;  %v8378_v13 = vpop.f32.mrb[15].mxu1  ;;  %6481 = vmatmul.mubr.f32.gmra.mrb[120].mxu1 %v8094_v34 }
 0x1c7   : > { %v8381_v14 = vpop.f32.mrb[16].mxu0  ;;  %1778 = vst [vmem:[#allocation5 + $0x1d8] sm:$0xff] %v8378_v13  ;;  %6482 = vmatprep.mubr.f32.mxu1 %v8100_v35 }
 0x1c8   : > { %1783 = vst [vmem:[#allocation5 + $0x200] sm:$0xff] %v8381_v14  ;;  %v8386_v16 = vpop.f32.mrb[17].mxu0  ;;  %6375 = vmatmul.mubr.f32.gmra.mrb[122].mxu0 %v8100_v35 }
 0x1c9   : > { %1784 = vst [vmem:[#allocation5 + $0x208] sm:$0xff] %v8386_v16  ;;  %v8390_v17 = vpop.f32.mrb[16].mxu1  ;;  %6376 = vmatprep.mubr.f32.mxu0 %v8106_v36 }
 0x1ca   : > { %1785 = vst [vmem:[#allocation5 + $0x210] sm:$0xff] %v8390_v17  ;;  %v8394_v18 = vpop.f32.mrb[17].mxu1  ;;  %6483 = vmatmul.mubr.f32.gmra.mrb[122].mxu1 %v8100_v35 }
 0x1cb   : > { %v8397_v20 = vpop.f32.mrb[18].mxu0  ;;  %1786 = vst [vmem:[#allocation5 + $0x218] sm:$0xff] %v8394_v18  ;;  %6484 = vmatprep.mubr.f32.mxu1 %v8106_v36 }
 0x1cc   : > { %1791 = vst [vmem:[#allocation5 + $0x240] sm:$0xff] %v8397_v20  ;;  %v8402_v21 = vpop.f32.mrb[19].mxu0  ;;  %6377 = vmatmul.mubr.f32.gmra.mrb[124].mxu0 %v8106_v36 }
 0x1cd   : > { %1792 = vst [vmem:[#allocation5 + $0x248] sm:$0xff] %v8402_v21  ;;  %v8406_v22 = vpop.f32.mrb[18].mxu1  ;;  %6378 = vmatprep.mubr.f32.mxu0 %v8112_v37 }
 0x1ce   : > { %1793 = vst [vmem:[#allocation5 + $0x250] sm:$0xff] %v8406_v22  ;;  %v8410_v23 = vpop.f32.mrb[19].mxu1  ;;  %6485 = vmatmul.mubr.f32.gmra.mrb[124].mxu1 %v8106_v36 }
 0x1cf   : > { %v8413_v24 = vpop.f32.mrb[20].mxu0  ;;  %1794 = vst [vmem:[#allocation5 + $0x258] sm:$0xff] %v8410_v23  ;;  %6486 = vmatprep.mubr.f32.mxu1 %v8112_v37 }
 0x1d0   : > { %1799 = vst [vmem:[#allocation5 + $0x280] sm:$0xff] %v8413_v24  ;;  %v8418_v25 = vpop.f32.mrb[21].mxu0  ;;  %6379 = vmatmul.mubr.f32.gmra.mrb[126].mxu0 %v8112_v37 }
 0x1d1   : > { %1800 = vst [vmem:[#allocation5 + $0x288] sm:$0xff] %v8418_v25  ;;  %v8422_v26 = vpop.f32.mrb[20].mxu1  ;;  %6380 = vmatprep.mubr.f32.mxu0 %v8118_v38 }
 0x1d2   : > { %1801 = vst [vmem:[#allocation5 + $0x290] sm:$0xff] %v8422_v26  ;;  %v8426_v27 = vpop.f32.mrb[21].mxu1  ;;  %6487 = vmatmul.mubr.f32.gmra.mrb[126].mxu1 %v8112_v37 }
 0x1d3   : > { %v8429_v28 = vpop.f32.mrb[22].mxu0  ;;  %1802 = vst [vmem:[#allocation5 + $0x298] sm:$0xff] %v8426_v27  ;;  %6488 = vmatprep.mubr.f32.mxu1 %v8118_v38 }
 0x1d4   : > { %1807 = vst [vmem:[#allocation5 + $0x2c0] sm:$0xff] %v8429_v28  ;;  %v8434_v30 = vpop.f32.mrb[23].mxu0  ;;  %6381 = vmatmul.mubr.f32.gmra.mrb[128].mxu0 %v8118_v38 }
 0x1d5   : > { %1808 = vst [vmem:[#allocation5 + $0x2c8] sm:$0xff] %v8434_v30  ;;  %v8438_v31 = vpop.f32.mrb[22].mxu1  ;;  %6382 = vmatprep.mubr.f32.mxu0 %v8124_v39 }
 0x1d6   : > { %1809 = vst [vmem:[#allocation5 + $0x2d0] sm:$0xff] %v8438_v31  ;;  %v8442_v32 = vpop.f32.mrb[23].mxu1  ;;  %6489 = vmatmul.mubr.f32.gmra.mrb[128].mxu1 %v8118_v38 }
 0x1d7   : > { %13152 = vst [vmem:[#allocation16_spill] sm:$0xff] %v8442_v32  ;;  %v8445_v34 = vpop.f32.mrb[24].mxu0  ;;  %1810 = vst [vmem:[#allocation5 + $0x2d8] sm:$0xff] %v8442_v32  ;;  %6490 = vmatprep.mubr.f32.mxu1 %v8124_v39 }
 0x1d8   : > { %1815 = vst [vmem:[#allocation5 + $0x300] sm:$0xff] %v8445_v34  ;;  %v8450_v35 = vpop.f32.mrb[25].mxu0  ;;  %6383 = vmatmul.mubr.f32.gmra.mrb[130].mxu0 %v8124_v39 }
 0x1d9   : > { %13153 = vst [vmem:[#allocation17_spill] sm:$0xff] %v8450_v35  ;;  %1816 = vst [vmem:[#allocation5 + $0x308] sm:$0xff] %v8450_v35  ;;  %v8454_v36 = vpop.f32.mrb[24].mxu1  ;;  %6384 = vmatprep.mubr.f32.mxu0 %v8130_v40 }
 0x1da   : > { %13154 = vst [vmem:[#allocation18_spill] sm:$0xff] %v8454_v36  ;;  %1817 = vst [vmem:[#allocation5 + $0x310] sm:$0xff] %v8454_v36  ;;  %v977_v37 = vpop.f32.mrb[25].mxu1  ;;  %6491 = vmatmul.mubr.f32.gmra.mrb[130].mxu1 %v8124_v39 }
 0x1db   : > { %v8459_v38 = vpop.f32.mrb[26].mxu0  ;;  %1818 = vst [vmem:[#allocation5 + $0x318] sm:$0xff] %v977_v37  ;;  %6492 = vmatprep.mubr.f32.mxu1 %v8130_v40 }
 0x1dc   : > { %13155 = vst [vmem:[#allocation19_spill] sm:$0xff] %v8459_v38  ;;  %1823 = vst [vmem:[#allocation5 + $0x340] sm:$0xff] %v8459_v38  ;;  %v8463_v32 = vpop.f32.mrb[27].mxu0  ;;  %6385 = vmatmul.mubr.f32.gmra.mrb[132].mxu0 %v8130_v40 }
 0x1dd   : > { %13156 = vst [vmem:[#allocation20_spill] sm:$0xff] %v8463_v32  ;;  %1824 = vst [vmem:[#allocation5 + $0x348] sm:$0xff] %v8463_v32  ;;  %v981_v35 = vpop.f32.mrb[26].mxu1  ;;  %6386 = vmatprep.mubr.f32.mxu0 %v8136_v41 }
 0x1de   : > { %1825 = vst [vmem:[#allocation5 + $0x350] sm:$0xff] %v981_v35  ;;  %v983_v36 = vpop.f32.mrb[27].mxu1  ;;  %6493 = vmatmul.mubr.f32.gmra.mrb[132].mxu1 %v8130_v40 }
 0x1df   : > { %v8469_v39 = vpop.f32.mrb[28].mxu0  ;;  %1826 = vst [vmem:[#allocation5 + $0x358] sm:$0xff] %v983_v36  ;;  %6494 = vmatprep.mubr.f32.mxu1 %v8136_v41 }
 0x1e0   : > { %13157 = vst [vmem:[#allocation21_spill] sm:$0xff] %v8469_v39  ;;  %1831 = vst [vmem:[#allocation5 + $0x380] sm:$0xff] %v8469_v39  ;;  %v8473_v37 = vpop.f32.mrb[29].mxu0  ;;  %6387 = vmatmul.mubr.f32.gmra.mrb[134].mxu0 %v8136_v41 }
 0x1e1   : > { %13158 = vst [vmem:[#allocation22_spill] sm:$0xff] %v8473_v37  ;;  %1832 = vst [vmem:[#allocation5 + $0x388] sm:$0xff] %v8473_v37  ;;  %v987_v32 = vpop.f32.mrb[28].mxu1  ;;  %6388 = vmatprep.mubr.f32.mxu0 %v8142_v42 }
 0x1e2   : > { %1833 = vst [vmem:[#allocation5 + $0x390] sm:$0xff] %v987_v32  ;;  %v989_v35 = vpop.f32.mrb[29].mxu1  ;;  %6495 = vmatmul.mubr.f32.gmra.mrb[134].mxu1 %v8136_v41 }
 0x1e3   : > { %v700_v40 = vpop.f32.mrb[30].mxu0  ;;  %1834 = vst [vmem:[#allocation5 + $0x398] sm:$0xff] %v989_v35  ;;  %6496 = vmatprep.mubr.f32.mxu1 %v8142_v42 }
 0x1e4   : > { %1839 = vst [vmem:[#allocation5 + $0x3c0] sm:$0xff] %v700_v40  ;;  %v702_v36 = vpop.f32.mrb[31].mxu0  ;;  %6389 = vmatmul.mubr.f32.gmra.mrb[136].mxu0 %v8142_v42 }
 0x1e5   : > { %1840 = vst [vmem:[#allocation5 + $0x3c8] sm:$0xff] %v702_v36  ;;  %v993_v39 = vpop.f32.mrb[30].mxu1  ;;  %6390 = vmatprep.mubr.f32.mxu0 %v8148_v44 }
 0x1e6   : > { %1841 = vst [vmem:[#allocation5 + $0x3d0] sm:$0xff] %v993_v39  ;;  %v995_v37 = vpop.f32.mrb[31].mxu1  ;;  %6497 = vmatmul.mubr.f32.gmra.mrb[136].mxu1 %v8142_v42 }
 0x1e7   : > { %v706_v32 = vpop.f32.mrb[32].mxu0  ;;  %1842 = vst [vmem:[#allocation5 + $0x3d8] sm:$0xff] %v995_v37  ;;  %6498 = vmatprep.mubr.f32.mxu1 %v8148_v44 }
 0x1e8   : > { %1847 = vst [vmem:[#allocation5 + $0x400] sm:$0xff] %v706_v32  ;;  %v708_v41 = vpop.f32.mrb[33].mxu0  ;;  %6391 = vmatmul.mubr.f32.gmra.mrb[138].mxu0 %v8148_v44 }
 0x1e9   : > { %1848 = vst [vmem:[#allocation5 + $0x408] sm:$0xff] %v708_v41  ;;  %v999_v35 = vpop.f32.mrb[32].mxu1  ;;  %6392 = vmatprep.mubr.f32.mxu0 %v8154_v45 }
 0x1ea   : > { %1849 = vst [vmem:[#allocation5 + $0x410] sm:$0xff] %v999_v35  ;;  %v1001_v40 = vpop.f32.mrb[33].mxu1  ;;  %6499 = vmatmul.mubr.f32.gmra.mrb[138].mxu1 %v8148_v44 }
 0x1eb   : > { %v712_v39 = vpop.f32.mrb[34].mxu0  ;;  %1850 = vst [vmem:[#allocation5 + $0x418] sm:$0xff] %v1001_v40  ;;  %6500 = vmatprep.mubr.f32.mxu1 %v8154_v45 }
 0x1ec   : > { %1855 = vst [vmem:[#allocation5 + $0x440] sm:$0xff] %v712_v39  ;;  %v714_v42 = vpop.f32.mrb[35].mxu0  ;;  %6393 = vmatmul.mubr.f32.gmra.mrb[140].mxu0 %v8154_v45 }
 0x1ed   : > { %1856 = vst [vmem:[#allocation5 + $0x448] sm:$0xff] %v714_v42  ;;  %v1005_v37 = vpop.f32.mrb[34].mxu1  ;;  %6394 = vmatprep.mubr.f32.mxu0 %v8160_v46 }
 0x1ee   : > { %1857 = vst [vmem:[#allocation5 + $0x450] sm:$0xff] %v1005_v37  ;;  %v1007_v36 = vpop.f32.mrb[35].mxu1  ;;  %6501 = vmatmul.mubr.f32.gmra.mrb[140].mxu1 %v8154_v45 }
 0x1ef   : > { %v718_v32 = vpop.f32.mrb[36].mxu0  ;;  %1858 = vst [vmem:[#allocation5 + $0x458] sm:$0xff] %v1007_v36  ;;  %6502 = vmatprep.mubr.f32.mxu1 %v8160_v46 }
 0x1f0   : > { %1863 = vst [vmem:[#allocation5 + $0x480] sm:$0xff] %v718_v32  ;;  %v720_v44 = vpop.f32.mrb[37].mxu0  ;;  %6395 = vmatmul.mubr.f32.gmra.mrb[142].mxu0 %v8160_v46 }
 0x1f1   : > { %1864 = vst [vmem:[#allocation5 + $0x488] sm:$0xff] %v720_v44  ;;  %v1011_v41 = vpop.f32.mrb[36].mxu1  ;;  %6396 = vmatprep.mubr.f32.mxu0 %v8166_v49 }
 0x1f2   : > { %1865 = vst [vmem:[#allocation5 + $0x490] sm:$0xff] %v1011_v41  ;;  %v1013_v35 = vpop.f32.mrb[37].mxu1  ;;  %6503 = vmatmul.mubr.f32.gmra.mrb[142].mxu1 %v8160_v46 }
 0x1f3   : > { %v724_v40 = vpop.f32.mrb[38].mxu0  ;;  %1866 = vst [vmem:[#allocation5 + $0x498] sm:$0xff] %v1013_v35  ;;  %6504 = vmatprep.mubr.f32.mxu1 %v8166_v49 }
 0x1f4   : > { %1871 = vst [vmem:[#allocation5 + $0x4c0] sm:$0xff] %v724_v40  ;;  %v726_v45 = vpop.f32.mrb[39].mxu0  ;;  %6397 = vmatmul.mubr.f32.gmra.mrb[144].mxu0 %v8166_v49 }
 0x1f5   : > { %1872 = vst [vmem:[#allocation5 + $0x4c8] sm:$0xff] %v726_v45  ;;  %v1017_v39 = vpop.f32.mrb[38].mxu1  ;;  %6398 = vmatprep.mubr.f32.mxu0 %v8172_v50 }
 0x1f6   : > { %1873 = vst [vmem:[#allocation5 + $0x4d0] sm:$0xff] %v1017_v39  ;;  %v1019_v42 = vpop.f32.mrb[39].mxu1  ;;  %6505 = vmatmul.mubr.f32.gmra.mrb[144].mxu1 %v8166_v49 }
 0x1f7   : > { %v730_v37 = vpop.f32.mrb[40].mxu0  ;;  %1874 = vst [vmem:[#allocation5 + $0x4d8] sm:$0xff] %v1019_v42  ;;  %6506 = vmatprep.mubr.f32.mxu1 %v8172_v50 }
 0x1f8   : > { %1879 = vst [vmem:[#allocation5 + $0x500] sm:$0xff] %v730_v37  ;;  %v732_v46 = vpop.f32.mrb[41].mxu0  ;;  %6399 = vmatmul.mubr.f32.gmra.mrb[146].mxu0 %v8172_v50 }
 0x1f9   : > { %1880 = vst [vmem:[#allocation5 + $0x508] sm:$0xff] %v732_v46  ;;  %v1023_v36 = vpop.f32.mrb[40].mxu1  ;;  %6400 = vmatprep.mubr.f32.mxu0 %v8178_v52 }
 0x1fa   : > { %1881 = vst [vmem:[#allocation5 + $0x510] sm:$0xff] %v1023_v36  ;;  %v1025_v32 = vpop.f32.mrb[41].mxu1  ;;  %6507 = vmatmul.mubr.f32.gmra.mrb[146].mxu1 %v8172_v50 }
 0x1fb   : > { %v736_v44 = vpop.f32.mrb[42].mxu0  ;;  %1882 = vst [vmem:[#allocation5 + $0x518] sm:$0xff] %v1025_v32  ;;  %6508 = vmatprep.mubr.f32.mxu1 %v8178_v52 }
 0x1fc   : > { %1887 = vst [vmem:[#allocation5 + $0x540] sm:$0xff] %v736_v44  ;;  %v738_v49 = vpop.f32.mrb[43].mxu0  ;;  %6401 = vmatmul.mubr.f32.gmra.mrb[148].mxu0 %v8178_v52 }
 0x1fd   : > { %1888 = vst [vmem:[#allocation5 + $0x548] sm:$0xff] %v738_v49  ;;  %v1029_v41 = vpop.f32.mrb[42].mxu1  ;;  %6402 = vmatprep.mubr.f32.mxu0 %v8184_v53 }
 0x1fe   : > { %1889 = vst [vmem:[#allocation5 + $0x550] sm:$0xff] %v1029_v41  ;;  %v1031_v35 = vpop.f32.mrb[43].mxu1  ;;  %6509 = vmatmul.mubr.f32.gmra.mrb[148].mxu1 %v8178_v52 }
 0x1ff   : > { %v742_v40 = vpop.f32.mrb[44].mxu0  ;;  %1890 = vst [vmem:[#allocation5 + $0x558] sm:$0xff] %v1031_v35  ;;  %6510 = vmatprep.mubr.f32.mxu1 %v8184_v53 }
 0x200   : > { %1895 = vst [vmem:[#allocation5 + $0x580] sm:$0xff] %v742_v40  ;;  %v744_v50 = vpop.f32.mrb[45].mxu0  ;;  %6403 = vmatmul.mubr.f32.gmra.mrb[150].mxu0 %v8184_v53 }
 0x201   : > { %1896 = vst [vmem:[#allocation5 + $0x588] sm:$0xff] %v744_v50  ;;  %v1035_v45 = vpop.f32.mrb[44].mxu1 }
 0x202   : > { %1897 = vst [vmem:[#allocation5 + $0x590] sm:$0xff] %v1035_v45  ;;  %v1037_v39 = vpop.f32.mrb[45].mxu1  ;;  %6511 = vmatmul.mubr.f32.gmra.mrb[150].mxu1 %v8184_v53 }
 0x203   : > { %v748_v42 = vpop.f32.mrb[46].mxu0  ;;  %1898 = vst [vmem:[#allocation5 + $0x598] sm:$0xff] %v1037_v39 }
 0x204   : > { %1903 = vst [vmem:[#allocation5 + $0x5c0] sm:$0xff] %v748_v42  ;;  %v750_v37 = vpop.f32.mrb[47].mxu0 }
 0x205   : > { %1904 = vst [vmem:[#allocation5 + $0x5c8] sm:$0xff] %v750_v37  ;;  %v1041_v52 = vpop.f32.mrb[46].mxu1 }
 0x206   : > { %1905 = vst [vmem:[#allocation5 + $0x5d0] sm:$0xff] %v1041_v52  ;;  %v1043_v46 = vpop.f32.mrb[47].mxu1 }
 0x207   : > { %v754_v36 = vpop.f32.mrb[48].mxu0  ;;  %1906 = vst [vmem:[#allocation5 + $0x5d8] sm:$0xff] %v1043_v46 }
 0x208   : > { %1911 = vst [vmem:[#allocation5 + $0x600] sm:$0xff] %v754_v36  ;;  %v756_v32 = vpop.f32.mrb[49].mxu0 }
 0x209   : > { %1912 = vst [vmem:[#allocation5 + $0x608] sm:$0xff] %v756_v32  ;;  %v1047_v44 = vpop.f32.mrb[48].mxu1 }
 0x20a   : > { %1913 = vst [vmem:[#allocation5 + $0x610] sm:$0xff] %v1047_v44  ;;  %v1049_v49 = vpop.f32.mrb[49].mxu1 }
 0x20b   : > { %v760_v41 = vpop.f32.mrb[50].mxu0  ;;  %1914 = vst [vmem:[#allocation5 + $0x618] sm:$0xff] %v1049_v49 }
 0x20c   : > { %1919 = vst [vmem:[#allocation5 + $0x640] sm:$0xff] %v760_v41  ;;  %v762_v53 = vpop.f32.mrb[51].mxu0 }
 0x20d   : > { %1920 = vst [vmem:[#allocation5 + $0x648] sm:$0xff] %v762_v53  ;;  %v1053_v35 = vpop.f32.mrb[50].mxu1 }
 0x20e   : > { %1921 = vst [vmem:[#allocation5 + $0x650] sm:$0xff] %v1053_v35  ;;  %v1055_v40 = vpop.f32.mrb[51].mxu1 }
 0x20f   : > { %v766_v50 = vpop.f32.mrb[52].mxu0  ;;  %1922 = vst [vmem:[#allocation5 + $0x658] sm:$0xff] %v1055_v40 }
 0x210   : > { %1927 = vst [vmem:[#allocation5 + $0x680] sm:$0xff] %v766_v50  ;;  %v768_v45 = vpop.f32.mrb[53].mxu0 }
 0x211   : > { %1928 = vst [vmem:[#allocation5 + $0x688] sm:$0xff] %v768_v45  ;;  %v1059_v39 = vpop.f32.mrb[52].mxu1 }
 0x212   : > { %1929 = vst [vmem:[#allocation5 + $0x690] sm:$0xff] %v1059_v39  ;;  %v1061_v42 = vpop.f32.mrb[53].mxu1 }
 0x213   : > { %v772_v37 = vpop.f32.mrb[54].mxu0  ;;  %1930 = vst [vmem:[#allocation5 + $0x698] sm:$0xff] %v1061_v42 }
 0x214   : > { %1935 = vst [vmem:[#allocation5 + $0x6c0] sm:$0xff] %v772_v37  ;;  %v774_v52 = vpop.f32.mrb[55].mxu0 }
 0x215   : > { %1936 = vst [vmem:[#allocation5 + $0x6c8] sm:$0xff] %v774_v52  ;;  %v1065_v46 = vpop.f32.mrb[54].mxu1 }
 0x216   : > { %1937 = vst [vmem:[#allocation5 + $0x6d0] sm:$0xff] %v1065_v46  ;;  %v1067_v36 = vpop.f32.mrb[55].mxu1  ;;  %v2025_v46 = vlaneseq }
 0x217   : > { %v778_v32 = vpop.f32.mrb[56].mxu0  ;;  %1938 = vst [vmem:[#allocation5 + $0x6d8] sm:$0xff] %v1067_v36 }
 0x218   : > { %1943 = vst [vmem:[#allocation5 + $0x700] sm:$0xff] %v778_v32  ;;  %v780_v44 = vpop.f32.mrb[57].mxu0 }
 0x219   : > { %1944 = vst [vmem:[#allocation5 + $0x708] sm:$0xff] %v780_v44  ;;  %v1071_v49 = vpop.f32.mrb[56].mxu1 }
 0x21a   : > { %1945 = vst [vmem:[#allocation5 + $0x710] sm:$0xff] %v1071_v49  ;;  %v1073_v41 = vpop.f32.mrb[57].mxu1 }
 0x21b   : > { %v784_v53 = vpop.f32.mrb[58].mxu0  ;;  %1946 = vst [vmem:[#allocation5 + $0x718] sm:$0xff] %v1073_v41  ;;  %v8510_v41 = vshrl.u32 %v2025_v46, 7 }
 0x21c   : > { %1951 = vst [vmem:[#allocation5 + $0x740] sm:$0xff] %v784_v53  ;;  %v786_v35 = vpop.f32.mrb[59].mxu0 }
 0x21d   : > { %1952 = vst [vmem:[#allocation5 + $0x748] sm:$0xff] %v786_v35  ;;  %v1077_v40 = vpop.f32.mrb[58].mxu1  ;;  %v2051_v38 = vsub.s32 6, %v8510_v41 }
 0x21e   : > { %1953 = vst [vmem:[#allocation5 + $0x750] sm:$0xff] %v1077_v40  ;;  %v1079_v50 = vpop.f32.mrb[59].mxu1 }
 0x21f   : > { %v790_v45 = vpop.f32.mrb[60].mxu0  ;;  %1954 = vst [vmem:[#allocation5 + $0x758] sm:$0xff] %v1079_v50 }
 0x220   : > { %1959 = vst [vmem:[#allocation5 + $0x780] sm:$0xff] %v790_v45  ;;  %v792_v39 = vpop.f32.mrb[61].mxu0  ;;  %v2027_v45 = vsub.s32 0, %v8510_v41 }
 0x221   : > { %1960 = vst [vmem:[#allocation5 + $0x788] sm:$0xff] %v792_v39  ;;  %v1083_v42 = vpop.f32.mrb[60].mxu1  ;;  %v2031_v39 = vsub.s32 1, %v8510_v41 }
 0x222   : > { %1961 = vst [vmem:[#allocation5 + $0x790] sm:$0xff] %v1083_v42  ;;  %v1085_v37 = vpop.f32.mrb[61].mxu1 }
 0x223   : > { %v796_v52 = vpop.f32.mrb[62].mxu0  ;;  %1962 = vst [vmem:[#allocation5 + $0x798] sm:$0xff] %v1085_v37  ;;  %v8514_v37 = vld [vmem:[#allocation11] sm:$0xff] }
 0x224   : > { %1967 = vst [vmem:[#allocation5 + $0x7c0] sm:$0xff] %v796_v52  ;;  %v798_v36 = vpop.f32.mrb[63].mxu0 }
 0x225   : > { %1968 = vst [vmem:[#allocation5 + $0x7c8] sm:$0xff] %v798_v36  ;;  %v1089_v32 = vpop.f32.mrb[62].mxu1 }
 0x226   : > { %1969 = vst [vmem:[#allocation5 + $0x7d0] sm:$0xff] %v1089_v32  ;;  %v1091_v44 = vpop.f32.mrb[63].mxu1  ;;  %v8517_v32 = vrot.slane %v8514_v37, %v2027_v45 }
 0x227   : > { %v802_v49 = vpop.f32.mrb[64].mxu0  ;;  %1970 = vst [vmem:[#allocation5 + $0x7d8] sm:$0xff] %v1091_v44  ;;  %v8520_v44 = vrot.slane %v8514_v37, %v2031_v39 }
 0x228   : > { %1975 = vst [vmem:[#allocation5 + $0x800] sm:$0xff] %v802_v49  ;;  %v804_v53 = vpop.f32.mrb[65].mxu0  ;;  %v2035_v49 = vsub.s32 2, %v8510_v41 }
 0x229   : > { %1976 = vst [vmem:[#allocation5 + $0x808] sm:$0xff] %v804_v53  ;;  %v1095_v35 = vpop.f32.mrb[64].mxu1  ;;  %v8530_v45 = vadd.f32 %v8520_v44, %v8258_v51 }
 0x22a   : > { %1977 = vst [vmem:[#allocation5 + $0x810] sm:$0xff] %v1095_v35  ;;  %v1097_v40 = vpop.f32.mrb[65].mxu1  ;;  %v8533_v39 = vrot.slane %v8514_v37, %v2035_v49 }
 0x22b   : > { %v808_v50 = vpop.f32.mrb[66].mxu0  ;;  %1978 = vst [vmem:[#allocation5 + $0x818] sm:$0xff] %v1097_v40  ;;  %13160 = vst [vmem:[#allocation24_spill] sm:$0xff] %v8530_v45 }
 0x22c   : > { %1983 = vst [vmem:[#allocation5 + $0x840] sm:$0xff] %v808_v50  ;;  %v810_v42 = vpop.f32.mrb[67].mxu0  ;;  %v2039_v50 = vsub.s32 3, %v8510_v41 }
 0x22d   : > { %1984 = vst [vmem:[#allocation5 + $0x848] sm:$0xff] %v810_v42  ;;  %v1101_v52 = vpop.f32.mrb[66].mxu1 }
 0x22e   : > { %1985 = vst [vmem:[#allocation5 + $0x850] sm:$0xff] %v1101_v52  ;;  %v1103_v46 = vpop.f32.mrb[67].mxu1  ;;  %v8526_v52 = vadd.f32 %v8517_v32, %v8254_v47  ;;  %v8541_v47 = vadd.f32 %v8520_v44, %v8274_v15  ;;  %v8544_v51 = vrot.slane %v8514_v37, %v2039_v50  ;;  %v2047_v15 = vsub.s32 5, %v8510_v41 }
 0x22f   : > { %v814_v36 = vpop.f32.mrb[68].mxu0  ;;  %1986 = vst [vmem:[#allocation5 + $0x858] sm:$0xff] %v1103_v46 }
 0x230   : > { %1991 = vst [vmem:[#allocation5 + $0x880] sm:$0xff] %v814_v36  ;;  %v816_v53 = vpop.f32.mrb[69].mxu0  ;;  %13159 = vst [vmem:[#allocation23_spill] sm:$0xff] %v8526_v52  ;;  %v2407_v49 = vmax.f32 %v8526_v52, %v8530_v45  ;;  %v8559_v45 = vadd.f32 %v8544_v51, %v8266_v1  ;;  %v8572_v52 = vadd.f32 %v8520_v44, %v8290_v43 }
 0x231   : > { %1992 = vst [vmem:[#allocation5 + $0x888] sm:$0xff] %v816_v53  ;;  %v1107_v35 = vpop.f32.mrb[68].mxu1  ;;  %13162 = vst [vmem:[#allocation26_spill] sm:$0xff] %v8541_v47 }
 0x232   : > { %1993 = vst [vmem:[#allocation5 + $0x890] sm:$0xff] %v1107_v35  ;;  %v1109_v40 = vpop.f32.mrb[69].mxu1  ;;  %v8537_v35 = vadd.f32 %v8517_v32, %v8269_v5  ;;  %v2043_v5 = vsub.s32 4, %v8510_v41  ;;  %13163 = vst [vmem:[#allocation27_spill] sm:$0xff] %v8559_v45 }
 0x233   : > { %v820_v42 = vpop.f32.mrb[70].mxu0  ;;  %1994 = vst [vmem:[#allocation5 + $0x898] sm:$0xff] %v1109_v40  ;;  %13164 = vst [vmem:[#allocation28_spill] sm:$0xff] %v8572_v52 }
 0x234   : > { %1999 = vst [vmem:[#allocation5 + $0x8c0] sm:$0xff] %v820_v42  ;;  %v822_v46 = vpop.f32.mrb[71].mxu0  ;;  %13161 = vst [vmem:[#allocation25_spill] sm:$0xff] %v8537_v35  ;;  %v8550_v42 = vadd.f32 %v8533_v39, %v8262_v55  ;;  %v8563_v55 = vadd.f32 %v8533_v39, %v8278_v19  ;;  %v8575_v1 = vrot.slane %v8514_v37, %v2043_v5  ;;  %v2055_v5 = vsub.s32 7, %v8510_v41 }
 0x235   : > { %2000 = vst [vmem:[#allocation5 + $0x8c8] sm:$0xff] %v822_v46  ;;  %v1113_v36 = vpop.f32.mrb[70].mxu1  ;;  %v8579_v19 = vadd.f32 %v8517_v32, %v8301_v56  ;;  %v8595_v56 = vadd.f32 %v8544_v51, %v8282_v29 }
 0x236   : > { %2001 = vst [vmem:[#allocation5 + $0x8d0] sm:$0xff] %v1113_v36  ;;  %v1115_v53 = vpop.f32.mrb[71].mxu1 }
 0x237   : > { %v826_v40 = vpop.f32.mrb[72].mxu0  ;;  %2002 = vst [vmem:[#allocation5 + $0x8d8] sm:$0xff] %v1115_v53  ;;  %v2416_v53 = vmax.f32 %v8537_v35, %v8541_v47  ;;  %13165 = vst [vmem:[#allocation29_spill] sm:$0xff] %v8579_v19 }
 0x238   : > { %2007 = vst [vmem:[#allocation5 + $0x900] sm:$0xff] %v826_v40  ;;  %v828_v46 = vpop.f32.mrb[73].mxu0  ;;  %13167 = vst [vmem:[#allocation31_spill] sm:$0xff] %v8595_v56 }
 0x239   : > { %2008 = vst [vmem:[#allocation5 + $0x908] sm:$0xff] %v828_v46  ;;  %v1119_v36 = vpop.f32.mrb[72].mxu1  ;;  %v2408_v46 = vmax.f32 %v2407_v49, %v8550_v42  ;;  %v8583_v49 = vadd.f32 %v8520_v44, %v8306_v57  ;;  %v2417_v35 = vmax.f32 %v2416_v53, %v8563_v55  ;;  %v8611_v53 = vadd.f32 %v8533_v39, %v8310_v58 }
 0x23a   : > { %2009 = vst [vmem:[#allocation5 + $0x910] sm:$0xff] %v1119_v36  ;;  %v1121_v50 = vpop.f32.mrb[73].mxu1  ;;  %v8568_v36 = vadd.f32 %v8517_v32, %v8285_v33  ;;  %v8626_v58 = vadd.f32 %v8517_v32, %v8317_v60 }
 0x23b   : > { %v832_v40 = vpop.f32.mrb[74].mxu0  ;;  %2010 = vst [vmem:[#allocation5 + $0x918] sm:$0xff] %v1121_v50  ;;  %13166 = vst [vmem:[#allocation30_spill] sm:$0xff] %v8583_v49  ;;  %v8586_v50 = vrot.slane %v8514_v37, %v2047_v15  ;;  %v2434_v29 = vmax.f32 %v8579_v19, %v8583_v49  ;;  %v2418_v49 = vmax.f32 %v2417_v35, %v8595_v56 }
 0x23c   : > { %2015 = vst [vmem:[#allocation5 + $0x940] sm:$0xff] %v832_v40  ;;  %v834_v47 = vpop.f32.mrb[75].mxu0  ;;  %v8589_v40 = vrot.slane %v8514_v37, %v2051_v38  ;;  %v2425_v15 = vmax.f32 %v8568_v36, %v8572_v52  ;;  %v8621_v52 = vrot.slane %v8514_v37, %v2055_v5 }
 0x23d   : > { %2016 = vst [vmem:[#allocation5 + $0x948] sm:$0xff] %v834_v47  ;;  %v1125_v33 = vpop.f32.mrb[74].mxu1  ;;  %v2409_v47 = vmax.f32 %v2408_v46, %v8559_v45  ;;  %v2435_v5 = vmax.f32 %v2434_v29, %v8611_v53 }
 0x23e   : > { %2017 = vst [vmem:[#allocation5 + $0x950] sm:$0xff] %v1125_v33  ;;  %v1127_v43 = vpop.f32.mrb[75].mxu1  ;;  %v8602_v33 = vadd.f32 %v8533_v39, %v8294_v48 }
 0x23f   : > { %v1196_v57 = vpop.f32.mrb[76].mxu0  ;;  %2018 = vst [vmem:[#allocation5 + $0x958] sm:$0xff] %v1127_v43 }
 0x240   : > { %1723 = vst [vmem:[#allocation5 + $0x20] sm:$0xff] %v1196_v57  ;;  %v8605_v38 = vadd.f32 %v8575_v1, %v1196_v57  ;;  %v1198_v41 = vpop.f32.mrb[77].mxu0 }
 0x241   : > { %1724 = vst [vmem:[#allocation5 + $0x28] sm:$0xff] %v1198_v41  ;;  %v8614_v46 = vadd.f32 %v8586_v50, %v1198_v41  ;;  %v1489_v43 = vpop.f32.mrb[76].mxu1  ;;  %v8630_v41 = vadd.f32 %v8520_v44, %v8322_v61  ;;  %v8644_v61 = vadd.f32 %v8544_v51, %v8314_v59 }
 0x242   : > { %13168 = vst [vmem:[#allocation32_spill] sm:$0xff] %v8605_v38  ;;  %v2410_v48 = vmax.f32 %v2409_v47, %v8605_v38  ;;  %1725 = vst [vmem:[#allocation5 + $0x30] sm:$0xff] %v1489_v43  ;;  %v8618_v45 = vadd.f32 %v8589_v40, %v1489_v43  ;;  %v1491_v57 = vpop.f32.mrb[77].mxu1  ;;  %v2426_v47 = vmax.f32 %v2425_v15, %v8602_v33 }
 0x243   : > { %13169 = vst [vmem:[#allocation33_spill] sm:$0xff] %v8614_v46  ;;  %13171 = vst [vmem:[#allocation35_spill] sm:$0xff] %v8630_v41  ;;  %v1202_v19 = vpop.f32.mrb[78].mxu0  ;;  %v8635_v43 = vadd.f32 %v8544_v51, %v8298_v54  ;;  %v2443_v59 = vmax.f32 %v8626_v58, %v8630_v41  ;;  %v8680_v41 = vadd.f32 %v8544_v51, %v8330_v63 }
 0x244   : > { %13170 = vst [vmem:[#allocation34_spill] sm:$0xff] %v8618_v45  ;;  %1726 = vst [vmem:[#allocation5 + $0x38] sm:$0xff] %v1491_v57  ;;  %v2411_v37 = vmax.f32 %v2410_v48, %v8614_v46  ;;  %v8639_v35 = vadd.f32 %v8575_v1, %v1202_v19  ;;  %v1204_v60 = vpop.f32.mrb[79].mxu0  ;;  %v8651_v48 = vadd.f32 %v8621_v52, %v1491_v57 }
 0x245   : > { %13172 = vst [vmem:[#allocation36_spill] sm:$0xff] %v8635_v43  ;;  %1731 = vst [vmem:[#allocation5 + $0x60] sm:$0xff] %v1202_v19  ;;  %v8647_v15 = vadd.f32 %v8586_v50, %v1204_v60  ;;  %v1495_v38 = vpop.f32.mrb[78].mxu1  ;;  %v8669_v57 = vadd.f32 %v8520_v44, %v8338_v2 }
 0x246   : > { %13173 = vst [vmem:[#allocation37_spill] sm:$0xff] %v8639_v35  ;;  %13174 = vst [vmem:[#allocation38_spill] sm:$0xff] %v8644_v61  ;;  %v2419_v54 = vmax.f32 %v2418_v49, %v8639_v35  ;;  %v8654_v19 = vadd.f32 %v8589_v40, %v1495_v38  ;;  %v1497_v46 = vpop.f32.mrb[79].mxu1  ;;  %v2412_v29 = vmax.f32 %v2411_v37, %v8618_v45 }
 0x247   : > { %1732 = vst [vmem:[#allocation5 + $0x68] sm:$0xff] %v1204_v60  ;;  %13175 = vst [vmem:[#allocation39_spill] sm:$0xff] %v8647_v15  ;;  %v8661_v60 = vadd.f32 %v8533_v39, %v8326_v62  ;;  %v8665_v49 = vadd.f32 %v8517_v32, %v8333_v0  ;;  %v2427_v35 = vmax.f32 %v2426_v47, %v8635_v43 }
 0x248   : > { %13176 = vst [vmem:[#allocation40_spill] sm:$0xff] %v8651_v48  ;;  %1733 = vst [vmem:[#allocation5 + $0x70] sm:$0xff] %v1495_v38  ;;  %v1208_v38 = vpop.f32.mrb[80].mxu0  ;;  %v2420_v37 = vmax.f32 %v2419_v54, %v8647_v15  ;;  %v2413_v56 = vmax.f32 %v2412_v29, %v8651_v48  ;;  %v2436_v0 = vmax.f32 %v2435_v5, %v8644_v61  ;;  %v9986_v15 = vld [vmem:[#allocation2 + $0x80] sm:$0xff] }
 0x249   : > { %13177 = vst [vmem:[#allocation41_spill] sm:$0xff] %v8654_v19  ;;  %1734 = vst [vmem:[#allocation5 + $0x78] sm:$0xff] %v1497_v46  ;;  %v8674_v45 = vadd.f32 %v8575_v1, %v1208_v38  ;;  %v1210_v62 = vpop.f32.mrb[81].mxu0  ;;  %v1501_v47 = vpop.f32.mrb[80].mxu1  ;;  %v8687_v43 = vadd.f32 %v8621_v52, %v1497_v46  ;;  %v2444_v63 = vmax.f32 %v2443_v59, %v8661_v60 }
 0x24a   : > { %1739 = vst [vmem:[#allocation5 + $0xa0] sm:$0xff] %v1208_v38  ;;  %13179 = vst [vmem:[#allocation43_spill] sm:$0xff] %v8680_v41  ;;  %v8683_v2 = vadd.f32 %v8586_v50, %v1210_v62  ;;  %2414 = vmax.xlane.f32.xlu0 %v2413_v56  ;;  %v8690_v29 = vadd.f32 %v8589_v40, %v1501_v47  ;;  %v1503_v5 = vpop.f32.mrb[81].mxu1  ;;  %v2421_v38 = vmax.f32 %v2420_v37, %v8654_v19 }
 0x24b   : > { %13178 = vst [vmem:[#allocation42_spill] sm:$0xff] %v8674_v45  ;;  %1740 = vst [vmem:[#allocation5 + $0xa8] sm:$0xff] %v1210_v62  ;;  %v2428_v54 = vmax.f32 %v2427_v35, %v8674_v45  ;;  %v2452_v62 = vmax.f32 %v8665_v49, %v8669_v57  ;;  %v8698_v61 = vadd.f32 %v8533_v39, %v8342_v3  ;;  %v1214_v56 = vpop.f32.mrb[82].mxu0 }
 0x24c   : > { %13180 = vst [vmem:[#allocation44_spill] sm:$0xff] %v8683_v2  ;;  %13181 = vst [vmem:[#allocation45_spill] sm:$0xff] %v8687_v43  ;;  %v8702_v46 = vadd.f32 %v8517_v32, %v8349_v6  ;;  %v8706_v35 = vadd.f32 %v8520_v44, %v8354_v7  ;;  %v8710_v59 = vadd.f32 %v8575_v1, %v1214_v56 }
 0x24d   : > { %1741 = vst [vmem:[#allocation5 + $0xb0] sm:$0xff] %v1501_v47  ;;  %13182 = vst [vmem:[#allocation46_spill] sm:$0xff] %v8690_v29  ;;  %v2429_v37 = vmax.f32 %v2428_v54, %v8683_v2  ;;  %v1216_v47 = vpop.f32.mrb[83].mxu0  ;;  %v2422_v3 = vmax.f32 %v2421_v38, %v8687_v43  ;;  %v8715_v45 = vadd.f32 %v8517_v32, %v8365_v10  ;;  %v1507_v54 = vpop.f32.mrb[82].mxu1 }
 0x24e   : > { %1742 = vst [vmem:[#allocation5 + $0xb8] sm:$0xff] %v1503_v5  ;;  %1747 = vst [vmem:[#allocation5 + $0xe0] sm:$0xff] %v1214_v56  ;;  %v8719_v6 = vadd.f32 %v8520_v44, %v8370_v11  ;;  %v8722_v7 = vadd.f32 %v8586_v50, %v1216_v47  ;;  %v2437_v2 = vmax.f32 %v2436_v0, %v8710_v59  ;;  %v1509_v10 = vpop.f32.mrb[83].mxu1 }
 0x24f   : > { %13183 = vst [vmem:[#allocation47_spill] sm:$0xff] %v8710_v59  ;;  %1748 = vst [vmem:[#allocation5 + $0xe8] sm:$0xff] %v1216_v47  ;;  %v8726_v56 = vadd.f32 %v8621_v52, %v1503_v5  ;;  %2423 = vmax.xlane.f32.xlu0 %v2422_v3  ;;  %v8729_v38 = vadd.f32 %v8589_v40, %v1507_v54  ;;  %v2430_v48 = vmax.f32 %v2429_v37, %v8690_v29  ;;  %v1220_v5 = vpop.f32.mrb[84].mxu0 }
 0x250   : > { %13184 = vst [vmem:[#allocation48_spill] sm:$0xff] %v8722_v7  ;;  %1749 = vst [vmem:[#allocation5 + $0xf0] sm:$0xff] %v1507_v54  ;;  %v2445_v11 = vmax.f32 %v2444_v63, %v8680_v41  ;;  %v2453_v43 = vmax.f32 %v2452_v62, %v8698_v61  ;;  %v8736_v47 = vadd.f32 %v8544_v51, %v8346_v4  ;;  %v1222_v62 = vpop.f32.mrb[85].mxu0 }
 0x251   : > { %13185 = vst [vmem:[#allocation49_spill] sm:$0xff] %v8726_v56  ;;  %13186 = vst [vmem:[#allocation50_spill] sm:$0xff] %v8729_v38  ;;  %v8740_v0 = vadd.f32 %v8533_v39, %v8358_v8  ;;  %v2461_v3 = vmax.f32 %v8702_v46, %v8706_v35  ;;  %v2438_v54 = vmax.f32 %v2437_v2, %v8722_v7  ;;  %v1513_v59 = vpop.f32.mrb[84].mxu1 }
 0x252   : > { %13187 = vst [vmem:[#allocation51_spill] sm:$0xff] %v8736_v47  ;;  %1750 = vst [vmem:[#allocation5 + $0xf8] sm:$0xff] %v1509_v10  ;;  %v8746_v63 = vadd.f32 %v8575_v1, %v1220_v5  ;;  %v2431_v37 = vmax.f32 %v2430_v48, %v8726_v56  ;;  %v2470_v4 = vmax.f32 %v8715_v45, %v8719_v6  ;;  %v1515_v7 = vpop.f32.mrb[85].mxu1 }
 0x253   : > { %1755 = vst [vmem:[#allocation5 + $0x120] sm:$0xff] %v1220_v5  ;;  %v8753_v8 = vadd.f32 %v8533_v39, %v8374_v12  ;;  %1756 = vst [vmem:[#allocation5 + $0x128] sm:$0xff] %v1222_v62  ;;  %v8756_v41 = vadd.f32 %v8586_v50, %v1222_v62  ;;  %v8760_v5 = vadd.f32 %v8621_v52, %v1509_v10 }
 0x254   : > { %13188 = vst [vmem:[#allocation52_spill] sm:$0xff] %v8746_v63  ;;  %v2446_v2 = vmax.f32 %v2445_v11, %v8746_v63  ;;  %2432 = vmax.xlane.f32.xlu1 %v2431_v37  ;;  %1757 = vst [vmem:[#allocation5 + $0x130] sm:$0xff] %v1513_v59  ;;  %v8763_v48 = vadd.f32 %v8589_v40, %v1513_v59  ;;  %v2439_v56 = vmax.f32 %v2438_v54, %v8729_v38  ;;  %v1226_v37 = vpop.f32.mrb[86].mxu0  ;;  %v13236_v38 = vld [vmem:[#allocation21_spill] sm:$0xff] }
 0x255   : > { %13189 = vst [vmem:[#allocation53_spill] sm:$0xff] %v8753_v8  ;;  %13190 = vst [vmem:[#allocation54_spill] sm:$0xff] %v8756_v41  ;;  %v2454_v12 = vmax.f32 %v2453_v43, %v8736_v47  ;;  %v8769_v62 = vadd.f32 %v8544_v51, %v8362_v9  ;;  %v8773_v11 = vadd.f32 %v8517_v32, %v8381_v14  ;;  %v1228_v9 = vpop.f32.mrb[87].mxu0 }
 0x256   : > { %13191 = vst [vmem:[#allocation55_spill] sm:$0xff] %v8760_v5  ;;  %13192 = vst [vmem:[#allocation56_spill] sm:$0xff] %v8763_v48  ;;  %v8777_v10 = vadd.f32 %v8520_v44, %v8386_v16  ;;  %v2462_v59 = vmax.f32 %v2461_v3, %v8740_v0  ;;  %v2447_v54 = vmax.f32 %v2446_v2, %v8756_v41  ;;  %v1519_v3 = vpop.f32.mrb[86].mxu1 }
 0x257   : > { %13193 = vst [vmem:[#allocation57_spill] sm:$0xff] %v8769_v62  ;;  %13194 = vst [vmem:[#allocation58_spill] sm:$0xff] %v8773_v11  ;;  %v8782_v43 = vadd.f32 %v8575_v1, %v1226_v37  ;;  %v2440_v47 = vmax.f32 %v2439_v56, %v8760_v5  ;;  %v2471_v14 = vmax.f32 %v2470_v4, %v8753_v8  ;;  %v1521_v4 = vpop.f32.mrb[87].mxu1  ;;  %v10183_v8 = vld [vmem:[#allocation2 + $0x118] sm:$0xff] }
 0x258   : > { %13195 = vst [vmem:[#allocation59_spill] sm:$0xff] %v8777_v10  ;;  %1758 = vst [vmem:[#allocation5 + $0x138] sm:$0xff] %v1515_v7  ;;  %v8788_v63 = vadd.f32 %v8544_v51, %v8378_v13  ;;  %v8791_v16 = vadd.f32 %v8586_v50, %v1228_v9  ;;  %v8795_v41 = vadd.f32 %v8621_v52, %v1515_v7 }
 0x259   : > { %1763 = vst [vmem:[#allocation5 + $0x160] sm:$0xff] %v1226_v37  ;;  %13196 = vst [vmem:[#allocation60_spill] sm:$0xff] %v8782_v43  ;;  %v2455_v2 = vmax.f32 %v2454_v12, %v8782_v43  ;;  %2441 = vmax.xlane.f32.xlu1 %v2440_v47  ;;  %v8798_v56 = vadd.f32 %v8589_v40, %v1519_v3  ;;  %v2448_v37 = vmax.f32 %v2447_v54, %v8763_v48  ;;  %v1232_v47 = vpop.f32.mrb[88].mxu0 }
 0x25a   : > { %13197 = vst [vmem:[#allocation61_spill] sm:$0xff] %v8788_v63  ;;  %1764 = vst [vmem:[#allocation5 + $0x168] sm:$0xff] %v1228_v9  ;;  %v2479_v13 = vmax.f32 %v8773_v11, %v8777_v10  ;;  %v8805_v9 = vadd.f32 %v8533_v39, %v8390_v17  ;;  %v8809_v12 = vadd.f32 %v8517_v32, %v8397_v20  ;;  %v1234_v17 = vpop.f32.mrb[89].mxu0  ;;  %v10017_v10 = vld [vmem:[#allocation2 + $0x98] sm:$0xff] }
 0x25b   : > { %13198 = vst [vmem:[#allocation62_spill] sm:$0xff] %v8791_v16  ;;  %13199 = vst [vmem:[#allocation63_spill] sm:$0xff] %v8795_v41  ;;  %v8813_v7 = vadd.f32 %v8520_v44, %v8402_v21  ;;  %v2456_v54 = vmax.f32 %v2455_v2, %v8791_v16  ;;  %v8818_v43 = vadd.f32 %v8575_v1, %v1232_v47 }
 0x25c   : > { %1765 = vst [vmem:[#allocation5 + $0x170] sm:$0xff] %v1519_v3  ;;  %13200 = vst [vmem:[#allocation64_spill] sm:$0xff] %v8798_v56  ;;  %v2463_v3 = vmax.f32 %v2462_v59, %v8769_v62  ;;  %v2449_v48 = vmax.f32 %v2448_v37, %v8795_v41  ;;  %v2472_v20 = vmax.f32 %v2471_v14, %v8788_v63  ;;  %v1525_v59 = vpop.f32.mrb[88].mxu1  ;;  %v13231_v41 = vld [vmem:[#allocation19_spill] sm:$0xff] }
 0x25d   : > { %13201 = vst [vmem:[#allocation65_spill] sm:$0xff] %v8805_v9  ;;  %1766 = vst [vmem:[#allocation5 + $0x178] sm:$0xff] %v1521_v4  ;;  %v8824_v5 = vadd.f32 %v8544_v51, %v8394_v18  ;;  %v8827_v21 = vadd.f32 %v8586_v50, %v1234_v17  ;;  %v8831_v16 = vadd.f32 %v8621_v52, %v1521_v4  ;;  %v1527_v14 = vpop.f32.mrb[89].mxu1 }
 0x25e   : > { %1771 = vst [vmem:[#allocation5 + $0x1a0] sm:$0xff] %v1232_v47  ;;  %13202 = vst [vmem:[#allocation66_spill] sm:$0xff] %v8818_v43  ;;  %v2464_v2 = vmax.f32 %v2463_v3, %v8818_v43  ;;  %2450 = vmax.xlane.f32.xlu0 %v2449_v48  ;;  %v8834_v37 = vadd.f32 %v8589_v40, %v1525_v59  ;;  %v2457_v47 = vmax.f32 %v2456_v54, %v8798_v56  ;;  %v1238_v48 = vpop.f32.mrb[90].mxu0 }
 0x25f   : > { %13203 = vst [vmem:[#allocation67_spill] sm:$0xff] %v8824_v5  ;;  %1772 = vst [vmem:[#allocation5 + $0x1a8] sm:$0xff] %v1234_v17  ;;  %v2480_v18 = vmax.f32 %v2479_v13, %v8805_v9  ;;  %v2488_v17 = vmax.f32 %v8809_v12, %v8813_v7  ;;  %v8842_v63 = vadd.f32 %v8533_v39, %v8406_v22  ;;  %v10007_v9 = vld [vmem:[#allocation2 + $0x90] sm:$0xff] }
 0x260   : > { %13204 = vst [vmem:[#allocation68_spill] sm:$0xff] %v8827_v21  ;;  %13205 = vst [vmem:[#allocation69_spill] sm:$0xff] %v8831_v16  ;;  %v8846_v4 = vadd.f32 %v8517_v32, %v8413_v24  ;;  %v8850_v3 = vadd.f32 %v8520_v44, %v8418_v25  ;;  %v2465_v54 = vmax.f32 %v2464_v2, %v8827_v21  ;;  %v1531_v2 = vpop.f32.mrb[90].mxu1 }
 0x261   : > { %1773 = vst [vmem:[#allocation5 + $0x1b0] sm:$0xff] %v1525_v59  ;;  %13206 = vst [vmem:[#allocation70_spill] sm:$0xff] %v8834_v37  ;;  %v8854_v13 = vadd.f32 %v8575_v1, %v1238_v48  ;;  %v1240_v59 = vpop.f32.mrb[91].mxu0  ;;  %v2458_v22 = vmax.f32 %v2457_v47, %v8831_v16  ;;  %v8859_v43 = vadd.f32 %v8517_v32, %v8429_v28  ;;  %v1533_v28 = vpop.f32.mrb[91].mxu1 }
 0x262   : > { %13207 = vst [vmem:[#allocation71_spill] sm:$0xff] %v8846_v4  ;;  %1774 = vst [vmem:[#allocation5 + $0x1b8] sm:$0xff] %v1527_v14  ;;  %v8863_v24 = vadd.f32 %v8520_v44, %v8434_v30  ;;  %v8866_v25 = vadd.f32 %v8586_v50, %v1240_v59  ;;  %v8873_v47 = vadd.f32 %v8589_v40, %v1531_v2 }
 0x263   : > { %13208 = vst [vmem:[#allocation72_spill] sm:$0xff] %v8850_v3  ;;  %1779 = vst [vmem:[#allocation5 + $0x1e0] sm:$0xff] %v1238_v48  ;;  %v2473_v21 = vmax.f32 %v2472_v20, %v8854_v13  ;;  %v8870_v48 = vadd.f32 %v8621_v52, %v1527_v14  ;;  %2459 = vmax.xlane.f32.xlu1 %v2458_v22  ;;  %v2466_v16 = vmax.f32 %v2465_v54, %v8834_v37  ;;  %v1244_v14 = vpop.f32.mrb[92].mxu0  ;;  %v13224_v37 = vld [vmem:[#allocation16_spill] sm:$0xff] }
 0x264   : > { %13209 = vst [vmem:[#allocation73_spill] sm:$0xff] %v8854_v13  ;;  %1780 = vst [vmem:[#allocation5 + $0x1e8] sm:$0xff] %v1240_v59  ;;  %v2481_v30 = vmax.f32 %v2480_v18, %v8824_v5  ;;  %v2489_v56 = vmax.f32 %v2488_v17, %v8842_v63  ;;  %v8880_v59 = vadd.f32 %v8544_v51, %v8410_v23  ;;  %v1246_v17 = vpop.f32.mrb[93].mxu0  ;;  %v1537_v5 = vpop.f32.mrb[92].mxu1 }
 0x265   : > { %13210 = vst [vmem:[#allocation74_spill] sm:$0xff] %v8866_v25  ;;  %13211 = vst [vmem:[#allocation75_spill] sm:$0xff] %v8870_v48  ;;  %v8884_v20 = vadd.f32 %v8533_v39, %v8422_v26  ;;  %v2497_v22 = vmax.f32 %v8846_v4, %v8850_v3  ;;  %v8890_v18 = vadd.f32 %v8575_v1, %v1244_v14  ;;  %v9976_v4 = vld [vmem:[#allocation2 + $0x78] sm:$0xff] }
 0x266   : > { %1781 = vst [vmem:[#allocation5 + $0x1f0] sm:$0xff] %v1531_v2  ;;  %13212 = vst [vmem:[#allocation76_spill] sm:$0xff] %v8873_v47  ;;  %v2474_v2 = vmax.f32 %v2473_v21, %v8866_v25  ;;  %v2467_v54 = vmax.f32 %v2466_v16, %v8870_v48  ;;  %v2506_v23 = vmax.f32 %v8859_v43, %v8863_v24  ;;  %v1539_v25 = vpop.f32.mrb[93].mxu1 }
 0x267   : > { %13213 = vst [vmem:[#allocation77_spill] sm:$0xff] %v8880_v59  ;;  %13214 = vst [vmem:[#allocation78_spill] sm:$0xff] %v8884_v20  ;;  %v8897_v26 = vadd.f32 %v8533_v39, %v8438_v31  ;;  %v8900_v13 = vadd.f32 %v8586_v50, %v1246_v17  ;;  %v2482_v21 = vmax.f32 %v2481_v30, %v8890_v18 }
 0x268   : > { %1782 = vst [vmem:[#allocation5 + $0x1f8] sm:$0xff] %v1533_v28  ;;  %1787 = vst [vmem:[#allocation5 + $0x220] sm:$0xff] %v1244_v14  ;;  %v8904_v14 = vadd.f32 %v8621_v52, %v1533_v28  ;;  %2468 = vmax.xlane.f32.xlu0 %v2467_v54  ;;  %v8907_v16 = vadd.f32 %v8589_v40, %v1537_v5  ;;  %v2475_v48 = vmax.f32 %v2474_v2, %v8873_v47  ;;  %v13221_v28 = vld [vmem:[#allocation17_spill] sm:$0xff] }
 0x269   : > { %13215 = vst [vmem:[#allocation79_spill] sm:$0xff] %v8890_v18  ;;  %1788 = vst [vmem:[#allocation5 + $0x228] sm:$0xff] %v1246_v17  ;;  %v2490_v31 = vmax.f32 %v2489_v56, %v8880_v59  ;;  %v8913_v17 = vadd.f32 %v8544_v51, %v8426_v27  ;;  %v8917_v30 = vadd.f32 %v8517_v32, %v8445_v34  ;;  %v1250_v18 = vpop.f32.mrb[94].mxu0 }
 0x26a   : > { %13216 = vst [vmem:[#allocation80_spill] sm:$0xff] %v8900_v13  ;;  %13217 = vst [vmem:[#allocation81_spill] sm:$0xff] %v8904_v14  ;;  %v8921_v54 = vadd.f32 %v8520_v44, %v13221_v28  ;;  %v2483_v2 = vmax.f32 %v2482_v21, %v8900_v13  ;;  %v8926_v56 = vadd.f32 %v8575_v1, %v1250_v18  ;;  %v1252_v27 = vpop.f32.mrb[95].mxu0 }
 0x26b   : > { %1789 = vst [vmem:[#allocation5 + $0x230] sm:$0xff] %v1537_v5  ;;  %13218 = vst [vmem:[#allocation82_spill] sm:$0xff] %v8907_v16  ;;  %v2498_v5 = vmax.f32 %v2497_v22, %v8884_v20  ;;  %v2476_v47 = vmax.f32 %v2475_v48, %v8904_v14  ;;  %v2507_v34 = vmax.f32 %v2506_v23, %v8897_v26  ;;  %v1543_v22 = vpop.f32.mrb[94].mxu1  ;;  %v13229_v14 = vld [vmem:[#allocation18_spill] sm:$0xff] }
 0x26c   : > { %13219 = vst [vmem:[#allocation83_spill] sm:$0xff] %v8913_v17  ;;  %13220 = vst [vmem:[#allocation84_spill] sm:$0xff] %v8917_v30  ;;  %v8932_v62 = vadd.f32 %v8544_v51, %v13224_v37  ;;  %v8935_v28 = vadd.f32 %v8586_v50, %v1252_v27  ;;  %v2491_v21 = vmax.f32 %v2490_v31, %v8926_v56 }
 0x26d   : > { %13222 = vst [vmem:[#allocation17_spill] sm:$0xff] %v8921_v54  ;;  %1790 = vst [vmem:[#allocation5 + $0x238] sm:$0xff] %v1539_v25  ;;  %v8939_v13 = vadd.f32 %v8621_v52, %v1539_v25  ;;  %2477 = vmax.xlane.f32.xlu1 %v2476_v47  ;;  %v8942_v48 = vadd.f32 %v8589_v40, %v1543_v22  ;;  %v2484_v23 = vmax.f32 %v2483_v2, %v8907_v16  ;;  %v13233_v25 = vld [vmem:[#allocation20_spill] sm:$0xff] }
 0x26e   : > { %1795 = vst [vmem:[#allocation5 + $0x260] sm:$0xff] %v1250_v18  ;;  %13223 = vst [vmem:[#allocation85_spill] sm:$0xff] %v8926_v56  ;;  %v1545_v18 = vpop.f32.mrb[95].mxu1  ;;  %v2515_v37 = vmax.f32 %v8917_v30, %v8921_v54  ;;  %v8953_v31 = vadd.f32 %v8517_v32, %v13231_v41  ;;  %v8957_v47 = vadd.f32 %v8520_v44, %v13233_v25  ;;  %v13238_v25 = vld [vmem:[#allocation22_spill] sm:$0xff] }
 0x26f   : > { %13225 = vst [vmem:[#allocation16_spill] sm:$0xff] %v8932_v62  ;;  %1796 = vst [vmem:[#allocation5 + $0x268] sm:$0xff] %v1252_v27  ;;  %v8949_v27 = vadd.f32 %v8533_v39, %v13229_v14  ;;  %v2499_v56 = vmax.f32 %v2498_v5, %v8913_v17  ;;  %v2492_v2 = vmax.f32 %v2491_v21, %v8935_v28  ;;  %v1549_v21 = vpop.f32.mrb[96].mxu1 }
 0x270   : > { %13226 = vst [vmem:[#allocation86_spill] sm:$0xff] %v8935_v28  ;;  %13227 = vst [vmem:[#allocation87_spill] sm:$0xff] %v8939_v13  ;;  %v2485_v59 = vmax.f32 %v2484_v23, %v8939_v13  ;;  %v2508_v41 = vmax.f32 %v2507_v34, %v8932_v62  ;;  %v8968_v54 = vadd.f32 %v8517_v32, %v13236_v38  ;;  %v1551_v38 = vpop.f32.mrb[97].mxu1  ;;  %v7403_v13 = vld [vmem:[#allocation5 + $0x318] sm:$0xff] }
 0x271   : > { %1797 = vst [vmem:[#allocation5 + $0x270] sm:$0xff] %v1543_v22  ;;  %13228 = vst [vmem:[#allocation88_spill] sm:$0xff] %v8942_v48  ;;  %v1256_v22 = vpop.f32.mrb[96].mxu0  ;;  %v8972_v30 = vadd.f32 %v8520_v44, %v13238_v25  ;;  %v8979_v28 = vadd.f32 %v8621_v52, %v1545_v18  ;;  %v8982_v34 = vadd.f32 %v8589_v40, %v1549_v21 }
 0x272   : > { %13230 = vst [vmem:[#allocation18_spill] sm:$0xff] %v8949_v27  ;;  %13232 = vst [vmem:[#allocation19_spill] sm:$0xff] %v8953_v31  ;;  %v8962_v16 = vadd.f32 %v8575_v1, %v1256_v22  ;;  %v1258_v14 = vpop.f32.mrb[97].mxu0  ;;  %2486 = vmax.xlane.f32.xlu0 %v2485_v59  ;;  %v2493_v23 = vmax.f32 %v2492_v2, %v8942_v48  ;;  %v2516_v25 = vmax.f32 %v2515_v37, %v8949_v27 }
 0x273   : > { %13234 = vst [vmem:[#allocation20_spill] sm:$0xff] %v8957_v47  ;;  %1798 = vst [vmem:[#allocation5 + $0x278] sm:$0xff] %v1545_v18  ;;  %v8975_v5 = vadd.f32 %v8586_v50, %v1258_v14  ;;  %v8989_v17 = vadd.f32 %v7403_v13, %v8544_v51  ;;  %v1262_v59 = vpop.f32.mrb[98].mxu0  ;;  %v2533_v62 = vmax.f32 %v8968_v54, %v8972_v30 }
 0x274   : > { %1803 = vst [vmem:[#allocation5 + $0x2a0] sm:$0xff] %v1256_v22  ;;  %13235 = vst [vmem:[#allocation89_spill] sm:$0xff] %v8962_v16  ;;  %v2500_v22 = vmax.f32 %v2499_v56, %v8962_v16  ;;  %v7404_v56 = vld [vmem:[#allocation5 + $0x350] sm:$0xff]  ;;  %v8999_v37 = vadd.f32 %v8575_v1, %v1262_v59  ;;  %v1264_v48 = vpop.f32.mrb[99].mxu0  ;;  %v2494_v13 = vmax.f32 %v2493_v23, %v8979_v28 }
 0x275   : > { %13237 = vst [vmem:[#allocation21_spill] sm:$0xff] %v8968_v54  ;;  %13239 = vst [vmem:[#allocation22_spill] sm:$0xff] %v8972_v30  ;;  %v8992_v18 = vadd.f32 %v7404_v56, %v8533_v39  ;;  %v9005_v56 = vadd.f32 %v8586_v50, %v1264_v48  ;;  %v9008_v27 = vadd.f32 %v8621_v52, %v1551_v38 }
 0x276   : > { %1804 = vst [vmem:[#allocation5 + $0x2a8] sm:$0xff] %v1258_v14  ;;  %13240 = vst [vmem:[#allocation90_spill] sm:$0xff] %v8975_v5  ;;  %v2524_v14 = vmax.f32 %v8953_v31, %v8957_v47  ;;  %v2501_v2 = vmax.f32 %v2500_v22, %v8975_v5  ;;  %v2509_v22 = vmax.f32 %v2508_v41, %v8999_v37  ;;  %2495 = vmax.xlane.f32.xlu1 %v2494_v13  ;;  %v7408_v41 = vld [vmem:[#allocation5 + $0x3c8] sm:$0xff]  ;;  %v9997_v47 = vld [vmem:[#allocation2 + $0x88] sm:$0xff] }
 0x277   : > { %13241 = vst [vmem:[#allocation91_spill] sm:$0xff] %v8979_v28  ;;  %1805 = vst [vmem:[#allocation5 + $0x2b0] sm:$0xff] %v1549_v21  ;;  %v7405_v21 = vld [vmem:[#allocation5 + $0x390] sm:$0xff]  ;;  %v7731_v28 = vmov 0   ;;  %v2517_v30 = vmax.f32 %v2516_v25, %v8989_v17  ;;  %v9023_v13 = vadd.f32 %v7408_v41, %v8520_v44 }
 0x278   : > { %13242 = vst [vmem:[#allocation92_spill] sm:$0xff] %v8982_v34  ;;  %13243 = vst [vmem:[#allocation93_spill] sm:$0xff] %v8989_v17  ;;  %v8995_v16 = vadd.f32 %v7405_v21, %v8533_v39  ;;  %v1555_v21 = vpop.f32.mrb[98].mxu1  ;;  %v2502_v23 = vmax.f32 %v2501_v2, %v8982_v34  ;;  %6717 = vset.pattern.permute.xlu0 %v7731_v28  ;;  %6718 = vset.pattern.permute.xlu1 %v7731_v28  ;;  %v7409_v17 = vld [vmem:[#allocation5 + $0x398] sm:$0xff] }
 0x279   : > { %13244 = vst [vmem:[#allocation94_spill] sm:$0xff] %v8992_v18  ;;  %1806 = vst [vmem:[#allocation5 + $0x2b8] sm:$0xff] %v1551_v38  ;;  %v1557_v5 = vpop.f32.mrb[99].mxu1  ;;  %v7407_v38 = vld [vmem:[#allocation5 + $0x3c0] sm:$0xff]  ;;  %v2525_v2 = vmax.f32 %v2524_v14, %v8992_v18  ;;  %v2510_v34 = vmax.f32 %v2509_v22, %v9005_v56  ;;  %v9035_v41 = vadd.f32 %v7409_v17, %v8544_v51 }
 0x27a   : > { %13245 = vst [vmem:[#allocation95_spill] sm:$0xff] %v8995_v16  ;;  %1811 = vst [vmem:[#allocation5 + $0x2e0] sm:$0xff] %v1262_v59  ;;  %v9012_v59 = vadd.f32 %v8589_v40, %v1555_v21  ;;  %v9020_v29 = vadd.f32 %v7407_v38, %v8517_v32  ;;  %v9032_v38 = vmax.f32 %v2533_v62, %v8995_v16  ;;  %v1561_v14 = vpop.f32.mrb[100].mxu1  ;;  %v7411_v16 = vld [vmem:[#allocation5 + $0x400] sm:$0xff] }
 0x27b   : > { %13246 = vst [vmem:[#allocation96_spill] sm:$0xff] %v8999_v37  ;;  %1812 = vst [vmem:[#allocation5 + $0x2e8] sm:$0xff] %v1264_v48  ;;  %v7406_v48 = vld [vmem:[#allocation5 + $0x358] sm:$0xff]  ;;  %v2503_v37 = vmax.f32 %v2502_v23, %v9008_v27  ;;  %v9045_v23 = vadd.f32 %v8589_v40, %v1561_v14  ;;  %v1563_v62 = vpop.f32.mrb[101].mxu1 }
 0x27c   : > { %13247 = vst [vmem:[#allocation97_spill] sm:$0xff] %v9005_v56  ;;  %13248 = vst [vmem:[#allocation98_spill] sm:$0xff] %v9008_v27  ;;  %v9017_v54 = vadd.f32 %v7406_v48, %v8544_v51  ;;  %v2511_v27 = vmax.f32 %v2510_v34, %v9012_v59  ;;  %v2542_v17 = vmax.f32 %v9020_v29, %v9023_v13  ;;  %v7410_v56 = vld [vmem:[#allocation5 + $0x3d0] sm:$0xff] }
 0x27d   : > { %1813 = vst [vmem:[#allocation5 + $0x2f0] sm:$0xff] %v1555_v21  ;;  %13249 = vst [vmem:[#allocation99_spill] sm:$0xff] %v9012_v59  ;;  %v1268_v21 = vpop.f32.mrb[100].mxu0  ;;  %2504 = vmax.xlane.f32.xlu0 %v2503_v37 }
 0x27e   : > { %13250 = vst [vmem:[#allocation100_spill] sm:$0xff] %v9017_v54  ;;  %13251 = vst [vmem:[#allocation101_spill] sm:$0xff] %v9020_v29  ;;  %v9028_v25 = vadd.f32 %v8575_v1, %v1268_v21  ;;  %v1270_v48 = vpop.f32.mrb[101].mxu0  ;;  %v7413_v29 = vld [vmem:[#allocation5 + $0x3d8] sm:$0xff] }
 0x27f   : > { %13252 = vst [vmem:[#allocation102_spill] sm:$0xff] %v9023_v13  ;;  %1814 = vst [vmem:[#allocation5 + $0x2f8] sm:$0xff] %v1557_v5  ;;  %v9038_v28 = vadd.f32 %v8586_v50, %v1270_v48 }
 0x280   : > { %1819 = vst [vmem:[#allocation5 + $0x320] sm:$0xff] %v1268_v21  ;;  %13253 = vst [vmem:[#allocation103_spill] sm:$0xff] %v9028_v25  ;;  %v2518_v22 = vmax.f32 %v2517_v30, %v9028_v25  ;;  %v9042_v21 = vadd.f32 %v8621_v52, %v1557_v5  ;;  %v9054_v30 = vadd.f32 %v7411_v16, %v8517_v32  ;;  %v7412_v5 = vld [vmem:[#allocation5 + $0x408] sm:$0xff] }
 0x281   : > { %13254 = vst [vmem:[#allocation104_spill] sm:$0xff] %v9035_v41  ;;  %1820 = vst [vmem:[#allocation5 + $0x328] sm:$0xff] %v1270_v48  ;;  %v9051_v48 = vadd.f32 %v7410_v56, %v8533_v39  ;;  %v9057_v37 = vadd.f32 %v7412_v5, %v8520_v44  ;;  %v2526_v25 = vmax.f32 %v2525_v2, %v9017_v54  ;;  %v1567_v2 = vpop.f32.mrb[102].mxu1  ;;  %v7417_v54 = vld [vmem:[#allocation5 + $0x480] sm:$0xff] }
 0x282   : > { %13255 = vst [vmem:[#allocation105_spill] sm:$0xff] %v9038_v28  ;;  %13256 = vst [vmem:[#allocation106_spill] sm:$0xff] %v9042_v21  ;;  %v2519_v34 = vmax.f32 %v2518_v22, %v9038_v28  ;;  %v2512_v13 = vmax.f32 %v2511_v27, %v9042_v21  ;;  %v2535_v16 = vmax.f32 %v9032_v38, %v9035_v41  ;;  %v1569_v38 = vpop.f32.mrb[103].mxu1  ;;  %v7414_v21 = vld [vmem:[#allocation5 + $0x410] sm:$0xff] }
 0x283   : > { %1821 = vst [vmem:[#allocation5 + $0x330] sm:$0xff] %v1561_v14  ;;  %13257 = vst [vmem:[#allocation107_spill] sm:$0xff] %v9045_v23  ;;  %v1274_v14 = vpop.f32.mrb[102].mxu0  ;;  %v9068_v5 = vadd.f32 %v7413_v29, %v8544_v51  ;;  %v9078_v27 = vadd.f32 %v8589_v40, %v1567_v2  ;;  %v2543_v29 = vmax.f32 %v2542_v17, %v9051_v48 }
 0x284   : > { %13258 = vst [vmem:[#allocation108_spill] sm:$0xff] %v9051_v48  ;;  %13259 = vst [vmem:[#allocation109_spill] sm:$0xff] %v9054_v30  ;;  %v9062_v59 = vadd.f32 %v8575_v1, %v1274_v14  ;;  %v1276_v56 = vpop.f32.mrb[103].mxu0  ;;  %2513 = vmax.xlane.f32.xlu1 %v2512_v13  ;;  %v2520_v28 = vmax.f32 %v2519_v34, %v9045_v23  ;;  %v9085_v41 = vadd.f32 %v7414_v21, %v8533_v39 }
 0x285   : > { %13260 = vst [vmem:[#allocation110_spill] sm:$0xff] %v9057_v37  ;;  %1822 = vst [vmem:[#allocation5 + $0x338] sm:$0xff] %v1563_v62  ;;  %v9071_v20 = vadd.f32 %v8586_v50, %v1276_v56  ;;  %v1280_v13 = vpop.f32.mrb[104].mxu0 }
 0x286   : > { %1827 = vst [vmem:[#allocation5 + $0x360] sm:$0xff] %v1274_v14  ;;  %13261 = vst [vmem:[#allocation111_spill] sm:$0xff] %v9062_v59  ;;  %v2527_v22 = vmax.f32 %v2526_v25, %v9062_v59  ;;  %v9075_v14 = vadd.f32 %v8621_v52, %v1563_v62  ;;  %v7415_v25 = vld [vmem:[#allocation5 + $0x440] sm:$0xff]  ;;  %v9095_v17 = vadd.f32 %v8575_v1, %v1280_v13  ;;  %v1282_v23 = vpop.f32.mrb[105].mxu0 }
 0x287   : > { %13262 = vst [vmem:[#allocation112_spill] sm:$0xff] %v9068_v5  ;;  %1828 = vst [vmem:[#allocation5 + $0x368] sm:$0xff] %v1276_v56  ;;  %v2551_v56 = vmax.f32 %v9054_v30, %v9057_v37  ;;  %v9088_v62 = vadd.f32 %v7415_v25, %v8517_v32  ;;  %v9099_v37 = vadd.f32 %v7417_v54, %v8517_v32  ;;  %v7418_v25 = vld [vmem:[#allocation5 + $0x488] sm:$0xff] }
 0x288   : > { %13263 = vst [vmem:[#allocation113_spill] sm:$0xff] %v9071_v20  ;;  %13264 = vst [vmem:[#allocation114_spill] sm:$0xff] %v9075_v14  ;;  %v2528_v34 = vmax.f32 %v2527_v22, %v9071_v20  ;;  %v2521_v21 = vmax.f32 %v2520_v28, %v9075_v14  ;;  %v9102_v30 = vadd.f32 %v7418_v25, %v8520_v44  ;;  %v1573_v22 = vpop.f32.mrb[104].mxu1 }
 0x289   : > { %1829 = vst [vmem:[#allocation5 + $0x370] sm:$0xff] %v1567_v2  ;;  %13265 = vst [vmem:[#allocation115_spill] sm:$0xff] %v9078_v27  ;;  %v7416_v2 = vld [vmem:[#allocation5 + $0x448] sm:$0xff]  ;;  %v2536_v20 = vmax.f32 %v2535_v16, %v9095_v17  ;;  %v9112_v28 = vadd.f32 %v8589_v40, %v1573_v22  ;;  %v1575_v54 = vpop.f32.mrb[105].mxu1  ;;  %v2544_v25 = vmax.f32 %v2543_v29, %v9068_v5  ;;  %v7420_v16 = vld [vmem:[#allocation5 + $0x450] sm:$0xff] }
 0x28a   : > { %13266 = vst [vmem:[#allocation116_spill] sm:$0xff] %v9085_v41  ;;  %13267 = vst [vmem:[#allocation117_spill] sm:$0xff] %v9088_v62  ;;  %v9091_v59 = vadd.f32 %v7416_v2, %v8520_v44  ;;  %v9105_v2 = vadd.f32 %v8586_v50, %v1282_v23  ;;  %2522 = vmax.xlane.f32.xlu0 %v2521_v21  ;;  %v2529_v14 = vmax.f32 %v2528_v34, %v9078_v27  ;;  %v1286_v21 = vpop.f32.mrb[106].mxu0  ;;  %v7421_v27 = vld [vmem:[#allocation5 + $0x490] sm:$0xff] }
 0x28b   : > { %1830 = vst [vmem:[#allocation5 + $0x378] sm:$0xff] %v1569_v38  ;;  %1835 = vst [vmem:[#allocation5 + $0x3a0] sm:$0xff] %v1280_v13  ;;  %v9109_v13 = vadd.f32 %v8621_v52, %v1569_v38  ;;  %v2552_v48 = vmax.f32 %v2551_v56, %v9085_v41  ;;  %v9121_v38 = vadd.f32 %v7420_v16, %v8533_v39  ;;  %v1288_v56 = vpop.f32.mrb[107].mxu0 }
 0x28c   : > { %13268 = vst [vmem:[#allocation118_spill] sm:$0xff] %v9091_v59  ;;  %13269 = vst [vmem:[#allocation119_spill] sm:$0xff] %v9095_v17  ;;  %v2537_v17 = vmax.f32 %v2536_v20, %v9105_v2  ;;  %v9127_v29 = vadd.f32 %v8575_v1, %v1286_v21  ;;  %v9133_v16 = vadd.f32 %v7421_v27, %v8533_v39 }
 0x28d   : > { %13270 = vst [vmem:[#allocation120_spill] sm:$0xff] %v9099_v37  ;;  %13271 = vst [vmem:[#allocation121_spill] sm:$0xff] %v9102_v30  ;;  %v2530_v34 = vmax.f32 %v2529_v14, %v9109_v13  ;;  %v9136_v5 = vadd.f32 %v8586_v50, %v1288_v56 }
 0x28e   : > { %1836 = vst [vmem:[#allocation5 + $0x3a8] sm:$0xff] %v1282_v23  ;;  %13272 = vst [vmem:[#allocation122_spill] sm:$0xff] %v9105_v2  ;;  %v7419_v23 = vld [vmem:[#allocation5 + $0x418] sm:$0xff]  ;;  %v2545_v20 = vmax.f32 %v2544_v25, %v9127_v29 }
 0x28f   : > { %13273 = vst [vmem:[#allocation123_spill] sm:$0xff] %v9109_v13  ;;  %1837 = vst [vmem:[#allocation5 + $0x3b0] sm:$0xff] %v1573_v22  ;;  %v9118_v3 = vadd.f32 %v7419_v23, %v8544_v51  ;;  %v2560_v22 = vmax.f32 %v9088_v62, %v9091_v59  ;;  %v2569_v23 = vmax.f32 %v9099_v37, %v9102_v30  ;;  %v1579_v59 = vpop.f32.mrb[106].mxu1  ;;  %2531 = vmax.xlane.f32.xlu1 %v2530_v34  ;;  %v7422_v30 = vld [vmem:[#allocation5 + $0x458] sm:$0xff]  ;;  %v7423_v37 = vld [vmem:[#allocation5 + $0x4c0] sm:$0xff] }
 0x290   : > { %13274 = vst [vmem:[#allocation124_spill] sm:$0xff] %v9112_v28  ;;  %13276 = vst [vmem:[#allocation126_spill] sm:$0xff] %v9121_v38  ;;  %v9143_v14 = vadd.f32 %v8589_v40, %v1579_v59  ;;  %v1581_v2 = vpop.f32.mrb[107].mxu1  ;;  %v2538_v13 = vmax.f32 %v2537_v17, %v9112_v28  ;;  %v9151_v25 = vadd.f32 %v7423_v37, %v8517_v32 }
 0x291   : > { %13275 = vst [vmem:[#allocation125_spill] sm:$0xff] %v9118_v3  ;;  %1838 = vst [vmem:[#allocation5 + $0x3b8] sm:$0xff] %v1575_v54  ;;  %v2553_v27 = vmax.f32 %v2552_v48, %v9118_v3  ;;  %v2546_v17 = vmax.f32 %v2545_v20, %v9136_v5  ;;  %v9163_v37 = vmax.f32 %v2569_v23, %v9133_v16  ;;  %v7425_v3 = vld [vmem:[#allocation5 + $0x498] sm:$0xff] }
 0x292   : > { %1843 = vst [vmem:[#allocation5 + $0x3e0] sm:$0xff] %v1286_v21  ;;  %13277 = vst [vmem:[#allocation127_spill] sm:$0xff] %v9127_v29  ;;  %v9140_v21 = vadd.f32 %v8621_v52, %v1575_v54  ;;  %v7424_v54 = vld [vmem:[#allocation5 + $0x4c8] sm:$0xff]  ;;  %v1292_v29 = vpop.f32.mrb[108].mxu0 }
 0x293   : > { %13278 = vst [vmem:[#allocation128_spill] sm:$0xff] %v9133_v16  ;;  %1844 = vst [vmem:[#allocation5 + $0x3e8] sm:$0xff] %v1288_v56  ;;  %v9148_v56 = vadd.f32 %v7422_v30, %v8544_v51  ;;  %v9154_v34 = vadd.f32 %v7424_v54, %v8520_v44  ;;  %v9159_v48 = vadd.f32 %v8575_v1, %v1292_v29  ;;  %v1294_v30 = vpop.f32.mrb[109].mxu0  ;;  %v7427_v16 = vld [vmem:[#allocation5 + $0x500] sm:$0xff] }
 0x294   : > { %13279 = vst [vmem:[#allocation129_spill] sm:$0xff] %v9136_v5  ;;  %13280 = vst [vmem:[#allocation130_spill] sm:$0xff] %v9140_v21  ;;  %v2539_v28 = vmax.f32 %v2538_v13, %v9140_v21  ;;  %v9166_v54 = vadd.f32 %v7425_v3, %v8544_v51  ;;  %v9169_v62 = vadd.f32 %v8586_v50, %v1294_v30  ;;  %v7426_v5 = vld [vmem:[#allocation5 + $0x4d0] sm:$0xff] }
 0x295   : > { %1845 = vst [vmem:[#allocation5 + $0x3f0] sm:$0xff] %v1579_v59  ;;  %13281 = vst [vmem:[#allocation131_spill] sm:$0xff] %v9143_v14  ;;  %v2561_v59 = vmax.f32 %v2560_v22, %v9121_v38  ;;  %v1585_v22 = vpop.f32.mrb[108].mxu1  ;;  %v2554_v20 = vmax.f32 %v2553_v27, %v9159_v48  ;;  %v2547_v21 = vmax.f32 %v2546_v17, %v9143_v14 }
 0x296   : > { %13282 = vst [vmem:[#allocation132_spill] sm:$0xff] %v9148_v56  ;;  %13283 = vst [vmem:[#allocation133_spill] sm:$0xff] %v9151_v25  ;;  %2540 = vmax.xlane.f32.xlu0 %v2539_v28  ;;  %v9176_v13 = vadd.f32 %v8589_v40, %v1585_v22  ;;  %v1587_v23 = vpop.f32.mrb[109].mxu1  ;;  %v2578_v3 = vmax.f32 %v9151_v25, %v9154_v34  ;;  %v9185_v27 = vadd.f32 %v7427_v16, %v8517_v32  ;;  %v7429_v25 = vld [vmem:[#allocation5 + $0x4d8] sm:$0xff] }
 0x297   : > { %13284 = vst [vmem:[#allocation134_spill] sm:$0xff] %v9154_v34  ;;  %1846 = vst [vmem:[#allocation5 + $0x3f8] sm:$0xff] %v1581_v2  ;;  %v2555_v17 = vmax.f32 %v2554_v20, %v9169_v62  ;;  %v2571_v16 = vmax.f32 %v9163_v37, %v9166_v54 }
 0x298   : > { %1851 = vst [vmem:[#allocation5 + $0x420] sm:$0xff] %v1292_v29  ;;  %13285 = vst [vmem:[#allocation135_spill] sm:$0xff] %v9159_v48  ;;  %v9173_v29 = vadd.f32 %v8621_v52, %v1581_v2  ;;  %v7428_v2 = vld [vmem:[#allocation5 + $0x508] sm:$0xff]  ;;  %v2562_v48 = vmax.f32 %v2561_v59, %v9148_v56  ;;  %v1591_v59 = vpop.f32.mrb[110].mxu1 }
 0x299   : > { %13286 = vst [vmem:[#allocation136_spill] sm:$0xff] %v9166_v54  ;;  %1852 = vst [vmem:[#allocation5 + $0x428] sm:$0xff] %v1294_v30  ;;  %v9182_v30 = vadd.f32 %v7426_v5, %v8533_v39  ;;  %v9188_v28 = vadd.f32 %v7428_v2, %v8520_v44  ;;  %v9199_v2 = vadd.f32 %v7429_v25, %v8544_v51  ;;  %v1593_v37 = vpop.f32.mrb[111].mxu1 }
 0x29a   : > { %13287 = vst [vmem:[#allocation137_spill] sm:$0xff] %v9169_v62  ;;  %13288 = vst [vmem:[#allocation138_spill] sm:$0xff] %v9173_v29  ;;  %v2548_v34 = vmax.f32 %v2547_v21, %v9173_v29  ;;  %v9209_v21 = vadd.f32 %v8589_v40, %v1591_v59  ;;  %v2556_v62 = vmax.f32 %v2555_v17, %v9176_v13  ;;  %v7430_v29 = vld [vmem:[#allocation5 + $0x510] sm:$0xff] }
 0x29b   : > { %1853 = vst [vmem:[#allocation5 + $0x430] sm:$0xff] %v1585_v22  ;;  %13289 = vst [vmem:[#allocation139_spill] sm:$0xff] %v9176_v13  ;;  %v1298_v22 = vpop.f32.mrb[110].mxu0  ;;  %v2579_v25 = vmax.f32 %v2578_v3, %v9182_v30  ;;  %v9216_v54 = vadd.f32 %v7430_v29, %v8533_v39 }
 0x29c   : > { %13290 = vst [vmem:[#allocation140_spill] sm:$0xff] %v9182_v30  ;;  %13291 = vst [vmem:[#allocation141_spill] sm:$0xff] %v9185_v27  ;;  %v9193_v14 = vadd.f32 %v8575_v1, %v1298_v22  ;;  %v1300_v5 = vpop.f32.mrb[111].mxu0  ;;  %2549 = vmax.xlane.f32.xlu1 %v2548_v34 }
 0x29d   : > { %13292 = vst [vmem:[#allocation142_spill] sm:$0xff] %v9188_v28  ;;  %1854 = vst [vmem:[#allocation5 + $0x438] sm:$0xff] %v1587_v23  ;;  %v9202_v38 = vadd.f32 %v8586_v50, %v1300_v5  ;;  %v1304_v34 = vpop.f32.mrb[112].mxu0 }
 0x29e   : > { %1859 = vst [vmem:[#allocation5 + $0x460] sm:$0xff] %v1298_v22  ;;  %13293 = vst [vmem:[#allocation143_spill] sm:$0xff] %v9193_v14  ;;  %v2563_v20 = vmax.f32 %v2562_v48, %v9193_v14  ;;  %v9206_v22 = vadd.f32 %v8621_v52, %v1587_v23  ;;  %v7431_v48 = vld [vmem:[#allocation5 + $0x540] sm:$0xff]  ;;  %v9226_v3 = vadd.f32 %v8575_v1, %v1304_v34  ;;  %v1306_v13 = vpop.f32.mrb[113].mxu0 }
 0x29f   : > { %13294 = vst [vmem:[#allocation144_spill] sm:$0xff] %v9199_v2  ;;  %1860 = vst [vmem:[#allocation5 + $0x468] sm:$0xff] %v1300_v5  ;;  %v2587_v5 = vmax.f32 %v9185_v27, %v9188_v28  ;;  %v9219_v23 = vadd.f32 %v7431_v48, %v8517_v32  ;;  %v7433_v28 = vld [vmem:[#allocation5 + $0x580] sm:$0xff]  ;;  %v7434_v48 = vld [vmem:[#allocation5 + $0x588] sm:$0xff] }
 0x2a0   : > { %13295 = vst [vmem:[#allocation145_spill] sm:$0xff] %v9202_v38  ;;  %13296 = vst [vmem:[#allocation146_spill] sm:$0xff] %v9206_v22  ;;  %v2564_v17 = vmax.f32 %v2563_v20, %v9202_v38  ;;  %v2557_v29 = vmax.f32 %v2556_v62, %v9206_v22  ;;  %v9230_v27 = vadd.f32 %v7433_v28, %v8517_v32  ;;  %v1597_v20 = vpop.f32.mrb[112].mxu1 }
 0x2a1   : > { %1861 = vst [vmem:[#allocation5 + $0x470] sm:$0xff] %v1591_v59  ;;  %13297 = vst [vmem:[#allocation147_spill] sm:$0xff] %v9209_v21  ;;  %v7432_v59 = vld [vmem:[#allocation5 + $0x548] sm:$0xff]  ;;  %v9233_v30 = vadd.f32 %v7434_v48, %v8520_v44  ;;  %v2572_v38 = vmax.f32 %v2571_v16, %v9226_v3  ;;  %v9243_v62 = vadd.f32 %v8589_v40, %v1597_v20  ;;  %v1599_v28 = vpop.f32.mrb[113].mxu1  ;;  %v7436_v16 = vld [vmem:[#allocation5 + $0x550] sm:$0xff] }
 0x2a2   : > { %13298 = vst [vmem:[#allocation148_spill] sm:$0xff] %v9216_v54  ;;  %13299 = vst [vmem:[#allocation149_spill] sm:$0xff] %v9219_v23  ;;  %v9222_v14 = vadd.f32 %v7432_v59, %v8520_v44  ;;  %v9236_v59 = vadd.f32 %v8586_v50, %v1306_v13  ;;  %2558 = vmax.xlane.f32.xlu0 %v2557_v29  ;;  %v2565_v22 = vmax.f32 %v2564_v17, %v9209_v21  ;;  %v1310_v29 = vpop.f32.mrb[114].mxu0  ;;  %v7437_v21 = vld [vmem:[#allocation5 + $0x590] sm:$0xff] }
 0x2a3   : > { %1862 = vst [vmem:[#allocation5 + $0x478] sm:$0xff] %v1593_v37  ;;  %1867 = vst [vmem:[#allocation5 + $0x4a0] sm:$0xff] %v1304_v34  ;;  %v9240_v34 = vadd.f32 %v8621_v52, %v1593_v37  ;;  %v2580_v48 = vmax.f32 %v2579_v25, %v9199_v2  ;;  %v2588_v56 = vmax.f32 %v2587_v5, %v9216_v54  ;;  %v1312_v5 = vpop.f32.mrb[115].mxu0 }
 0x2a4   : > { %13300 = vst [vmem:[#allocation150_spill] sm:$0xff] %v9222_v14  ;;  %13301 = vst [vmem:[#allocation151_spill] sm:$0xff] %v9226_v3  ;;  %v9252_v37 = vadd.f32 %v7436_v16, %v8533_v39  ;;  %v2573_v3 = vmax.f32 %v2572_v38, %v9236_v59  ;;  %v9258_v25 = vadd.f32 %v8575_v1, %v1310_v29 }
 0x2a5   : > { %13302 = vst [vmem:[#allocation152_spill] sm:$0xff] %v9230_v27  ;;  %13303 = vst [vmem:[#allocation153_spill] sm:$0xff] %v9233_v30  ;;  %v2566_v17 = vmax.f32 %v2565_v22, %v9240_v34  ;;  %v9264_v16 = vadd.f32 %v7437_v21, %v8533_v39  ;;  %v9267_v54 = vadd.f32 %v8586_v50, %v1312_v5 }
 0x2a6   : > { %1868 = vst [vmem:[#allocation5 + $0x4a8] sm:$0xff] %v1306_v13  ;;  %13304 = vst [vmem:[#allocation154_spill] sm:$0xff] %v9236_v59  ;;  %v7435_v13 = vld [vmem:[#allocation5 + $0x518] sm:$0xff]  ;;  %v2581_v38 = vmax.f32 %v2580_v48, %v9258_v25 }
 0x2a7   : > { %13305 = vst [vmem:[#allocation155_spill] sm:$0xff] %v9240_v34  ;;  %1869 = vst [vmem:[#allocation5 + $0x4b0] sm:$0xff] %v1597_v20  ;;  %v9249_v41 = vadd.f32 %v7435_v13, %v8544_v51  ;;  %v2596_v20 = vmax.f32 %v9219_v23, %v9222_v14  ;;  %v2605_v13 = vmax.f32 %v9230_v27, %v9233_v30  ;;  %v1603_v14 = vpop.f32.mrb[114].mxu1  ;;  %2567 = vmax.xlane.f32.xlu1 %v2566_v17  ;;  %v7438_v30 = vld [vmem:[#allocation5 + $0x558] sm:$0xff]  ;;  %v7439_v27 = vld [vmem:[#allocation5 + $0x5c0] sm:$0xff]  ;;  %v1316_v23 = vpop.f32.mrb[116].mxu0 }
 0x2a8   : > { %13306 = vst [vmem:[#allocation156_spill] sm:$0xff] %v9243_v62  ;;  %13308 = vst [vmem:[#allocation158_spill] sm:$0xff] %v9252_v37  ;;  %v9274_v22 = vadd.f32 %v8589_v40, %v1603_v14  ;;  %v1605_v59 = vpop.f32.mrb[115].mxu1  ;;  %v2574_v34 = vmax.f32 %v2573_v3, %v9243_v62  ;;  %v9282_v48 = vadd.f32 %v7439_v27, %v8517_v32 }
 0x2a9   : > { %13307 = vst [vmem:[#allocation157_spill] sm:$0xff] %v9249_v41  ;;  %1870 = vst [vmem:[#allocation5 + $0x4b8] sm:$0xff] %v1599_v28  ;;  %v2589_v21 = vmax.f32 %v2588_v56, %v9249_v41  ;;  %v2582_v3 = vmax.f32 %v2581_v38, %v9267_v54  ;;  %v9290_v56 = vadd.f32 %v8575_v1, %v1316_v23  ;;  %v7441_v41 = vld [vmem:[#allocation5 + $0x598] sm:$0xff] }
 0x2aa   : > { %1875 = vst [vmem:[#allocation5 + $0x4e0] sm:$0xff] %v1310_v29  ;;  %13309 = vst [vmem:[#allocation159_spill] sm:$0xff] %v9258_v25  ;;  %v9271_v29 = vadd.f32 %v8621_v52, %v1599_v28  ;;  %v7440_v28 = vld [vmem:[#allocation5 + $0x5c8] sm:$0xff]  ;;  %v9294_v27 = vmax.f32 %v2605_v13, %v9264_v16 }
 0x2ab   : > { %13310 = vst [vmem:[#allocation160_spill] sm:$0xff] %v9264_v16  ;;  %1876 = vst [vmem:[#allocation5 + $0x4e8] sm:$0xff] %v1312_v5  ;;  %v9279_v5 = vadd.f32 %v7438_v30, %v8544_v51  ;;  %v9285_v17 = vadd.f32 %v7440_v28, %v8520_v44  ;;  %v1318_v30 = vpop.f32.mrb[117].mxu0  ;;  %v9297_v28 = vadd.f32 %v7441_v41, %v8544_v51  ;;  %v7442_v16 = vld [vmem:[#allocation5 + $0x5d0] sm:$0xff] }
 0x2ac   : > { %13311 = vst [vmem:[#allocation161_spill] sm:$0xff] %v9267_v54  ;;  %13312 = vst [vmem:[#allocation162_spill] sm:$0xff] %v9271_v29  ;;  %v2575_v62 = vmax.f32 %v2574_v34, %v9271_v29  ;;  %v9300_v25 = vadd.f32 %v8586_v50, %v1318_v30  ;;  %v2590_v38 = vmax.f32 %v2589_v21, %v9290_v56  ;;  %v7443_v54 = vld [vmem:[#allocation5 + $0x600] sm:$0xff] }
 0x2ad   : > { %1877 = vst [vmem:[#allocation5 + $0x4f0] sm:$0xff] %v1603_v14  ;;  %13313 = vst [vmem:[#allocation163_spill] sm:$0xff] %v9274_v22  ;;  %v2597_v14 = vmax.f32 %v2596_v20, %v9252_v37  ;;  %v1609_v20 = vpop.f32.mrb[116].mxu1  ;;  %v2583_v29 = vmax.f32 %v2582_v3, %v9274_v22  ;;  %v2614_v41 = vmax.f32 %v9282_v48, %v9285_v17 }
 0x2ae   : > { %13314 = vst [vmem:[#allocation164_spill] sm:$0xff] %v9279_v5  ;;  %13315 = vst [vmem:[#allocation165_spill] sm:$0xff] %v9282_v48  ;;  %2576 = vmax.xlane.f32.xlu0 %v2575_v62  ;;  %v9307_v34 = vadd.f32 %v8589_v40, %v1609_v20  ;;  %v1611_v13 = vpop.f32.mrb[117].mxu1  ;;  %v9316_v21 = vadd.f32 %v7443_v54, %v8517_v32  ;;  %v2591_v3 = vmax.f32 %v2590_v38, %v9300_v25  ;;  %v7445_v48 = vld [vmem:[#allocation5 + $0x5d8] sm:$0xff] }
 0x2af   : > { %13316 = vst [vmem:[#allocation166_spill] sm:$0xff] %v9285_v17  ;;  %1878 = vst [vmem:[#allocation5 + $0x4f8] sm:$0xff] %v1605_v59  ;;  %v2607_v54 = vmax.f32 %v9294_v27, %v9297_v28 }
 0x2b0   : > { %1883 = vst [vmem:[#allocation5 + $0x520] sm:$0xff] %v1316_v23  ;;  %13317 = vst [vmem:[#allocation167_spill] sm:$0xff] %v9290_v56  ;;  %v9304_v23 = vadd.f32 %v8621_v52, %v1605_v59  ;;  %v7444_v59 = vld [vmem:[#allocation5 + $0x608] sm:$0xff]  ;;  %v2598_v56 = vmax.f32 %v2597_v14, %v9279_v5  ;;  %v1615_v14 = vpop.f32.mrb[118].mxu1 }
 0x2b1   : > { %13318 = vst [vmem:[#allocation168_spill] sm:$0xff] %v9297_v28  ;;  %1884 = vst [vmem:[#allocation5 + $0x528] sm:$0xff] %v1318_v30  ;;  %v9313_v30 = vadd.f32 %v7442_v16, %v8533_v39  ;;  %v9319_v62 = vadd.f32 %v7444_v59, %v8520_v44  ;;  %v9330_v59 = vadd.f32 %v7445_v48, %v8544_v51  ;;  %v1617_v27 = vpop.f32.mrb[119].mxu1 }
 0x2b2   : > { %13319 = vst [vmem:[#allocation169_spill] sm:$0xff] %v9300_v25  ;;  %13320 = vst [vmem:[#allocation170_spill] sm:$0xff] %v9304_v23  ;;  %v2584_v17 = vmax.f32 %v2583_v29, %v9304_v23  ;;  %v9340_v29 = vadd.f32 %v8589_v40, %v1615_v14  ;;  %v2592_v25 = vmax.f32 %v2591_v3, %v9307_v34  ;;  %v7446_v23 = vld [vmem:[#allocation5 + $0x610] sm:$0xff] }
 0x2b3   : > { %1885 = vst [vmem:[#allocation5 + $0x530] sm:$0xff] %v1609_v20  ;;  %13321 = vst [vmem:[#allocation171_spill] sm:$0xff] %v9307_v34  ;;  %v1322_v20 = vpop.f32.mrb[118].mxu0  ;;  %v2615_v48 = vmax.f32 %v2614_v41, %v9313_v30  ;;  %v9347_v28 = vadd.f32 %v7446_v23, %v8533_v39 }
 0x2b4   : > { %13322 = vst [vmem:[#allocation172_spill] sm:$0xff] %v9313_v30  ;;  %13323 = vst [vmem:[#allocation173_spill] sm:$0xff] %v9316_v21  ;;  %v9324_v22 = vadd.f32 %v8575_v1, %v1322_v20  ;;  %v1324_v16 = vpop.f32.mrb[119].mxu0  ;;  %2585 = vmax.xlane.f32.xlu1 %v2584_v17 }
 0x2b5   : > { %13324 = vst [vmem:[#allocation174_spill] sm:$0xff] %v9319_v62  ;;  %1886 = vst [vmem:[#allocation5 + $0x538] sm:$0xff] %v1611_v13  ;;  %v9333_v37 = vadd.f32 %v8586_v50, %v1324_v16  ;;  %v1328_v17 = vpop.f32.mrb[120].mxu0 }
 0x2b6   : > { %1891 = vst [vmem:[#allocation5 + $0x560] sm:$0xff] %v1322_v20  ;;  %13325 = vst [vmem:[#allocation175_spill] sm:$0xff] %v9324_v22  ;;  %v2599_v38 = vmax.f32 %v2598_v56, %v9324_v22  ;;  %v9337_v20 = vadd.f32 %v8621_v52, %v1611_v13  ;;  %v7447_v56 = vld [vmem:[#allocation5 + $0x640] sm:$0xff]  ;;  %v9357_v41 = vadd.f32 %v8575_v1, %v1328_v17  ;;  %v1330_v34 = vpop.f32.mrb[121].mxu0 }
 0x2b7   : > { %13326 = vst [vmem:[#allocation176_spill] sm:$0xff] %v9330_v59  ;;  %1892 = vst [vmem:[#allocation5 + $0x568] sm:$0xff] %v1324_v16  ;;  %v2623_v16 = vmax.f32 %v9316_v21, %v9319_v62  ;;  %v9350_v13 = vadd.f32 %v7447_v56, %v8517_v32  ;;  %v7449_v62 = vld [vmem:[#allocation5 + $0x680] sm:$0xff]  ;;  %v7450_v56 = vld [vmem:[#allocation5 + $0x688] sm:$0xff] }
 0x2b8   : > { %13327 = vst [vmem:[#allocation177_spill] sm:$0xff] %v9333_v37  ;;  %13328 = vst [vmem:[#allocation178_spill] sm:$0xff] %v9337_v20  ;;  %v2600_v3 = vmax.f32 %v2599_v38, %v9333_v37  ;;  %v2593_v23 = vmax.f32 %v2592_v25, %v9337_v20  ;;  %v9361_v21 = vadd.f32 %v7449_v62, %v8517_v32  ;;  %v1621_v38 = vpop.f32.mrb[120].mxu1 }
 0x2b9   : > { %1893 = vst [vmem:[#allocation5 + $0x570] sm:$0xff] %v1615_v14  ;;  %13329 = vst [vmem:[#allocation179_spill] sm:$0xff] %v9340_v29  ;;  %v7448_v14 = vld [vmem:[#allocation5 + $0x648] sm:$0xff]  ;;  %v9364_v30 = vadd.f32 %v7450_v56, %v8520_v44  ;;  %v2608_v37 = vmax.f32 %v2607_v54, %v9357_v41  ;;  %v9374_v25 = vadd.f32 %v8589_v40, %v1621_v38  ;;  %v1623_v62 = vpop.f32.mrb[121].mxu1  ;;  %v7452_v54 = vld [vmem:[#allocation5 + $0x650] sm:$0xff] }
 0x2ba   : > { %13330 = vst [vmem:[#allocation180_spill] sm:$0xff] %v9347_v28  ;;  %13331 = vst [vmem:[#allocation181_spill] sm:$0xff] %v9350_v13  ;;  %v9353_v22 = vadd.f32 %v7448_v14, %v8520_v44  ;;  %v9367_v14 = vadd.f32 %v8586_v50, %v1330_v34  ;;  %2594 = vmax.xlane.f32.xlu0 %v2593_v23  ;;  %v2601_v20 = vmax.f32 %v2600_v3, %v9340_v29  ;;  %v1334_v23 = vpop.f32.mrb[122].mxu0  ;;  %v7453_v29 = vld [vmem:[#allocation5 + $0x690] sm:$0xff] }
 0x2bb   : > { %1894 = vst [vmem:[#allocation5 + $0x578] sm:$0xff] %v1617_v27  ;;  %1899 = vst [vmem:[#allocation5 + $0x5a0] sm:$0xff] %v1328_v17  ;;  %v9371_v17 = vadd.f32 %v8621_v52, %v1617_v27  ;;  %v2616_v56 = vmax.f32 %v2615_v48, %v9330_v59  ;;  %v2624_v5 = vmax.f32 %v2623_v16, %v9347_v28  ;;  %v1336_v16 = vpop.f32.mrb[123].mxu0 }
 0x2bc   : > { %13332 = vst [vmem:[#allocation182_spill] sm:$0xff] %v9353_v22  ;;  %13333 = vst [vmem:[#allocation183_spill] sm:$0xff] %v9357_v41  ;;  %v9383_v27 = vadd.f32 %v7452_v54, %v8533_v39  ;;  %v2609_v41 = vmax.f32 %v2608_v37, %v9367_v14  ;;  %v9389_v48 = vadd.f32 %v8575_v1, %v1334_v23 }
 0x2bd   : > { %13334 = vst [vmem:[#allocation184_spill] sm:$0xff] %v9361_v21  ;;  %13335 = vst [vmem:[#allocation185_spill] sm:$0xff] %v9364_v30  ;;  %v2602_v3 = vmax.f32 %v2601_v20, %v9371_v17  ;;  %v9395_v54 = vadd.f32 %v7453_v29, %v8533_v39  ;;  %v9398_v28 = vadd.f32 %v8586_v50, %v1336_v16 }
 0x2be   : > { %1900 = vst [vmem:[#allocation5 + $0x5a8] sm:$0xff] %v1330_v34  ;;  %13336 = vst [vmem:[#allocation186_spill] sm:$0xff] %v9367_v14  ;;  %v7451_v34 = vld [vmem:[#allocation5 + $0x618] sm:$0xff]  ;;  %v2617_v37 = vmax.f32 %v2616_v56, %v9389_v48 }
 0x2bf   : > { %13337 = vst [vmem:[#allocation187_spill] sm:$0xff] %v9371_v17  ;;  %1901 = vst [vmem:[#allocation5 + $0x5b0] sm:$0xff] %v1621_v38  ;;  %v9380_v2 = vadd.f32 %v7451_v34, %v8544_v51  ;;  %v2632_v38 = vmax.f32 %v9350_v13, %v9353_v22  ;;  %v2641_v34 = vmax.f32 %v9361_v21, %v9364_v30  ;;  %v1627_v22 = vpop.f32.mrb[122].mxu1  ;;  %2603 = vmax.xlane.f32.xlu1 %v2602_v3  ;;  %v7454_v30 = vld [vmem:[#allocation5 + $0x658] sm:$0xff]  ;;  %v7455_v21 = vld [vmem:[#allocation5 + $0x6c0] sm:$0xff]  ;;  %v1340_v13 = vpop.f32.mrb[124].mxu0 }
 0x2c0   : > { %13338 = vst [vmem:[#allocation188_spill] sm:$0xff] %v9374_v25  ;;  %13340 = vst [vmem:[#allocation190_spill] sm:$0xff] %v9383_v27  ;;  %v9405_v20 = vadd.f32 %v8589_v40, %v1627_v22  ;;  %v1629_v14 = vpop.f32.mrb[123].mxu1  ;;  %v2610_v17 = vmax.f32 %v2609_v41, %v9374_v25  ;;  %v9413_v56 = vadd.f32 %v7455_v21, %v8517_v32 }
 0x2c1   : > { %13339 = vst [vmem:[#allocation189_spill] sm:$0xff] %v9380_v2  ;;  %1902 = vst [vmem:[#allocation5 + $0x5b8] sm:$0xff] %v1623_v62  ;;  %v2625_v29 = vmax.f32 %v2624_v5, %v9380_v2  ;;  %v2618_v41 = vmax.f32 %v2617_v37, %v9398_v28  ;;  %v9421_v5 = vadd.f32 %v8575_v1, %v1340_v13  ;;  %v7457_v2 = vld [vmem:[#allocation5 + $0x698] sm:$0xff] }
 0x2c2   : > { %1907 = vst [vmem:[#allocation5 + $0x5e0] sm:$0xff] %v1334_v23  ;;  %13341 = vst [vmem:[#allocation191_spill] sm:$0xff] %v9389_v48  ;;  %v9402_v23 = vadd.f32 %v8621_v52, %v1623_v62  ;;  %v7456_v62 = vld [vmem:[#allocation5 + $0x6c8] sm:$0xff]  ;;  %v9425_v21 = vmax.f32 %v2641_v34, %v9395_v54 }
 0x2c3   : > { %13342 = vst [vmem:[#allocation192_spill] sm:$0xff] %v9395_v54  ;;  %1908 = vst [vmem:[#allocation5 + $0x5e8] sm:$0xff] %v1336_v16  ;;  %v9410_v16 = vadd.f32 %v7454_v30, %v8544_v51  ;;  %v9416_v3 = vadd.f32 %v7456_v62, %v8520_v44  ;;  %v1342_v30 = vpop.f32.mrb[125].mxu0  ;;  %v9428_v62 = vadd.f32 %v7457_v2, %v8544_v51  ;;  %v7458_v54 = vld [vmem:[#allocation5 + $0x6d0] sm:$0xff] }
 0x2c4   : > { %13343 = vst [vmem:[#allocation193_spill] sm:$0xff] %v9398_v28  ;;  %13344 = vst [vmem:[#allocation194_spill] sm:$0xff] %v9402_v23  ;;  %v2611_v25 = vmax.f32 %v2610_v17, %v9402_v23  ;;  %v9431_v48 = vadd.f32 %v8586_v50, %v1342_v30  ;;  %v2626_v37 = vmax.f32 %v2625_v29, %v9421_v5 }
 0x2c5   : > { %1909 = vst [vmem:[#allocation5 + $0x5f0] sm:$0xff] %v1627_v22  ;;  %13345 = vst [vmem:[#allocation195_spill] sm:$0xff] %v9405_v20  ;;  %v2633_v22 = vmax.f32 %v2632_v38, %v9383_v27  ;;  %v1633_v38 = vpop.f32.mrb[124].mxu1  ;;  %v2619_v23 = vmax.f32 %v2618_v41, %v9405_v20  ;;  %v2650_v2 = vmax.f32 %v9413_v56, %v9416_v3  ;;  %v7459_v27 = vld [vmem:[#allocation5 + $0x700] sm:$0xff] }
 0x2c6   : > { %13346 = vst [vmem:[#allocation196_spill] sm:$0xff] %v9410_v16  ;;  %13347 = vst [vmem:[#allocation197_spill] sm:$0xff] %v9413_v56  ;;  %2612 = vmax.xlane.f32.xlu0 %v2611_v25  ;;  %v9438_v17 = vadd.f32 %v8589_v40, %v1633_v38  ;;  %v1635_v34 = vpop.f32.mrb[125].mxu1  ;;  %v9447_v29 = vadd.f32 %v7459_v27, %v8517_v32  ;;  %v2627_v41 = vmax.f32 %v2626_v37, %v9431_v48  ;;  %v7461_v56 = vld [vmem:[#allocation5 + $0x6d8] sm:$0xff] }
 0x2c7   : > { %13348 = vst [vmem:[#allocation198_spill] sm:$0xff] %v9416_v3  ;;  %1910 = vst [vmem:[#allocation5 + $0x5f8] sm:$0xff] %v1629_v14  ;;  %v2643_v27 = vmax.f32 %v9425_v21, %v9428_v62 }
 0x2c8   : > { %1915 = vst [vmem:[#allocation5 + $0x620] sm:$0xff] %v1340_v13  ;;  %13349 = vst [vmem:[#allocation199_spill] sm:$0xff] %v9421_v5  ;;  %v9435_v13 = vadd.f32 %v8621_v52, %v1629_v14  ;;  %v7460_v14 = vld [vmem:[#allocation5 + $0x708] sm:$0xff]  ;;  %v2634_v5 = vmax.f32 %v2633_v22, %v9410_v16  ;;  %v1639_v22 = vpop.f32.mrb[126].mxu1 }
 0x2c9   : > { %13350 = vst [vmem:[#allocation200_spill] sm:$0xff] %v9428_v62  ;;  %1916 = vst [vmem:[#allocation5 + $0x628] sm:$0xff] %v1342_v30  ;;  %v9444_v30 = vadd.f32 %v7458_v54, %v8533_v39  ;;  %v9450_v25 = vadd.f32 %v7460_v14, %v8520_v44  ;;  %v9461_v14 = vadd.f32 %v7461_v56, %v8544_v51  ;;  %v1641_v21 = vpop.f32.mrb[127].mxu1 }
 0x2ca   : > { %13351 = vst [vmem:[#allocation201_spill] sm:$0xff] %v9431_v48  ;;  %13352 = vst [vmem:[#allocation202_spill] sm:$0xff] %v9435_v13  ;;  %v2620_v3 = vmax.f32 %v2619_v23, %v9435_v13  ;;  %v9471_v23 = vadd.f32 %v8589_v40, %v1639_v22  ;;  %v2628_v48 = vmax.f32 %v2627_v41, %v9438_v17  ;;  %v7462_v13 = vld [vmem:[#allocation5 + $0x710] sm:$0xff] }
 0x2cb   : > { %1917 = vst [vmem:[#allocation5 + $0x630] sm:$0xff] %v1633_v38  ;;  %13353 = vst [vmem:[#allocation203_spill] sm:$0xff] %v9438_v17  ;;  %v1346_v38 = vpop.f32.mrb[126].mxu0  ;;  %v2651_v56 = vmax.f32 %v2650_v2, %v9444_v30  ;;  %v9478_v62 = vadd.f32 %v7462_v13, %v8533_v39 }
 0x2cc   : > { %13354 = vst [vmem:[#allocation204_spill] sm:$0xff] %v9444_v30  ;;  %13355 = vst [vmem:[#allocation205_spill] sm:$0xff] %v9447_v29  ;;  %v9455_v20 = vadd.f32 %v8575_v1, %v1346_v38  ;;  %v1348_v54 = vpop.f32.mrb[127].mxu0  ;;  %2621 = vmax.xlane.f32.xlu1 %v2620_v3 }
 0x2cd   : > { %13356 = vst [vmem:[#allocation206_spill] sm:$0xff] %v9450_v25  ;;  %1918 = vst [vmem:[#allocation5 + $0x638] sm:$0xff] %v1635_v34  ;;  %v9464_v28 = vadd.f32 %v8586_v50, %v1348_v54  ;;  %v1352_v3 = vpop.f32.mrb[128].mxu0 }
 0x2ce   : > { %1923 = vst [vmem:[#allocation5 + $0x660] sm:$0xff] %v1346_v38  ;;  %13357 = vst [vmem:[#allocation207_spill] sm:$0xff] %v9455_v20  ;;  %v2635_v37 = vmax.f32 %v2634_v5, %v9455_v20  ;;  %v9468_v38 = vadd.f32 %v8621_v52, %v1635_v34  ;;  %v7463_v5 = vld [vmem:[#allocation5 + $0x740] sm:$0xff]  ;;  %v9488_v2 = vadd.f32 %v8575_v1, %v1352_v3  ;;  %v1354_v17 = vpop.f32.mrb[129].mxu0 }
 0x2cf   : > { %13358 = vst [vmem:[#allocation208_spill] sm:$0xff] %v9461_v14  ;;  %1924 = vst [vmem:[#allocation5 + $0x668] sm:$0xff] %v1348_v54  ;;  %v2659_v54 = vmax.f32 %v9447_v29, %v9450_v25  ;;  %v9481_v34 = vadd.f32 %v7463_v5, %v8517_v32  ;;  %v7465_v25 = vld [vmem:[#allocation5 + $0x780] sm:$0xff]  ;;  %v7466_v5 = vld [vmem:[#allocation5 + $0x788] sm:$0xff] }
 0x2d0   : > { %13359 = vst [vmem:[#allocation209_spill] sm:$0xff] %v9464_v28  ;;  %13360 = vst [vmem:[#allocation210_spill] sm:$0xff] %v9468_v38  ;;  %v2636_v41 = vmax.f32 %v2635_v37, %v9464_v28  ;;  %v2629_v13 = vmax.f32 %v2628_v48, %v9468_v38  ;;  %v9492_v29 = vadd.f32 %v7465_v25, %v8517_v32  ;;  %v1645_v37 = vpop.f32.mrb[128].mxu1 }
 0x2d1   : > { %1925 = vst [vmem:[#allocation5 + $0x670] sm:$0xff] %v1639_v22  ;;  %13361 = vst [vmem:[#allocation211_spill] sm:$0xff] %v9471_v23  ;;  %v7464_v22 = vld [vmem:[#allocation5 + $0x748] sm:$0xff]  ;;  %v9495_v30 = vadd.f32 %v7466_v5, %v8520_v44  ;;  %v2644_v28 = vmax.f32 %v2643_v27, %v9488_v2  ;;  %v9505_v48 = vadd.f32 %v8589_v40, %v1645_v37  ;;  %v1647_v25 = vpop.f32.mrb[129].mxu1  ;;  %v7468_v27 = vld [vmem:[#allocation5 + $0x750] sm:$0xff] }
 0x2d2   : > { %13362 = vst [vmem:[#allocation212_spill] sm:$0xff] %v9478_v62  ;;  %13363 = vst [vmem:[#allocation213_spill] sm:$0xff] %v9481_v34  ;;  %v9484_v20 = vadd.f32 %v7464_v22, %v8520_v44  ;;  %v9498_v22 = vadd.f32 %v8586_v50, %v1354_v17  ;;  %2630 = vmax.xlane.f32.xlu0 %v2629_v13  ;;  %v2637_v38 = vmax.f32 %v2636_v41, %v9471_v23  ;;  %v1358_v13 = vpop.f32.mrb[130].mxu0  ;;  %v7469_v23 = vld [vmem:[#allocation5 + $0x790] sm:$0xff] }
 0x2d3   : > { %1926 = vst [vmem:[#allocation5 + $0x678] sm:$0xff] %v1641_v21  ;;  %1931 = vst [vmem:[#allocation5 + $0x6a0] sm:$0xff] %v1352_v3  ;;  %v9502_v3 = vadd.f32 %v8621_v52, %v1641_v21  ;;  %v2652_v5 = vmax.f32 %v2651_v56, %v9461_v14  ;;  %v2660_v16 = vmax.f32 %v2659_v54, %v9478_v62  ;;  %v1360_v54 = vpop.f32.mrb[131].mxu0 }
 0x2d4   : > { %13364 = vst [vmem:[#allocation214_spill] sm:$0xff] %v9484_v20  ;;  %13365 = vst [vmem:[#allocation215_spill] sm:$0xff] %v9488_v2  ;;  %v9514_v21 = vadd.f32 %v7468_v27, %v8533_v39  ;;  %v2645_v2 = vmax.f32 %v2644_v28, %v9498_v22  ;;  %v9520_v56 = vadd.f32 %v8575_v1, %v1358_v13 }
 0x2d5   : > { %13366 = vst [vmem:[#allocation216_spill] sm:$0xff] %v9492_v29  ;;  %13367 = vst [vmem:[#allocation217_spill] sm:$0xff] %v9495_v30  ;;  %v2638_v41 = vmax.f32 %v2637_v38, %v9502_v3  ;;  %v9526_v27 = vadd.f32 %v7469_v23, %v8533_v39  ;;  %v9529_v62 = vadd.f32 %v8586_v50, %v1360_v54 }
 0x2d6   : > { %1932 = vst [vmem:[#allocation5 + $0x6a8] sm:$0xff] %v1354_v17  ;;  %13368 = vst [vmem:[#allocation218_spill] sm:$0xff] %v9498_v22  ;;  %v7467_v17 = vld [vmem:[#allocation5 + $0x718] sm:$0xff]  ;;  %v2653_v28 = vmax.f32 %v2652_v5, %v9520_v56 }
 0x2d7   : > { %13369 = vst [vmem:[#allocation219_spill] sm:$0xff] %v9502_v3  ;;  %1933 = vst [vmem:[#allocation5 + $0x6b0] sm:$0xff] %v1645_v37  ;;  %v9511_v59 = vadd.f32 %v7467_v17, %v8544_v51  ;;  %v2668_v37 = vmax.f32 %v9481_v34, %v9484_v20  ;;  %v2677_v17 = vmax.f32 %v9492_v29, %v9495_v30  ;;  %v1651_v20 = vpop.f32.mrb[130].mxu1  ;;  %2639 = vmax.xlane.f32.xlu1 %v2638_v41  ;;  %v7470_v30 = vld [vmem:[#allocation5 + $0x758] sm:$0xff]  ;;  %v7471_v29 = vld [vmem:[#allocation5 + $0x7c0] sm:$0xff]  ;;  %v1364_v34 = vpop.f32.mrb[132].mxu0 }
 0x2d8   : > { %13370 = vst [vmem:[#allocation220_spill] sm:$0xff] %v9505_v48  ;;  %13372 = vst [vmem:[#allocation222_spill] sm:$0xff] %v9514_v21  ;;  %v9536_v38 = vadd.f32 %v8589_v40, %v1651_v20  ;;  %v1653_v22 = vpop.f32.mrb[131].mxu1  ;;  %v2646_v3 = vmax.f32 %v2645_v2, %v9505_v48  ;;  %v9544_v5 = vadd.f32 %v7471_v29, %v8517_v32 }
 0x2d9   : > { %13371 = vst [vmem:[#allocation221_spill] sm:$0xff] %v9511_v59  ;;  %1934 = vst [vmem:[#allocation5 + $0x6b8] sm:$0xff] %v1647_v25  ;;  %v2661_v23 = vmax.f32 %v2660_v16, %v9511_v59  ;;  %v2654_v2 = vmax.f32 %v2653_v28, %v9529_v62  ;;  %v9552_v16 = vadd.f32 %v8575_v1, %v1364_v34  ;;  %v7473_v59 = vld [vmem:[#allocation5 + $0x798] sm:$0xff] }
 0x2da   : > { %1939 = vst [vmem:[#allocation5 + $0x6e0] sm:$0xff] %v1358_v13  ;;  %13373 = vst [vmem:[#allocation223_spill] sm:$0xff] %v9520_v56  ;;  %v9533_v13 = vadd.f32 %v8621_v52, %v1647_v25  ;;  %v7472_v25 = vld [vmem:[#allocation5 + $0x7c8] sm:$0xff]  ;;  %v9556_v29 = vmax.f32 %v2677_v17, %v9526_v27 }
 0x2db   : > { %13374 = vst [vmem:[#allocation224_spill] sm:$0xff] %v9526_v27  ;;  %1940 = vst [vmem:[#allocation5 + $0x6e8] sm:$0xff] %v1360_v54  ;;  %v9541_v54 = vadd.f32 %v7470_v30, %v8544_v51  ;;  %v9547_v41 = vadd.f32 %v7472_v25, %v8520_v44  ;;  %v1366_v30 = vpop.f32.mrb[133].mxu0  ;;  %v9559_v25 = vadd.f32 %v7473_v59, %v8544_v51  ;;  %v7474_v27 = vld [vmem:[#allocation5 + $0x7d0] sm:$0xff] }
 0x2dc   : > { %13375 = vst [vmem:[#allocation225_spill] sm:$0xff] %v9529_v62  ;;  %13376 = vst [vmem:[#allocation226_spill] sm:$0xff] %v9533_v13  ;;  %v2647_v48 = vmax.f32 %v2646_v3, %v9533_v13  ;;  %v9562_v56 = vadd.f32 %v8586_v50, %v1366_v30  ;;  %v2662_v28 = vmax.f32 %v2661_v23, %v9552_v16 }
 0x2dd   : > { %1941 = vst [vmem:[#allocation5 + $0x6f0] sm:$0xff] %v1651_v20  ;;  %13377 = vst [vmem:[#allocation227_spill] sm:$0xff] %v9536_v38  ;;  %v2669_v20 = vmax.f32 %v2668_v37, %v9514_v21  ;;  %v1657_v37 = vpop.f32.mrb[132].mxu1  ;;  %v2655_v13 = vmax.f32 %v2654_v2, %v9536_v38  ;;  %v2686_v59 = vmax.f32 %v9544_v5, %v9547_v41  ;;  %v7475_v21 = vld [vmem:[#allocation5 + $0x800] sm:$0xff] }
 0x2de   : > { %13378 = vst [vmem:[#allocation228_spill] sm:$0xff] %v9541_v54  ;;  %13379 = vst [vmem:[#allocation229_spill] sm:$0xff] %v9544_v5  ;;  %2648 = vmax.xlane.f32.xlu0 %v2647_v48  ;;  %v9569_v3 = vadd.f32 %v8589_v40, %v1657_v37  ;;  %v1659_v17 = vpop.f32.mrb[133].mxu1  ;;  %v9578_v23 = vadd.f32 %v7475_v21, %v8517_v32  ;;  %v2663_v2 = vmax.f32 %v2662_v28, %v9562_v56  ;;  %v7477_v5 = vld [vmem:[#allocation5 + $0x7d8] sm:$0xff] }
 0x2df   : > { %13380 = vst [vmem:[#allocation230_spill] sm:$0xff] %v9547_v41  ;;  %1942 = vst [vmem:[#allocation5 + $0x6f8] sm:$0xff] %v1653_v22  ;;  %v2679_v21 = vmax.f32 %v9556_v29, %v9559_v25 }
 0x2e0   : > { %1947 = vst [vmem:[#allocation5 + $0x720] sm:$0xff] %v1364_v34  ;;  %13381 = vst [vmem:[#allocation231_spill] sm:$0xff] %v9552_v16  ;;  %v9566_v34 = vadd.f32 %v8621_v52, %v1653_v22  ;;  %v7476_v22 = vld [vmem:[#allocation5 + $0x808] sm:$0xff]  ;;  %v2670_v16 = vmax.f32 %v2669_v20, %v9541_v54  ;;  %v1663_v20 = vpop.f32.mrb[134].mxu1 }
 0x2e1   : > { %13382 = vst [vmem:[#allocation232_spill] sm:$0xff] %v9559_v25  ;;  %1948 = vst [vmem:[#allocation5 + $0x728] sm:$0xff] %v1366_v30  ;;  %v9575_v30 = vadd.f32 %v7474_v27, %v8533_v39  ;;  %v9581_v48 = vadd.f32 %v7476_v22, %v8520_v44  ;;  %v9592_v22 = vadd.f32 %v7477_v5, %v8544_v51  ;;  %v1665_v29 = vpop.f32.mrb[135].mxu1  ;;  %v7478_v25 = vld [vmem:[#allocation5 + $0x810] sm:$0xff] }
 0x2e2   : > { %13383 = vst [vmem:[#allocation233_spill] sm:$0xff] %v9562_v56  ;;  %13384 = vst [vmem:[#allocation234_spill] sm:$0xff] %v9566_v34  ;;  %v2656_v41 = vmax.f32 %v2655_v13, %v9566_v34  ;;  %v9602_v13 = vadd.f32 %v8589_v40, %v1663_v20  ;;  %v2664_v34 = vmax.f32 %v2663_v2, %v9569_v3 }
 0x2e3   : > { %1949 = vst [vmem:[#allocation5 + $0x730] sm:$0xff] %v1657_v37  ;;  %13385 = vst [vmem:[#allocation235_spill] sm:$0xff] %v9569_v3  ;;  %v1370_v37 = vpop.f32.mrb[134].mxu0  ;;  %v2687_v5 = vmax.f32 %v2686_v59, %v9575_v30  ;;  %v9609_v54 = vadd.f32 %v7478_v25, %v8533_v39 }
 0x2e4   : > { %13386 = vst [vmem:[#allocation236_spill] sm:$0xff] %v9575_v30  ;;  %13387 = vst [vmem:[#allocation237_spill] sm:$0xff] %v9578_v23  ;;  %v9586_v38 = vadd.f32 %v8575_v1, %v1370_v37  ;;  %v1372_v27 = vpop.f32.mrb[135].mxu0  ;;  %2657 = vmax.xlane.f32.xlu1 %v2656_v41 }
 0x2e5   : > { %13388 = vst [vmem:[#allocation238_spill] sm:$0xff] %v9581_v48  ;;  %1950 = vst [vmem:[#allocation5 + $0x738] sm:$0xff] %v1659_v17  ;;  %v9595_v62 = vadd.f32 %v8586_v50, %v1372_v27  ;;  %v1376_v41 = vpop.f32.mrb[136].mxu0 }
 0x2e6   : > { %1955 = vst [vmem:[#allocation5 + $0x760] sm:$0xff] %v1370_v37  ;;  %13389 = vst [vmem:[#allocation239_spill] sm:$0xff] %v9586_v38  ;;  %v2671_v28 = vmax.f32 %v2670_v16, %v9586_v38  ;;  %v9599_v37 = vadd.f32 %v8621_v52, %v1659_v17  ;;  %v7479_v16 = vld [vmem:[#allocation5 + $0x840] sm:$0xff]  ;;  %v9619_v59 = vadd.f32 %v8575_v1, %v1376_v41  ;;  %v1378_v3 = vpop.f32.mrb[137].mxu0 }
 0x2e7   : > { %13390 = vst [vmem:[#allocation240_spill] sm:$0xff] %v9592_v22  ;;  %1956 = vst [vmem:[#allocation5 + $0x768] sm:$0xff] %v1372_v27  ;;  %v2695_v27 = vmax.f32 %v9578_v23, %v9581_v48  ;;  %v9612_v17 = vadd.f32 %v7479_v16, %v8517_v32  ;;  %v7481_v48 = vld [vmem:[#allocation5 + $0x880] sm:$0xff]  ;;  %v7482_v16 = vld [vmem:[#allocation5 + $0x888] sm:$0xff] }
 0x2e8   : > { %13391 = vst [vmem:[#allocation241_spill] sm:$0xff] %v9595_v62  ;;  %13392 = vst [vmem:[#allocation242_spill] sm:$0xff] %v9599_v37  ;;  %v2672_v2 = vmax.f32 %v2671_v28, %v9595_v62  ;;  %v2665_v25 = vmax.f32 %v2664_v34, %v9599_v37  ;;  %v9623_v23 = vadd.f32 %v7481_v48, %v8517_v32  ;;  %v1669_v28 = vpop.f32.mrb[136].mxu1 }
 0x2e9   : > { %1957 = vst [vmem:[#allocation5 + $0x770] sm:$0xff] %v1663_v20  ;;  %13393 = vst [vmem:[#allocation243_spill] sm:$0xff] %v9602_v13  ;;  %v7480_v20 = vld [vmem:[#allocation5 + $0x848] sm:$0xff]  ;;  %v9626_v30 = vadd.f32 %v7482_v16, %v8520_v44  ;;  %v2680_v62 = vmax.f32 %v2679_v21, %v9619_v59  ;;  %v9636_v34 = vadd.f32 %v8589_v40, %v1669_v28  ;;  %v1671_v48 = vpop.f32.mrb[137].mxu1  ;;  %v7484_v21 = vld [vmem:[#allocation5 + $0x850] sm:$0xff] }
 0x2ea   : > { %13394 = vst [vmem:[#allocation244_spill] sm:$0xff] %v9609_v54  ;;  %13395 = vst [vmem:[#allocation245_spill] sm:$0xff] %v9612_v17  ;;  %v9615_v38 = vadd.f32 %v7480_v20, %v8520_v44  ;;  %v9629_v20 = vadd.f32 %v8586_v50, %v1378_v3  ;;  %2666 = vmax.xlane.f32.xlu0 %v2665_v25  ;;  %v2673_v37 = vmax.f32 %v2672_v2, %v9602_v13  ;;  %v1382_v25 = vpop.f32.mrb[138].mxu0  ;;  %v7485_v13 = vld [vmem:[#allocation5 + $0x890] sm:$0xff] }
 0x2eb   : > { %1958 = vst [vmem:[#allocation5 + $0x778] sm:$0xff] %v1665_v29  ;;  %1963 = vst [vmem:[#allocation5 + $0x7a0] sm:$0xff] %v1376_v41  ;;  %v9633_v41 = vadd.f32 %v8621_v52, %v1665_v29  ;;  %v2688_v16 = vmax.f32 %v2687_v5, %v9592_v22  ;;  %v2696_v56 = vmax.f32 %v2695_v27, %v9609_v54  ;;  %v1384_v27 = vpop.f32.mrb[139].mxu0 }
 0x2ec   : > { %13396 = vst [vmem:[#allocation246_spill] sm:$0xff] %v9615_v38  ;;  %13397 = vst [vmem:[#allocation247_spill] sm:$0xff] %v9619_v59  ;;  %v9645_v29 = vadd.f32 %v7484_v21, %v8533_v39  ;;  %v2681_v59 = vmax.f32 %v2680_v62, %v9629_v20  ;;  %v9651_v5 = vadd.f32 %v8575_v1, %v1382_v25 }
 0x2ed   : > { %13398 = vst [vmem:[#allocation248_spill] sm:$0xff] %v9623_v23  ;;  %13399 = vst [vmem:[#allocation249_spill] sm:$0xff] %v9626_v30  ;;  %v2674_v2 = vmax.f32 %v2673_v37, %v9633_v41  ;;  %v9657_v21 = vadd.f32 %v7485_v13, %v8533_v39  ;;  %v9660_v54 = vadd.f32 %v8586_v50, %v1384_v27 }
 0x2ee   : > { %1964 = vst [vmem:[#allocation5 + $0x7a8] sm:$0xff] %v1378_v3  ;;  %13400 = vst [vmem:[#allocation250_spill] sm:$0xff] %v9629_v20  ;;  %v7483_v3 = vld [vmem:[#allocation5 + $0x818] sm:$0xff]  ;;  %v2689_v62 = vmax.f32 %v2688_v16, %v9651_v5 }
 0x2ef   : > { %13401 = vst [vmem:[#allocation251_spill] sm:$0xff] %v9633_v41  ;;  %1965 = vst [vmem:[#allocation5 + $0x7b0] sm:$0xff] %v1669_v28  ;;  %v9642_v14 = vadd.f32 %v7483_v3, %v8544_v51  ;;  %v2704_v28 = vmax.f32 %v9612_v17, %v9615_v38  ;;  %v2713_v3 = vmax.f32 %v9623_v23, %v9626_v30  ;;  %v1675_v38 = vpop.f32.mrb[138].mxu1  ;;  %2675 = vmax.xlane.f32.xlu1 %v2674_v2  ;;  %v7486_v23 = vld [vmem:[#allocation5 + $0x858] sm:$0xff]  ;;  %v7487_v17 = vld [vmem:[#allocation5 + $0x8c0] sm:$0xff] }
 0x2f0   : > { %13402 = vst [vmem:[#allocation252_spill] sm:$0xff] %v9636_v34  ;;  %13404 = vst [vmem:[#allocation254_spill] sm:$0xff] %v9645_v29  ;;  %v9667_v37 = vadd.f32 %v8589_v40, %v1675_v38  ;;  %v1677_v41 = vpop.f32.mrb[139].mxu1  ;;  %v2682_v30 = vmax.f32 %v2681_v59, %v9636_v34  ;;  %v9675_v16 = vadd.f32 %v7487_v17, %v8517_v32 }
 0x2f1   : > { %13403 = vst [vmem:[#allocation253_spill] sm:$0xff] %v9642_v14  ;;  %1966 = vst [vmem:[#allocation5 + $0x7b8] sm:$0xff] %v1671_v48  ;;  %v2697_v13 = vmax.f32 %v2696_v56, %v9642_v14  ;;  %v2690_v59 = vmax.f32 %v2689_v62, %v9660_v54  ;;  %v2714_v17 = vmax.f32 %v2713_v3, %v9657_v21  ;;  %v7489_v14 = vld [vmem:[#allocation5 + $0x898] sm:$0xff] }
 0x2f2   : > { %1971 = vst [vmem:[#allocation5 + $0x7e0] sm:$0xff] %v1382_v25  ;;  %13405 = vst [vmem:[#allocation255_spill] sm:$0xff] %v9651_v5  ;;  %v9664_v25 = vadd.f32 %v8621_v52, %v1671_v48  ;;  %v7488_v48 = vld [vmem:[#allocation5 + $0x8c8] sm:$0xff]  ;;  %v1388_v5 = vpop.f32.mrb[140].mxu0  ;;  %v9688_v22 = vadd.f32 %v7489_v14, %v8544_v51 }
 0x2f3   : > { %13406 = vst [vmem:[#allocation256_spill] sm:$0xff] %v9657_v21  ;;  %1972 = vst [vmem:[#allocation5 + $0x7e8] sm:$0xff] %v1384_v27  ;;  %v9672_v27 = vadd.f32 %v7486_v23, %v8544_v51  ;;  %v9678_v2 = vadd.f32 %v7488_v48, %v8520_v44  ;;  %v9683_v56 = vadd.f32 %v8575_v1, %v1388_v5  ;;  %v1390_v23 = vpop.f32.mrb[141].mxu0  ;;  %v7491_v21 = vld [vmem:[#allocation5 + $0x900] sm:$0xff] }
 0x2f4   : > { %13407 = vst [vmem:[#allocation257_spill] sm:$0xff] %v9660_v54  ;;  %13408 = vst [vmem:[#allocation258_spill] sm:$0xff] %v9664_v25  ;;  %v2683_v34 = vmax.f32 %v2682_v30, %v9664_v25  ;;  %v9691_v48 = vadd.f32 %v8586_v50, %v1390_v23  ;;  %v2691_v3 = vmax.f32 %v2690_v59, %v9667_v37  ;;  %v7490_v25 = vld [vmem:[#allocation5 + $0x8d0] sm:$0xff] }
 0x2f5   : > { %1973 = vst [vmem:[#allocation5 + $0x7f0] sm:$0xff] %v1675_v38  ;;  %13409 = vst [vmem:[#allocation259_spill] sm:$0xff] %v9667_v37  ;;  %v2705_v38 = vmax.f32 %v2704_v28, %v9645_v29  ;;  %v1681_v28 = vpop.f32.mrb[140].mxu1  ;;  %v2698_v62 = vmax.f32 %v2697_v13, %v9683_v56  ;;  %v9695_v29 = vadd.f32 %v8621_v52, %v1677_v41 }
 0x2f6   : > { %13410 = vst [vmem:[#allocation260_spill] sm:$0xff] %v9672_v27  ;;  %13411 = vst [vmem:[#allocation261_spill] sm:$0xff] %v9675_v16  ;;  %2684 = vmax.xlane.f32.xlu0 %v2683_v34  ;;  %v9698_v30 = vadd.f32 %v8589_v40, %v1681_v28  ;;  %v2722_v14 = vmax.f32 %v9675_v16, %v9678_v2  ;;  %v9707_v13 = vadd.f32 %v7491_v21, %v8517_v32  ;;  %v7493_v16 = vld [vmem:[#allocation5 + $0x8d8] sm:$0xff] }
 0x2f7   : > { %13412 = vst [vmem:[#allocation262_spill] sm:$0xff] %v9678_v2  ;;  %1974 = vst [vmem:[#allocation5 + $0x7f8] sm:$0xff] %v1677_v41  ;;  %v7492_v41 = vld [vmem:[#allocation5 + $0x908] sm:$0xff]  ;;  %v2699_v59 = vmax.f32 %v2698_v62, %v9691_v48  ;;  %v2692_v2 = vmax.f32 %v2691_v3, %v9695_v29  ;;  %v2715_v21 = vmax.f32 %v2714_v17, %v9688_v22 }
 0x2f8   : > { %1979 = vst [vmem:[#allocation5 + $0x820] sm:$0xff] %v1388_v5  ;;  %13413 = vst [vmem:[#allocation263_spill] sm:$0xff] %v9683_v56  ;;  %v1683_v5 = vpop.f32.mrb[141].mxu1  ;;  %v9710_v34 = vadd.f32 %v7492_v41, %v8520_v44  ;;  %v2706_v56 = vmax.f32 %v2705_v38, %v9672_v27  ;;  %v9720_v54 = vadd.f32 %v7493_v16, %v8544_v51 }
 0x2f9   : > { %13414 = vst [vmem:[#allocation264_spill] sm:$0xff] %v9688_v22  ;;  %1980 = vst [vmem:[#allocation5 + $0x828] sm:$0xff] %v1390_v23  ;;  %v9704_v23 = vadd.f32 %v7490_v25, %v8533_v39  ;;  %v1687_v38 = vpop.f32.mrb[142].mxu1  ;;  %v9727_v27 = vadd.f32 %v8621_v52, %v1683_v5  ;;  %2693 = vmax.xlane.f32.xlu1 %v2692_v2 }
 0x2fa   : > { %13415 = vst [vmem:[#allocation265_spill] sm:$0xff] %v9691_v48  ;;  %13416 = vst [vmem:[#allocation266_spill] sm:$0xff] %v9695_v29  ;;  %v9730_v3 = vadd.f32 %v8589_v40, %v1687_v38  ;;  %v1689_v17 = vpop.f32.mrb[143].mxu1  ;;  %v7494_v29 = vld [vmem:[#allocation5 + $0x910] sm:$0xff]  ;;  %v9965_v48 = vld [vmem:[#allocation2 + $0x70] sm:$0xff] }
 0x2fb   : > { %1981 = vst [vmem:[#allocation5 + $0x830] sm:$0xff] %v1681_v28  ;;  %13417 = vst [vmem:[#allocation267_spill] sm:$0xff] %v9698_v30  ;;  %v1394_v28 = vpop.f32.mrb[142].mxu0  ;;  %v2723_v16 = vmax.f32 %v2722_v14, %v9704_v23  ;;  %v9737_v22 = vadd.f32 %v7494_v29, %v8533_v39 }
 0x2fc   : > { %13418 = vst [vmem:[#allocation268_spill] sm:$0xff] %v9704_v23  ;;  %13419 = vst [vmem:[#allocation269_spill] sm:$0xff] %v9707_v13  ;;  %v9715_v37 = vadd.f32 %v8575_v1, %v1394_v28  ;;  %v1396_v25 = vpop.f32.mrb[143].mxu0 }
 0x2fd   : > { %13420 = vst [vmem:[#allocation270_spill] sm:$0xff] %v9710_v34  ;;  %1982 = vst [vmem:[#allocation5 + $0x838] sm:$0xff] %v1683_v5  ;;  %v9723_v41 = vadd.f32 %v8586_v50, %v1396_v25  ;;  %v1400_v2 = vpop.f32.mrb[144].mxu0 }
 0x2fe   : > { %1987 = vst [vmem:[#allocation5 + $0x860] sm:$0xff] %v1394_v28  ;;  %13421 = vst [vmem:[#allocation271_spill] sm:$0xff] %v9715_v37  ;;  %v2707_v62 = vmax.f32 %v2706_v56, %v9715_v37  ;;  %v2700_v28 = vmax.f32 %v2699_v59, %v9698_v30  ;;  %v7495_v56 = vld [vmem:[#allocation5 + $0x940] sm:$0xff]  ;;  %v9747_v14 = vadd.f32 %v8575_v1, %v1400_v2  ;;  %v1402_v30 = vpop.f32.mrb[145].mxu0 }
 0x2ff   : > { %13422 = vst [vmem:[#allocation272_spill] sm:$0xff] %v9720_v54  ;;  %1988 = vst [vmem:[#allocation5 + $0x868] sm:$0xff] %v1396_v25  ;;  %v2731_v25 = vmax.f32 %v9707_v13, %v9710_v34  ;;  %v9740_v5 = vadd.f32 %v7495_v56, %v8517_v32  ;;  %v9751_v34 = vadd.f32 %v8586_v50, %v1402_v30  ;;  %v1693_v32 = vpop.f32.mrb[144].mxu1 }
 0x300   : > { %13423 = vst [vmem:[#allocation273_spill] sm:$0xff] %v9723_v41  ;;  %13424 = vst [vmem:[#allocation274_spill] sm:$0xff] %v9727_v27  ;;  %v2708_v59 = vmax.f32 %v2707_v62, %v9723_v41  ;;  %v2701_v29 = vmax.f32 %v2700_v28, %v9727_v27  ;;  %v2716_v56 = vmax.f32 %v2715_v21, %v9747_v14  ;;  %v1695_v62 = vpop.f32.mrb[145].mxu1  ;;  %v7498_v21 = vld [vmem:[#allocation5 + $0x950] sm:$0xff] }
 0x301   : > { %1989 = vst [vmem:[#allocation5 + $0x870] sm:$0xff] %v1687_v38  ;;  %13425 = vst [vmem:[#allocation275_spill] sm:$0xff] %v9730_v3  ;;  %v7496_v38 = vld [vmem:[#allocation5 + $0x948] sm:$0xff]  ;;  %v9755_v13 = vadd.f32 %v8621_v52, %v1689_v17  ;;  %v2724_v28 = vmax.f32 %v2723_v16, %v9720_v54  ;;  %v9944_v54 = vld [vmem:[#allocation2 + $0x60] sm:$0xff] }
 0x302   : > { %13426 = vst [vmem:[#allocation276_spill] sm:$0xff] %v9737_v22  ;;  %13427 = vst [vmem:[#allocation277_spill] sm:$0xff] %v9740_v5  ;;  %v9743_v37 = vadd.f32 %v7496_v38, %v8520_v44  ;;  %2702 = vmax.xlane.f32.xlu0 %v2701_v29  ;;  %v9758_v44 = vadd.f32 %v8589_v40, %v1693_v32  ;;  %v2732_v38 = vmax.f32 %v2731_v25, %v9737_v22  ;;  %v1406_v29 = vpop.f32.mrb[146].mxu0 }
 0x303   : > { %1990 = vst [vmem:[#allocation5 + $0x878] sm:$0xff] %v1689_v17  ;;  %1995 = vst [vmem:[#allocation5 + $0x8a0] sm:$0xff] %v1400_v2  ;;  %v2709_v2 = vmax.f32 %v2708_v59, %v9730_v3  ;;  %v9767_v17 = vadd.f32 %v7498_v21, %v8533_v39  ;;  %v2717_v23 = vmax.f32 %v2716_v56, %v9751_v34  ;;  %v1408_v25 = vpop.f32.mrb[147].mxu0  ;;  %v1699_v39 = vpop.f32.mrb[146].mxu1 }
 0x304   : > { %13428 = vst [vmem:[#allocation278_spill] sm:$0xff] %v9743_v37  ;;  %13429 = vst [vmem:[#allocation279_spill] sm:$0xff] %v9747_v14  ;;  %v9773_v16 = vadd.f32 %v8575_v1, %v1406_v29  ;;  %v9781_v3 = vadd.f32 %v8621_v52, %v1695_v62  ;;  %v9784_v56 = vadd.f32 %v8589_v40, %v1699_v39  ;;  %v9955_v14 = vld [vmem:[#allocation2 + $0x68] sm:$0xff] }
 0x305   : > { %1996 = vst [vmem:[#allocation5 + $0x8a8] sm:$0xff] %v1402_v30  ;;  %13430 = vst [vmem:[#allocation280_spill] sm:$0xff] %v9751_v34  ;;  %v7497_v30 = vld [vmem:[#allocation5 + $0x918] sm:$0xff]  ;;  %v2710_v59 = vmax.f32 %v2709_v2, %v9755_v13 }
 0x306   : > { %13431 = vst [vmem:[#allocation281_spill] sm:$0xff] %v9755_v13  ;;  %1997 = vst [vmem:[#allocation5 + $0x8b0] sm:$0xff] %v1693_v32  ;;  %v9764_v27 = vadd.f32 %v7497_v30, %v8544_v51  ;;  %v2740_v32 = vmax.f32 %v9740_v5, %v9743_v37  ;;  %v9777_v30 = vadd.f32 %v8586_v50, %v1408_v25  ;;  %v7499_v13 = vld [vmem:[#allocation5 + $0x958] sm:$0xff]  ;;  %v1412_v5 = vpop.f32.mrb[148].mxu0 }
 0x307   : > { %13432 = vst [vmem:[#allocation282_spill] sm:$0xff] %v9758_v44  ;;  %13434 = vst [vmem:[#allocation284_spill] sm:$0xff] %v9767_v17  ;;  %v2725_v21 = vmax.f32 %v2724_v28, %v9773_v16  ;;  %2711 = vmax.xlane.f32.xlu1 %v2710_v59  ;;  %v2718_v37 = vmax.f32 %v2717_v23, %v9758_v44  ;;  %v9794_v59 = vadd.f32 %v8575_v1, %v1412_v5 }
 0x308   : > { %13433 = vst [vmem:[#allocation283_spill] sm:$0xff] %v9764_v27  ;;  %1998 = vst [vmem:[#allocation5 + $0x8b8] sm:$0xff] %v1695_v62  ;;  %v2733_v2 = vmax.f32 %v2732_v38, %v9764_v27  ;;  %v2741_v28 = vmax.f32 %v2740_v32, %v9767_v17  ;;  %v9817_v17 = vld [vmem:[#allocation2] sm:$0xff] }
 0x309   : > { %2003 = vst [vmem:[#allocation5 + $0x8e0] sm:$0xff] %v1406_v29  ;;  %13435 = vst [vmem:[#allocation285_spill] sm:$0xff] %v9773_v16  ;;  %v1701_v29 = vpop.f32.mrb[147].mxu1  ;;  %v2726_v62 = vmax.f32 %v2725_v21, %v9777_v30  ;;  %v2719_v22 = vmax.f32 %v2718_v37, %v9781_v3 }
 0x30a   : > { %2004 = vst [vmem:[#allocation5 + $0x8e8] sm:$0xff] %v1408_v25  ;;  %13436 = vst [vmem:[#allocation286_spill] sm:$0xff] %v9777_v30  ;;  %v9789_v25 = vadd.f32 %v7499_v13, %v8544_v51  ;;  %v1705_v38 = vpop.f32.mrb[148].mxu1  ;;  %v2734_v51 = vmax.f32 %v2733_v2, %v9794_v59  ;;  %v9802_v13 = vadd.f32 %v8621_v52, %v1701_v29  ;;  %v9934_v30 = vld [vmem:[#allocation2 + $0x58] sm:$0xff] }
 0x30b   : > { %13437 = vst [vmem:[#allocation287_spill] sm:$0xff] %v9781_v3  ;;  %2005 = vst [vmem:[#allocation5 + $0x8f0] sm:$0xff] %v1699_v39  ;;  %v1414_v39 = vpop.f32.mrb[149].mxu0  ;;  %2720 = vmax.xlane.f32.xlu0 %v2719_v22  ;;  %v9805_v32 = vadd.f32 %v8589_v40, %v1705_v38  ;;  %v2727_v21 = vmax.f32 %v2726_v62, %v9784_v56 }
 0x30c   : > { %13438 = vst [vmem:[#allocation288_spill] sm:$0xff] %v9784_v56  ;;  %13439 = vst [vmem:[#allocation289_spill] sm:$0xff] %v9789_v25  ;;  %v9798_v23 = vadd.f32 %v8586_v50, %v1414_v39  ;;  %v1418_v44 = vpop.f32.mrb[150].mxu0  ;;  %v2742_v37 = vmax.f32 %v2741_v28, %v9789_v25  ;;  %v9913_v25 = vld [vmem:[#allocation2 + $0x48] sm:$0xff] }
 0x30d   : > { %2006 = vst [vmem:[#allocation5 + $0x8f8] sm:$0xff] %v1701_v29  ;;  %2011 = vst [vmem:[#allocation5 + $0x920] sm:$0xff] %v1412_v5  ;;  %v1707_v5 = vpop.f32.mrb[149].mxu1  ;;  %v9811_v2 = vadd.f32 %v8575_v1, %v1418_v44  ;;  %v1420_v29 = vpop.f32.mrb[151].mxu0  ;;  %v2728_v22 = vmax.f32 %v2727_v21, %v9802_v13 }
 0x30e   : > { %13440 = vst [vmem:[#allocation290_spill] sm:$0xff] %v9794_v59  ;;  %2012 = vst [vmem:[#allocation5 + $0x928] sm:$0xff] %v1414_v39  ;;  %v2735_v39 = vmax.f32 %v2734_v51, %v9798_v23  ;;  %v1711_v3 = vpop.f32.mrb[150].mxu1  ;;  %v9821_v28 = vadd.f32 %v8621_v52, %v1707_v5  ;;  %v2415_v21 = vpop.xlane.xlu0 %2414  ;;  %v9923_v59 = vld [vmem:[#allocation2 + $0x50] sm:$0xff] }
 0x30f   : > { %13441 = vst [vmem:[#allocation291_spill] sm:$0xff] %v9798_v23  ;;  %13442 = vst [vmem:[#allocation292_spill] sm:$0xff] %v9802_v13  ;;  %v2743_v62 = vmax.f32 %v2742_v37, %v9811_v2  ;;  %2729 = vmax.xlane.f32.xlu1 %v2728_v22  ;;  %v9824_v1 = vadd.f32 %v8589_v40, %v1711_v3  ;;  %v9864_v22 = vld [vmem:[#allocation2 + $0x20] sm:$0xff]  ;;  %v9893_v13 = vld [vmem:[#allocation2 + $0x38] sm:$0xff] }
 0x310   : > { %2013 = vst [vmem:[#allocation5 + $0x930] sm:$0xff] %v1705_v38  ;;  %13443 = vst [vmem:[#allocation293_spill] sm:$0xff] %v9805_v32  ;;  %v9815_v38 = vadd.f32 %v8586_v50, %v1420_v29  ;;  %v2736_v51 = vmax.f32 %v2735_v39, %v9805_v32 }
 0x311   : > { %2014 = vst [vmem:[#allocation5 + $0x938] sm:$0xff] %v1707_v5  ;;  %2019 = vst [vmem:[#allocation5 + $0x960] sm:$0xff] %v1418_v44  ;;  %v1713_v44 = vpop.f32.mrb[151].mxu1  ;;  %v9832_v5 = vld [vmem:[#allocation2 + $0x8] sm:$0xff] }
 0x312   : > { %13444 = vst [vmem:[#allocation294_spill] sm:$0xff] %v9811_v2  ;;  %2020 = vst [vmem:[#allocation5 + $0x968] sm:$0xff] %v1420_v29  ;;  %v2744_v50 = vmax.f32 %v2743_v62, %v9815_v38  ;;  %v9829_v29 = vmax.f32 %v9817_v17, %v2415_v21  ;;  %v2737_v37 = vmax.f32 %v2736_v51, %v9821_v28  ;;  %v2424_v39 = vpop.xlane.xlu0 %2423  ;;  %v9846_v21 = vld [vmem:[#allocation2 + $0x10] sm:$0xff] }
 0x313   : > { %13445 = vst [vmem:[#allocation295_spill] sm:$0xff] %v9815_v38  ;;  %13446 = vst [vmem:[#allocation296_spill] sm:$0xff] %v9821_v28  ;;  %v9839_v40 = vadd.f32 %v8621_v52, %v1713_v44  ;;  %v9843_v62 = vmax.f32 %v9832_v5, %v2424_v39  ;;  %v2433_v52 = vpop.xlane.xlu1 %2432  ;;  %v9903_v38 = vld [vmem:[#allocation2 + $0x40] sm:$0xff] }
 0x314   : > { %2021 = vst [vmem:[#allocation5 + $0x970] sm:$0xff] %v1711_v3  ;;  %13447 = vst [vmem:[#allocation297_spill] sm:$0xff] %v9824_v1  ;;  %2738 = vmax.xlane.f32.xlu0 %v2737_v37  ;;  %v2745_v3 = vmax.f32 %v2744_v50, %v9824_v1  ;;  %v9855_v50 = vld [vmem:[#allocation2 + $0x18] sm:$0xff]  ;;  %v9873_v37 = vld [vmem:[#allocation2 + $0x28] sm:$0xff] }
 0x315   : > { %2022 = vst [vmem:[#allocation5 + $0x978] sm:$0xff] %v1713_v44  ;;  %4498 = vst.msk [vmem:[#allocation2] sm:$0xff] %vm4459_vm1, %v9829_v29  ;;  %v9853_v44 = vmax.f32 %v9846_v21, %v2433_v52 }
 0x316   : > { %13448 = vst [vmem:[#allocation298_spill] sm:$0xff] %v9839_v40  ;;  %v2746_v51 = vmax.f32 %v2745_v3, %v9839_v40  ;;  %4499 = vst.msk [vmem:[#allocation2 + $0x8] sm:$0xff] %vm4459_vm1, %v9843_v62  ;;  %v2451_v52 = vpop.xlane.xlu0 %2450 }
 0x317   : > { %4500 = vst.msk [vmem:[#allocation2 + $0x10] sm:$0xff] %vm4459_vm1, %v9853_v44  ;;  %v2442_v3 = vpop.xlane.xlu1 %2441  ;;  %v9871_v40 = vmax.f32 %v9864_v22, %v2451_v52  ;;  %13449 = vst [vmem:[#allocation299_spill] sm:$0xff] %v9986_v15 }
 0x318   : > { %2747 = vmax.xlane.f32.xlu1 %v2746_v51  ;;  %v9862_v39 = vmax.f32 %v9855_v50, %v2442_v3  ;;  %v9882_v51 = vld [vmem:[#allocation2 + $0x30] sm:$0xff]  ;;  %13451 = vst [vmem:[#allocation301_spill] sm:$0xff] %v9997_v47  ;;  %13453 = vst [vmem:[#allocation303_spill] sm:$0xff] %v10007_v9 }
 0x319   : > { %4502 = vst.msk [vmem:[#allocation2 + $0x20] sm:$0xff] %vm4459_vm1, %v9871_v40  ;;  %13455 = vst [vmem:[#allocation305_spill] sm:$0xff] %v10017_v10 }
 0x31a   : > { %4501 = vst.msk [vmem:[#allocation2 + $0x18] sm:$0xff] %vm4459_vm1, %v9862_v39  ;;  %v2469_v52 = vpop.xlane.xlu0 %2468  ;;  %13489 = vst [vmem:[#allocation337_spill] sm:$0xff] %v10183_v8 }
 0x31b   : > { %v2460_v3 = vpop.xlane.xlu1 %2459  ;;  %v9890_v1 = vmax.f32 %v9882_v51, %v2469_v52 }
 0x31c   : > { %v9880_v28 = vmax.f32 %v9873_v37, %v2460_v3 }
 0x31d   : > { %4504 = vst.msk [vmem:[#allocation2 + $0x30] sm:$0xff] %vm4459_vm1, %v9890_v1 }
 0x31e   : > { %4503 = vst.msk [vmem:[#allocation2 + $0x28] sm:$0xff] %vm4459_vm1, %v9880_v28  ;;  %v2487_v2 = vpop.xlane.xlu0 %2486 }
 0x31f   : > { %v2478_v32 = vpop.xlane.xlu1 %2477  ;;  %v9911_v3 = vmax.f32 %v9903_v38, %v2487_v2 }
 0x320   : > { %v9901_v56 = vmax.f32 %v9893_v13, %v2478_v32 }
 0x321   : > { %4506 = vst.msk [vmem:[#allocation2 + $0x40] sm:$0xff] %vm4459_vm1, %v9911_v3 }
 0x322   : > { %4505 = vst.msk [vmem:[#allocation2 + $0x38] sm:$0xff] %vm4459_vm1, %v9901_v56  ;;  %v2505_v32 = vpop.xlane.xlu0 %2504 }
 0x323   : > { %v2496_v23 = vpop.xlane.xlu1 %2495  ;;  %v9932_v27 = vmax.f32 %v9923_v59, %v2505_v32 }
 0x324   : > { %v9921_v52 = vmax.f32 %v9913_v25, %v2496_v23 }
 0x325   : > { %4508 = vst.msk [vmem:[#allocation2 + $0x50] sm:$0xff] %vm4459_vm1, %v9932_v27 }
 0x326   : > { %4507 = vst.msk [vmem:[#allocation2 + $0x48] sm:$0xff] %vm4459_vm1, %v9921_v52  ;;  %v2523_v23 = vpop.xlane.xlu0 %2522 }
 0x327   : > { %v2514_v2 = vpop.xlane.xlu1 %2513  ;;  %v9953_v34 = vmax.f32 %v9944_v54, %v2523_v23 }
 0x328   : > { %v9942_v16 = vmax.f32 %v9934_v30, %v2514_v2 }
 0x329   : > { %2984 = vperm.xlu1 %6718, %v9843_v62   ;;  %4510 = vst.msk [vmem:[#allocation2 + $0x60] sm:$0xff] %vm4459_vm1, %v9953_v34 }
 0x32a   : > { %2979 = vperm.xlu0 %6717, %v9829_v29   ;;  %4509 = vst.msk [vmem:[#allocation2 + $0x58] sm:$0xff] %vm4459_vm1, %v9942_v16  ;;  %v2541_v2 = vpop.xlane.xlu0 %2540 }
 0x32b   : > { %v2532_v32 = vpop.xlane.xlu1 %2531  ;;  %v9974_v20 = vmax.f32 %v9965_v48, %v2541_v2 }
 0x32c   : > { %v9963_v41 = vmax.f32 %v9955_v14, %v2532_v32 }
 0x32d   : > { %2989 = vperm.xlu1 %6718, %v9853_v44   ;;  %4512 = vst.msk [vmem:[#allocation2 + $0x70] sm:$0xff] %vm4459_vm1, %v9974_v20 }
 0x32e   : > { %3024 = vperm.xlu0 %6717, %v9921_v52   ;;  %4511 = vst.msk [vmem:[#allocation2 + $0x68] sm:$0xff] %vm4459_vm1, %v9963_v41 }
 0x32f   : > { %v2550_v23 = vpop.xlane.xlu1 %2549  ;;  %v2559_v32 = vpop.xlane.xlu0 %2558 }
 0x330   : > { %v9984_v19 = vmax.f32 %v9976_v4, %v2550_v23  ;;  %v9995_v18 = vmax.f32 %v9986_v15, %v2559_v32 }
 0x331   : > { %2994 = vperm.xlu1 %6718, %v9862_v39  }
 0x332   : > { %3034 = vperm.xlu0 %6717, %v9942_v16   ;;  %4513 = vst.msk [vmem:[#allocation2 + $0x78] sm:$0xff] %vm4459_vm1, %v9984_v19  ;;  %13450 = vst [vmem:[#allocation300_spill] sm:$0xff] %v9995_v18 }
 0x333   : > { %4514 = vst.msk [vmem:[#allocation2 + $0x80] sm:$0xff] %vm4459_vm1, %v9995_v18 }
 0x334   : > { %v2568_v2 = vpop.xlane.xlu1 %2567 }
 0x335   : > { %2999 = vperm.xlu1 %6718, %v9871_v40   ;;  %v10005_v31 = vmax.f32 %v9997_v47, %v2568_v2 }
 0x336   : > { %3044 = vperm.xlu0 %6717, %v9963_v41  }
 0x337   : > { %13452 = vst [vmem:[#allocation302_spill] sm:$0xff] %v10005_v31  ;;  %4515 = vst.msk [vmem:[#allocation2 + $0x88] sm:$0xff] %vm4459_vm1, %v10005_v31 }
 0x339   : > { %3004 = vperm.xlu1 %6718, %v9880_v28  }
 0x33a   : > { %3054 = vperm.xlu0 %6717, %v9984_v19  }
 0x33b   : > { %v2577_v23 = vpop.xlane.xlu0 %2576 }
 0x33c   : > { %v10015_v15 = vmax.f32 %v10007_v9, %v2577_v23 }
 0x33d   : > { %3009 = vperm.xlu1 %6718, %v9890_v1  }
 0x33e   : > { %3064 = vperm.xlu0 %6717, %v10005_v31   ;;  %13454 = vst [vmem:[#allocation304_spill] sm:$0xff] %v10015_v15  ;;  %4516 = vst.msk [vmem:[#allocation2 + $0x90] sm:$0xff] %vm4459_vm1, %v10015_v15  ;;  %v10037_v31 = vld [vmem:[#allocation2 + $0xa8] sm:$0xff] }
 0x33f   : > { %13459 = vst [vmem:[#allocation309_spill] sm:$0xff] %v10037_v31 }
 0x341   : > { %3014 = vperm.xlu1 %6718, %v9901_v56   ;;  %v2586_v32 = vpop.xlane.xlu1 %2585 }
 0x342   : > { %v10025_v47 = vmax.f32 %v10017_v10, %v2586_v32 }
 0x344   : > { %13456 = vst [vmem:[#allocation306_spill] sm:$0xff] %v10025_v47  ;;  %4517 = vst.msk [vmem:[#allocation2 + $0x98] sm:$0xff] %vm4459_vm1, %v10025_v47  ;;  %3074 = vperm.xlu0 %6717, %v10025_v47   ;;  %v10057_v47 = vld [vmem:[#allocation2 + $0xb8] sm:$0xff] }
 0x345   : > { %3019 = vperm.xlu1 %6718, %v9911_v3   ;;  %13463 = vst [vmem:[#allocation313_spill] sm:$0xff] %v10057_v47 }
 0x347   : > { %v2595_v2 = vpop.xlane.xlu0 %2594 }
 0x349   : > { %3029 = vperm.xlu1 %6718, %v9932_v27  }
 0x34c   : > { %v2604_v23 = vpop.xlane.xlu1 %2603 }
 0x34d   : > { %3039 = vperm.xlu1 %6718, %v9953_v34   ;;  %v10045_v10 = vmax.f32 %v10037_v31, %v2604_v23 }
 0x34f   : > { %13460 = vst [vmem:[#allocation310_spill] sm:$0xff] %v10045_v10  ;;  %4519 = vst.msk [vmem:[#allocation2 + $0xa8] sm:$0xff] %vm4459_vm1, %v10045_v10  ;;  %3084 = vperm.xlu0 %6717, %v10045_v10   ;;  %v10077_v10 = vld [vmem:[#allocation2 + $0xc8] sm:$0xff] }
 0x350   : > { %13467 = vst [vmem:[#allocation317_spill] sm:$0xff] %v10077_v10 }
 0x351   : > { %3049 = vperm.xlu1 %6718, %v9974_v20  }
 0x353   : > { %v2613_v32 = vpop.xlane.xlu0 %2612 }
 0x355   : > { %3059 = vperm.xlu1 %6718, %v9995_v18   ;;  %v10027_v18 = vld [vmem:[#allocation2 + $0xa0] sm:$0xff] }
 0x356   : > { %13457 = vst [vmem:[#allocation307_spill] sm:$0xff] %v10027_v18  ;;  %v10035_v9 = vmax.f32 %v10027_v18, %v2595_v2 }
 0x358   : > { %13458 = vst [vmem:[#allocation308_spill] sm:$0xff] %v10035_v9  ;;  %4518 = vst.msk [vmem:[#allocation2 + $0xa0] sm:$0xff] %vm4459_vm1, %v10035_v9 }
 0x359   : > { %3069 = vperm.xlu1 %6718, %v10015_v15   ;;  %v10047_v15 = vld [vmem:[#allocation2 + $0xb0] sm:$0xff]  ;;  %v2622_v2 = vpop.xlane.xlu1 %2621 }
 0x35a   : > { %13461 = vst [vmem:[#allocation311_spill] sm:$0xff] %v10047_v15  ;;  %v10055_v18 = vmax.f32 %v10047_v15, %v2613_v32  ;;  %v10065_v31 = vmax.f32 %v10057_v47, %v2622_v2 }
 0x35c   : > { %13462 = vst [vmem:[#allocation312_spill] sm:$0xff] %v10055_v18  ;;  %4520 = vst.msk [vmem:[#allocation2 + $0xb0] sm:$0xff] %vm4459_vm1, %v10055_v18  ;;  %3094 = vperm.xlu0 %6717, %v10065_v31  }
 0x35d   : > { %3079 = vperm.xlu1 %6718, %v10035_v9   ;;  %13464 = vst [vmem:[#allocation314_spill] sm:$0xff] %v10065_v31  ;;  %v10067_v9 = vld [vmem:[#allocation2 + $0xc0] sm:$0xff]  ;;  %4521 = vst.msk [vmem:[#allocation2 + $0xb8] sm:$0xff] %vm4459_vm1, %v10065_v31  ;;  %v10097_v31 = vld [vmem:[#allocation2 + $0xd8] sm:$0xff] }
 0x35e   : > { %13465 = vst [vmem:[#allocation315_spill] sm:$0xff] %v10067_v9  ;;  %13471 = vst [vmem:[#allocation321_spill] sm:$0xff] %v10097_v31 }
 0x35f   : > { %v2631_v23 = vpop.xlane.xlu0 %2630 }
 0x360   : > { %v10075_v15 = vmax.f32 %v10067_v9, %v2631_v23 }
 0x361   : > { %3089 = vperm.xlu1 %6718, %v10055_v18   ;;  %v10087_v18 = vld [vmem:[#allocation2 + $0xd0] sm:$0xff] }
 0x362   : > { %13466 = vst [vmem:[#allocation316_spill] sm:$0xff] %v10075_v15  ;;  %4522 = vst.msk [vmem:[#allocation2 + $0xc0] sm:$0xff] %vm4459_vm1, %v10075_v15 }
 0x363   : > { %13469 = vst [vmem:[#allocation319_spill] sm:$0xff] %v10087_v18 }
 0x364   : > { %v2640_v32 = vpop.xlane.xlu1 %2639 }
 0x365   : > { %3099 = vperm.xlu1 %6718, %v10075_v15   ;;  %v10085_v47 = vmax.f32 %v10077_v10, %v2640_v32  ;;  %v10107_v15 = vld [vmem:[#allocation2 + $0xe0] sm:$0xff] }
 0x366   : > { %13473 = vst [vmem:[#allocation323_spill] sm:$0xff] %v10107_v15 }
 0x367   : > { %13468 = vst [vmem:[#allocation318_spill] sm:$0xff] %v10085_v47  ;;  %4523 = vst.msk [vmem:[#allocation2 + $0xc8] sm:$0xff] %vm4459_vm1, %v10085_v47  ;;  %3104 = vperm.xlu0 %6717, %v10085_v47   ;;  %v10117_v47 = vld [vmem:[#allocation2 + $0xe8] sm:$0xff] }
 0x368   : > { %13475 = vst [vmem:[#allocation325_spill] sm:$0xff] %v10117_v47 }
 0x36b   : > { %v2649_v2 = vpop.xlane.xlu0 %2648 }
 0x36c   : > { %v10095_v9 = vmax.f32 %v10087_v18, %v2649_v2 }
 0x36e   : > { %13470 = vst [vmem:[#allocation320_spill] sm:$0xff] %v10095_v9  ;;  %4524 = vst.msk [vmem:[#allocation2 + $0xd0] sm:$0xff] %vm4459_vm1, %v10095_v9  ;;  %3109 = vperm.xlu1 %6718, %v10095_v9   ;;  %v10127_v9 = vld [vmem:[#allocation2 + $0xf0] sm:$0xff] }
 0x36f   : > { %13477 = vst [vmem:[#allocation327_spill] sm:$0xff] %v10127_v9 }
 0x371   : > { %v2658_v23 = vpop.xlane.xlu1 %2657 }
 0x372   : > { %v10105_v10 = vmax.f32 %v10097_v31, %v2658_v23 }
 0x374   : > { %13472 = vst [vmem:[#allocation322_spill] sm:$0xff] %v10105_v10  ;;  %4525 = vst.msk [vmem:[#allocation2 + $0xd8] sm:$0xff] %vm4459_vm1, %v10105_v10  ;;  %3114 = vperm.xlu0 %6717, %v10105_v10   ;;  %v10137_v10 = vld [vmem:[#allocation2 + $0xf8] sm:$0xff] }
 0x375   : > { %13479 = vst [vmem:[#allocation329_spill] sm:$0xff] %v10137_v10 }
 0x377   : > { %v2667_v32 = vpop.xlane.xlu0 %2666 }
 0x378   : > { %v10115_v18 = vmax.f32 %v10107_v15, %v2667_v32 }
 0x37a   : > { %13474 = vst [vmem:[#allocation324_spill] sm:$0xff] %v10115_v18  ;;  %4526 = vst.msk [vmem:[#allocation2 + $0xe0] sm:$0xff] %vm4459_vm1, %v10115_v18  ;;  %3119 = vperm.xlu1 %6718, %v10115_v18   ;;  %v10147_v18 = vld [vmem:[#allocation2 + $0x100] sm:$0xff] }
 0x37b   : > { %13481 = vst [vmem:[#allocation331_spill] sm:$0xff] %v10147_v18 }
 0x37c   : > { %v2676_v2 = vpop.xlane.xlu1 %2675 }
 0x37d   : > { %v10125_v31 = vmax.f32 %v10117_v47, %v2676_v2 }
 0x37f   : > { %13476 = vst [vmem:[#allocation326_spill] sm:$0xff] %v10125_v31  ;;  %4527 = vst.msk [vmem:[#allocation2 + $0xe8] sm:$0xff] %vm4459_vm1, %v10125_v31  ;;  %3124 = vperm.xlu0 %6717, %v10125_v31   ;;  %v10157_v31 = vld [vmem:[#allocation2 + $0x108] sm:$0xff] }
 0x380   : > { %13483 = vst [vmem:[#allocation333_spill] sm:$0xff] %v10157_v31 }
 0x383   : > { %v2685_v23 = vpop.xlane.xlu0 %2684 }
 0x384   : > { %v10135_v15 = vmax.f32 %v10127_v9, %v2685_v23 }
 0x386   : > { %13478 = vst [vmem:[#allocation328_spill] sm:$0xff] %v10135_v15  ;;  %4528 = vst.msk [vmem:[#allocation2 + $0xf0] sm:$0xff] %vm4459_vm1, %v10135_v15  ;;  %3129 = vperm.xlu1 %6718, %v10135_v15   ;;  %v2694_v32 = vpop.xlane.xlu1 %2693  ;;  %v10167_v15 = vld [vmem:[#allocation2 + $0x110] sm:$0xff] }
 0x387   : > { %v10145_v47 = vmax.f32 %v10137_v10, %v2694_v32  ;;  %13485 = vst [vmem:[#allocation335_spill] sm:$0xff] %v10167_v15 }
 0x389   : > { %13480 = vst [vmem:[#allocation330_spill] sm:$0xff] %v10145_v47  ;;  %4529 = vst.msk [vmem:[#allocation2 + $0xf8] sm:$0xff] %vm4459_vm1, %v10145_v47  ;;  %3134 = vperm.xlu0 %6717, %v10145_v47  }
 0x38f   : > { %v2703_v2 = vpop.xlane.xlu0 %2702 }
 0x390   : > { %v10155_v9 = vmax.f32 %v10147_v18, %v2703_v2  ;;  %v13486_v18 = vsub.f32 %v9817_v17, %v9829_v29  ;;  %v13490_v2 = vsub.f32 %v9846_v21, %v9853_v44  ;;  %v13494_v44 = vsub.f32 %v9873_v37, %v9880_v28 }
 0x391   : > { %v13500_v37 = vsub.f32 %v9913_v25, %v9921_v52  ;;  %v13503_v25 = vsub.f32 %v9934_v30, %v9942_v16 }
 0x392   : > { %13482 = vst [vmem:[#allocation332_spill] sm:$0xff] %v10155_v9  ;;  %4530 = vst.msk [vmem:[#allocation2 + $0x100] sm:$0xff] %vm4459_vm1, %v10155_v9  ;;  %3139 = vperm.xlu1 %6718, %v10155_v9   ;;  %v2863_v47 = vmul.f32 1.442695, %v13486_v18  ;;  %v13491_v18 = vsub.f32 %v9855_v50, %v9862_v39  ;;  %v13496_v50 = vsub.f32 %v9882_v51, %v9890_v1 }
 0x393   : > { %v2881_v51 = vmul.f32 1.442695, %v13500_v37 }
 0x394   : > { %v2712_v23 = vpop.xlane.xlu1 %2711  ;;  %v2869_v17 = vmul.f32 1.442695, %v13491_v18  ;;  %6719 = vpow2.f32 %v2863_v47  ;;  %v2875_v39 = vmul.f32 1.442695, %v13496_v50  ;;  %v13509_v50 = vld [vmem:[#allocation23_spill] sm:$0xff] }
 0x395   : > { %v10165_v10 = vmax.f32 %v10157_v31, %v2712_v23  ;;  %v13488_v23 = vsub.f32 %v9832_v5, %v9843_v62  ;;  %v2867_v31 = vmul.f32 1.442695, %v13490_v2  ;;  %v13492_v5 = vsub.f32 %v9864_v22, %v9871_v40  ;;  %v10205_v2 = vld [vmem:[#allocation2 + $0x120] sm:$0xff] }
 0x396   : > { %13495 = vst [vmem:[#allocation339_spill] sm:$0xff] %v10205_v2 }
 0x397   : > { %13484 = vst [vmem:[#allocation334_spill] sm:$0xff] %v10165_v10  ;;  %4531 = vst.msk [vmem:[#allocation2 + $0x108] sm:$0xff] %vm4459_vm1, %v10165_v10  ;;  %3144 = vperm.xlu0 %6717, %v10165_v10   ;;  %v2865_v11 = vmul.f32 1.442695, %v13488_v23  ;;  %v2871_v62 = vmul.f32 1.442695, %v13492_v5 }
 0x398   : > { %v2721_v32 = vpop.xlane.xlu0 %2720  ;;  %v10227_v23 = vld [vmem:[#allocation2 + $0x128] sm:$0xff] }
 0x399   : > { %v10178_v9 = vmax.f32 %v10167_v15, %v2721_v32  ;;  %6721 = vpow2.f32 %v2865_v11  ;;  %v2873_v32 = vmul.f32 1.442695, %v13494_v44  ;;  %v13497_v11 = vsub.f32 %v9893_v13, %v9901_v56  ;;  %13501 = vst [vmem:[#allocation341_spill] sm:$0xff] %v10227_v23 }
 0x39a   : > { %6723 = vpow2.f32 %v2867_v31  ;;  %v13498_v31 = vsub.f32 %v9903_v38, %v9911_v3  ;;  %v13502_v56 = vsub.f32 %v9923_v59, %v9932_v27  ;;  %v2885_v38 = vmul.f32 1.442695, %v13503_v25 }
 0x39b   : > { %13487 = vst [vmem:[#allocation336_spill] sm:$0xff] %v10178_v9  ;;  %4532 = vst.msk [vmem:[#allocation2 + $0x110] sm:$0xff] %vm4459_vm1, %v10178_v9  ;;  %3149 = vperm.xlu1 %6718, %v10178_v9   ;;  %6725 = vpow2.f32 %v2869_v17  ;;  %v2877_v28 = vmul.f32 1.442695, %v13497_v11  ;;  %v13505_v27 = vsub.f32 %v9944_v54, %v9953_v34  ;;  %v13507_v54 = vsub.f32 %v9965_v48, %v9974_v20  ;;  %v13510_v11 = vld [vmem:[#allocation24_spill] sm:$0xff] }
 0x39c   : > { %v2730_v29 = vpop.xlane.xlu1 %2729  ;;  %6727 = vpow2.f32 %v2871_v62  ;;  %v2879_v1 = vmul.f32 1.442695, %v13498_v31  ;;  %v2883_v13 = vmul.f32 1.442695, %v13502_v56 }
 0x39d   : > { %v10200_v21 = vmax.f32 %v10183_v8, %v2730_v29  ;;  %6729 = vpow2.f32 %v2873_v32  ;;  %v2887_v59 = vmul.f32 1.442695, %v13505_v27  ;;  %v13506_v29 = vsub.f32 %v9955_v14, %v9963_v41 }
 0x39e   : > { %6731 = vpow2.f32 %v2875_v39  ;;  %v10246_v17 = vpop.eup %6719  ;;  %v2891_v34 = vmul.f32 1.442695, %v13507_v54  ;;  %v13508_v14 = vsub.f32 %v9976_v4, %v9984_v19 }
 0x39f   : > { %13493 = vst [vmem:[#allocation338_spill] sm:$0xff] %v10200_v21  ;;  %4533 = vst.msk [vmem:[#allocation2 + $0x118] sm:$0xff] %vm4459_vm1, %v10200_v21  ;;  %3154 = vperm.xlu0 %6717, %v10200_v21   ;;  %6733 = vpow2.f32 %v2877_v28  ;;  %v2889_v5 = vmul.f32 1.442695, %v13506_v29  ;;  %v13528_v21 = vld [vmem:[#allocation20_spill] sm:$0xff] }
 0x3a0   : > { %6735 = vpow2.f32 %v2879_v1  ;;  %v2893_v32 = vmul.f32 1.442695, %v13508_v14  ;;  %v13512_v1 = vld [vmem:[#allocation26_spill] sm:$0xff] }
 0x3a1   : > { %v2739_v22 = vpop.xlane.xlu0 %2738  ;;  %6737 = vpow2.f32 %v2881_v51 }
 0x3a2   : > { %v10222_v40 = vmax.f32 %v10205_v2, %v2739_v22  ;;  %6739 = vpow2.f32 %v2883_v13  ;;  %v13511_v22 = vld [vmem:[#allocation25_spill] sm:$0xff] }
 0x3a3   : > { %v10256_v30 = vpop.eup %6721  ;;  %6741 = vpow2.f32 %v2885_v38 }
 0x3a4   : > { %13499 = vst [vmem:[#allocation340_spill] sm:$0xff] %v10222_v40  ;;  %4534 = vst.msk [vmem:[#allocation2 + $0x120] sm:$0xff] %vm4459_vm1, %v10222_v40  ;;  %3159 = vperm.xlu1 %6718, %v10222_v40   ;;  %v10265_v41 = vpop.eup %6723  ;;  %6743 = vpow2.f32 %v2887_v59  ;;  %v13513_v59 = vld [vmem:[#allocation28_spill] sm:$0xff] }
 0x3a5   : > { %v2748_v3 = vpop.xlane.xlu1 %2747  ;;  %v10276_v48 = vpop.eup %6725  ;;  %6745 = vpow2.f32 %v2889_v5 }
 0x3a6   : > { %v10241_v52 = vmax.f32 %v10227_v23, %v2748_v3  ;;  %v10282_v19 = vpop.eup %6727  ;;  %6747 = vpow2.f32 %v2891_v34  ;;  %v13523_v23 = vld [vmem:[#allocation65_spill] sm:$0xff] }
 0x3a7   : > { %v10286_v13 = vpop.eup %6729  ;;  %6749 = vpow2.f32 %v2893_v32 }
 0x3a8   : > { %13504 = vst [vmem:[#allocation342_spill] sm:$0xff] %v10241_v52  ;;  %4535 = vst.msk [vmem:[#allocation2 + $0x128] sm:$0xff] %vm4459_vm1, %v10241_v52  ;;  %3164 = vperm.xlu0 %6717, %v10241_v52   ;;  %v10290_v38 = vpop.eup %6731  ;;  %v13522_v52 = vld [vmem:[#allocation59_spill] sm:$0xff] }
 0x3a9   : > { %v10261_v62 = vpop.permute.xlu0 %2979  ;;  %v10263_v44 = vpop.permute.xlu1 %2984 }
 0x3aa   : > { %v3167_v39 = vsub.f32 %v13509_v50, %v10261_v62  ;;  %v3168_v28 = vsub.f32 %v13510_v11, %v10261_v62  ;;  %v3169_v20 = vsub.f32 %v8550_v42, %v10261_v62  ;;  %v3175_v31 = vsub.f32 %v13511_v22, %v10263_v44  ;;  %v10296_v5 = vpop.eup %6733  ;;  %v13515_v22 = vld [vmem:[#allocation30_spill] sm:$0xff] }
 0x3ab   : > { %v3176_v37 = vsub.f32 %v13512_v1, %v10263_v44  ;;  %v3177_v56 = vsub.f32 %v8563_v55, %v10263_v44  ;;  %v10300_v34 = vpop.eup %6735 }
 0x3ac   : > { %v3471_v4 = vmul.f32 1.442695, %v3167_v39  ;;  %v3473_v51 = vmul.f32 1.442695, %v3168_v28  ;;  %v3475_v42 = vmul.f32 1.442695, %v3169_v20  ;;  %v10302_v50 = vpop.eup %6737 }
 0x3ad   : > { %v10288_v25 = vpop.permute.xlu1 %2989  ;;  %v3487_v3 = vmul.f32 1.442695, %v3175_v31  ;;  %v3489_v55 = vmul.f32 1.442695, %v3176_v37  ;;  %v3491_v14 = vmul.f32 1.442695, %v3177_v56  ;;  %v10306_v11 = vpop.eup %6739 }
 0x3ae   : > { %v3183_v27 = vsub.f32 %v8568_v36, %v10288_v25  ;;  %v3184_v29 = vsub.f32 %v13513_v59, %v10288_v25  ;;  %6751 = vpow2.f32 %v3471_v4  ;;  %v3185_v54 = vsub.f32 %v8602_v33, %v10288_v25  ;;  %v13514_v28 = vld [vmem:[#allocation29_spill] sm:$0xff]  ;;  %v10314_v1 = vpop.eup %6741 }
 0x3af   : > { %6753 = vpow2.f32 %v3473_v51  ;;  %v10316_v51 = vpop.eup %6743 }
 0x3b0   : > { %6755 = vpow2.f32 %v3475_v42  ;;  %v3503_v32 = vmul.f32 1.442695, %v3183_v27  ;;  %v3505_v39 = vmul.f32 1.442695, %v3184_v29  ;;  %v3507_v37 = vmul.f32 1.442695, %v3185_v54  ;;  %v10320_v27 = vpop.eup %6745 }
 0x3b1   : > { %v10304_v36 = vpop.permute.xlu1 %2994  ;;  %6757 = vpow2.f32 %v3487_v3  ;;  %v10328_v54 = vpop.eup %6747 }
 0x3b2   : > { %v3191_v20 = vsub.f32 %v13514_v28, %v10304_v36  ;;  %v3192_v33 = vsub.f32 %v13515_v22, %v10304_v36  ;;  %v3193_v31 = vsub.f32 %v8611_v53, %v10304_v36  ;;  %6759 = vpow2.f32 %v3489_v55  ;;  %v13516_v53 = vld [vmem:[#allocation35_spill] sm:$0xff]  ;;  %13517 = vst [vmem:[#allocation23_spill] sm:$0xff] %v10328_v54  ;;  %v2787_v54 = vld [vmem:[#allocation3] sm:$0xff] }
 0x3b3   : > { %6761 = vpow2.f32 %v3491_v14  ;;  %v10330_v14 = vpop.permute.xlu0 %3024 }
 0x3b4   : > { %v3519_v4 = vmul.f32 1.442695, %v3191_v20  ;;  %6763 = vpow2.f32 %v3503_v32  ;;  %v3521_v56 = vmul.f32 1.442695, %v3192_v33  ;;  %v3523_v42 = vmul.f32 1.442695, %v3193_v31  ;;  %v10332_v32 = vpop.eup %6749 }
 0x3b5   : > { %v10318_v3 = vpop.permute.xlu1 %2999  ;;  %6765 = vpow2.f32 %v3505_v39  ;;  %13518 = vst [vmem:[#allocation24_spill] sm:$0xff] %v10332_v32  ;;  %v3239_v22 = vsub.f32 %v8809_v12, %v10330_v14 }
 0x3b6   : > { %v3199_v59 = vsub.f32 %v8626_v58, %v10318_v3  ;;  %v3200_v29 = vsub.f32 %v13516_v53, %v10318_v3  ;;  %v3201_v55 = vsub.f32 %v8661_v60, %v10318_v3  ;;  %6767 = vpow2.f32 %v3507_v37 }
 0x3b7   : > { %6769 = vpow2.f32 %v3519_v4  ;;  %v3240_v60 = vsub.f32 %v8813_v7, %v10330_v14  ;;  %v3241_v37 = vsub.f32 %v8842_v63, %v10330_v14 }
 0x3b8   : > { %v3535_v28 = vmul.f32 1.442695, %v3199_v59  ;;  %v3537_v20 = vmul.f32 1.442695, %v3200_v29  ;;  %v10334_v39 = vpop.eup %6751  ;;  %6771 = vpow2.f32 %v3521_v56  ;;  %v3539_v58 = vmul.f32 1.442695, %v3201_v55 }
 0x3b9   : > { %v10340_v33 = vpop.permute.xlu1 %3004  ;;  %v10342_v31 = vpop.eup %6753  ;;  %6773 = vpow2.f32 %v3523_v42  ;;  %v3615_v56 = vmul.f32 1.442695, %v3239_v22  ;;  %v3617_v53 = vmul.f32 1.442695, %v3240_v60  ;;  %v3619_v29 = vmul.f32 1.442695, %v3241_v37 }
 0x3ba   : > { %v3207_v4 = vsub.f32 %v8665_v49, %v10340_v33  ;;  %v10348_v59 = vpop.eup %6755  ;;  %6775 = vpow2.f32 %v3535_v28  ;;  %v3208_v12 = vsub.f32 %v8669_v57, %v10340_v33  ;;  %v3209_v42 = vsub.f32 %v8698_v61, %v10340_v33  ;;  %v10370_v60 = vpop.permute.xlu0 %3034 }
 0x3bb   : > { %v10352_v7 = vpop.eup %6757  ;;  %6777 = vpow2.f32 %v3537_v20 }
 0x3bc   : > { %v10356_v55 = vpop.eup %6759  ;;  %6779 = vpow2.f32 %v3539_v58  ;;  %v3551_v63 = vmul.f32 1.442695, %v3207_v4  ;;  %v3553_v28 = vmul.f32 1.442695, %v3208_v12  ;;  %v3555_v61 = vmul.f32 1.442695, %v3209_v42 }
 0x3bd   : > { %v10358_v49 = vpop.permute.xlu1 %3009  ;;  %v10360_v16 = vpop.eup %6761  ;;  %6781 = vpow2.f32 %v3615_v56  ;;  %v3255_v56 = vsub.f32 %v8859_v43, %v10370_v60 }
 0x3be   : > { %v3215_v57 = vsub.f32 %v8702_v46, %v10358_v49  ;;  %v3216_v20 = vsub.f32 %v8706_v35, %v10358_v49  ;;  %v10366_v22 = vpop.eup %6763  ;;  %6783 = vpow2.f32 %v3617_v53  ;;  %v3217_v58 = vsub.f32 %v8740_v0, %v10358_v49 }
 0x3bf   : > { %v10372_v37 = vpop.eup %6765  ;;  %6785 = vpow2.f32 %v3619_v29  ;;  %v3256_v53 = vsub.f32 %v8863_v24, %v10370_v60  ;;  %v3257_v29 = vsub.f32 %v8897_v26, %v10370_v60  ;;  %v3647_v43 = vmul.f32 1.442695, %v3255_v56  ;;  %v13521_v56 = vld [vmem:[#allocation58_spill] sm:$0xff] }
 0x3c0   : > { %v3567_v4 = vmul.f32 1.442695, %v3215_v57  ;;  %v10376_v46 = vpop.eup %6767  ;;  %6787 = vpow2.f32 %v3551_v63  ;;  %v3569_v35 = vmul.f32 1.442695, %v3216_v20  ;;  %v3571_v0 = vmul.f32 1.442695, %v3217_v58 }
 0x3c1   : > { %v10380_v12 = vpop.permute.xlu1 %3014  ;;  %v10382_v42 = vpop.eup %6769  ;;  %6789 = vpow2.f32 %v3553_v28  ;;  %v3649_v18 = vmul.f32 1.442695, %v3256_v53  ;;  %v13519_v28 = vld [vmem:[#allocation53_spill] sm:$0xff]  ;;  %v3651_v26 = vmul.f32 1.442695, %v3257_v29 }
 0x3c2   : > { %v10386_v57 = vpop.eup %6771  ;;  %6791 = vpow2.f32 %v3555_v61  ;;  %v3223_v63 = vsub.f32 %v8715_v45, %v10380_v12  ;;  %v3224_v20 = vsub.f32 %v8719_v6, %v10380_v12  ;;  %v3225_v58 = vsub.f32 %v13519_v28, %v10380_v12  ;;  %v10410_v29 = vpop.permute.xlu0 %3044 }
 0x3c3   : > { %v10392_v24 = vpop.eup %6773  ;;  %6793 = vpow2.f32 %v3567_v4  ;;  %13524 = vst [vmem:[#allocation26_spill] sm:$0xff] %v10410_v29 }
 0x3c4   : > { %v10396_v47 = vpop.eup %6775  ;;  %6795 = vpow2.f32 %v3569_v35  ;;  %v3583_v45 = vmul.f32 1.442695, %v3223_v63  ;;  %v3585_v28 = vmul.f32 1.442695, %v3224_v20  ;;  %v13526_v63 = vld [vmem:[#allocation19_spill] sm:$0xff] }
 0x3c5   : > { %v10398_v10 = vpop.permute.xlu1 %3019  ;;  %v10400_v61 = vpop.eup %6777  ;;  %6797 = vpow2.f32 %v3571_v0  ;;  %v3587_v0 = vmul.f32 1.442695, %v3225_v58  ;;  %v3271_v2 = vsub.f32 %v13526_v63, %v10410_v29  ;;  %v13531_v58 = vld [vmem:[#allocation94_spill] sm:$0xff] }
 0x3c6   : > { %13520 = vst [vmem:[#allocation25_spill] sm:$0xff] %v10398_v10  ;;  %v3231_v6 = vsub.f32 %v13521_v56, %v10398_v10  ;;  %v3232_v4 = vsub.f32 %v13522_v52, %v10398_v10  ;;  %v10406_v53 = vpop.eup %6779  ;;  %6799 = vpow2.f32 %v3647_v43  ;;  %v3233_v35 = vsub.f32 %v13523_v23, %v10398_v10  ;;  %v13530_v23 = vld [vmem:[#allocation31_spill] sm:$0xff] }
 0x3c7   : > { %v10412_v40 = vpop.eup %6781  ;;  %6801 = vpow2.f32 %v3649_v18  ;;  %v3272_v43 = vsub.f32 %v13528_v21, %v10410_v29  ;;  %v3178_v8 = vsub.f32 %v13530_v23, %v10263_v44  ;;  %v3273_v63 = vsub.f32 %v13531_v58, %v10410_v29  ;;  %v13532_v21 = vld [vmem:[#allocation37_spill] sm:$0xff] }
 0x3c8   : > { %13525 = vst [vmem:[#allocation28_spill] sm:$0xff] %v10412_v40  ;;  %v10416_v56 = vpop.eup %6783  ;;  %6803 = vpow2.f32 %v3651_v26  ;;  %v3599_v52 = vmul.f32 1.442695, %v3231_v6  ;;  %v3601_v9 = vmul.f32 1.442695, %v3232_v4  ;;  %v3179_v32 = vsub.f32 %v13532_v21, %v10263_v44  ;;  %v13533_v4 = vld [vmem:[#allocation39_spill] sm:$0xff] }
 0x3c9   : > { %13527 = vst [vmem:[#allocation29_spill] sm:$0xff] %v10416_v56  ;;  %v10420_v20 = vpop.eup %6785  ;;  %6805 = vpow2.f32 %v3583_v45  ;;  %v3603_v18 = vmul.f32 1.442695, %v3233_v35  ;;  %v3679_v6 = vmul.f32 1.442695, %v3271_v2  ;;  %v2789_v35 = vld [vmem:[#allocation3 + $0x10] sm:$0xff]  ;;  %v10441_v2 = vmul.f32 %v10246_v17, %v2787_v54 }
 0x3ca   : > { %13529 = vst [vmem:[#allocation30_spill] sm:$0xff] %v10420_v20  ;;  %v10424_v15 = vpop.eup %6787  ;;  %6807 = vpow2.f32 %v3585_v28  ;;  %v2788_v20 = vld [vmem:[#allocation3 + $0x8] sm:$0xff]  ;;  %v3681_v45 = vmul.f32 1.442695, %v3272_v43  ;;  %v3180_v28 = vsub.f32 %v13533_v4, %v10263_v44  ;;  %v3493_v58 = vmul.f32 1.442695, %v3178_v8 }
 0x3cb   : > { %v10428_v26 = vpop.eup %6789  ;;  %6809 = vpow2.f32 %v3587_v0  ;;  %v13535_v40 = vld [vmem:[#allocation41_spill] sm:$0xff]  ;;  %13536 = vst [vmem:[#allocation53_spill] sm:$0xff] %v10441_v2  ;;  %v2790_v21 = vld [vmem:[#allocation3 + $0x18] sm:$0xff]  ;;  %v3683_v10 = vmul.f32 1.442695, %v3273_v63  ;;  %v10448_v4 = vmul.f32 %v10256_v30, %v2788_v20  ;;  %v10455_v54 = vmul.f32 %v10265_v41, %v2789_v35  ;;  %v13542_v63 = vld [vmem:[#allocation32_spill] sm:$0xff]  ;;  %v10468_v35 = vpop.permute.xlu1 %3029 }
 0x3cc   : > { %v10432_v56 = vpop.eup %6791  ;;  %6811 = vpow2.f32 %v3599_v52  ;;  %v3181_v0 = vsub.f32 %v13535_v40, %v10263_v44  ;;  %v13538_v52 = vld [vmem:[#allocation27_spill] sm:$0xff]  ;;  %v3495_v17 = vmul.f32 1.442695, %v3179_v32  ;;  %v2792_v2 = vld [vmem:[#allocation3 + $0x28] sm:$0xff]  ;;  %v3171_v30 = vsub.f32 %v13542_v63, %v10261_v62 }
 0x3cd   : > { %v10436_v23 = vpop.eup %6793  ;;  %6813 = vpow2.f32 %v3601_v9  ;;  %v3170_v43 = vsub.f32 %v13538_v52, %v10261_v62  ;;  %13539 = vst [vmem:[#allocation59_spill] sm:$0xff] %v10448_v4  ;;  %v13540_v9 = vld [vmem:[#allocation45_spill] sm:$0xff]  ;;  %13541 = vst [vmem:[#allocation65_spill] sm:$0xff] %v10455_v54  ;;  %v10462_v20 = vmul.f32 %v10276_v48, %v2790_v21  ;;  %v2793_v52 = vld [vmem:[#allocation3 + $0x30] sm:$0xff]  ;;  %v10478_v63 = vmul.f32 %v10286_v13, %v2792_v2 }
 0x3ce   : > { %13534 = vst [vmem:[#allocation35_spill] sm:$0xff] %v10436_v23  ;;  %v10443_v29 = vpop.eup %6795  ;;  %6815 = vpow2.f32 %v3603_v18  ;;  %v2791_v23 = vld [vmem:[#allocation3 + $0x20] sm:$0xff]  ;;  %v3182_v40 = vsub.f32 %v13540_v9, %v10263_v44  ;;  %v3497_v18 = vmul.f32 1.442695, %v3180_v28  ;;  %v3499_v44 = vmul.f32 1.442695, %v3181_v0 }
 0x3cf   : > { %13537 = vst [vmem:[#allocation58_spill] sm:$0xff] %v10443_v29  ;;  %v10450_v8 = vpop.eup %6797  ;;  %6817 = vpow2.f32 %v3679_v6  ;;  %13543 = vst [vmem:[#allocation19_spill] sm:$0xff] %v10462_v20  ;;  %v13544_v32 = vld [vmem:[#allocation33_spill] sm:$0xff]  ;;  %v10471_v9 = vmul.f32 %v10282_v19, %v2791_v23  ;;  %v3477_v28 = vmul.f32 1.442695, %v3170_v43  ;;  %v13546_v48 = vld [vmem:[#allocation34_spill] sm:$0xff]  ;;  %v10485_v19 = vmul.f32 %v10290_v38, %v2793_v52 }
 0x3d0   : > { %v10457_v29 = vpop.eup %6799  ;;  %6819 = vpow2.f32 %v3681_v45  ;;  %v3172_v41 = vsub.f32 %v13544_v32, %v10261_v62  ;;  %v3173_v21 = vsub.f32 %v13546_v48, %v10261_v62  ;;  %13547 = vst [vmem:[#allocation31_spill] sm:$0xff] %v10478_v63  ;;  %v3501_v32 = vmul.f32 1.442695, %v3182_v40  ;;  %v13548_v20 = vld [vmem:[#allocation40_spill] sm:$0xff]  ;;  %v13550_v2 = vld [vmem:[#allocation71_spill] sm:$0xff]  ;;  %v2796_v63 = vld [vmem:[#allocation3 + $0x48] sm:$0xff] }
 0x3d1   : > { %v10464_v6 = vpop.eup %6801  ;;  %6821 = vpow2.f32 %v3493_v58  ;;  %13545 = vst [vmem:[#allocation20_spill] sm:$0xff] %v10471_v9  ;;  %v2794_v58 = vld [vmem:[#allocation3 + $0x38] sm:$0xff]  ;;  %v3174_v54 = vsub.f32 %v13548_v20, %v10261_v62  ;;  %13549 = vst [vmem:[#allocation94_spill] sm:$0xff] %v10485_v19  ;;  %v2795_v23 = vld [vmem:[#allocation3 + $0x40] sm:$0xff]  ;;  %v3479_v13 = vmul.f32 1.442695, %v3171_v30  ;;  %v3247_v48 = vsub.f32 %v13550_v2, %v10468_v35  ;;  %v10542_v9 = vpop.permute.xlu0 %3054 }
 0x3d2   : > { %v10473_v45 = vpop.eup %6803  ;;  %6823 = vpow2.f32 %v3683_v10  ;;  %v4088_v10 = vadd.f32 %v10356_v55, %v10352_v7  ;;  %v3481_v40 = vmul.f32 1.442695, %v3172_v41  ;;  %v13551_v62 = vld [vmem:[#allocation72_spill] sm:$0xff]  ;;  %v10498_v20 = vmul.f32 %v10296_v5, %v2794_v58  ;;  %v13555_v41 = vld [vmem:[#allocation78_spill] sm:$0xff]  ;;  %v13567_v4 = vld [vmem:[#allocation101_spill] sm:$0xff] }
 0x3d3   : > { %v10480_v0 = vpop.eup %6805  ;;  %6825 = vpow2.f32 %v3495_v17  ;;  %v3248_v38 = vsub.f32 %v13551_v62, %v10468_v35  ;;  %v3483_v55 = vmul.f32 1.442695, %v3173_v21  ;;  %v10505_v30 = vmul.f32 %v10300_v34, %v2795_v23  ;;  %v2797_v58 = vld [vmem:[#allocation3 + $0x50] sm:$0xff] }
 0x3d4   : > { %v10487_v43 = vpop.eup %6807  ;;  %6827 = vpow2.f32 %v3497_v18  ;;  %13552 = vst [vmem:[#allocation37_spill] sm:$0xff] %v10498_v20  ;;  %v13553_v18 = vld [vmem:[#allocation36_spill] sm:$0xff]  ;;  %v3249_v62 = vsub.f32 %v13555_v41, %v10468_v35  ;;  %v10512_v5 = vmul.f32 %v10302_v50, %v2796_v63  ;;  %v13557_v34 = vld [vmem:[#allocation42_spill] sm:$0xff]  ;;  %v10525_v41 = vpop.permute.xlu1 %3039 }
 0x3d5   : > { %v10493_v17 = vpop.eup %6809  ;;  %6829 = vpow2.f32 %v3499_v44  ;;  %v3186_v7 = vsub.f32 %v13553_v18, %v10288_v25  ;;  %13554 = vst [vmem:[#allocation39_spill] sm:$0xff] %v10505_v30  ;;  %v3485_v44 = vmul.f32 1.442695, %v3174_v54  ;;  %v4089_v18 = vadd.f32 %v10360_v16, %v4088_v10  ;;  %v13558_v50 = vld [vmem:[#allocation44_spill] sm:$0xff]  ;;  %v13559_v10 = vld [vmem:[#allocation46_spill] sm:$0xff] }
 0x3d6   : > { %v10500_v52 = vpop.eup %6811  ;;  %6831 = vpow2.f32 %v3477_v28  ;;  %13556 = vst [vmem:[#allocation41_spill] sm:$0xff] %v10512_v5  ;;  %v3631_v28 = vmul.f32 1.442695, %v3247_v48  ;;  %v3187_v21 = vsub.f32 %v13557_v34, %v10288_v25  ;;  %v4079_v54 = vadd.f32 %v10342_v31, %v10334_v39  ;;  %v13561_v34 = vld [vmem:[#allocation38_spill] sm:$0xff] }
 0x3d7   : > { %v10507_v2 = vpop.eup %6813  ;;  %6833 = vpow2.f32 %v3501_v32  ;;  %v3633_v32 = vmul.f32 1.442695, %v3248_v38  ;;  %v3188_v63 = vsub.f32 %v13558_v50, %v10288_v25  ;;  %v3509_v16 = vmul.f32 1.442695, %v3186_v7  ;;  %v13562_v38 = vld [vmem:[#allocation49_spill] sm:$0xff] }
 0x3d8   : > { %v10514_v20 = vpop.eup %6815  ;;  %6835 = vpow2.f32 %v3479_v13  ;;  %v3189_v13 = vsub.f32 %v13559_v10, %v10288_v25  ;;  %v10532_v48 = vmul.f32 %v10306_v11, %v2797_v58  ;;  %v3194_v39 = vsub.f32 %v13561_v34, %v10304_v36 }
 0x3d9   : > { %v10519_v23 = vpop.eup %6817  ;;  %6837 = vpow2.f32 %v3481_v40  ;;  %v3635_v31 = vmul.f32 1.442695, %v3249_v62  ;;  %v3190_v50 = vsub.f32 %v13562_v38, %v10288_v25  ;;  %v3511_v7 = vmul.f32 1.442695, %v3187_v21 }
 0x3da   : > { %v10527_v5 = vpop.eup %6819  ;;  %6839 = vpow2.f32 %v3483_v55  ;;  %13560 = vst [vmem:[#allocation27_spill] sm:$0xff] %v10532_v48  ;;  %v13564_v55 = vld [vmem:[#allocation84_spill] sm:$0xff]  ;;  %v4080_v58 = vadd.f32 %v10348_v59, %v4079_v54  ;;  %v3513_v34 = vmul.f32 1.442695, %v3188_v63  ;;  %v3515_v38 = vmul.f32 1.442695, %v3189_v13 }
 0x3db   : > { %v6822_v40 = vpop.eup %6821  ;;  %6841 = vpow2.f32 %v3485_v44  ;;  %v3263_v10 = vsub.f32 %v13564_v55, %v10525_v41  ;;  %v13565_v44 = vld [vmem:[#allocation17_spill] sm:$0xff]  ;;  %v3517_v55 = vmul.f32 1.442695, %v3190_v50  ;;  %v13568_v63 = vld [vmem:[#allocation102_spill] sm:$0xff]  ;;  %v4097_v13 = vadd.f32 %v10372_v37, %v10366_v22  ;;  %v13571_v37 = vld [vmem:[#allocation48_spill] sm:$0xff] }
 0x3dc   : > { %v10538_v30 = vpop.eup %6823  ;;  %v4090_v19 = vadd.f32 %v6822_v40, %v4089_v18  ;;  %6843 = vpow2.f32 %v3631_v28  ;;  %v3264_v62 = vsub.f32 %v13565_v44, %v10525_v41  ;;  %v13566_v18 = vld [vmem:[#allocation18_spill] sm:$0xff]  ;;  %v3525_v40 = vmul.f32 1.442695, %v3194_v39 }
 0x3dd   : > { %13563 = vst [vmem:[#allocation45_spill] sm:$0xff] %v10538_v30  ;;  %v6826_v11 = vpop.eup %6825  ;;  %6845 = vpow2.f32 %v3633_v32  ;;  %v3265_v28 = vsub.f32 %v13566_v18, %v10525_v41  ;;  %v3287_v30 = vsub.f32 %v13567_v4, %v10542_v9  ;;  %v3663_v32 = vmul.f32 1.442695, %v3263_v10  ;;  %v13569_v4 = vld [vmem:[#allocation108_spill] sm:$0xff] }
 0x3de   : > { %v6828_v48 = vpop.eup %6827  ;;  %v4091_v25 = vadd.f32 %v6826_v11, %v4090_v19  ;;  %6847 = vpow2.f32 %v3509_v16  ;;  %v3288_v44 = vsub.f32 %v13568_v63, %v10542_v9  ;;  %v3665_v11 = vmul.f32 1.442695, %v3264_v62 }
 0x3df   : > { %v6830_v21 = vpop.eup %6829  ;;  %6849 = vpow2.f32 %v3635_v31  ;;  %v3667_v50 = vmul.f32 1.442695, %v3265_v28  ;;  %v3289_v18 = vsub.f32 %v13569_v4, %v10542_v9  ;;  %v3711_v10 = vmul.f32 1.442695, %v3287_v30  ;;  %v13572_v30 = vld [vmem:[#allocation50_spill] sm:$0xff] }
 0x3e0   : > { %v6832_v59 = vpop.eup %6831  ;;  %v4092_v54 = vadd.f32 %v6828_v48, %v4091_v25  ;;  %6851 = vpow2.f32 %v3511_v7  ;;  %v13570_v25 = vld [vmem:[#allocation47_spill] sm:$0xff]  ;;  %v3713_v22 = vmul.f32 1.442695, %v3288_v44  ;;  %v3196_v62 = vsub.f32 %v13571_v37, %v10304_v36 }
 0x3e1   : > { %v6834_v19 = vpop.eup %6833  ;;  %v4081_v16 = vadd.f32 %v6832_v59, %v4080_v58  ;;  %6853 = vpow2.f32 %v3513_v34  ;;  %v3195_v63 = vsub.f32 %v13570_v25, %v10304_v36  ;;  %v2798_v58 = vld [vmem:[#allocation3 + $0x58] sm:$0xff] }
 0x3e2   : > { %v6836_v39 = vpop.eup %6835  ;;  %v4093_v31 = vadd.f32 %v6830_v21, %v4092_v54  ;;  %6855 = vpow2.f32 %v3515_v38  ;;  %v10561_v38 = vpop.permute.xlu1 %3049  ;;  %v4098_v54 = vadd.f32 %v10376_v46, %v4097_v13  ;;  %v13575_v13 = vld [vmem:[#allocation21_spill] sm:$0xff]  ;;  %v13576_v25 = vld [vmem:[#allocation43_spill] sm:$0xff] }
 0x3e3   : > { %v6838_v48 = vpop.eup %6837  ;;  %v4082_v7 = vadd.f32 %v6836_v39, %v4081_v16  ;;  %6857 = vpow2.f32 %v3517_v55  ;;  %v3197_v55 = vsub.f32 %v13572_v30, %v10304_v36  ;;  %v10571_v39 = vmul.f32 %v10314_v1, %v2798_v58 }
 0x3e4   : > { %v6840_v34 = vpop.eup %6839  ;;  %v4094_v59 = vadd.f32 %v6834_v19, %v4093_v31  ;;  %6859 = vpow2.f32 %v3663_v32  ;;  %v3715_v19 = vmul.f32 1.442695, %v3289_v18  ;;  %v13573_v32 = vld [vmem:[#allocation55_spill] sm:$0xff]  ;;  %v3527_v46 = vmul.f32 1.442695, %v3195_v63 }
 0x3e5   : > { %v6842_v28 = vpop.eup %6841  ;;  %v4083_v21 = vadd.f32 %v6838_v48, %v4082_v7  ;;  %6861 = vpow2.f32 %v3665_v11  ;;  %v3198_v44 = vsub.f32 %v13573_v32, %v10304_v36  ;;  %13574 = vst [vmem:[#allocation32_spill] sm:$0xff] %v10571_v39  ;;  %v3279_v11 = vsub.f32 %v13575_v13, %v10561_v38  ;;  %v2799_v48 = vld [vmem:[#allocation3 + $0x60] sm:$0xff]  ;;  %v13577_v36 = vld [vmem:[#allocation22_spill] sm:$0xff] }
 0x3e6   : > { %v10566_v16 = vpop.eup %6843  ;;  %4095 = vadd.xlane.f32.xlu0 %v4094_v59  ;;  %6863 = vpow2.f32 %v3667_v50  ;;  %v3202_v50 = vsub.f32 %v13576_v25, %v10318_v3  ;;  %v3529_v18 = vmul.f32 1.442695, %v3196_v62  ;;  %v3280_v59 = vsub.f32 %v13577_v36, %v10561_v38  ;;  %v13580_v25 = vld [vmem:[#allocation52_spill] sm:$0xff] }
 0x3e7   : > { %v10573_v31 = vpop.eup %6845  ;;  %v4084_v4 = vadd.f32 %v6840_v34, %v4083_v21  ;;  %6865 = vpow2.f32 %v3711_v10  ;;  %v3531_v10 = vmul.f32 1.442695, %v3197_v55  ;;  %v3533_v34 = vmul.f32 1.442695, %v3198_v44  ;;  %v13578_v21 = vld [vmem:[#allocation95_spill] sm:$0xff] }
 0x3e8   : > { %v6848_v7 = vpop.eup %6847  ;;  %6867 = vpow2.f32 %v3713_v22  ;;  %v3281_v30 = vsub.f32 %v13578_v21, %v10561_v38  ;;  %v10586_v32 = vmul.f32 %v10316_v51, %v2799_v48  ;;  %v3695_v13 = vmul.f32 1.442695, %v3279_v11 }
 0x3e9   : > { %v10581_v1 = vpop.eup %6849  ;;  %v4085_v58 = vadd.f32 %v6842_v28, %v4084_v4  ;;  %v4099_v37 = vadd.f32 %v6848_v7, %v4098_v54  ;;  %6869 = vpow2.f32 %v3525_v40  ;;  %v3203_v28 = vsub.f32 %v13580_v25, %v10318_v3  ;;  %v10594_v4 = vpop.permute.xlu1 %3059 }
 0x3ea   : > { %v6852_v63 = vpop.eup %6851  ;;  %6871 = vpow2.f32 %v3715_v19  ;;  %13579 = vst [vmem:[#allocation33_spill] sm:$0xff] %v10586_v32  ;;  %v4106_v40 = vadd.f32 %v10386_v57, %v10382_v42  ;;  %v3697_v55 = vmul.f32 1.442695, %v3280_v59  ;;  %v13581_v19 = vld [vmem:[#allocation54_spill] sm:$0xff]  ;;  %v3541_v48 = vmul.f32 1.442695, %v3202_v50 }
 0x3eb   : > { %v6854_v22 = vpop.eup %6853  ;;  %4086 = vadd.xlane.f32.xlu1 %v4085_v58  ;;  %v4100_v62 = vadd.f32 %v6852_v63, %v4099_v37  ;;  %6873 = vpow2.f32 %v3527_v46  ;;  %v3204_v44 = vsub.f32 %v13581_v19, %v10318_v3  ;;  %v13582_v46 = vld [vmem:[#allocation56_spill] sm:$0xff]  ;;  %v3699_v42 = vmul.f32 1.442695, %v3281_v30  ;;  %v13584_v57 = vld [vmem:[#allocation63_spill] sm:$0xff]  ;;  %v13586_v30 = vld [vmem:[#allocation110_spill] sm:$0xff] }
 0x3ec   : > { %v6856_v54 = vpop.eup %6855  ;;  %6875 = vpow2.f32 %v3529_v18  ;;  %v3205_v11 = vsub.f32 %v13582_v46, %v10318_v3  ;;  %v13583_v18 = vld [vmem:[#allocation77_spill] sm:$0xff]  ;;  %v3206_v59 = vsub.f32 %v13584_v57, %v10318_v3  ;;  %v3543_v50 = vmul.f32 1.442695, %v3203_v28  ;;  %v13587_v28 = vld [vmem:[#allocation116_spill] sm:$0xff] }
 0x3ed   : > { %v6858_v51 = vpop.eup %6857  ;;  %v4101_v7 = vadd.f32 %v6854_v22, %v4100_v62  ;;  %6877 = vpow2.f32 %v3531_v10  ;;  %v3242_v58 = vsub.f32 %v13583_v18, %v10330_v14  ;;  %v13585_v10 = vld [vmem:[#allocation109_spill] sm:$0xff]  ;;  %v10608_v22 = vpop.permute.xlu0 %3064  ;;  %v4107_v19 = vadd.f32 %v10392_v24, %v4106_v40 }
 0x3ee   : > { %v10598_v36 = vpop.eup %6859  ;;  %6879 = vpow2.f32 %v3533_v34  ;;  %v3295_v21 = vsub.f32 %v13585_v10, %v10594_v4  ;;  %v2800_v62 = vld [vmem:[#allocation3 + $0x68] sm:$0xff]  ;;  %v3545_v34 = vmul.f32 1.442695, %v3204_v44  ;;  %v3296_v3 = vsub.f32 %v13586_v30, %v10594_v4  ;;  %v13592_v30 = vld [vmem:[#allocation126_spill] sm:$0xff] }
 0x3ef   : > { %v10604_v37 = vpop.eup %6861  ;;  %v4102_v63 = vadd.f32 %v6856_v54, %v4101_v7  ;;  %6881 = vpow2.f32 %v3695_v13  ;;  %v3547_v13 = vmul.f32 1.442695, %v3205_v11  ;;  %v3297_v7 = vsub.f32 %v13587_v28, %v10594_v4  ;;  %v13588_v10 = vld [vmem:[#allocation117_spill] sm:$0xff] }
 0x3f0   : > { %v10610_v25 = vpop.eup %6863  ;;  %6883 = vpow2.f32 %v3697_v55  ;;  %v3549_v57 = vmul.f32 1.442695, %v3206_v59  ;;  %v3303_v24 = vsub.f32 %v13588_v10, %v10608_v22  ;;  %v10624_v40 = vmul.f32 %v10320_v27, %v2800_v62 }
 0x3f1   : > { %v10615_v46 = vpop.eup %6865  ;;  %v4103_v54 = vadd.f32 %v6858_v51, %v4102_v63  ;;  %6885 = vpow2.f32 %v3541_v48  ;;  %v4115_v44 = vadd.f32 %v10400_v61, %v10396_v47  ;;  %v3727_v51 = vmul.f32 1.442695, %v3295_v21  ;;  %v13590_v48 = vld [vmem:[#allocation118_spill] sm:$0xff]  ;;  %v13594_v21 = vld [vmem:[#allocation51_spill] sm:$0xff] }
 0x3f2   : > { %v10619_v18 = vpop.eup %6867  ;;  %6887 = vpow2.f32 %v3699_v42  ;;  %13589 = vst [vmem:[#allocation34_spill] sm:$0xff] %v10624_v40  ;;  %v3304_v11 = vsub.f32 %v13590_v48, %v10608_v22  ;;  %v3729_v59 = vmul.f32 1.442695, %v3296_v3  ;;  %v3305_v28 = vsub.f32 %v13592_v30, %v10608_v22 }
 0x3f3   : > { %v6870_v55 = vpop.eup %6869  ;;  %4104 = vadd.xlane.f32.xlu0 %v4103_v54  ;;  %6889 = vpow2.f32 %v3543_v50  ;;  %v10634_v62 = vmul.f32 1.442695, %v3242_v58  ;;  %v3731_v50 = vmul.f32 1.442695, %v3297_v7  ;;  %v13593_v54 = vld [vmem:[#allocation132_spill] sm:$0xff]  ;;  %v3210_v10 = vsub.f32 %v13594_v21, %v10340_v33 }
 0x3f4   : > { %v10630_v63 = vpop.eup %6871  ;;  %v4108_v42 = vadd.f32 %v6870_v55, %v4107_v19  ;;  %6891 = vpow2.f32 %v3545_v34  ;;  %v3306_v47 = vsub.f32 %v13593_v54, %v10608_v22  ;;  %v3743_v19 = vmul.f32 1.442695, %v3303_v24  ;;  %v13595_v55 = vld [vmem:[#allocation143_spill] sm:$0xff]  ;;  %v13596_v54 = vld [vmem:[#allocation60_spill] sm:$0xff] }
 0x3f5   : > { %13591 = vst [vmem:[#allocation40_spill] sm:$0xff] %v10630_v63  ;;  %v6874_v27 = vpop.eup %6873  ;;  %6893 = vpow2.f32 %v3547_v13  ;;  %v4116_v3 = vadd.f32 %v10406_v53, %v4115_v44  ;;  %v3307_v58 = vsub.f32 %v13595_v55, %v10608_v22  ;;  %v3745_v30 = vmul.f32 1.442695, %v3304_v11  ;;  %v13599_v53 = vld [vmem:[#allocation62_spill] sm:$0xff]  ;;  %v13602_v21 = vld [vmem:[#allocation16_spill] sm:$0xff] }
 0x3f6   : > { %v6876_v61 = vpop.eup %6875  ;;  %v4109_v48 = vadd.f32 %v6874_v27, %v4108_v42  ;;  %6895 = vpow2.f32 %v3549_v57  ;;  %v3747_v32 = vmul.f32 1.442695, %v3305_v28  ;;  %v3211_v40 = vsub.f32 %v13596_v54, %v10340_v33  ;;  %v13598_v57 = vld [vmem:[#allocation57_spill] sm:$0xff] }
 0x3f7   : > { %v6878_v34 = vpop.eup %6877  ;;  %6897 = vpow2.f32 %v3727_v51  ;;  %v3218_v24 = vsub.f32 %v13598_v57, %v10358_v49  ;;  %v3749_v42 = vmul.f32 1.442695, %v3306_v47  ;;  %v3212_v44 = vsub.f32 %v13599_v53, %v10340_v33 }
 0x3f8   : > { %v6880_v13 = vpop.eup %6879  ;;  %v4110_v7 = vadd.f32 %v6876_v61, %v4109_v48  ;;  %6899 = vpow2.f32 %v3729_v59  ;;  %v3557_v11 = vmul.f32 1.442695, %v3210_v10  ;;  %v13601_v59 = vld [vmem:[#allocation64_spill] sm:$0xff]  ;;  %v3258_v48 = vsub.f32 %v13602_v21, %v10370_v60 }
 0x3f9   : > { %v10645_v39 = vpop.eup %6881  ;;  %6901 = vpow2.f32 %v3731_v50  ;;  %v3213_v28 = vsub.f32 %v13601_v59, %v10340_v33  ;;  %v3751_v55 = vmul.f32 1.442695, %v3307_v58  ;;  %v13603_v50 = vld [vmem:[#allocation69_spill] sm:$0xff]  ;;  %v3559_v10 = vmul.f32 1.442695, %v3211_v40  ;;  %v13605_v59 = vld [vmem:[#allocation66_spill] sm:$0xff] }
 0x3fa   : > { %13597 = vst [vmem:[#allocation71_spill] sm:$0xff] %v10645_v39  ;;  %v10651_v51 = vpop.eup %6883  ;;  %v4111_v27 = vadd.f32 %v6878_v34, %v4110_v7  ;;  %6903 = vpow2.f32 %v3743_v19  ;;  %v3214_v47 = vsub.f32 %v13603_v50, %v10340_v33  ;;  %v3573_v19 = vmul.f32 1.442695, %v3218_v24  ;;  %v13606_v33 = vld [vmem:[#allocation68_spill] sm:$0xff]  ;;  %v10665_v50 = vpop.permute.xlu1 %3069  ;;  %v13607_v40 = vld [vmem:[#allocation61_spill] sm:$0xff]  ;;  %v13608_v24 = vld [vmem:[#allocation70_spill] sm:$0xff] }
 0x3fb   : > { %13600 = vst [vmem:[#allocation72_spill] sm:$0xff] %v10651_v51  ;;  %v6886_v61 = vpop.eup %6885  ;;  %6905 = vpow2.f32 %v3745_v30  ;;  %v3561_v7 = vmul.f32 1.442695, %v3212_v44  ;;  %v3219_v63 = vsub.f32 %v13605_v59, %v10358_v49  ;;  %v3563_v58 = vmul.f32 1.442695, %v3213_v28  ;;  %v13609_v28 = vld [vmem:[#allocation75_spill] sm:$0xff]  ;;  %v10681_v59 = vpop.permute.xlu0 %3074 }
 0x3fc   : > { %v10659_v54 = vpop.eup %6887  ;;  %v4112_v57 = vadd.f32 %v6880_v13, %v4111_v27  ;;  %v4117_v53 = vadd.f32 %v6886_v61, %v4116_v3  ;;  %6907 = vpow2.f32 %v3747_v32  ;;  %v3220_v21 = vsub.f32 %v13606_v33, %v10358_v49 }
 0x3fd   : > { %13604 = vst [vmem:[#allocation36_spill] sm:$0xff] %v10659_v54  ;;  %v6890_v34 = vpop.eup %6889  ;;  %6909 = vpow2.f32 %v3749_v42  ;;  %v10667_v32 = vmul.f32 1.442695, %v3258_v48  ;;  %v3226_v13 = vsub.f32 %v13607_v40, %v10380_v12  ;;  %v3221_v42 = vsub.f32 %v13608_v24, %v10358_v49 }
 0x3fe   : > { %v6892_v51 = vpop.eup %6891  ;;  %4113 = vadd.xlane.f32.xlu1 %v4112_v57  ;;  %v4118_v30 = vadd.f32 %v6890_v34, %v4117_v53  ;;  %6911 = vpow2.f32 %v3557_v11  ;;  %v3565_v11 = vmul.f32 1.442695, %v3214_v47  ;;  %v3222_v61 = vsub.f32 %v13609_v28, %v10358_v49  ;;  %v13611_v34 = vld [vmem:[#allocation120_spill] sm:$0xff] }
 0x3ff   : > { %v6894_v3 = vpop.eup %6893  ;;  %6913 = vpow2.f32 %v3751_v55  ;;  %v4124_v48 = vadd.f32 %v10428_v26, %v10424_v15  ;;  %v3575_v53 = vmul.f32 1.442695, %v3219_v63  ;;  %v3311_v55 = vsub.f32 %v13611_v34, %v10665_v50  ;;  %v13615_v26 = vld [vmem:[#allocation128_spill] sm:$0xff] }
 0x400   : > { %v6896_v44 = vpop.eup %6895  ;;  %v4119_v27 = vadd.f32 %v6892_v51, %v4118_v30  ;;  %6915 = vpow2.f32 %v3559_v10  ;;  %v3577_v47 = vmul.f32 1.442695, %v3220_v21  ;;  %v13613_v10 = vld [vmem:[#allocation121_spill] sm:$0xff]  ;;  %v3579_v15 = vmul.f32 1.442695, %v3221_v42 }
 0x401   : > { %v10675_v57 = vpop.eup %6897  ;;  %6917 = vpow2.f32 %v3561_v7  ;;  %v3312_v49 = vsub.f32 %v13613_v10, %v10665_v50  ;;  %v10689_v7 = vmul.f32 1.442695, %v3226_v13  ;;  %v3313_v63 = vsub.f32 %v13615_v26, %v10665_v50  ;;  %v13621_v10 = vld [vmem:[#allocation35_spill] sm:$0xff] }
 0x402   : > { %13610 = vst [vmem:[#allocation78_spill] sm:$0xff] %v10675_v57  ;;  %v10683_v33 = vpop.eup %6899  ;;  %v4120_v51 = vadd.f32 %v6894_v3, %v4119_v27  ;;  %6919 = vpow2.f32 %v3563_v58  ;;  %v3581_v28 = vmul.f32 1.442695, %v3222_v61  ;;  %v13617_v58 = vld [vmem:[#allocation133_spill] sm:$0xff]  ;;  %v4125_v27 = vadd.f32 %v10432_v56, %v4124_v48  ;;  %v13626_v56 = vld [vmem:[#allocation67_spill] sm:$0xff] }
 0x403   : > { %13612 = vst [vmem:[#allocation42_spill] sm:$0xff] %v10683_v33  ;;  %v10687_v30 = vpop.eup %6901  ;;  %6921 = vpow2.f32 %v3573_v19  ;;  %v3319_v21 = vsub.f32 %v13617_v58, %v10681_v59  ;;  %v3759_v13 = vmul.f32 1.442695, %v3311_v55  ;;  %v13619_v19 = vld [vmem:[#allocation134_spill] sm:$0xff]  ;;  %v3761_v61 = vmul.f32 1.442695, %v3312_v49 }
 0x404   : > { %13614 = vst [vmem:[#allocation44_spill] sm:$0xff] %v10687_v30  ;;  %v10693_v40 = vpop.eup %6903  ;;  %v4121_v24 = vadd.f32 %v6896_v44, %v4120_v51  ;;  %6923 = vpow2.f32 %v3565_v11  ;;  %v3320_v42 = vsub.f32 %v13619_v19, %v10681_v59  ;;  %v13622_v44 = vld [vmem:[#allocation58_spill] sm:$0xff]  ;;  %v13623_v51 = vld [vmem:[#allocation140_spill] sm:$0xff]  ;;  %v13625_v30 = vld [vmem:[#allocation25_spill] sm:$0xff] }
 0x405   : > { %13616 = vst [vmem:[#allocation46_spill] sm:$0xff] %v10693_v40  ;;  %v10697_v3 = vpop.eup %6905  ;;  %6925 = vpow2.f32 %v3575_v53  ;;  %v4133_v11 = vadd.f32 %v13622_v44, %v13621_v10  ;;  %v3321_v26 = vsub.f32 %v13623_v51, %v10681_v59  ;;  %v3234_v48 = vsub.f32 %v13626_v56, %v13625_v30  ;;  %v13627_v55 = vld [vmem:[#allocation144_spill] sm:$0xff]  ;;  %v13630_v10 = vld [vmem:[#allocation83_spill] sm:$0xff] }
 0x406   : > { %13618 = vst [vmem:[#allocation38_spill] sm:$0xff] %v10697_v3  ;;  %v10702_v34 = vpop.eup %6907  ;;  %4122 = vadd.xlane.f32.xlu0 %v4121_v24  ;;  %6927 = vpow2.f32 %v3577_v47  ;;  %v3763_v53 = vmul.f32 1.442695, %v3313_v63  ;;  %v3322_v19 = vsub.f32 %v13627_v55, %v10681_v59  ;;  %v13628_v24 = vld [vmem:[#allocation26_spill] sm:$0xff]  ;;  %v13629_v47 = vld [vmem:[#allocation100_spill] sm:$0xff]  ;;  %v3250_v49 = vsub.f32 %v13630_v10, %v10468_v35  ;;  %v13632_v56 = vld [vmem:[#allocation159_spill] sm:$0xff] }
 0x407   : > { %13620 = vst [vmem:[#allocation49_spill] sm:$0xff] %v10702_v34  ;;  %v10708_v58 = vpop.eup %6909  ;;  %6929 = vpow2.f32 %v3579_v15  ;;  %v3274_v3 = vsub.f32 %v13629_v47, %v13628_v24  ;;  %v3775_v44 = vmul.f32 1.442695, %v3319_v21  ;;  %v3323_v15 = vsub.f32 %v13632_v56, %v10681_v59  ;;  %v13633_v47 = vld [vmem:[#allocation73_spill] sm:$0xff]  ;;  %v13634_v21 = vld [vmem:[#allocation74_spill] sm:$0xff] }
 0x408   : > { %13624 = vst [vmem:[#allocation84_spill] sm:$0xff] %v10708_v58  ;;  %v6912_v34 = vpop.eup %6911  ;;  %6931 = vpow2.f32 %v3581_v28  ;;  %v3777_v63 = vmul.f32 1.442695, %v3320_v42  ;;  %v4134_v55 = vadd.f32 %v10450_v8, %v4133_v11  ;;  %v3779_v54 = vmul.f32 1.442695, %v3321_v26  ;;  %v13635_v8 = vld [vmem:[#allocation76_spill] sm:$0xff] }
 0x409   : > { %v10718_v51 = vpop.eup %6913  ;;  %v4126_v58 = vadd.f32 %v6912_v34, %v4125_v27  ;;  %6933 = vpow2.f32 %v3759_v13  ;;  %v3227_v33 = vsub.f32 %v13633_v47, %v10380_v12  ;;  %v3781_v28 = vmul.f32 1.442695, %v3322_v19  ;;  %v13636_v19 = vld [vmem:[#allocation81_spill] sm:$0xff] }
 0x40a   : > { %13631 = vst [vmem:[#allocation17_spill] sm:$0xff] %v10718_v51  ;;  %v6916_v40 = vpop.eup %6915  ;;  %6935 = vpow2.f32 %v3761_v61  ;;  %v3228_v27 = vsub.f32 %v13634_v21, %v10380_v12  ;;  %v10727_v34 = vmul.f32 1.442695, %v3234_v48  ;;  %v10729_v56 = vmul.f32 1.442695, %v3274_v3  ;;  %v13637_v51 = vld [vmem:[#allocation85_spill] sm:$0xff] }
 0x40b   : > { %v6918_v57 = vpop.eup %6917  ;;  %v4127_v10 = vadd.f32 %v6916_v40, %v4126_v58  ;;  %6937 = vpow2.f32 %v3763_v53  ;;  %v3229_v42 = vsub.f32 %v13635_v8, %v10380_v12  ;;  %v10733_v61 = vmul.f32 1.442695, %v3250_v49 }
 0x40c   : > { %v6920_v13 = vpop.eup %6919  ;;  %6939 = vpow2.f32 %v3775_v44  ;;  %v3783_v40 = vmul.f32 1.442695, %v3323_v15  ;;  %v3230_v47 = vsub.f32 %v13636_v19, %v10380_v12  ;;  %v3591_v48 = vmul.f32 1.442695, %v3227_v33  ;;  %v13638_v15 = vld [vmem:[#allocation86_spill] sm:$0xff] }
 0x40d   : > { %v6922_v11 = vpop.eup %6921  ;;  %v4128_v26 = vadd.f32 %v6918_v57, %v4127_v10  ;;  %6941 = vpow2.f32 %v3777_v63  ;;  %v3593_v44 = vmul.f32 1.442695, %v3228_v27  ;;  %v3243_v8 = vsub.f32 %v13637_v51, %v10330_v14  ;;  %v13640_v10 = vld [vmem:[#allocation88_spill] sm:$0xff] }
 0x40e   : > { %v6924_v58 = vpop.eup %6923  ;;  %v4135_v53 = vadd.f32 %v6922_v11, %v4134_v55  ;;  %6943 = vpow2.f32 %v3779_v54  ;;  %v3595_v57 = vmul.f32 1.442695, %v3229_v42  ;;  %v3244_v63 = vsub.f32 %v13638_v15, %v10330_v14  ;;  %v13639_v55 = vld [vmem:[#allocation93_spill] sm:$0xff]  ;;  %v13641_v51 = vld [vmem:[#allocation112_spill] sm:$0xff] }
 0x40f   : > { %v6926_v21 = vpop.eup %6925  ;;  %v4129_v3 = vadd.f32 %v6920_v13, %v4128_v26  ;;  %6945 = vpow2.f32 %v3781_v28  ;;  %v3266_v12 = vsub.f32 %v13639_v55, %v10525_v41  ;;  %v3245_v28 = vsub.f32 %v13640_v10, %v10330_v14 }
 0x410   : > { %v6928_v39 = vpop.eup %6927  ;;  %v4136_v49 = vadd.f32 %v6926_v21, %v4135_v53  ;;  %6947 = vpow2.f32 %v10689_v7  ;;  %v3290_v13 = vsub.f32 %v13641_v51, %v10542_v9  ;;  %v3597_v7 = vmul.f32 1.442695, %v3230_v47  ;;  %v13650_v51 = vld [vmem:[#allocation28_spill] sm:$0xff] }
 0x411   : > { %v6930_v54 = vpop.eup %6929  ;;  %v4130_v33 = vadd.f32 %v6924_v58, %v4129_v3  ;;  %6949 = vpow2.f32 %v3783_v40  ;;  %v4142_v26 = vadd.f32 %v10487_v43, %v10480_v0  ;;  %v13642_v58 = vld [vmem:[#allocation91_spill] sm:$0xff]  ;;  %v3623_v53 = vmul.f32 1.442695, %v3243_v8  ;;  %v13644_v0 = vld [vmem:[#allocation80_spill] sm:$0xff] }
 0x412   : > { %v6932_v27 = vpop.eup %6931  ;;  %v4137_v11 = vadd.f32 %v6928_v39, %v4136_v49  ;;  %6951 = vpow2.f32 %v3591_v48  ;;  %v3246_v40 = vsub.f32 %v13642_v58, %v10330_v14  ;;  %v3625_v3 = vmul.f32 1.442695, %v3244_v63  ;;  %v13643_v39 = vld [vmem:[#allocation79_spill] sm:$0xff]  ;;  %v10765_v14 = vpop.permute.xlu1 %3079  ;;  %v13646_v63 = vld [vmem:[#allocation82_spill] sm:$0xff] }
 0x413   : > { %v10748_v42 = vpop.eup %6933  ;;  %4131 = vadd.xlane.f32.xlu1 %v4130_v33  ;;  %6953 = vpow2.f32 %v3593_v44  ;;  %v3235_v48 = vsub.f32 %v13643_v39, %v13625_v30  ;;  %v10760_v49 = vmul.f32 1.442695, %v3266_v12  ;;  %v3627_v44 = vmul.f32 1.442695, %v3245_v28  ;;  %v13648_v33 = vld [vmem:[#allocation87_spill] sm:$0xff] }
 0x414   : > { %v10754_v19 = vpop.eup %6935  ;;  %v4138_v21 = vadd.f32 %v6930_v54, %v4137_v11  ;;  %6955 = vpow2.f32 %v3595_v57  ;;  %v3236_v43 = vsub.f32 %v13644_v0, %v13625_v30  ;;  %v10769_v15 = vmul.f32 1.442695, %v3290_v13  ;;  %v13651_v13 = vld [vmem:[#allocation29_spill] sm:$0xff] }
 0x415   : > { %v10758_v47 = vpop.eup %6937  ;;  %6957 = vpow2.f32 %v10634_v62  ;;  %v3237_v54 = vsub.f32 %v13646_v63, %v13625_v30  ;;  %v4143_v12 = vadd.f32 %v10493_v17, %v4142_v26  ;;  %v3629_v62 = vmul.f32 1.442695, %v3246_v40  ;;  %v13654_v17 = vld [vmem:[#allocation104_spill] sm:$0xff]  ;;  %v13655_v40 = vld [vmem:[#allocation142_spill] sm:$0xff] }
 0x416   : > { %v10767_v8 = vpop.eup %6939  ;;  %v4139_v57 = vadd.f32 %v6932_v27, %v4138_v21  ;;  %6959 = vpow2.f32 %v3597_v7  ;;  %v3238_v10 = vsub.f32 %v13648_v33, %v13625_v30  ;;  %v4160_v27 = vadd.f32 %v13651_v13, %v13650_v51  ;;  %v13652_v7 = vld [vmem:[#allocation141_spill] sm:$0xff]  ;;  %v10784_v21 = vpop.permute.xlu0 %3084 }
 0x417   : > { %13645 = vst [vmem:[#allocation18_spill] sm:$0xff] %v10767_v8  ;;  %v10773_v55 = vpop.eup %6941  ;;  %6961 = vpow2.f32 %v3623_v53  ;;  %v3607_v11 = vmul.f32 1.442695, %v3235_v48  ;;  %v3327_v58 = vsub.f32 %v13652_v7, %v10765_v14  ;;  %v3282_v26 = vsub.f32 %v13654_v17, %v10561_v38  ;;  %v13659_v17 = vld [vmem:[#allocation30_spill] sm:$0xff] }
 0x418   : > { %13647 = vst [vmem:[#allocation101_spill] sm:$0xff] %v10773_v55  ;;  %v10778_v28 = vpop.eup %6943  ;;  %4140 = vadd.xlane.f32.xlu0 %v4139_v57  ;;  %6963 = vpow2.f32 %v3625_v3  ;;  %v3609_v30 = vmul.f32 1.442695, %v3236_v43  ;;  %v3328_v53 = vsub.f32 %v13655_v40, %v10765_v14  ;;  %v3611_v0 = vmul.f32 1.442695, %v3237_v54  ;;  %v13656_v57 = vld [vmem:[#allocation148_spill] sm:$0xff] }
 0x419   : > { %13649 = vst [vmem:[#allocation102_spill] sm:$0xff] %v10778_v28  ;;  %v10786_v39 = vpop.eup %6945  ;;  %6965 = vpow2.f32 %v3627_v44  ;;  %v4151_v48 = vadd.f32 %v10507_v2, %v10500_v52  ;;  %v3329_v63 = vsub.f32 %v13656_v57, %v10765_v14  ;;  %v3613_v13 = vmul.f32 1.442695, %v3238_v10  ;;  %v13658_v44 = vld [vmem:[#allocation149_spill] sm:$0xff]  ;;  %v13660_v54 = vld [vmem:[#allocation150_spill] sm:$0xff] }
 0x41a   : > { %13653 = vst [vmem:[#allocation108_spill] sm:$0xff] %v10786_v39  ;;  %v6948_v3 = vpop.eup %6947  ;;  %6967 = vpow2.f32 %v10727_v34  ;;  %v3335_v43 = vsub.f32 %v13658_v44, %v10784_v21  ;;  %v4161_v40 = vadd.f32 %v13659_v17, %v4160_v27  ;;  %v3791_v34 = vmul.f32 1.442695, %v3327_v58  ;;  %v13662_v10 = vld [vmem:[#allocation125_spill] sm:$0xff]  ;;  %v13663_v27 = vld [vmem:[#allocation164_spill] sm:$0xff] }
 0x41b   : > { %v10797_v33 = vpop.eup %6949  ;;  %v4144_v51 = vadd.f32 %v6948_v3, %v4143_v12  ;;  %6969 = vpow2.f32 %v3629_v62  ;;  %v3336_v39 = vsub.f32 %v13660_v54, %v10784_v21  ;;  %v3793_v57 = vmul.f32 1.442695, %v3328_v53 }
 0x41c   : > { %13657 = vst [vmem:[#allocation47_spill] sm:$0xff] %v10797_v33  ;;  %v6952_v7 = vpop.eup %6951  ;;  %6971 = vpow2.f32 %v3607_v11  ;;  %v13661_v33 = vld [vmem:[#allocation158_spill] sm:$0xff]  ;;  %v3298_v3 = vsub.f32 %v13662_v10, %v10594_v4  ;;  %v3795_v44 = vmul.f32 1.442695, %v3329_v63  ;;  %v3338_v11 = vsub.f32 %v13663_v27, %v10784_v21  ;;  %v13665_v63 = vld [vmem:[#allocation96_spill] sm:$0xff] }
 0x41d   : > { %v6954_v52 = vpop.eup %6953  ;;  %v4145_v2 = vadd.f32 %v6952_v7, %v4144_v51  ;;  %6973 = vpow2.f32 %v3609_v30  ;;  %v3337_v12 = vsub.f32 %v13661_v33, %v10784_v21  ;;  %v4152_v54 = vadd.f32 %v10514_v20, %v4151_v48  ;;  %v13664_v33 = vld [vmem:[#allocation175_spill] sm:$0xff]  ;;  %v13666_v20 = vld [vmem:[#allocation97_spill] sm:$0xff] }
 0x41e   : > { %v6956_v62 = vpop.eup %6955  ;;  %6975 = vpow2.f32 %v3611_v0  ;;  %v3807_v51 = vmul.f32 1.442695, %v3335_v43  ;;  %v3339_v7 = vsub.f32 %v13664_v33, %v10784_v21  ;;  %v3809_v28 = vmul.f32 1.442695, %v3336_v39  ;;  %v13667_v39 = vld [vmem:[#allocation99_spill] sm:$0xff]  ;;  %v13669_v33 = vld [vmem:[#allocation89_spill] sm:$0xff] }
 0x41f   : > { %v6958_v58 = vpop.eup %6957  ;;  %v4146_v17 = vadd.f32 %v6954_v52, %v4145_v2  ;;  %6977 = vpow2.f32 %v3613_v13  ;;  %v3811_v0 = vmul.f32 1.442695, %v3337_v12  ;;  %v3259_v27 = vsub.f32 %v13665_v63, %v10370_v60 }
 0x420   : > { %v6960_v30 = vpop.eup %6959  ;;  %v4162_v53 = vadd.f32 %v6958_v58, %v4161_v40  ;;  %6979 = vpow2.f32 %v3791_v34  ;;  %v3813_v13 = vmul.f32 1.442695, %v3338_v11  ;;  %v3260_v48 = vsub.f32 %v13666_v20, %v10370_v60  ;;  %v13668_v11 = vld [vmem:[#allocation106_spill] sm:$0xff] }
 0x421   : > { %v6962_v55 = vpop.eup %6961  ;;  %v4147_v10 = vadd.f32 %v6956_v62, %v4146_v17  ;;  %6981 = vpow2.f32 %v3793_v57  ;;  %v10817_v40 = vmul.f32 1.442695, %v3282_v26  ;;  %v3261_v2 = vsub.f32 %v13667_v39, %v10370_v60 }
 0x422   : > { %v6964_v8 = vpop.eup %6963  ;;  %v4163_v52 = vadd.f32 %v6962_v55, %v4162_v53  ;;  %6983 = vpow2.f32 %v3795_v44  ;;  %v10821_v12 = vmul.f32 1.442695, %v3298_v3  ;;  %v3815_v58 = vmul.f32 1.442695, %v3339_v7 }
 0x423   : > { %v6966_v43 = vpop.eup %6965  ;;  %v4148_v34 = vadd.f32 %v6960_v30, %v4147_v10  ;;  %6985 = vpow2.f32 %v3807_v51  ;;  %v3262_v17 = vsub.f32 %v13668_v11, %v10370_v60  ;;  %v3655_v26 = vmul.f32 1.442695, %v3259_v27 }
 0x424   : > { %v6968_v57 = vpop.eup %6967  ;;  %v4164_v62 = vadd.f32 %v6964_v8, %v4163_v52  ;;  %6987 = vpow2.f32 %v3809_v28  ;;  %v3657_v51 = vmul.f32 1.442695, %v3260_v48  ;;  %v3251_v10 = vsub.f32 %v13669_v33, %v10468_v35  ;;  %v13670_v28 = vld [vmem:[#allocation90_spill] sm:$0xff]  ;;  %v13672_v52 = vld [vmem:[#allocation92_spill] sm:$0xff]  ;;  %v13673_v48 = vld [vmem:[#allocation145_spill] sm:$0xff] }
 0x425   : > { %v6970_v55 = vpop.eup %6969  ;;  %4149 = vadd.xlane.f32.xlu1 %v4148_v34  ;;  %v4153_v44 = vadd.f32 %v6968_v57, %v4152_v54  ;;  %6989 = vpow2.f32 %v3811_v0  ;;  %v3659_v8 = vmul.f32 1.442695, %v3261_v2  ;;  %v3252_v54 = vsub.f32 %v13670_v28, %v10468_v35  ;;  %v13671_v0 = vld [vmem:[#allocation136_spill] sm:$0xff]  ;;  %v13674_v57 = vld [vmem:[#allocation98_spill] sm:$0xff] }
 0x426   : > { %v6972_v53 = vpop.eup %6971  ;;  %v4165_v30 = vadd.f32 %v6966_v43, %v4164_v62  ;;  %6991 = vpow2.f32 %v3813_v13  ;;  %v3314_v60 = vsub.f32 %v13671_v0, %v10665_v50  ;;  %v3253_v13 = vsub.f32 %v13672_v52, %v10468_v35 }
 0x427   : > { %v6974_v3 = vpop.eup %6973  ;;  %v4154_v63 = vadd.f32 %v6972_v53, %v4153_v44  ;;  %6993 = vpow2.f32 %v10667_v32  ;;  %v3308_v43 = vsub.f32 %v13673_v48, %v10608_v22  ;;  %v3661_v32 = vmul.f32 1.442695, %v3262_v17  ;;  %v13675_v53 = vld [vmem:[#allocation111_spill] sm:$0xff] }
 0x428   : > { %v6976_v7 = vpop.eup %6975  ;;  %v4166_v27 = vadd.f32 %v6970_v55, %v4165_v30  ;;  %6995 = vpow2.f32 %v3815_v58  ;;  %v4178_v2 = vadd.f32 %v10464_v6, %v10457_v29  ;;  %v3254_v62 = vsub.f32 %v13674_v57, %v10468_v35  ;;  %v13676_v29 = vld [vmem:[#allocation113_spill] sm:$0xff] }
 0x429   : > { %v6978_v20 = vpop.eup %6977  ;;  %v4155_v34 = vadd.f32 %v6974_v3, %v4154_v63  ;;  %6997 = vpow2.f32 %v3655_v26  ;;  %v3639_v58 = vmul.f32 1.442695, %v3251_v10  ;;  %v3641_v11 = vmul.f32 1.442695, %v3252_v54  ;;  %v13677_v10 = vld [vmem:[#allocation157_spill] sm:$0xff]  ;;  %v13678_v63 = vld [vmem:[#allocation115_spill] sm:$0xff] }
 0x42a   : > { %v10836_v39 = vpop.eup %6979  ;;  %4167 = vadd.xlane.f32.xlu1 %v4166_v27  ;;  %6999 = vpow2.f32 %v3657_v51  ;;  %v3275_v26 = vsub.f32 %v13675_v53, %v13628_v24  ;;  %v10848_v30 = vmul.f32 1.442695, %v3314_v60  ;;  %v3643_v51 = vmul.f32 1.442695, %v3253_v13  ;;  %v13679_v60 = vld [vmem:[#allocation123_spill] sm:$0xff] }
 0x42b   : > { %v10842_v55 = vpop.eup %6981  ;;  %v4156_v44 = vadd.f32 %v6976_v7, %v4155_v34  ;;  %7001 = vpow2.f32 %v3659_v8  ;;  %v3276_v6 = vsub.f32 %v13676_v29, %v13628_v24  ;;  %v3330_v3 = vsub.f32 %v13677_v10, %v10765_v14  ;;  %v13683_v53 = vld [vmem:[#allocation107_spill] sm:$0xff] }
 0x42c   : > { %v10846_v17 = vpop.eup %6983  ;;  %7003 = vpow2.f32 %v10733_v61  ;;  %v3277_v8 = vsub.f32 %v13678_v63, %v13628_v24  ;;  %v4179_v54 = vadd.f32 %v10473_v45, %v4178_v2  ;;  %v3645_v61 = vmul.f32 1.442695, %v3254_v62  ;;  %v13680_v45 = vld [vmem:[#allocation161_spill] sm:$0xff]  ;;  %v13732_v34 = vld [vmem:[#allocation151_spill] sm:$0xff] }
 0x42d   : > { %v10853_v35 = vpop.eup %6985  ;;  %v4157_v33 = vadd.f32 %v6978_v20, %v4156_v44  ;;  %7005 = vpow2.f32 %v3661_v32  ;;  %v4169_v7 = vadd.f32 %v10573_v31, %v10566_v16  ;;  %v3278_v27 = vsub.f32 %v13679_v60, %v13628_v24  ;;  %v13681_v16 = vld [vmem:[#allocation103_spill] sm:$0xff]  ;;  %v13682_v62 = vld [vmem:[#allocation105_spill] sm:$0xff]  ;;  %v10893_v60 = vpop.permute.xlu0 %3094 }
 0x42e   : > { %v10859_v28 = vpop.eup %6987  ;;  %7007 = vpow2.f32 %v3639_v58  ;;  %v3687_v52 = vmul.f32 1.442695, %v3275_v26  ;;  %v4196_v13 = vadd.f32 %v10527_v5, %v10519_v23  ;;  %v3689_v32 = vmul.f32 1.442695, %v3276_v6  ;;  %v10881_v5 = vpop.permute.xlu1 %3089  ;;  %v13684_v6 = vld [vmem:[#allocation45_spill] sm:$0xff] }
 0x42f   : > { %v10864_v0 = vpop.eup %6989  ;;  %4158 = vadd.xlane.f32.xlu0 %v4157_v33  ;;  %7009 = vpow2.f32 %v3641_v11  ;;  %v3267_v31 = vsub.f32 %v13681_v16, %v10525_v41  ;;  %v10876_v57 = vmul.f32 1.442695, %v3330_v3  ;;  %v3691_v24 = vmul.f32 1.442695, %v3277_v8  ;;  %v13685_v33 = vld [vmem:[#allocation114_spill] sm:$0xff] }
 0x430   : > { %v10870_v20 = vpop.eup %6991  ;;  %7011 = vpow2.f32 %v3643_v51  ;;  %v3268_v58 = vsub.f32 %v13682_v62, %v10525_v41  ;;  %v4170_v11 = vadd.f32 %v10581_v1, %v4169_v7  ;;  %v3269_v26 = vsub.f32 %v13683_v53, %v10525_v41 }
 0x431   : > { %v6994_v2 = vpop.eup %6993  ;;  %7013 = vpow2.f32 %v10729_v56  ;;  %v3693_v29 = vmul.f32 1.442695, %v3278_v27  ;;  %v4197_v56 = vadd.f32 %v13684_v6, %v4196_v13  ;;  %v3270_v10 = vsub.f32 %v13685_v33, %v10525_v41  ;;  %v13690_v6 = vld [vmem:[#allocation166_spill] sm:$0xff] }
 0x432   : > { %v10883_v23 = vpop.eup %6995  ;;  %v4180_v44 = vadd.f32 %v6994_v2, %v4179_v54  ;;  %7015 = vpow2.f32 %v3645_v61  ;;  %v3671_v8 = vmul.f32 1.442695, %v3267_v31  ;;  %v13686_v54 = vld [vmem:[#allocation152_spill] sm:$0xff]  ;;  %v3673_v7 = vmul.f32 1.442695, %v3268_v58 }
 0x433   : > { %v6998_v51 = vpop.eup %6997  ;;  %7017 = vpow2.f32 %v3687_v52  ;;  %v3343_v61 = vsub.f32 %v13686_v54, %v10881_v5  ;;  %v4187_v27 = vadd.f32 %v10604_v37, %v10598_v36  ;;  %v13687_v52 = vld [vmem:[#allocation153_spill] sm:$0xff]  ;;  %v13688_v31 = vld [vmem:[#allocation160_spill] sm:$0xff]  ;;  %v3677_v53 = vmul.f32 1.442695, %v3270_v10 }
 0x434   : > { %v7000_v3 = vpop.eup %6999  ;;  %v4181_v63 = vadd.f32 %v6998_v51, %v4180_v44  ;;  %7019 = vpow2.f32 %v3689_v32  ;;  %v3344_v13 = vsub.f32 %v13687_v52, %v10881_v5  ;;  %v3675_v32 = vmul.f32 1.442695, %v3269_v26  ;;  %v13692_v52 = vld [vmem:[#allocation176_spill] sm:$0xff] }
 0x435   : > { %v7002_v1 = vpop.eup %7001  ;;  %7021 = vpow2.f32 %v3691_v24  ;;  %v3345_v2 = vsub.f32 %v13688_v31, %v10881_v5  ;;  %v13689_v24 = vld [vmem:[#allocation165_spill] sm:$0xff]  ;;  %v3823_v37 = vmul.f32 1.442695, %v3343_v61  ;;  %v3352_v33 = vsub.f32 %v13690_v6, %v10893_v60 }
 0x436   : > { %v7004_v16 = vpop.eup %7003  ;;  %v4182_v41 = vadd.f32 %v7000_v3, %v4181_v63  ;;  %7023 = vpow2.f32 %v10760_v49  ;;  %v3351_v58 = vsub.f32 %v13689_v24, %v10893_v60  ;;  %v3825_v26 = vmul.f32 1.442695, %v3344_v13  ;;  %v13691_v63 = vld [vmem:[#allocation172_spill] sm:$0xff]  ;;  %v13693_v13 = vld [vmem:[#allocation191_spill] sm:$0xff] }
 0x437   : > { %v7006_v62 = vpop.eup %7005  ;;  %v4171_v44 = vadd.f32 %v7004_v16, %v4170_v11  ;;  %7025 = vpow2.f32 %v3693_v29  ;;  %v3353_v54 = vsub.f32 %v13691_v63, %v10893_v60  ;;  %v3827_v10 = vmul.f32 1.442695, %v3345_v2 }
 0x438   : > { %v7008_v51 = vpop.eup %7007  ;;  %v4183_v36 = vadd.f32 %v7002_v1, %v4182_v41  ;;  %7027 = vpow2.f32 %v3671_v8  ;;  %v3354_v16 = vsub.f32 %v13692_v52, %v10893_v60  ;;  %v4188_v61 = vadd.f32 %v10610_v25, %v4187_v27  ;;  %v13695_v27 = vld [vmem:[#allocation129_spill] sm:$0xff] }
 0x439   : > { %v7010_v3 = vpop.eup %7009  ;;  %v4172_v49 = vadd.f32 %v7008_v51, %v4171_v44  ;;  %7029 = vpow2.f32 %v3673_v7  ;;  %v3839_v41 = vmul.f32 1.442695, %v3351_v58  ;;  %v3355_v44 = vsub.f32 %v13693_v13, %v10893_v60  ;;  %v13694_v51 = vld [vmem:[#allocation127_spill] sm:$0xff] }
 0x43a   : > { %v7012_v11 = vpop.eup %7011  ;;  %v4184_v29 = vadd.f32 %v7006_v62, %v4183_v36  ;;  %7031 = vpow2.f32 %v3675_v32  ;;  %v3841_v24 = vmul.f32 1.442695, %v3352_v33  ;;  %v3843_v2 = vmul.f32 1.442695, %v3353_v54  ;;  %v13697_v33 = vld [vmem:[#allocation131_spill] sm:$0xff] }
 0x43b   : > { %v7014_v1 = vpop.eup %7013  ;;  %v4173_v8 = vadd.f32 %v7010_v3, %v4172_v49  ;;  %7033 = vpow2.f32 %v3677_v53  ;;  %v3291_v36 = vsub.f32 %v13694_v51, %v10542_v9  ;;  %v3845_v25 = vmul.f32 1.442695, %v3354_v16 }
 0x43c   : > { %v7016_v31 = vpop.eup %7015  ;;  %4185 = vadd.xlane.f32.xlu1 %v4184_v29  ;;  %v4198_v7 = vadd.f32 %v7014_v1, %v4197_v56  ;;  %7035 = vpow2.f32 %v3823_v37  ;;  %v3292_v58 = vsub.f32 %v13695_v27, %v10542_v9  ;;  %v13696_v37 = vld [vmem:[#allocation177_spill] sm:$0xff]  ;;  %v13699_v1 = vld [vmem:[#allocation138_spill] sm:$0xff] }
 0x43d   : > { %v7018_v62 = vpop.eup %7017  ;;  %v4174_v32 = vadd.f32 %v7012_v11, %v4173_v8  ;;  %7037 = vpow2.f32 %v3825_v26  ;;  %v3293_v26 = vsub.f32 %v13697_v33, %v10542_v9  ;;  %v13698_v11 = vld [vmem:[#allocation168_spill] sm:$0xff]  ;;  %v3294_v8 = vsub.f32 %v13699_v1, %v10542_v9 }
 0x43e   : > { %v7020_v6 = vpop.eup %7019  ;;  %v4199_v53 = vadd.f32 %v7018_v62, %v4198_v7  ;;  %7039 = vpow2.f32 %v3827_v10  ;;  %v3346_v29 = vsub.f32 %v13698_v11, %v10881_v5  ;;  %v3847_v10 = vmul.f32 1.442695, %v3355_v44  ;;  %v13700_v62 = vld [vmem:[#allocation119_spill] sm:$0xff]  ;;  %v13702_v9 = vld [vmem:[#allocation124_spill] sm:$0xff] }
 0x43f   : > { %v7022_v56 = vpop.eup %7021  ;;  %v4175_v49 = vadd.f32 %v7016_v31, %v4174_v32  ;;  %7041 = vpow2.f32 %v3839_v41  ;;  %v3719_v7 = vmul.f32 1.442695, %v3291_v36  ;;  %v3721_v13 = vmul.f32 1.442695, %v3292_v58 }
 0x440   : > { %v7024_v63 = vpop.eup %7023  ;;  %v4200_v54 = vadd.f32 %v7020_v6, %v4199_v53  ;;  %7043 = vpow2.f32 %v3841_v24  ;;  %v3283_v32 = vsub.f32 %v13700_v62, %v10561_v38  ;;  %v3723_v44 = vmul.f32 1.442695, %v3293_v26  ;;  %v13701_v24 = vld [vmem:[#allocation122_spill] sm:$0xff] }
 0x441   : > { %v7026_v52 = vpop.eup %7025  ;;  %4176 = vadd.xlane.f32.xlu0 %v4175_v49  ;;  %v4189_v16 = vadd.f32 %v7024_v63, %v4188_v61  ;;  %7045 = vpow2.f32 %v3843_v2  ;;  %v3284_v61 = vsub.f32 %v13701_v24, %v10561_v38  ;;  %v10930_v27 = vmul.f32 1.442695, %v3346_v29  ;;  %v13704_v63 = vld [vmem:[#allocation130_spill] sm:$0xff] }
 0x442   : > { %v7028_v31 = vpop.eup %7027  ;;  %v4201_v41 = vadd.f32 %v7022_v56, %v4200_v54  ;;  %7047 = vpow2.f32 %v3845_v25  ;;  %v3285_v36 = vsub.f32 %v13702_v9, %v10561_v38  ;;  %v13703_v56 = vld [vmem:[#allocation193_spill] sm:$0xff]  ;;  %v3725_v33 = vmul.f32 1.442695, %v3294_v8  ;;  %v13712_v9 = vld [vmem:[#allocation78_spill] sm:$0xff] }
 0x443   : > { %v7030_v51 = vpop.eup %7029  ;;  %v4190_v6 = vadd.f32 %v7028_v31, %v4189_v16  ;;  %7049 = vpow2.f32 %v10769_v15  ;;  %v4214_v26 = vadd.f32 %v10619_v18, %v10615_v46  ;;  %v3286_v54 = vsub.f32 %v13704_v63, %v10561_v38  ;;  %v13705_v16 = vld [vmem:[#allocation135_spill] sm:$0xff]  ;;  %v13708_v18 = vld [vmem:[#allocation137_spill] sm:$0xff] }
 0x444   : > { %v7032_v2 = vpop.eup %7031  ;;  %v4202_v53 = vadd.f32 %v7026_v52, %v4201_v41  ;;  %7051 = vpow2.f32 %v3847_v10  ;;  %v3703_v11 = vmul.f32 1.442695, %v3283_v32  ;;  %v3705_v52 = vmul.f32 1.442695, %v3284_v61  ;;  %v13706_v31 = vld [vmem:[#allocation71_spill] sm:$0xff]  ;;  %v13707_v41 = vld [vmem:[#allocation72_spill] sm:$0xff] }
 0x445   : > { %v7034_v25 = vpop.eup %7033  ;;  %v4191_v58 = vadd.f32 %v7030_v51, %v4190_v6  ;;  %7053 = vpow2.f32 %v3719_v7  ;;  %v3299_v1 = vsub.f32 %v13705_v16, %v10594_v4  ;;  %v3707_v7 = vmul.f32 1.442695, %v3285_v36  ;;  %v13709_v51 = vld [vmem:[#allocation139_spill] sm:$0xff]  ;;  %v13711_v61 = vld [vmem:[#allocation40_spill] sm:$0xff]  ;;  %v13713_v36 = vld [vmem:[#allocation42_spill] sm:$0xff] }
 0x446   : > { %v10936_v15 = vpop.eup %7035  ;;  %4203 = vadd.xlane.f32.xlu1 %v4202_v53  ;;  %7055 = vpow2.f32 %v3721_v13  ;;  %v4205_v46 = vadd.f32 %v13707_v41, %v13706_v31  ;;  %v3300_v38 = vsub.f32 %v13708_v18, %v10594_v4  ;;  %v10953_v13 = vpop.permute.xlu1 %3099  ;;  %v3301_v6 = vsub.f32 %v13709_v51, %v10594_v4  ;;  %v13715_v16 = vld [vmem:[#allocation174_spill] sm:$0xff]  ;;  %v13717_v41 = vld [vmem:[#allocation180_spill] sm:$0xff] }
 0x447   : > { %v10942_v29 = vpop.eup %7037  ;;  %v4192_v10 = vadd.f32 %v7032_v2, %v4191_v58  ;;  %7057 = vpow2.f32 %v3723_v44  ;;  %v13710_v44 = vld [vmem:[#allocation146_spill] sm:$0xff]  ;;  %v4215_v2 = vadd.f32 %v13711_v61, %v4214_v26  ;;  %v3709_v53 = vmul.f32 1.442695, %v3286_v54  ;;  %v13716_v26 = vld [vmem:[#allocation36_spill] sm:$0xff] }
 0x448   : > { %v10946_v8 = vpop.eup %7039  ;;  %7059 = vpow2.f32 %v10817_v40  ;;  %v3302_v24 = vsub.f32 %v13710_v44, %v10594_v4  ;;  %v4223_v58 = vadd.f32 %v13713_v36, %v13712_v9  ;;  %v3360_v4 = vsub.f32 %v13715_v16, %v10953_v13  ;;  %v13719_v44 = vld [vmem:[#allocation38_spill] sm:$0xff]  ;;  %v10985_v16 = vpop.permute.xlu0 %3104 }
 0x449   : > { %v10955_v62 = vpop.eup %7041  ;;  %v4193_v32 = vadd.f32 %v7034_v25, %v4192_v10  ;;  %7061 = vpow2.f32 %v3725_v33  ;;  %v3735_v25 = vmul.f32 1.442695, %v3299_v1  ;;  %v13714_v33 = vld [vmem:[#allocation173_spill] sm:$0xff]  ;;  %v3737_v54 = vmul.f32 1.442695, %v3300_v38 }
 0x44a   : > { %v10961_v40 = vpop.eup %7043  ;;  %7063 = vpow2.f32 %v3703_v11  ;;  %v3359_v10 = vsub.f32 %v13714_v33, %v10953_v13  ;;  %v4206_v11 = vadd.f32 %v13716_v26, %v4205_v46  ;;  %v3361_v18 = vsub.f32 %v13717_v41, %v10953_v13  ;;  %v13721_v33 = vld [vmem:[#allocation44_spill] sm:$0xff]  ;;  %v13722_v46 = vld [vmem:[#allocation147_spill] sm:$0xff] }
 0x44b   : > { %v10966_v63 = vpop.eup %7045  ;;  %4194 = vadd.xlane.f32.xlu0 %v4193_v32  ;;  %7065 = vpow2.f32 %v3705_v52  ;;  %v3739_v52 = vmul.f32 1.442695, %v3301_v6  ;;  %v3741_v1 = vmul.f32 1.442695, %v3302_v24  ;;  %v13718_v32 = vld [vmem:[#allocation46_spill] sm:$0xff]  ;;  %v3309_v38 = vsub.f32 %v13722_v46, %v10608_v22  ;;  %v13726_v46 = vld [vmem:[#allocation181_spill] sm:$0xff] }
 0x44c   : > { %v10972_v31 = vpop.eup %7047  ;;  %7067 = vpow2.f32 %v3707_v7  ;;  %v4232_v61 = vadd.f32 %v13719_v44, %v13718_v32  ;;  %v4224_v7 = vadd.f32 %v13721_v33, %v4223_v58  ;;  %v3855_v24 = vmul.f32 1.442695, %v3359_v10  ;;  %v13725_v33 = vld [vmem:[#allocation49_spill] sm:$0xff] }
 0x44d   : > { %v7050_v51 = vpop.eup %7049  ;;  %7069 = vpow2.f32 %v10821_v12  ;;  %v13723_v12 = vld [vmem:[#allocation189_spill] sm:$0xff]  ;;  %v3857_v41 = vmul.f32 1.442695, %v3360_v4  ;;  %v3859_v44 = vmul.f32 1.442695, %v3361_v18  ;;  %v3367_v3 = vsub.f32 %v13726_v46, %v10985_v16  ;;  %v13731_v46 = vld [vmem:[#allocation84_spill] sm:$0xff] }
 0x44e   : > { %v10980_v9 = vpop.eup %7051  ;;  %v4216_v36 = vadd.f32 %v7050_v51, %v4215_v2  ;;  %7071 = vpow2.f32 %v3709_v53  ;;  %v13724_v2 = vld [vmem:[#allocation155_spill] sm:$0xff]  ;;  %v3753_v51 = vmul.f32 1.442695, %v3308_v43 }
 0x44f   : > { %13720 = vst [vmem:[#allocation48_spill] sm:$0xff] %v10980_v9  ;;  %v7054_v26 = vpop.eup %7053  ;;  %7073 = vpow2.f32 %v3735_v25  ;;  %v3310_v53 = vsub.f32 %v13724_v2, %v10608_v22  ;;  %v4233_v25 = vadd.f32 %v13725_v33, %v4232_v61  ;;  %v13729_v22 = vld [vmem:[#allocation196_spill] sm:$0xff] }
 0x450   : > { %v7056_v49 = vpop.eup %7055  ;;  %v4217_v32 = vadd.f32 %v7054_v26, %v4216_v36  ;;  %7075 = vpow2.f32 %v3737_v54  ;;  %v3755_v36 = vmul.f32 1.442695, %v3309_v38  ;;  %v13727_v54 = vld [vmem:[#allocation182_spill] sm:$0xff]  ;;  %v3370_v48 = vsub.f32 %v13729_v22, %v10985_v16 }
 0x451   : > { %v7058_v58 = vpop.eup %7057  ;;  %7077 = vpow2.f32 %v3739_v52  ;;  %v3368_v18 = vsub.f32 %v13727_v54, %v10985_v16  ;;  %v13728_v52 = vld [vmem:[#allocation190_spill] sm:$0xff]  ;;  %v3757_v33 = vmul.f32 1.442695, %v3310_v53  ;;  %v4234_v54 = vadd.f32 %v13731_v46, %v4233_v25 }
 0x452   : > { %v7060_v10 = vpop.eup %7059  ;;  %v4218_v4 = vadd.f32 %v7056_v49, %v4217_v32  ;;  %7079 = vpow2.f32 %v3741_v1  ;;  %v3369_v6 = vsub.f32 %v13728_v52, %v10985_v16  ;;  %v13730_v49 = vld [vmem:[#allocation207_spill] sm:$0xff]  ;;  %v3315_v22 = vsub.f32 %v13732_v34, %v10665_v50  ;;  %v13733_v25 = vld [vmem:[#allocation154_spill] sm:$0xff]  ;;  %v13734_v34 = vld [vmem:[#allocation156_spill] sm:$0xff] }
 0x453   : > { %v7062_v26 = vpop.eup %7061  ;;  %v4207_v2 = vadd.f32 %v7060_v10, %v4206_v11  ;;  %7081 = vpow2.f32 %v3855_v24  ;;  %v3371_v1 = vsub.f32 %v13730_v49, %v10985_v16  ;;  %v3871_v11 = vmul.f32 1.442695, %v3367_v3 }
 0x454   : > { %v7064_v43 = vpop.eup %7063  ;;  %v4219_v61 = vadd.f32 %v7058_v58, %v4218_v4  ;;  %7083 = vpow2.f32 %v3857_v41  ;;  %v3873_v52 = vmul.f32 1.442695, %v3368_v18  ;;  %v3875_v41 = vmul.f32 1.442695, %v3369_v6 }
 0x455   : > { %v7066_v38 = vpop.eup %7065  ;;  %v4208_v32 = vadd.f32 %v7064_v43, %v4207_v2  ;;  %7085 = vpow2.f32 %v3753_v51  ;;  %v3877_v53 = vmul.f32 1.442695, %v3370_v48  ;;  %v3879_v51 = vmul.f32 1.442695, %v3371_v1  ;;  %v11010_v2 = vpop.permute.xlu1 %3109  ;;  %v13736_v1 = vld [vmem:[#allocation184_spill] sm:$0xff] }
 0x456   : > { %v7068_v24 = vpop.eup %7067  ;;  %v4220_v10 = vadd.f32 %v7062_v26, %v4219_v61  ;;  %7087 = vpow2.f32 %v3859_v44  ;;  %v3316_v3 = vsub.f32 %v13733_v25, %v10665_v50  ;;  %v3317_v26 = vsub.f32 %v13734_v34, %v10665_v50 }
 0x457   : > { %v7070_v9 = vpop.eup %7069  ;;  %v4209_v58 = vadd.f32 %v7066_v38, %v4208_v32  ;;  %7089 = vpow2.f32 %v3755_v36  ;;  %v13735_v36 = vld [vmem:[#allocation162_spill] sm:$0xff]  ;;  %v3375_v38 = vsub.f32 %v13736_v1, %v11010_v2  ;;  %v13737_v32 = vld [vmem:[#allocation185_spill] sm:$0xff] }
 0x458   : > { %v7072_v4 = vpop.eup %7071  ;;  %4221 = vadd.xlane.f32.xlu1 %v4220_v10  ;;  %v4225_v49 = vadd.f32 %v7070_v9, %v4224_v7  ;;  %7091 = vpow2.f32 %v3757_v33  ;;  %v3318_v6 = vsub.f32 %v13735_v36, %v10665_v50  ;;  %v3767_v9 = vmul.f32 1.442695, %v3315_v22  ;;  %v13738_v10 = vld [vmem:[#allocation17_spill] sm:$0xff]  ;;  %v13739_v22 = vld [vmem:[#allocation192_spill] sm:$0xff] }
 0x459   : > { %v7074_v44 = vpop.eup %7073  ;;  %v4210_v18 = vadd.f32 %v7068_v24, %v4209_v58  ;;  %7093 = vpow2.f32 %v3871_v11  ;;  %v4241_v7 = vadd.f32 %v10754_v19, %v10748_v42  ;;  %v3376_v46 = vsub.f32 %v13737_v32, %v11010_v2  ;;  %v13745_v1 = vld [vmem:[#allocation197_spill] sm:$0xff] }
 0x45a   : > { %v7076_v48 = vpop.eup %7075  ;;  %v4226_v43 = vadd.f32 %v7074_v44, %v4225_v49  ;;  %7095 = vpow2.f32 %v3873_v52  ;;  %v4235_v50 = vadd.f32 %v13738_v10, %v4234_v54  ;;  %v3769_v58 = vmul.f32 1.442695, %v3316_v3  ;;  %v13740_v44 = vld [vmem:[#allocation18_spill] sm:$0xff]  ;;  %v13741_v54 = vld [vmem:[#allocation101_spill] sm:$0xff]  ;;  %v11033_v3 = vpop.permute.xlu0 %3114 }
 0x45b   : > { %v7078_v61 = vpop.eup %7077  ;;  %v4211_v33 = vadd.f32 %v7072_v4, %v4210_v18  ;;  %7097 = vpow2.f32 %v3875_v41  ;;  %v3771_v42 = vmul.f32 1.442695, %v3317_v26  ;;  %v3773_v19 = vmul.f32 1.442695, %v3318_v6  ;;  %v13742_v26 = vld [vmem:[#allocation163_spill] sm:$0xff]  ;;  %v13747_v10 = vld [vmem:[#allocation198_spill] sm:$0xff] }
 0x45c   : > { %v7080_v11 = vpop.eup %7079  ;;  %v4227_v24 = vadd.f32 %v7076_v48, %v4226_v43  ;;  %7099 = vpow2.f32 %v3877_v53  ;;  %v3377_v41 = vsub.f32 %v13739_v22, %v11010_v2  ;;  %v4242_v25 = vadd.f32 %v10758_v47, %v4241_v7 }
 0x45d   : > { %v11023_v52 = vpop.eup %7081  ;;  %4212 = vadd.xlane.f32.xlu0 %v4211_v33  ;;  %7101 = vpow2.f32 %v10848_v30  ;;  %v4250_v53 = vadd.f32 %v13741_v54, %v13740_v44  ;;  %v3887_v34 = vmul.f32 1.442695, %v3375_v38  ;;  %v3889_v30 = vmul.f32 1.442695, %v3376_v46  ;;  %v13750_v54 = vld [vmem:[#allocation208_spill] sm:$0xff] }
 0x45e   : > { %v11028_v4 = vpop.eup %7083  ;;  %v4228_v49 = vadd.f32 %v7078_v61, %v4227_v24  ;;  %7103 = vpow2.f32 %v3879_v51  ;;  %v3325_v36 = vsub.f32 %v13742_v26, %v10681_v59  ;;  %v13743_v51 = vld [vmem:[#allocation170_spill] sm:$0xff]  ;;  %v3891_v61 = vmul.f32 1.442695, %v3377_v41 }
 0x45f   : > { %v7086_v18 = vpop.eup %7085  ;;  %7105 = vpow2.f32 %v3767_v9  ;;  %v3326_v47 = vsub.f32 %v13743_v51, %v10681_v59  ;;  %v13744_v33 = vsub.f32 %v13680_v45, %v10681_v59  ;;  %v3383_v38 = vsub.f32 %v13745_v1, %v11033_v3  ;;  %v13749_v45 = vld [vmem:[#allocation204_spill] sm:$0xff] }
 0x460   : > { %v11037_v6 = vpop.eup %7087  ;;  %v4229_v48 = vadd.f32 %v7080_v11, %v4228_v49  ;;  %v4236_v43 = vadd.f32 %v7086_v18, %v4235_v50  ;;  %7107 = vpow2.f32 %v3769_v58  ;;  %v13746_v11 = vld [vmem:[#allocation102_spill] sm:$0xff]  ;;  %v3384_v50 = vsub.f32 %v13747_v10, %v11033_v3 }
 0x461   : > { %v7090_v7 = vpop.eup %7089  ;;  %7109 = vpow2.f32 %v3771_v42  ;;  %v3785_v9 = vmul.f32 1.442695, %v13744_v33  ;;  %v4251_v24 = vadd.f32 %v13746_v11, %v4250_v53  ;;  %v13748_v42 = vld [vmem:[#allocation200_spill] sm:$0xff]  ;;  %v3787_v59 = vmul.f32 1.442695, %v3325_v36  ;;  %v13755_v11 = vld [vmem:[#allocation167_spill] sm:$0xff] }
 0x462   : > { %v7092_v32 = vpop.eup %7091  ;;  %4230 = vadd.xlane.f32.xlu0 %v4229_v48  ;;  %v4237_v46 = vadd.f32 %v7090_v7, %v4236_v43  ;;  %7111 = vpow2.f32 %v3773_v19  ;;  %v3378_v22 = vsub.f32 %v13748_v42, %v11010_v2  ;;  %v3385_v41 = vsub.f32 %v13749_v45, %v11033_v3  ;;  %v13754_v7 = vld [vmem:[#allocation223_spill] sm:$0xff]  ;;  %v11081_v45 = vpop.permute.xlu1 %3119 }
 0x463   : > { %v11049_v58 = vpop.eup %7093  ;;  %7113 = vpow2.f32 %v3887_v34  ;;  %v3789_v19 = vmul.f32 1.442695, %v3326_v47  ;;  %v3386_v53 = vsub.f32 %v13750_v54, %v11033_v3  ;;  %v13751_v26 = vsub.f32 %v13723_v12, %v10953_v13  ;;  %v13752_v34 = vld [vmem:[#allocation209_spill] sm:$0xff]  ;;  %v13759_v54 = vld [vmem:[#allocation178_spill] sm:$0xff] }
 0x464   : > { %v11055_v49 = vpop.eup %7095  ;;  %v4238_v44 = vadd.f32 %v7092_v32, %v4237_v46  ;;  %7115 = vpow2.f32 %v3889_v30  ;;  %v3903_v43 = vmul.f32 1.442695, %v3383_v38  ;;  %v13753_v30 = vld [vmem:[#allocation108_spill] sm:$0xff]  ;;  %v3387_v33 = vsub.f32 %v13754_v7, %v11033_v3 }
 0x465   : > { %v11059_v18 = vpop.eup %7097  ;;  %v11064_v48 = vmul.f32 1.442695, %v13751_v26  ;;  %7117 = vpow2.f32 %v3785_v9  ;;  %v4252_v47 = vadd.f32 %v13753_v30, %v4251_v24  ;;  %v3905_v1 = vmul.f32 1.442695, %v3384_v50 }
 0x466   : > { %v11068_v51 = vpop.eup %7099  ;;  %4239 = vadd.xlane.f32.xlu1 %v4238_v44  ;;  %7119 = vpow2.f32 %v3891_v61  ;;  %v11073_v46 = vmul.f32 1.442695, %v3378_v22  ;;  %v3907_v12 = vmul.f32 1.442695, %v3385_v41  ;;  %v3331_v10 = vsub.f32 %v13755_v11, %v10765_v14  ;;  %v13756_v61 = vld [vmem:[#allocation169_spill] sm:$0xff] }
 0x467   : > { %v7102_v32 = vpop.eup %7101  ;;  %7121 = vpow2.f32 %v3787_v59  ;;  %v3909_v42 = vmul.f32 1.442695, %v3386_v53  ;;  %v3332_v24 = vsub.f32 %v13756_v61, %v10765_v14  ;;  %v13758_v59 = vld [vmem:[#allocation171_spill] sm:$0xff]  ;;  %v3334_v26 = vsub.f32 %v13759_v54, %v10765_v14 }
 0x468   : > { %v11077_v9 = vpop.eup %7103  ;;  %v4243_v38 = vadd.f32 %v7102_v32, %v4242_v25  ;;  %7123 = vpow2.f32 %v3789_v19  ;;  %v3333_v41 = vsub.f32 %v13758_v59, %v10765_v14  ;;  %v13760_v19 = vld [vmem:[#allocation47_spill] sm:$0xff]  ;;  %v3911_v7 = vmul.f32 1.442695, %v3387_v33  ;;  %v13762_v14 = vld [vmem:[#allocation206_spill] sm:$0xff] }
 0x469   : > { %v7106_v44 = vpop.eup %7105  ;;  %7125 = vpow2.f32 %v3903_v43  ;;  %v4253_v53 = vadd.f32 %v13760_v19, %v4252_v47  ;;  %v3799_v11 = vmul.f32 1.442695, %v3331_v10  ;;  %v4259_v61 = vadd.f32 %v10842_v55, %v10836_v39  ;;  %v13761_v43 = vld [vmem:[#allocation205_spill] sm:$0xff] }
 0x46a   : > { %v7108_v30 = vpop.eup %7107  ;;  %v4244_v25 = vadd.f32 %v7106_v44, %v4243_v38  ;;  %7127 = vpow2.f32 %v3905_v1  ;;  %v3391_v22 = vsub.f32 %v13761_v43, %v11081_v45  ;;  %v3801_v50 = vmul.f32 1.442695, %v3332_v24  ;;  %v13763_v1 = vld [vmem:[#allocation212_spill] sm:$0xff]  ;;  %v13764_v10 = vld [vmem:[#allocation221_spill] sm:$0xff] }
 0x46b   : > { %v7110_v32 = vpop.eup %7109  ;;  %7129 = vpow2.f32 %v3907_v12  ;;  %v3392_v38 = vsub.f32 %v13762_v14, %v11081_v45  ;;  %v3803_v47 = vmul.f32 1.442695, %v3333_v41  ;;  %v3805_v33 = vmul.f32 1.442695, %v3334_v26 }
 0x46c   : > { %v7112_v36 = vpop.eup %7111  ;;  %v4245_v59 = vadd.f32 %v7108_v30, %v4244_v25  ;;  %7131 = vpow2.f32 %v3909_v42  ;;  %v3393_v12 = vsub.f32 %v13763_v1, %v11081_v45  ;;  %v3394_v42 = vsub.f32 %v13764_v10, %v11081_v45 }
 0x46d   : > { %v11096_v44 = vpop.eup %7113  ;;  %7133 = vpow2.f32 %v10876_v57  ;;  %v4268_v24 = vadd.f32 %v10859_v28, %v10853_v35  ;;  %v4260_v30 = vadd.f32 %v10846_v17, %v4259_v61  ;;  %v13765_v57 = vld [vmem:[#allocation231_spill] sm:$0xff]  ;;  %v3919_v26 = vmul.f32 1.442695, %v3391_v22 }
 0x46e   : > { %v11101_v39 = vpop.eup %7115  ;;  %v4246_v55 = vadd.f32 %v7110_v32, %v4245_v59  ;;  %7135 = vpow2.f32 %v3911_v7  ;;  %v3395_v41 = vsub.f32 %v13765_v57, %v11081_v45  ;;  %v3921_v7 = vmul.f32 1.442695, %v3392_v38  ;;  %v11112_v32 = vpop.permute.xlu0 %3124  ;;  %v13767_v35 = vld [vmem:[#allocation179_spill] sm:$0xff] }
 0x46f   : > { %v7118_v54 = vpop.eup %7117  ;;  %7137 = vpow2.f32 %v3799_v11  ;;  %13766 = vst [vmem:[#allocation50_spill] sm:$0xff] %v11112_v32  ;;  %v3923_v14 = vmul.f32 1.442695, %v3393_v12  ;;  %v3341_v28 = vsub.f32 %v13767_v35, %v10784_v21  ;;  %v13768_v17 = vld [vmem:[#allocation187_spill] sm:$0xff]  ;;  %v3925_v1 = vmul.f32 1.442695, %v3394_v42 }
 0x470   : > { %v11110_v25 = vpop.eup %7119  ;;  %v4247_v19 = vadd.f32 %v7112_v36, %v4246_v55  ;;  %v4254_v43 = vadd.f32 %v7118_v54, %v4253_v53  ;;  %7139 = vpow2.f32 %v3801_v50  ;;  %v3342_v11 = vsub.f32 %v13768_v17, %v10784_v21  ;;  %v13771_v55 = vld [vmem:[#allocation214_spill] sm:$0xff]  ;;  %v13774_v35 = vld [vmem:[#allocation228_spill] sm:$0xff] }
 0x471   : > { %v7122_v59 = vpop.eup %7121  ;;  %7141 = vpow2.f32 %v3803_v47  ;;  %v4269_v36 = vadd.f32 %v10864_v0, %v4268_v24  ;;  %v13769_v53 = vsub.f32 %v13696_v37, %v10784_v21  ;;  %v13770_v47 = vld [vmem:[#allocation213_spill] sm:$0xff]  ;;  %v3400_v10 = vsub.f32 %v13771_v55, %v11112_v32  ;;  %v13773_v37 = vld [vmem:[#allocation222_spill] sm:$0xff] }
 0x472   : > { %v7124_v61 = vpop.eup %7123  ;;  %4248 = vadd.xlane.f32.xlu0 %v4247_v19  ;;  %v4255_v22 = vadd.f32 %v7122_v59, %v4254_v43  ;;  %7143 = vpow2.f32 %v3805_v33  ;;  %v3399_v12 = vsub.f32 %v13770_v47, %v11112_v32  ;;  %v13772_v33 = vld [vmem:[#allocation233_spill] sm:$0xff]  ;;  %v3927_v0 = vmul.f32 1.442695, %v3395_v41 }
 0x473   : > { %v11119_v50 = vpop.eup %7125  ;;  %7145 = vpow2.f32 %v3919_v26  ;;  %v3817_v38 = vmul.f32 1.442695, %v13769_v53  ;;  %v3819_v26 = vmul.f32 1.442695, %v3341_v28  ;;  %v3821_v21 = vmul.f32 1.442695, %v3342_v11 }
 0x474   : > { %v11128_v54 = vpop.eup %7127  ;;  %v4256_v57 = vadd.f32 %v7124_v61, %v4255_v22  ;;  %7147 = vpow2.f32 %v3921_v7  ;;  %v3401_v19 = vsub.f32 %v13773_v37, %v11112_v32  ;;  %v4270_v59 = vadd.f32 %v10870_v20, %v4269_v36  ;;  %v13775_v7 = vld [vmem:[#allocation239_spill] sm:$0xff]  ;;  %v13778_v36 = vld [vmem:[#allocation186_spill] sm:$0xff] }
 0x475   : > { %v11132_v24 = vpop.eup %7129  ;;  %7149 = vpow2.f32 %v3923_v14  ;;  %v3402_v17 = vsub.f32 %v13774_v35, %v11112_v32  ;;  %v3403_v41 = vsub.f32 %v13775_v7, %v11112_v32  ;;  %v3935_v11 = vmul.f32 1.442695, %v3399_v12  ;;  %v13779_v35 = vld [vmem:[#allocation188_spill] sm:$0xff]  ;;  %v13780_v12 = vld [vmem:[#allocation194_spill] sm:$0xff] }
 0x476   : > { %v11136_v43 = vpop.eup %7131  ;;  %4257 = vadd.xlane.f32.xlu1 %v4256_v57  ;;  %7151 = vpow2.f32 %v3925_v1  ;;  %v3937_v22 = vmul.f32 1.442695, %v3400_v10  ;;  %v13777_v1 = vld [vmem:[#allocation183_spill] sm:$0xff]  ;;  %v3348_v55 = vsub.f32 %v13778_v36, %v10881_v5  ;;  %v11151_v57 = vpop.permute.xlu1 %3129  ;;  %v3349_v7 = vsub.f32 %v13779_v35, %v10881_v5 }
 0x477   : > { %v7134_v61 = vpop.eup %7133  ;;  %7153 = vpow2.f32 %v3817_v38  ;;  %v3347_v20 = vsub.f32 %v13777_v1, %v10881_v5  ;;  %v3939_v38 = vmul.f32 1.442695, %v3401_v19  ;;  %v3350_v10 = vsub.f32 %v13780_v12, %v10881_v5 }
 0x478   : > { %v11145_v53 = vpop.eup %7135  ;;  %v4261_v47 = vadd.f32 %v7134_v61, %v4260_v30  ;;  %7155 = vpow2.f32 %v3927_v0  ;;  %v4271_v0 = vadd.f32 %v10883_v23, %v4270_v59  ;;  %v3941_v61 = vmul.f32 1.442695, %v3402_v17 }
 0x479   : > { %v7138_v37 = vpop.eup %7137  ;;  %7157 = vpow2.f32 %v3819_v26  ;;  %v3943_v36 = vmul.f32 1.442695, %v3403_v41  ;;  %v4277_v42 = vadd.f32 %v10942_v29, %v10936_v15  ;;  %v13781_v26 = vld [vmem:[#allocation216_spill] sm:$0xff]  ;;  %v3831_v32 = vmul.f32 1.442695, %v3347_v20  ;;  %v13782_v15 = vld [vmem:[#allocation217_spill] sm:$0xff] }
 0x47a   : > { %v7140_v28 = vpop.eup %7139  ;;  %v4262_v30 = vadd.f32 %v7138_v37, %v4261_v47  ;;  %7159 = vpow2.f32 %v3821_v21  ;;  %v3407_v19 = vsub.f32 %v13781_v26, %v11151_v57  ;;  %v3833_v5 = vmul.f32 1.442695, %v3348_v55  ;;  %v13784_v20 = vld [vmem:[#allocation232_spill] sm:$0xff] }
 0x47b   : > { %v7142_v1 = vpop.eup %7141  ;;  %7161 = vpow2.f32 %v3935_v11  ;;  %v3835_v21 = vmul.f32 1.442695, %v3349_v7  ;;  %v3837_v23 = vmul.f32 1.442695, %v3350_v10  ;;  %v4286_v59 = vadd.f32 %v10961_v40, %v10955_v62  ;;  %v13785_v62 = vld [vmem:[#allocation247_spill] sm:$0xff]  ;;  %v13786_v7 = vld [vmem:[#allocation250_spill] sm:$0xff] }
 0x47c   : > { %v7144_v14 = vpop.eup %7143  ;;  %v4263_v35 = vadd.f32 %v7140_v28, %v4262_v30  ;;  %7163 = vpow2.f32 %v3937_v22  ;;  %v3408_v29 = vsub.f32 %v13782_v15, %v11151_v57  ;;  %v13783_v28 = vld [vmem:[#allocation224_spill] sm:$0xff]  ;;  %v4278_v47 = vadd.f32 %v10946_v8, %v4277_v42  ;;  %v13787_v30 = vld [vmem:[#allocation195_spill] sm:$0xff]  ;;  %v13788_v8 = vld [vmem:[#allocation202_spill] sm:$0xff] }
 0x47d   : > { %v11162_v12 = vpop.eup %7145  ;;  %7165 = vpow2.f32 %v3939_v38  ;;  %v3409_v11 = vsub.f32 %v13783_v28, %v11151_v57  ;;  %v3410_v55 = vsub.f32 %v13784_v20, %v11151_v57  ;;  %v3411_v40 = vsub.f32 %v13785_v62, %v11151_v57 }
 0x47e   : > { %v11166_v17 = vpop.eup %7147  ;;  %v4264_v41 = vadd.f32 %v7142_v1, %v4263_v35  ;;  %7167 = vpow2.f32 %v3941_v61  ;;  %v3357_v61 = vsub.f32 %v13787_v30, %v10893_v60  ;;  %v3358_v42 = vsub.f32 %v13788_v8, %v10893_v60  ;;  %v11189_v35 = vpop.permute.xlu0 %3134 }
 0x47f   : > { %v11172_v22 = vpop.eup %7149  ;;  %7169 = vpow2.f32 %v10930_v27  ;;  %v3951_v27 = vmul.f32 1.442695, %v3407_v19  ;;  %v4287_v26 = vadd.f32 %v10966_v63, %v4286_v59  ;;  %13789 = vst [vmem:[#allocation55_spill] sm:$0xff] %v11189_v35  ;;  %v3957_v20 = vmul.f32 1.442695, %v3410_v55  ;;  %v13791_v59 = vld [vmem:[#allocation229_spill] sm:$0xff] }
 0x480   : > { %v11180_v37 = vpop.eup %7151  ;;  %v4265_v38 = vadd.f32 %v7144_v14, %v4264_v41  ;;  %7171 = vpow2.f32 %v3943_v36  ;;  %v3953_v36 = vmul.f32 1.442695, %v3408_v29  ;;  %v3955_v41 = vmul.f32 1.442695, %v3409_v11  ;;  %v13794_v55 = vld [vmem:[#allocation240_spill] sm:$0xff] }
 0x481   : > { %v7154_v1 = vpop.eup %7153  ;;  %7173 = vpow2.f32 %v3831_v32  ;;  %v3959_v62 = vmul.f32 1.442695, %v3411_v40  ;;  %v13790_v32 = vsub.f32 %v13703_v56, %v10893_v60  ;;  %v3851_v63 = vmul.f32 1.442695, %v3357_v61  ;;  %v13793_v56 = vld [vmem:[#allocation236_spill] sm:$0xff] }
 0x482   : > { %v11191_v15 = vpop.eup %7155  ;;  %4266 = vadd.xlane.f32.xlu0 %v4265_v38  ;;  %v4272_v14 = vadd.f32 %v7154_v1, %v4271_v0  ;;  %7175 = vpow2.f32 %v3833_v5  ;;  %v3415_v10 = vsub.f32 %v13791_v59, %v11189_v35  ;;  %v3853_v0 = vmul.f32 1.442695, %v3358_v42  ;;  %v13795_v1 = vld [vmem:[#allocation255_spill] sm:$0xff] }
 0x483   : > { %v7158_v28 = vpop.eup %7157  ;;  %7177 = vpow2.f32 %v3835_v21  ;;  %v3849_v19 = vmul.f32 1.442695, %v13790_v32  ;;  %v4288_v5 = vadd.f32 %v10972_v31, %v4287_v26  ;;  %v13792_v21 = vld [vmem:[#allocation230_spill] sm:$0xff]  ;;  %v3418_v40 = vsub.f32 %v13794_v55, %v11189_v35  ;;  %v13797_v26 = vld [vmem:[#allocation199_spill] sm:$0xff]  ;;  %v13798_v32 = vld [vmem:[#allocation201_spill] sm:$0xff] }
 0x484   : > { %v7160_v30 = vpop.eup %7159  ;;  %v4273_v8 = vadd.f32 %v7158_v28, %v4272_v14  ;;  %7179 = vpow2.f32 %v3837_v23  ;;  %v3416_v29 = vsub.f32 %v13792_v21, %v11189_v35  ;;  %v3417_v23 = vsub.f32 %v13793_v56, %v11189_v35  ;;  %v13800_v21 = vld [vmem:[#allocation48_spill] sm:$0xff] }
 0x485   : > { %v11198_v38 = vpop.eup %7161  ;;  %7181 = vpow2.f32 %v3951_v27  ;;  %v3419_v27 = vsub.f32 %v13795_v1, %v11189_v35  ;;  %v3363_v14 = vsub.f32 %v13797_v26, %v10953_v13  ;;  %v4289_v56 = vadd.f32 %v13800_v21, %v4288_v5  ;;  %v13801_v1 = vld [vmem:[#allocation210_spill] sm:$0xff] }
 0x486   : > { %v11203_v11 = vpop.eup %7163  ;;  %v4274_v60 = vadd.f32 %v7160_v30, %v4273_v8  ;;  %7183 = vpow2.f32 %v3953_v36  ;;  %v3967_v36 = vmul.f32 1.442695, %v3415_v10  ;;  %v3364_v30 = vsub.f32 %v13798_v32, %v10953_v13  ;;  %v13799_v8 = vld [vmem:[#allocation203_spill] sm:$0xff] }
 0x487   : > { %v11209_v61 = vpop.eup %7165  ;;  %7185 = vpow2.f32 %v3955_v41  ;;  %v3365_v41 = vsub.f32 %v13799_v8, %v10953_v13  ;;  %v3969_v55 = vmul.f32 1.442695, %v3416_v29  ;;  %v3366_v42 = vsub.f32 %v13801_v1, %v10953_v13 }
 0x488   : > { %v11217_v28 = vpop.eup %7167  ;;  %4275 = vadd.xlane.f32.xlu1 %v4274_v60  ;;  %7187 = vpow2.f32 %v3957_v20  ;;  %v3971_v20 = vmul.f32 1.442695, %v3417_v23  ;;  %v3973_v10 = vmul.f32 1.442695, %v3418_v40  ;;  %v11228_v60 = vpop.permute.xlu1 %3139  ;;  %v3975_v35 = vmul.f32 1.442695, %v3419_v27 }
 0x489   : > { %v7170_v59 = vpop.eup %7169  ;;  %7189 = vpow2.f32 %v3849_v19  ;;  %v3863_v8 = vmul.f32 1.442695, %v3363_v14  ;;  %v4295_v19 = vadd.f32 %v11028_v4, %v11023_v52  ;;  %v3865_v21 = vmul.f32 1.442695, %v3364_v30  ;;  %v13803_v14 = vld [vmem:[#allocation238_spill] sm:$0xff]  ;;  %v13804_v4 = vld [vmem:[#allocation244_spill] sm:$0xff] }
 0x48a   : > { %v11226_v26 = vpop.eup %7171  ;;  %v4279_v31 = vadd.f32 %v7170_v59, %v4278_v47  ;;  %7191 = vpow2.f32 %v3959_v62  ;;  %v3867_v13 = vmul.f32 1.442695, %v3365_v41  ;;  %v3869_v47 = vmul.f32 1.442695, %v3366_v42  ;;  %v13802_v62 = vld [vmem:[#allocation237_spill] sm:$0xff] }
 0x48b   : > { %v7174_v32 = vpop.eup %7173  ;;  %7193 = vpow2.f32 %v3851_v63  ;;  %v3423_v23 = vsub.f32 %v13802_v62, %v11228_v60  ;;  %v4304_v40 = vadd.f32 %v11055_v49, %v11049_v58  ;;  %v3424_v52 = vsub.f32 %v13803_v14, %v11228_v60  ;;  %v13806_v58 = vld [vmem:[#allocation263_spill] sm:$0xff] }
 0x48c   : > { %v7176_v5 = vpop.eup %7175  ;;  %v4280_v29 = vadd.f32 %v7174_v32, %v4279_v31  ;;  %7195 = vpow2.f32 %v3853_v0  ;;  %v3425_v0 = vsub.f32 %v13804_v4, %v11228_v60  ;;  %v11243_v42 = vadd.f32 %v11037_v6, %v4295_v19  ;;  %v13809_v19 = vld [vmem:[#allocation219_spill] sm:$0xff]  ;;  %v11261_v4 = vpop.permute.xlu0 %3144 }
 0x48d   : > { %v7178_v1 = vpop.eup %7177  ;;  %7197 = vpow2.f32 %v3967_v36  ;;  %v13805_v36 = vld [vmem:[#allocation253_spill] sm:$0xff]  ;;  %v3427_v49 = vsub.f32 %v13806_v58, %v11228_v60  ;;  %v3983_v6 = vmul.f32 1.442695, %v3423_v23  ;;  %v3374_v62 = vsub.f32 %v13809_v19, %v10985_v16 }
 0x48e   : > { %v7180_v63 = vpop.eup %7179  ;;  %v4281_v27 = vadd.f32 %v7176_v5, %v4280_v29  ;;  %7199 = vpow2.f32 %v3969_v55  ;;  %v3426_v30 = vsub.f32 %v13805_v36, %v11228_v60  ;;  %v13808_v5 = vld [vmem:[#allocation211_spill] sm:$0xff]  ;;  %v4305_v14 = vadd.f32 %v11059_v18, %v4304_v40  ;;  %v13811_v19 = vld [vmem:[#allocation245_spill] sm:$0xff] }
 0x48f   : > { %v11240_v31 = vpop.eup %7181  ;;  %7201 = vpow2.f32 %v3971_v20  ;;  %v3373_v29 = vsub.f32 %v13808_v5, %v10985_v16  ;;  %v3987_v36 = vmul.f32 1.442695, %v3425_v0  ;;  %v3991_v32 = vmul.f32 1.442695, %v3427_v49  ;;  %v13812_v0 = vld [vmem:[#allocation246_spill] sm:$0xff] }
 0x490   : > { %v11249_v41 = vpop.eup %7183  ;;  %v4282_v59 = vadd.f32 %v7178_v1, %v4281_v27  ;;  %7203 = vpow2.f32 %v3973_v10  ;;  %v3985_v27 = vmul.f32 1.442695, %v3424_v52  ;;  %v3989_v5 = vmul.f32 1.442695, %v3426_v30 }
 0x491   : > { %v11255_v20 = vpop.eup %7185  ;;  %7205 = vpow2.f32 %v11064_v48  ;;  %v13810_v48 = vsub.f32 %v13752_v34, %v10985_v16  ;;  %v3883_v40 = vmul.f32 1.442695, %v3373_v29  ;;  %v3885_v52 = vmul.f32 1.442695, %v3374_v62  ;;  %v13813_v34 = vld [vmem:[#allocation254_spill] sm:$0xff] }
 0x492   : > { %v11263_v1 = vpop.eup %7187  ;;  %v4283_v10 = vadd.f32 %v7180_v63, %v4282_v59  ;;  %7207 = vpow2.f32 %v3975_v35  ;;  %v3431_v63 = vsub.f32 %v13811_v19, %v11261_v4  ;;  %v3432_v30 = vsub.f32 %v13812_v0, %v11261_v4  ;;  %v13818_v19 = vld [vmem:[#allocation218_spill] sm:$0xff] }
 0x493   : > { %v7190_v58 = vpop.eup %7189  ;;  %7209 = vpow2.f32 %v3863_v8  ;;  %v3881_v23 = vmul.f32 1.442695, %v13810_v48  ;;  %v4306_v8 = vadd.f32 %v11068_v51, %v4305_v14  ;;  %v3433_v59 = vsub.f32 %v13813_v34, %v11261_v4  ;;  %v11298_v14 = vpop.permute.xlu1 %3149 }
 0x494   : > { %v11268_v55 = vpop.eup %7191  ;;  %4284 = vadd.xlane.f32.xlu0 %v4283_v10  ;;  %v4290_v18 = vadd.f32 %v7190_v58, %v4289_v56  ;;  %7211 = vpow2.f32 %v3865_v21  ;;  %v13814_v56 = vld [vmem:[#allocation260_spill] sm:$0xff]  ;;  %v13817_v10 = vld [vmem:[#allocation215_spill] sm:$0xff]  ;;  %v4001_v34 = vmul.f32 1.442695, %v3432_v30 }
 0x495   : > { %v7194_v35 = vpop.eup %7193  ;;  %7213 = vpow2.f32 %v3867_v13  ;;  %v3434_v21 = vsub.f32 %v13814_v56, %v11261_v4  ;;  %v13815_v13 = vld [vmem:[#allocation271_spill] sm:$0xff]  ;;  %v3379_v58 = vsub.f32 %v13817_v10, %v11010_v2  ;;  %v13819_v56 = vld [vmem:[#allocation220_spill] sm:$0xff] }
 0x496   : > { %v7196_v49 = vpop.eup %7195  ;;  %v4291_v16 = vadd.f32 %v7194_v35, %v4290_v18  ;;  %7215 = vpow2.f32 %v3869_v47  ;;  %v3435_v62 = vsub.f32 %v13815_v13, %v11261_v4  ;;  %v3999_v18 = vmul.f32 1.442695, %v3431_v63 }
 0x497   : > { %v11279_v29 = vpop.eup %7197  ;;  %7217 = vpow2.f32 %v3983_v6  ;;  %v3380_v35 = vsub.f32 %v13818_v19, %v11010_v2  ;;  %v11294_v6 = vadd.f32 %v11077_v9, %v4306_v8  ;;  %v3381_v13 = vsub.f32 %v13819_v56, %v11010_v2 }
 0x498   : > { %v11287_v48 = vpop.eup %7199  ;;  %v4292_v47 = vadd.f32 %v7196_v49, %v4291_v16  ;;  %7219 = vpow2.f32 %v3985_v27  ;;  %v4003_v27 = vmul.f32 1.442695, %v3433_v59  ;;  %v4005_v63 = vmul.f32 1.442695, %v3434_v21  ;;  %v13820_v49 = vld [vmem:[#allocation226_spill] sm:$0xff] }
 0x499   : > { %v11291_v0 = vpop.eup %7201  ;;  %7221 = vpow2.f32 %v3987_v36  ;;  %v3382_v16 = vsub.f32 %v13820_v49, %v11010_v2  ;;  %v4007_v36 = vmul.f32 1.442695, %v3435_v62  ;;  %v3895_v9 = vmul.f32 1.442695, %v3379_v58  ;;  %v13822_v2 = vld [vmem:[#allocation249_spill] sm:$0xff] }
 0x49a   : > { %v11300_v10 = vpop.eup %7203  ;;  %4293 = vadd.xlane.f32.xlu1 %v4292_v47  ;;  %7223 = vpow2.f32 %v3989_v5  ;;  %v4313_v8 = vadd.f32 %v11101_v39, %v11096_v44  ;;  %v3897_v51 = vmul.f32 1.442695, %v3380_v35  ;;  %v13821_v5 = vld [vmem:[#allocation248_spill] sm:$0xff]  ;;  %v3899_v47 = vmul.f32 1.442695, %v3381_v13 }
 0x49b   : > { %v7206_v19 = vpop.eup %7205  ;;  %7225 = vpow2.f32 %v3881_v23  ;;  %v3439_v59 = vsub.f32 %v13821_v5, %v11298_v14  ;;  %v3440_v23 = vsub.f32 %v13822_v2, %v11298_v14  ;;  %v4322_v62 = vadd.f32 %v11128_v54, %v11119_v50 }
 0x49c   : > { %v11306_v30 = vpop.eup %7207  ;;  %v4297_v56 = vadd.f32 %v7206_v19, %v11243_v42  ;;  %7227 = vpow2.f32 %v3991_v32  ;;  %v3901_v39 = vmul.f32 1.442695, %v3382_v16  ;;  %v13823_v42 = vld [vmem:[#allocation256_spill] sm:$0xff]  ;;  %v11318_v49 = vadd.f32 %v11110_v25, %v4313_v8  ;;  %v13825_v19 = vld [vmem:[#allocation279_spill] sm:$0xff] }
 0x49d   : > { %v7210_v21 = vpop.eup %7209  ;;  %7229 = vpow2.f32 %v3883_v40  ;;  %v3441_v32 = vsub.f32 %v13823_v42, %v11298_v14  ;;  %v13824_v40 = vld [vmem:[#allocation264_spill] sm:$0xff]  ;;  %v3443_v5 = vsub.f32 %v13825_v19, %v11298_v14  ;;  %v13827_v16 = vld [vmem:[#allocation227_spill] sm:$0xff]  ;;  %v4015_v25 = vmul.f32 1.442695, %v3439_v59  ;;  %v11331_v42 = vpop.permute.xlu0 %3154  ;;  %v13830_v59 = vld [vmem:[#allocation225_spill] sm:$0xff] }
 0x49e   : > { %v7212_v58 = vpop.eup %7211  ;;  %v4298_v44 = vadd.f32 %v7210_v21, %v4297_v56  ;;  %7231 = vpow2.f32 %v3885_v52  ;;  %v3442_v13 = vsub.f32 %v13824_v40, %v11298_v14  ;;  %v3389_v56 = vsub.f32 %v13827_v16, %v11033_v3  ;;  %13828 = vst [vmem:[#allocation21_spill] sm:$0xff] %v11331_v42 }
 0x49f   : > { %v7214_v35 = vpop.eup %7213  ;;  %7233 = vpow2.f32 %v3999_v18  ;;  %v4017_v18 = vmul.f32 1.442695, %v3440_v23  ;;  %v4323_v8 = vadd.f32 %v11132_v24, %v4322_v62  ;;  %v13831_v23 = vsub.f32 %v13830_v59, %v11033_v3 }
 0x4a0   : > { %v7216_v2 = vpop.eup %7215  ;;  %v4299_v50 = vadd.f32 %v7212_v58, %v4298_v44  ;;  %7235 = vpow2.f32 %v4001_v34  ;;  %v4019_v34 = vmul.f32 1.442695, %v3441_v32  ;;  %v13829_v58 = vld [vmem:[#allocation234_spill] sm:$0xff]  ;;  %v4021_v16 = vmul.f32 1.442695, %v3442_v13 }
 0x4a1   : > { %v11328_v21 = vpop.eup %7217  ;;  %7237 = vpow2.f32 %v4003_v27  ;;  %v3390_v44 = vsub.f32 %v13829_v58, %v11033_v3  ;;  %v4023_v27 = vmul.f32 1.442695, %v3443_v5  ;;  %v3913_v24 = vmul.f32 1.442695, %v13831_v23 }
 0x4a2   : > { %v11333_v40 = vpop.eup %7219  ;;  %v4300_v19 = vadd.f32 %v7214_v35, %v4299_v50  ;;  %7239 = vpow2.f32 %v4005_v63  ;;  %v3915_v35 = vmul.f32 1.442695, %v3389_v56  ;;  %v13832_v63 = vld [vmem:[#allocation261_spill] sm:$0xff]  ;;  %v4324_v58 = vadd.f32 %v11136_v43, %v4323_v8  ;;  %v13835_v56 = vld [vmem:[#allocation268_spill] sm:$0xff] }
 0x4a3   : > { %v11337_v52 = vpop.eup %7221  ;;  %7241 = vpow2.f32 %v11073_v46  ;;  %v3447_v32 = vsub.f32 %v13832_v63, %v11331_v42  ;;  %v13833_v46 = vld [vmem:[#allocation262_spill] sm:$0xff]  ;;  %v4331_v5 = vadd.f32 %v11166_v17, %v11162_v12  ;;  %v13836_v43 = vld [vmem:[#allocation272_spill] sm:$0xff]  ;;  %v13837_v8 = vld [vmem:[#allocation285_spill] sm:$0xff] }
 0x4a4   : > { %v11343_v62 = vpop.eup %7223  ;;  %v4301_v54 = vadd.f32 %v7216_v2, %v4300_v19  ;;  %7243 = vpow2.f32 %v4007_v36  ;;  %v3448_v13 = vsub.f32 %v13833_v46, %v11331_v42  ;;  %v3917_v36 = vmul.f32 1.442695, %v3390_v44  ;;  %v11367_v46 = vpop.permute.xlu0 %3164 }
 0x4a5   : > { %v7226_v50 = vpop.eup %7225  ;;  %7245 = vpow2.f32 %v3895_v9  ;;  %v3449_v19 = vsub.f32 %v13835_v56, %v11331_v42  ;;  %v3450_v9 = vsub.f32 %v13836_v43, %v11331_v42  ;;  %v3451_v23 = vsub.f32 %v13837_v8, %v11331_v42 }
 0x4a6   : > { %v11352_v3 = vpop.eup %7227  ;;  %4302 = vadd.xlane.f32.xlu0 %v4301_v54  ;;  %v4308_v2 = vadd.f32 %v7226_v50, %v11294_v6  ;;  %7247 = vpow2.f32 %v3897_v51  ;;  %v4031_v6 = vmul.f32 1.442695, %v3447_v32  ;;  %v13839_v51 = vld [vmem:[#allocation235_spill] sm:$0xff]  ;;  %v11365_v50 = vpop.permute.xlu1 %3159  ;;  %v11372_v56 = vadd.f32 %v11145_v53, %v4324_v58 }
 0x4a7   : > { %13834 = vst [vmem:[#allocation43_spill] sm:$0xff] %v11352_v3  ;;  %v7230_v59 = vpop.eup %7229  ;;  %7249 = vpow2.f32 %v3899_v47  ;;  %v3397_v44 = vsub.f32 %v13839_v51, %v11081_v45  ;;  %v4033_v43 = vmul.f32 1.442695, %v3448_v13  ;;  %v4332_v8 = vadd.f32 %v11172_v22, %v4331_v5  ;;  %v13844_v5 = vld [vmem:[#allocation270_spill] sm:$0xff] }
 0x4a8   : > { %v7232_v63 = vpop.eup %7231  ;;  %v4309_v54 = vadd.f32 %v7230_v59, %v4308_v2  ;;  %7251 = vpow2.f32 %v3901_v39  ;;  %v4035_v32 = vmul.f32 1.442695, %v3449_v19  ;;  %v13840_v2 = vld [vmem:[#allocation242_spill] sm:$0xff]  ;;  %v4037_v12 = vmul.f32 1.442695, %v3450_v9 }
 0x4a9   : > { %v11369_v47 = vpop.eup %7233  ;;  %7253 = vpow2.f32 %v4015_v25  ;;  %v3398_v59 = vsub.f32 %v13840_v2, %v11081_v45  ;;  %v4039_v3 = vmul.f32 1.442695, %v3451_v23  ;;  %v13841_v25 = vld [vmem:[#allocation269_spill] sm:$0xff]  ;;  %v13843_v22 = vsub.f32 %v13772_v33, %v11081_v45  ;;  %v13845_v23 = vld [vmem:[#allocation276_spill] sm:$0xff]  ;;  %v13847_v2 = vld [vmem:[#allocation283_spill] sm:$0xff] }
 0x4aa   : > { %v11375_v17 = vpop.eup %7235  ;;  %v4310_v39 = vadd.f32 %v7232_v63, %v4309_v54  ;;  %7255 = vpow2.f32 %v4017_v18  ;;  %v3455_v53 = vsub.f32 %v13841_v25, %v11365_v50  ;;  %v3931_v13 = vmul.f32 1.442695, %v3397_v44  ;;  %v11390_v63 = vpop.xlane.xlu0 %4095 }
 0x4ab   : > { %v11379_v51 = vpop.eup %7237  ;;  %7257 = vpow2.f32 %v4019_v34  ;;  %v3929_v18 = vmul.f32 1.442695, %v13843_v22  ;;  %v3456_v19 = vsub.f32 %v13844_v5, %v11365_v50  ;;  %v4333_v9 = vadd.f32 %v11180_v37, %v4332_v8  ;;  %v13848_v37 = vld [vmem:[#allocation290_spill] sm:$0xff] }
 0x4ac   : > { %v11383_v58 = vpop.eup %7239  ;;  %4311 = vadd.xlane.f32.xlu1 %v4310_v39  ;;  %7259 = vpow2.f32 %v4021_v16  ;;  %v3457_v54 = vsub.f32 %v13845_v23, %v11365_v50  ;;  %v4340_v16 = vadd.f32 %v11203_v11, %v11198_v38  ;;  %v11397_v39 = vpop.xlane.xlu1 %4086  ;;  %v3933_v44 = vmul.f32 1.442695, %v3398_v59 }
 0x4ad   : > { %13842 = vst [vmem:[#allocation22_spill] sm:$0xff] %v11383_v58  ;;  %v7242_v34 = vpop.eup %7241  ;;  %7261 = vpow2.f32 %v3913_v24  ;;  %v3458_v25 = vsub.f32 %v13847_v2, %v11365_v50  ;;  %v3459_v8 = vsub.f32 %v13848_v37, %v11365_v50  ;;  %v4047_v38 = vmul.f32 1.442695, %v3455_v53  ;;  %v13850_v58 = vld [vmem:[#allocation50_spill] sm:$0xff] }
 0x4ae   : > { %v11399_v45 = vpop.eup %7243  ;;  %v4315_v33 = vadd.f32 %v7242_v34, %v11318_v49  ;;  %7263 = vpow2.f32 %v4023_v27  ;;  %v13851_v49 = vld [vmem:[#allocation243_spill] sm:$0xff]  ;;  %v11411_v34 = vadd.f32 %v11191_v15, %v4333_v9  ;;  %v4341_v2 = vadd.f32 %v11209_v61, %v4340_v16  ;;  %v13853_v15 = vld [vmem:[#allocation241_spill] sm:$0xff] }
 0x4af   : > { %13846 = vst [vmem:[#allocation95_spill] sm:$0xff] %v11399_v45  ;;  %v7246_v24 = vpop.eup %7245  ;;  %7265 = vpow2.f32 %v3915_v35  ;;  %v4049_v45 = vmul.f32 1.442695, %v3456_v19  ;;  %v3405_v27 = vsub.f32 %v13851_v49, %v13850_v58  ;;  %v4051_v35 = vmul.f32 1.442695, %v3457_v54  ;;  %v13855_v61 = vld [vmem:[#allocation277_spill] sm:$0xff] }
 0x4b0   : > { %v7248_v11 = vpop.eup %7247  ;;  %v4316_v23 = vadd.f32 %v7246_v24, %v4315_v33  ;;  %7267 = vpow2.f32 %v3917_v36  ;;  %v11414_v37 = vpop.xlane.xlu1 %4113  ;;  %v4053_v53 = vmul.f32 1.442695, %v3458_v25  ;;  %v13852_v36 = vld [vmem:[#allocation251_spill] sm:$0xff]  ;;  %v13854_v9 = vsub.f32 %v13853_v15, %v13850_v58 }
 0x4b1   : > { %v7250_v59 = vpop.eup %7249  ;;  %7269 = vpow2.f32 %v4031_v6  ;;  %v3406_v19 = vsub.f32 %v13852_v36, %v13850_v58  ;;  %v11418_v33 = vpop.xlane.xlu0 %4104  ;;  %v4055_v6 = vmul.f32 1.442695, %v3459_v8  ;;  %v3463_v16 = vsub.f32 %v13855_v61, %v11367_v46  ;;  %v13857_v8 = vld [vmem:[#allocation284_spill] sm:$0xff] }
 0x4b2   : > { %v7252_v42 = vpop.eup %7251  ;;  %v4317_v5 = vadd.f32 %v7248_v11, %v4316_v23  ;;  %7271 = vpow2.f32 %v4033_v43  ;;  %v3945_v54 = vmul.f32 1.442695, %v13854_v9  ;;  %v3947_v25 = vmul.f32 1.442695, %v3405_v27  ;;  %v13856_v11 = vld [vmem:[#allocation278_spill] sm:$0xff]  ;;  %v13859_v27 = vld [vmem:[#allocation289_spill] sm:$0xff] }
 0x4b3   : > { %v11420_v24 = vpop.eup %7253  ;;  %7273 = vpow2.f32 %v4035_v32  ;;  %v3464_v23 = vsub.f32 %v13856_v11, %v11367_v46  ;;  %v4342_v32 = vadd.f32 %v11217_v28, %v4341_v2  ;;  %v3465_v58 = vsub.f32 %v13857_v8, %v11367_v46  ;;  %v13860_v28 = vld [vmem:[#allocation294_spill] sm:$0xff] }
 0x4b4   : > { %v11427_v49 = vpop.eup %7255  ;;  %v4318_v43 = vadd.f32 %v7250_v59, %v4317_v5  ;;  %7275 = vpow2.f32 %v4037_v12  ;;  %v4349_v15 = vadd.f32 %v11249_v41, %v11240_v31  ;;  %v11438_v9 = vpop.xlane.xlu1 %4131  ;;  %v3949_v5 = vmul.f32 1.442695, %v3406_v19  ;;  %v13862_v19 = vld [vmem:[#allocation252_spill] sm:$0xff] }
 0x4b5   : > { %v11431_v36 = vpop.eup %7257  ;;  %7277 = vpow2.f32 %v3929_v18  ;;  %v3466_v59 = vsub.f32 %v13859_v27, %v11367_v46  ;;  %v4123_v11 = vpop.xlane.xlu0 %4122  ;;  %v3467_v2 = vsub.f32 %v13860_v28, %v11367_v46  ;;  %v4063_v31 = vmul.f32 1.442695, %v3463_v16 }
 0x4b6   : > { %v11440_v61 = vpop.eup %7259  ;;  %v4319_v12 = vadd.f32 %v7252_v42, %v4318_v43  ;;  %7279 = vpow2.f32 %v4039_v3  ;;  %v4065_v3 = vmul.f32 1.442695, %v3464_v23  ;;  %v3413_v43 = vsub.f32 %v13862_v19, %v11151_v57 }
 0x4b7   : > { %13858 = vst [vmem:[#allocation52_spill] sm:$0xff] %v11440_v61  ;;  %v7262_v18 = vpop.eup %7261  ;;  %7281 = vpow2.f32 %v3931_v13  ;;  %v11454_v13 = vadd.f32 %v11226_v26, %v4342_v32  ;;  %v4067_v28 = vmul.f32 1.442695, %v3465_v58  ;;  %v4350_v61 = vadd.f32 %v11255_v20, %v4349_v15  ;;  %v13863_v26 = vld [vmem:[#allocation258_spill] sm:$0xff] }
 0x4b8   : > { %v11448_v41 = vpop.eup %7263  ;;  %4320 = vadd.xlane.f32.xlu0 %v4319_v12  ;;  %v4326_v42 = vadd.f32 %v7262_v18, %v11372_v56  ;;  %7283 = vpow2.f32 %v3933_v44  ;;  %v4150_v22 = vpop.xlane.xlu1 %4149  ;;  %v4069_v12 = vmul.f32 1.442695, %v3466_v59  ;;  %v4358_v56 = vadd.f32 %v11287_v48, %v11279_v29  ;;  %v13865_v29 = vld [vmem:[#allocation55_spill] sm:$0xff] }
 0x4b9   : > { %v7266_v27 = vpop.eup %7265  ;;  %7285 = vpow2.f32 %v4047_v38  ;;  %v4141_v44 = vpop.xlane.xlu0 %4140  ;;  %v11461_v18 = vmul.f32 1.442695, %v3467_v2  ;;  %v3414_v38 = vsub.f32 %v13863_v26, %v11151_v57  ;;  %v13864_v20 = vsub.f32 %v13786_v7, %v11151_v57  ;;  %v13866_v48 = vld [vmem:[#allocation259_spill] sm:$0xff]  ;;  %v13867_v2 = vld [vmem:[#allocation266_spill] sm:$0xff] }
 0x4ba   : > { %v7268_v16 = vpop.eup %7267  ;;  %v4327_v8 = vadd.f32 %v7266_v27, %v4326_v42  ;;  %7287 = vpow2.f32 %v4049_v45  ;;  %v11470_v15 = vmul.f32 1.442695, %v3413_v43  ;;  %v3421_v59 = vsub.f32 %v13866_v48, %v13865_v29  ;;  %v13868_v27 = vld [vmem:[#allocation59_spill] sm:$0xff] }
 0x4bb   : > { %v11459_v23 = vpop.eup %7269  ;;  %7289 = vpow2.f32 %v4051_v35  ;;  %v3961_v32 = vmul.f32 1.442695, %v13864_v20  ;;  %v4351_v35 = vadd.f32 %v11263_v1, %v4350_v61  ;;  %v3422_v19 = vsub.f32 %v13867_v2, %v13865_v29  ;;  %v13871_v61 = vld [vmem:[#allocation65_spill] sm:$0xff]  ;;  %v13872_v20 = vld [vmem:[#allocation19_spill] sm:$0xff] }
 0x4bc   : > { %v11468_v58 = vpop.eup %7271  ;;  %v4328_v45 = vadd.f32 %v7268_v16, %v4327_v8  ;;  %7291 = vpow2.f32 %v4053_v53  ;;  %v4422_v57 = vadd.f32 %v11390_v63, %v13868_v27  ;;  %v4359_v53 = vadd.f32 %v11291_v0, %v4358_v56  ;;  %v13869_v8 = vld [vmem:[#allocation267_spill] sm:$0xff]  ;;  %v13870_v16 = vld [vmem:[#allocation53_spill] sm:$0xff]  ;;  %v4168_v0 = vpop.xlane.xlu1 %4167 }
 0x4bd   : > { %v11474_v42 = vpop.eup %7273  ;;  %7293 = vpow2.f32 %v3945_v54  ;;  %v3429_v43 = vsub.f32 %v13869_v8, %v11228_v60  ;;  %v4421_v54 = vadd.f32 %v11397_v39, %v13870_v16  ;;  %v4159_v26 = vpop.xlane.xlu0 %4158  ;;  %v4423_v63 = vadd.f32 %v11418_v33, %v13871_v61  ;;  %v13878_v16 = vld [vmem:[#allocation274_spill] sm:$0xff] }
 0x4be   : > { %v11481_v7 = vpop.eup %7275  ;;  %4329 = vadd.xlane.f32.xlu1 %v4328_v45  ;;  %7295 = vpow2.f32 %v4055_v6  ;;  %4461 = vst.msk [vmem:[#allocation3 + $0x8] sm:$0xff] %vm4459_vm1, %v4422_v57  ;;  %v4424_v45 = vadd.f32 %v11414_v37, %v13872_v20  ;;  %v13873_v6 = vld [vmem:[#allocation20_spill] sm:$0xff]  ;;  %v4367_v39 = vadd.f32 %v11333_v40, %v11328_v21  ;;  %v13875_v37 = vld [vmem:[#allocation94_spill] sm:$0xff]  ;;  %v13877_v57 = vld [vmem:[#allocation39_spill] sm:$0xff]  ;;  %v3965_v61 = vmul.f32 1.442695, %v3414_v38 }
 0x4bf   : > { %v7278_v1 = vpop.eup %7277  ;;  %7297 = vpow2.f32 %v3947_v25  ;;  %v4425_v48 = vadd.f32 %v4123_v11, %v13873_v6  ;;  %4460 = vst.msk [vmem:[#allocation3] sm:$0xff] %vm4459_vm1, %v4421_v54  ;;  %v13874_v25 = vld [vmem:[#allocation31_spill] sm:$0xff]  ;;  %4462 = vst.msk [vmem:[#allocation3 + $0x10] sm:$0xff] %vm4459_vm1, %v4423_v63  ;;  %v4427_v11 = vadd.f32 %v4141_v44, %v13875_v37  ;;  %v4429_v8 = vadd.f32 %v4159_v26, %v13877_v57  ;;  %v13880_v63 = vld [vmem:[#allocation257_spill] sm:$0xff] }
 0x4c0   : > { %v11494_v56 = vpop.eup %7279  ;;  %v4335_v2 = vadd.f32 %v7278_v1, %v11411_v34  ;;  %7299 = vpow2.f32 %v3949_v5  ;;  %v4426_v27 = vadd.f32 %v11438_v9, %v13874_v25  ;;  %4463 = vst.msk [vmem:[#allocation3 + $0x18] sm:$0xff] %vm4459_vm1, %v4424_v45  ;;  %v13876_v34 = vld [vmem:[#allocation37_spill] sm:$0xff]  ;;  %v3430_v9 = vsub.f32 %v13878_v16, %v11228_v60  ;;  %v13892_v16 = vld [vmem:[#allocation288_spill] sm:$0xff] }
 0x4c1   : > { %v7282_v33 = vpop.eup %7281  ;;  %7301 = vpow2.f32 %v4063_v31  ;;  %4464 = vst.msk [vmem:[#allocation3 + $0x20] sm:$0xff] %vm4459_vm1, %v4425_v48  ;;  %v4428_v5 = vadd.f32 %v4150_v22, %v13876_v34  ;;  %v13879_v31 = vld [vmem:[#allocation41_spill] sm:$0xff]  ;;  %v13881_v44 = vsub.f32 %v13880_v63, %v13865_v29  ;;  %v4360_v26 = vadd.f32 %v11300_v10, %v4359_v53  ;;  %4466 = vst.msk [vmem:[#allocation3 + $0x30] sm:$0xff] %vm4459_vm1, %v4427_v11 }
 0x4c2   : > { %v7284_v21 = vpop.eup %7283  ;;  %v4336_v40 = vadd.f32 %v7282_v33, %v4335_v2  ;;  %7303 = vpow2.f32 %v4065_v3  ;;  %4465 = vst.msk [vmem:[#allocation3 + $0x28] sm:$0xff] %vm4459_vm1, %v4426_v27  ;;  %v4430_v54 = vadd.f32 %v4168_v0, %v13879_v31  ;;  %4468 = vst.msk [vmem:[#allocation3 + $0x40] sm:$0xff] %vm4459_vm1, %v4429_v8  ;;  %v4368_v45 = vadd.f32 %v11337_v52, %v4367_v39  ;;  %v13882_v53 = vld [vmem:[#allocation265_spill] sm:$0xff]  ;;  %v13888_v27 = vld [vmem:[#allocation282_spill] sm:$0xff] }
 0x4c3   : > { %v11512_v1 = vpop.eup %7285  ;;  %7305 = vpow2.f32 %v4067_v28  ;;  %v3977_v22 = vmul.f32 1.442695, %v13881_v44  ;;  %4467 = vst.msk [vmem:[#allocation3 + $0x38] sm:$0xff] %vm4459_vm1, %v4428_v5  ;;  %v4376_v28 = vadd.f32 %v11375_v17, %v11369_v47  ;;  %v3979_v10 = vmul.f32 1.442695, %v3421_v59  ;;  %v13884_v59 = vld [vmem:[#allocation275_spill] sm:$0xff] }
 0x4c4   : > { %v11521_v3 = vpop.eup %7287  ;;  %v4337_v20 = vadd.f32 %v7284_v21, %v4336_v40  ;;  %7307 = vpow2.f32 %v4069_v12  ;;  %4469 = vst.msk [vmem:[#allocation3 + $0x48] sm:$0xff] %vm4459_vm1, %v4430_v54  ;;  %v3981_v29 = vmul.f32 1.442695, %v3422_v19  ;;  %v13883_v6 = vsub.f32 %v13882_v53, %v11228_v60  ;;  %v13885_v60 = vld [vmem:[#allocation281_spill] sm:$0xff] }
 0x4c5   : > { %v11527_v38 = vpop.eup %7289  ;;  %7309 = vpow2.f32 %v3961_v32  ;;  %v4352_v52 = vadd.f32 %v11268_v55, %v4351_v35  ;;  %v3995_v12 = vmul.f32 1.442695, %v3429_v43  ;;  %v3997_v17 = vmul.f32 1.442695, %v3430_v9  ;;  %v13891_v40 = vld [vmem:[#allocation21_spill] sm:$0xff] }
 0x4c6   : > { %v3993_v48 = vmul.f32 1.442695, %v13883_v6  ;;  %v11532_v0 = vpop.eup %7291  ;;  %4338 = vadd.xlane.f32.xlu0 %v4337_v20  ;;  %7311 = vpow2.f32 %v11461_v18  ;;  %v11538_v32 = vadd.f32 %v11306_v30, %v4360_v26  ;;  %v3437_v19 = vsub.f32 %v13884_v59, %v11261_v4 }
 0x4c7   : > { %v7294_v47 = vpop.eup %7293  ;;  %7313 = vpow2.f32 %v11470_v15  ;;  %v3438_v2 = vsub.f32 %v13885_v60, %v11261_v4  ;;  %v4369_v55 = vadd.f32 %v11343_v62, %v4368_v45  ;;  %v4377_v35 = vadd.f32 %v11379_v51, %v4376_v28  ;;  %v13886_v15 = vld [vmem:[#allocation273_spill] sm:$0xff]  ;;  %v13889_v62 = vld [vmem:[#allocation287_spill] sm:$0xff]  ;;  %v13890_v51 = vld [vmem:[#allocation32_spill] sm:$0xff] }
 0x4c8   : > { %v11544_v39 = vpop.eup %7295  ;;  %v4344_v18 = vadd.f32 %v7294_v47, %v11454_v13  ;;  %7315 = vpow2.f32 %v3977_v22  ;;  %v13887_v30 = vsub.f32 %v13886_v15, %v11261_v4  ;;  %v3445_v33 = vsub.f32 %v13888_v27, %v11298_v14  ;;  %v13895_v22 = vld [vmem:[#allocation280_spill] sm:$0xff]  ;;  %v13900_v60 = vld [vmem:[#allocation27_spill] sm:$0xff]  ;;  %v13902_v15 = vld [vmem:[#allocation293_spill] sm:$0xff] }
 0x4c9   : > { %v7298_v43 = vpop.eup %7297  ;;  %7317 = vpow2.f32 %v3965_v61  ;;  %v4385_v37 = vadd.f32 %v11427_v49, %v11420_v24  ;;  %v4186_v11 = vpop.xlane.xlu1 %4185  ;;  %v3446_v5 = vsub.f32 %v13889_v62, %v11298_v14  ;;  %v4011_v21 = vmul.f32 1.442695, %v3437_v19  ;;  %v13893_v24 = vld [vmem:[#allocation43_spill] sm:$0xff]  ;;  %v13894_v61 = vld [vmem:[#allocation22_spill] sm:$0xff]  ;;  %v13897_v28 = vld [vmem:[#allocation292_spill] sm:$0xff] }
 0x4ca   : > { %v4009_v25 = vmul.f32 1.442695, %v13887_v30  ;;  %v7300_v34 = vpop.eup %7299  ;;  %v4345_v13 = vadd.f32 %v7298_v43, %v4344_v18  ;;  %7319 = vpow2.f32 %v3979_v10  ;;  %v4432_v57 = vadd.f32 %v4186_v11, %v13890_v51  ;;  %v13903_v27 = vld [vmem:[#allocation52_spill] sm:$0xff] }
 0x4cb   : > { %v7302_v8 = vpop.eup %7301  ;;  %7321 = vpow2.f32 %v3993_v48  ;;  %v4013_v4 = vmul.f32 1.442695, %v3438_v2  ;;  %v3453_v9 = vsub.f32 %v13892_v16, %v13891_v40  ;;  %v4370_v49 = vadd.f32 %v13893_v24, %v4369_v55  ;;  %v13898_v48 = vld [vmem:[#allocation286_spill] sm:$0xff] }
 0x4cc   : > { %v7304_v31 = vpop.eup %7303  ;;  %v4346_v54 = vadd.f32 %v7300_v34, %v4345_v13  ;;  %7323 = vpow2.f32 %v3981_v29  ;;  %v4378_v63 = vadd.f32 %v13894_v61, %v4377_v35  ;;  %4471 = vst.msk [vmem:[#allocation3 + $0x58] sm:$0xff] %vm4459_vm1, %v4432_v57  ;;  %v13896_v26 = vsub.f32 %v13895_v22, %v11298_v14  ;;  %v13901_v35 = vld [vmem:[#allocation95_spill] sm:$0xff]  ;;  %v13908_v24 = vld [vmem:[#allocation34_spill] sm:$0xff] }
 0x4cd   : > { %v11564_v44 = vpop.eup %7305  ;;  %7325 = vpow2.f32 %v3995_v12  ;;  %v4386_v45 = vadd.f32 %v11431_v36, %v4385_v37  ;;  %v3454_v10 = vsub.f32 %v13897_v28, %v13891_v40  ;;  %v4027_v29 = vmul.f32 1.442695, %v3445_v33  ;;  %v13904_v37 = vld [vmem:[#allocation296_spill] sm:$0xff] }
 0x4ce   : > { %v4025_v20 = vmul.f32 1.442695, %v13896_v26  ;;  %v11572_v53 = vpop.eup %7307  ;;  %4347 = vadd.xlane.f32.xlu1 %v4346_v54  ;;  %7327 = vpow2.f32 %v4009_v25  ;;  %v4029_v6 = vmul.f32 1.442695, %v3446_v5  ;;  %v13899_v47 = vsub.f32 %v13898_v48, %v13891_v40  ;;  %v4177_v12 = vpop.xlane.xlu0 %4176 }
 0x4cf   : > { %v7310_v19 = vpop.eup %7309  ;;  %7329 = vpow2.f32 %v3997_v17  ;;  %v4043_v14 = vmul.f32 1.442695, %v3453_v9  ;;  %v4394_v36 = vadd.f32 %v11468_v58, %v11459_v23  ;;  %v4431_v2 = vadd.f32 %v4177_v12, %v13900_v60 }
 0x4d0   : > { %v4041_v59 = vmul.f32 1.442695, %v13899_v47  ;;  %v11580_v18 = vpop.eup %7311  ;;  %v4353_v55 = vadd.f32 %v7310_v19, %v4352_v52  ;;  %7331 = vpow2.f32 %v4011_v21  ;;  %v4379_v43 = vadd.f32 %v13901_v35, %v4378_v63  ;;  %v13905_v52 = vld [vmem:[#allocation291_spill] sm:$0xff]  ;;  %v13907_v21 = vld [vmem:[#allocation297_spill] sm:$0xff] }
 0x4d1   : > { %v3461_v30 = vsub.f32 %v13902_v15, %v11365_v50  ;;  %v7314_v25 = vpop.eup %7313  ;;  %7333 = vpow2.f32 %v4025_v20  ;;  %v4387_v33 = vadd.f32 %v13903_v27, %v4386_v45  ;;  %v4045_v17 = vmul.f32 1.442695, %v3454_v10  ;;  %4470 = vst.msk [vmem:[#allocation3 + $0x50] sm:$0xff] %vm4459_vm1, %v4431_v2  ;;  %v13910_v20 = vld [vmem:[#allocation295_spill] sm:$0xff]  ;;  %v13912_v19 = vld [vmem:[#allocation33_spill] sm:$0xff] }
 0x4d2   : > { %v3462_v11 = vsub.f32 %v13904_v37, %v11365_v50  ;;  %v7316_v23 = vpop.eup %7315  ;;  %v4354_v58 = vadd.f32 %v7314_v25, %v4353_v55  ;;  %7335 = vpow2.f32 %v4013_v4  ;;  %v13906_v34 = vsub.f32 %v13905_v52, %v11365_v50  ;;  %v13914_v25 = vld [vmem:[#allocation300_spill] sm:$0xff] }
 0x4d3   : > { %v4403_v62 = vadd.f32 %v11521_v3, %v11512_v1  ;;  %v7318_v5 = vpop.eup %7317  ;;  %v4362_v51 = vadd.f32 %v7316_v23, %v11538_v32  ;;  %7337 = vpow2.f32 %v4027_v29  ;;  %v4395_v57 = vadd.f32 %v11474_v42, %v4394_v36  ;;  %v4204_v16 = vpop.xlane.xlu1 %4203  ;;  %v13909_v1 = vld [vmem:[#allocation298_spill] sm:$0xff] }
 0x4d4   : > { %v4057_v13 = vmul.f32 1.442695, %v13906_v34  ;;  %v3469_v40 = vsub.f32 %v13907_v21, %v11367_v46  ;;  %v7320_v9 = vpop.eup %7319  ;;  %v4355_v54 = vadd.f32 %v7318_v5, %v4354_v58  ;;  %7339 = vpow2.f32 %v4041_v59  ;;  %v13917_v5 = vld [vmem:[#allocation302_spill] sm:$0xff] }
 0x4d5   : > { %v4059_v4 = vmul.f32 1.442695, %v3461_v30  ;;  %v4434_v50 = vadd.f32 %v4204_v16, %v13908_v24  ;;  %v7322_v61 = vpop.eup %7321  ;;  %v4363_v63 = vadd.f32 %v7320_v9, %v4362_v51  ;;  %7341 = vpow2.f32 %v4029_v6  ;;  %v13913_v30 = vld [vmem:[#allocation299_spill] sm:$0xff] }
 0x4d6   : > { %v3470_v3 = vsub.f32 %v13909_v1, %v11367_v46  ;;  %v4412_v32 = vadd.f32 %v7304_v31, %v7302_v8  ;;  %v7324_v22 = vpop.eup %7323  ;;  %4356 = vadd.xlane.f32.xlu0 %v4355_v54  ;;  %v4371_v42 = vadd.f32 %v7322_v61, %v4370_v49  ;;  %7343 = vpow2.f32 %v4043_v14 }
 0x4d7   : > { %v4404_v26 = vadd.f32 %v11527_v38, %v4403_v62  ;;  %v13911_v45 = vsub.f32 %v13910_v20, %v11367_v46  ;;  %4473 = vst.msk [vmem:[#allocation3 + $0x68] sm:$0xff] %vm4459_vm1, %v4434_v50  ;;  %v7326_v10 = vpop.eup %7325  ;;  %v4364_v29 = vadd.f32 %v7324_v22, %v4363_v63  ;;  %v4396_v6 = vadd.f32 %v11481_v7, %v4395_v57  ;;  %v13916_v62 = vld [vmem:[#allocation301_spill] sm:$0xff]  ;;  %v13919_v50 = vld [vmem:[#allocation24_spill] sm:$0xff] }
 0x4d8   : > { %7345 = vpow2.f32 %v4057_v13  ;;  %v4061_v48 = vmul.f32 1.442695, %v3462_v11  ;;  %v7328_v47 = vpop.eup %7327  ;;  %v4372_v8 = vadd.f32 %v7326_v10, %v4371_v42  ;;  %v4388_v31 = vadd.f32 %v11448_v41, %v4387_v33  ;;  %v4195_v59 = vpop.xlane.xlu0 %4194  ;;  %v2801_v42 = vld [vmem:[#allocation3 + $0x70] sm:$0xff] }
 0x4d9   : > { %v4073_v28 = vmul.f32 1.442695, %v13911_v45  ;;  %7347 = vpow2.f32 %v4045_v17  ;;  %v4075_v49 = vmul.f32 1.442695, %v3469_v40  ;;  %v7330_v38 = vpop.eup %7329  ;;  %4365 = vadd.xlane.f32.xlu1 %v4364_v29  ;;  %v4380_v12 = vadd.f32 %v7328_v47, %v4379_v43  ;;  %v2803_v47 = vld [vmem:[#allocation3 + $0x80] sm:$0xff] }
 0x4da   : > { %7349 = vpow2.f32 %v4059_v4  ;;  %v4413_v46 = vadd.f32 %v11564_v44, %v4412_v32  ;;  %v4433_v14 = vadd.f32 %v4195_v59, %v13912_v19  ;;  %v7332_v36 = vpop.eup %7331  ;;  %v4373_v60 = vadd.f32 %v7330_v38, %v4372_v8  ;;  %v13921_v8 = vld [vmem:[#allocation303_spill] sm:$0xff]  ;;  %v2804_v19 = vld [vmem:[#allocation3 + $0x88] sm:$0xff] }
 0x4db   : > { %v4405_v7 = vadd.f32 %v11532_v0, %v4404_v26  ;;  %7351 = vpow2.f32 %v4073_v28  ;;  %v4077_v2 = vmul.f32 1.442695, %v3470_v3  ;;  %v7334_v55 = vpop.eup %7333  ;;  %v4381_v35 = vadd.f32 %v7332_v36, %v4380_v12  ;;  %v13920_v28 = vld [vmem:[#allocation23_spill] sm:$0xff]  ;;  %v13924_v36 = vld [vmem:[#allocation305_spill] sm:$0xff] }
 0x4dc   : > { %v4397_v41 = vadd.f32 %v11494_v56, %v4396_v6  ;;  %7353 = vpow2.f32 %v4061_v48  ;;  %4472 = vst.msk [vmem:[#allocation3 + $0x60] sm:$0xff] %vm4459_vm1, %v4433_v14  ;;  %v7336_v15 = vpop.eup %7335  ;;  %4374 = vadd.xlane.f32.xlu0 %v4373_v60  ;;  %v4389_v43 = vadd.f32 %v7334_v55, %v4388_v31  ;;  %v13915_v27 = vsub.f32 %v13913_v30, %v13914_v25  ;;  %v13922_v31 = vld [vmem:[#allocation304_spill] sm:$0xff]  ;;  %v13925_v60 = vld [vmem:[#allocation306_spill] sm:$0xff] }
 0x4dd   : > { %7355 = vpow2.f32 %v4075_v49  ;;  %v7338_v44 = vpop.eup %7337  ;;  %v4382_v17 = vadd.f32 %v7336_v15, %v4381_v35  ;;  %v4414_v0 = vadd.f32 %v11572_v53, %v4413_v46  ;;  %v4406_v23 = vadd.f32 %v11544_v39, %v4405_v7  ;;  %v2802_v53 = vld [vmem:[#allocation3 + $0x78] sm:$0xff]  ;;  %v13928_v30 = vld [vmem:[#allocation308_spill] sm:$0xff] }
 0x4de   : > { %v2895_v33 = vmul.f32 1.442695, %v13915_v27  ;;  %v7340_v37 = vpop.eup %7339  ;;  %v4390_v11 = vadd.f32 %v7338_v44, %v4389_v43  ;;  %7357 = vpow2.f32 %v4077_v2  ;;  %v13918_v51 = vsub.f32 %v13916_v62, %v13917_v5  ;;  %v2805_v43 = vld [vmem:[#allocation3 + $0x90] sm:$0xff]  ;;  %v13927_v44 = vld [vmem:[#allocation307_spill] sm:$0xff] }
 0x4df   : > { %v7342_v56 = vpop.eup %7341  ;;  %4383 = vadd.xlane.f32.xlu1 %v4382_v17  ;;  %v4398_v58 = vadd.f32 %v7340_v37, %v4397_v41  ;;  %v4415_v40 = vadd.f32 %v11580_v18, %v4414_v0  ;;  %v2954_v61 = vmul.f32 %v13919_v50, %v2802_v53  ;;  %v2953_v10 = vmul.f32 %v13920_v28, %v2801_v42  ;;  %v2806_v37 = vld [vmem:[#allocation3 + $0x98] sm:$0xff]  ;;  %v13936_v50 = vld [vmem:[#allocation313_spill] sm:$0xff]  ;;  %v2809_v42 = vld [vmem:[#allocation3 + $0xb0] sm:$0xff] }
 0x4e0   : > { %v7344_v52 = vpop.eup %7343  ;;  %v4391_v34 = vadd.f32 %v7342_v56, %v4390_v11  ;;  %7359 = vpow2.f32 %v2895_v33  ;;  %v2897_v57 = vmul.f32 1.442695, %v13918_v51  ;;  %v13923_v49 = vsub.f32 %v13921_v8, %v13922_v31  ;;  %v13930_v56 = vld [vmem:[#allocation309_spill] sm:$0xff]  ;;  %v2807_v51 = vld [vmem:[#allocation3 + $0xa0] sm:$0xff]  ;;  %v13943_v31 = vld [vmem:[#allocation318_spill] sm:$0xff] }
 0x4e1   : > { %v4399_v21 = vadd.f32 %v7344_v52, %v4398_v58  ;;  %v13926_v7 = vsub.f32 %v13924_v36, %v13925_v60  ;;  %v13929_v25 = vsub.f32 %v13927_v44, %v13928_v30  ;;  %v13931_v58 = vld [vmem:[#allocation310_spill] sm:$0xff]  ;;  %v13942_v8 = vld [vmem:[#allocation317_spill] sm:$0xff]  ;;  %v13945_v36 = vld [vmem:[#allocation319_spill] sm:$0xff] }
 0x4e2   : > { %v7346_v13 = vpop.eup %7345  ;;  %4392 = vadd.xlane.f32.xlu0 %v4391_v34  ;;  %7361 = vpow2.f32 %v2897_v57  ;;  %v2899_v59 = vmul.f32 1.442695, %v13923_v49  ;;  %v13932_v52 = vsub.f32 %v13930_v56, %v13931_v58  ;;  %v13944_v49 = vsub.f32 %v13942_v8, %v13943_v31  ;;  %v13946_v60 = vld [vmem:[#allocation320_spill] sm:$0xff]  ;;  %v13948_v44 = vld [vmem:[#allocation321_spill] sm:$0xff]  ;;  %v13949_v30 = vld [vmem:[#allocation322_spill] sm:$0xff] }
 0x4e3   : > { %v7348_v16 = vpop.eup %7347  ;;  %v4407_v9 = vadd.f32 %v7346_v13, %v4406_v23  ;;  %v2901_v2 = vmul.f32 1.442695, %v13926_v7  ;;  %v2903_v27 = vmul.f32 1.442695, %v13929_v25  ;;  %v13947_v7 = vsub.f32 %v13945_v36, %v13946_v60  ;;  %v2813_v58 = vld [vmem:[#allocation3 + $0xd0] sm:$0xff]  ;;  %v13972_v60 = vld [vmem:[#allocation337_spill] sm:$0xff] }
 0x4e4   : > { %v7350_v39 = vpop.eup %7349  ;;  %v4400_v54 = vadd.f32 %v7348_v16, %v4399_v21  ;;  %7363 = vpow2.f32 %v2899_v59  ;;  %v2905_v34 = vmul.f32 1.442695, %v13932_v52  ;;  %v13933_v21 = vld [vmem:[#allocation311_spill] sm:$0xff]  ;;  %v2913_v59 = vmul.f32 1.442695, %v13944_v49  ;;  %v2817_v36 = vld [vmem:[#allocation3 + $0xf0] sm:$0xff] }
 0x4e5   : > { %v7352_v4 = vpop.eup %7351  ;;  %v4408_v24 = vadd.f32 %v7350_v39, %v4407_v9  ;;  %v4222_v3 = vpop.xlane.xlu1 %4221  ;;  %7365 = vpow2.f32 %v2901_v2  ;;  %v2915_v2 = vmul.f32 1.442695, %v13947_v7  ;;  %v13950_v25 = vsub.f32 %v13948_v44, %v13949_v30  ;;  %v13973_v7 = vld [vmem:[#allocation338_spill] sm:$0xff]  ;;  %v13976_v44 = vld [vmem:[#allocation340_spill] sm:$0xff] }
 0x4e6   : > { %v7354_v63 = vpop.eup %7353  ;;  %4401 = vadd.xlane.f32.xlu1 %v4400_v54  ;;  %v4416_v1 = vadd.f32 %v7352_v4, %v4415_v40  ;;  %v4436_v26 = vadd.f32 %v4222_v3, %v2954_v61  ;;  %7367 = vpow2.f32 %v2903_v27  ;;  %v13934_v40 = vld [vmem:[#allocation312_spill] sm:$0xff]  ;;  %v2808_v4 = vld [vmem:[#allocation3 + $0xa8] sm:$0xff]  ;;  %v13937_v61 = vld [vmem:[#allocation314_spill] sm:$0xff] }
 0x4e7   : > { %v7356_v32 = vpop.eup %7355  ;;  %v4409_v22 = vadd.f32 %v7354_v63, %v4408_v24  ;;  %7369 = vpow2.f32 %v2905_v34  ;;  %v13935_v53 = vsub.f32 %v13933_v21, %v13934_v40  ;;  %v13938_v63 = vsub.f32 %v13936_v50, %v13937_v61 }
 0x4e8   : > { %v4417_v18 = vadd.f32 %v7356_v32, %v4416_v1  ;;  %v7358_v20 = vpop.eup %7357  ;;  %4475 = vst.msk [vmem:[#allocation3 + $0x78] sm:$0xff] %vm4459_vm1, %v4436_v26  ;;  %v2917_v27 = vmul.f32 1.442695, %v13950_v25 }
 0x4e9   : > { %4410 = vadd.xlane.f32.xlu0 %v4409_v22  ;;  %v2907_v16 = vmul.f32 1.442695, %v13935_v53  ;;  %v2909_v1 = vmul.f32 1.442695, %v13938_v63 }
 0x4ea   : > { %v4418_v45 = vadd.f32 %v7358_v20, %v4417_v18  ;;  %v4213_v29 = vpop.xlane.xlu0 %4212  ;;  %v7360_v6 = vpop.eup %7359  ;;  %v13939_v18 = vld [vmem:[#allocation315_spill] sm:$0xff]  ;;  %v13940_v20 = vld [vmem:[#allocation316_spill] sm:$0xff] }
 0x4eb   : > { %v4435_v48 = vadd.f32 %v4213_v29, %v2953_v10  ;;  %v2955_v38 = vmul.f32 %v7360_v6, %v2803_v47  ;;  %7371 = vpow2.f32 %v2907_v16 }
 0x4ec   : > { %4419 = vadd.xlane.f32.xlu1 %v4418_v45  ;;  %v7362_v12 = vpop.eup %7361  ;;  %7373 = vpow2.f32 %v2909_v1  ;;  %v13941_v45 = vsub.f32 %v13939_v18, %v13940_v20  ;;  %v13963_v20 = vld [vmem:[#allocation331_spill] sm:$0xff] }
 0x4ed   : > { %4474 = vst.msk [vmem:[#allocation3 + $0x70] sm:$0xff] %vm4459_vm1, %v4435_v48  ;;  %v2956_v55 = vmul.f32 %v7362_v12, %v2804_v19  ;;  %v2810_v48 = vld [vmem:[#allocation3 + $0xb8] sm:$0xff]  ;;  %v2811_v19 = vld [vmem:[#allocation3 + $0xc0] sm:$0xff] }
 0x4ee   : > { %v7364_v15 = vpop.eup %7363  ;;  %v2911_v28 = vmul.f32 1.442695, %v13941_v45  ;;  %v13964_v45 = vld [vmem:[#allocation332_spill] sm:$0xff] }
 0x4ef   : > { %v4231_v46 = vpop.xlane.xlu0 %4230  ;;  %v2957_v33 = vmul.f32 %v7364_v15, %v2805_v43  ;;  %v7366_v17 = vpop.eup %7365  ;;  %v2812_v15 = vld [vmem:[#allocation3 + $0xc8] sm:$0xff] }
 0x4f0   : > { %v4437_v14 = vadd.f32 %v4231_v46, %v2955_v38  ;;  %v2958_v23 = vmul.f32 %v7366_v17, %v2806_v37  ;;  %v7368_v5 = vpop.eup %7367  ;;  %7375 = vpow2.f32 %v2911_v28  ;;  %v13951_v37 = vld [vmem:[#allocation323_spill] sm:$0xff]  ;;  %v13965_v28 = vsub.f32 %v13963_v20, %v13964_v45 }
 0x4f1   : > { %v2959_v57 = vmul.f32 %v7368_v5, %v2807_v51  ;;  %v7370_v54 = vpop.eup %7369  ;;  %7377 = vpow2.f32 %v2913_v59  ;;  %v2814_v5 = vld [vmem:[#allocation3 + $0xd8] sm:$0xff]  ;;  %v13954_v51 = vld [vmem:[#allocation325_spill] sm:$0xff] }
 0x4f2   : > { %4476 = vst.msk [vmem:[#allocation3 + $0x80] sm:$0xff] %vm4459_vm1, %v4437_v14  ;;  %v2960_v24 = vmul.f32 %v7370_v54, %v2808_v4  ;;  %7379 = vpow2.f32 %v2915_v2  ;;  %v2815_v54 = vld [vmem:[#allocation3 + $0xe0] sm:$0xff]  ;;  %v13957_v4 = vld [vmem:[#allocation327_spill] sm:$0xff]  ;;  %v13974_v2 = vsub.f32 %v13972_v60, %v13973_v7 }
 0x4f3   : > { %v4240_v35 = vpop.xlane.xlu1 %4239  ;;  %7381 = vpow2.f32 %v2917_v27 }
 0x4f4   : > { %v4438_v41 = vadd.f32 %v4240_v35, %v2956_v55 }
 0x4f5   : > { %v7372_v22 = vpop.eup %7371 }
 0x4f6   : > { %4477 = vst.msk [vmem:[#allocation3 + $0x88] sm:$0xff] %vm4459_vm1, %v4438_v41  ;;  %v2961_v26 = vmul.f32 %v7372_v22, %v2809_v42  ;;  %v7374_v6 = vpop.eup %7373 }
 0x4f7   : > { %v2962_v47 = vmul.f32 %v7374_v6, %v2810_v48  ;;  %v13966_v6 = vld [vmem:[#allocation333_spill] sm:$0xff]  ;;  %v13967_v48 = vld [vmem:[#allocation334_spill] sm:$0xff] }
 0x4fa   : > { %v7376_v46 = vpop.eup %7375 }
 0x4fb   : > { %v2963_v14 = vmul.f32 %v7376_v46, %v2811_v19  ;;  %v7378_v41 = vpop.eup %7377 }
 0x4fc   : > { %v2964_v43 = vmul.f32 %v7378_v41, %v2812_v15  ;;  %v2818_v15 = vld [vmem:[#allocation3 + $0xf8] sm:$0xff] }
 0x4ff   : > { %v4249_v0 = vpop.xlane.xlu0 %4248 }
 0x500   : > { %v4439_v11 = vadd.f32 %v4249_v0, %v2957_v33  ;;  %v7380_v0 = vpop.eup %7379 }
 0x501   : > { %v2965_v52 = vmul.f32 %v7380_v0, %v2813_v58 }
 0x502   : > { %4478 = vst.msk [vmem:[#allocation3 + $0x90] sm:$0xff] %vm4459_vm1, %v4439_v11  ;;  %v13952_v11 = vld [vmem:[#allocation324_spill] sm:$0xff] }
 0x503   : > { %v4258_v13 = vpop.xlane.xlu1 %4257 }
 0x504   : > { %v4440_v62 = vadd.f32 %v4258_v13, %v2958_v23  ;;  %v13953_v23 = vsub.f32 %v13951_v37, %v13952_v11  ;;  %v2819_v37 = vld [vmem:[#allocation3 + $0x100] sm:$0xff]  ;;  %v13978_v11 = vld [vmem:[#allocation341_spill] sm:$0xff] }
 0x506   : > { %4479 = vst.msk [vmem:[#allocation3 + $0x98] sm:$0xff] %vm4459_vm1, %v4440_v62  ;;  %v2919_v56 = vmul.f32 1.442695, %v13953_v23  ;;  %v7382_v62 = vpop.eup %7381  ;;  %v13979_v23 = vld [vmem:[#allocation342_spill] sm:$0xff] }
 0x507   : > { %v2966_v53 = vmul.f32 %v7382_v62, %v2814_v5  ;;  %v2820_v5 = vld [vmem:[#allocation3 + $0x108] sm:$0xff] }
 0x508   : > { %7383 = vpow2.f32 %v2919_v56  ;;  %v13980_v56 = vsub.f32 %v13978_v11, %v13979_v23 }
 0x50a   : > { %v2937_v58 = vmul.f32 1.442695, %v13980_v56 }
 0x50f   : > { %v4267_v9 = vpop.xlane.xlu0 %4266 }
 0x510   : > { %v4441_v39 = vadd.f32 %v4267_v9, %v2959_v57  ;;  %v13955_v57 = vld [vmem:[#allocation326_spill] sm:$0xff] }
 0x511   : > { %v13956_v21 = vsub.f32 %v13954_v51, %v13955_v57 }
 0x512   : > { %4480 = vst.msk [vmem:[#allocation3 + $0xa0] sm:$0xff] %vm4459_vm1, %v4441_v39  ;;  %v7384_v39 = vpop.eup %7383 }
 0x513   : > { %v2921_v40 = vmul.f32 1.442695, %v13956_v21  ;;  %v2967_v63 = vmul.f32 %v7384_v39, %v2815_v54 }
 0x515   : > { %v4276_v3 = vpop.xlane.xlu1 %4275  ;;  %7385 = vpow2.f32 %v2921_v40 }
 0x516   : > { %v4442_v32 = vadd.f32 %v4276_v3, %v2960_v24  ;;  %v13958_v24 = vld [vmem:[#allocation328_spill] sm:$0xff]  ;;  %v13960_v3 = vld [vmem:[#allocation329_spill] sm:$0xff] }
 0x517   : > { %v13959_v50 = vsub.f32 %v13957_v4, %v13958_v24  ;;  %v2822_v4 = vld [vmem:[#allocation3 + $0x118] sm:$0xff] }
 0x518   : > { %4481 = vst.msk [vmem:[#allocation3 + $0xa8] sm:$0xff] %vm4459_vm1, %v4442_v32  ;;  %v13961_v32 = vld [vmem:[#allocation330_spill] sm:$0xff] }
 0x519   : > { %v2923_v61 = vmul.f32 1.442695, %v13959_v50  ;;  %v13962_v22 = vsub.f32 %v13960_v3, %v13961_v32 }
 0x51b   : > { %v2925_v42 = vmul.f32 1.442695, %v13962_v22  ;;  %7387 = vpow2.f32 %v2923_v61 }
 0x51d   : > { %7389 = vpow2.f32 %v2925_v42 }
 0x51f   : > { %v7386_v18 = vpop.eup %7385 }
 0x521   : > { %v4285_v10 = vpop.xlane.xlu0 %4284 }
 0x522   : > { %v4443_v29 = vadd.f32 %v4285_v10, %v2961_v26  ;;  %v2927_v10 = vmul.f32 1.442695, %v13965_v28 }
 0x524   : > { %4482 = vst.msk [vmem:[#allocation3 + $0xb0] sm:$0xff] %vm4459_vm1, %v4443_v29  ;;  %v2816_v29 = vld [vmem:[#allocation3 + $0xe8] sm:$0xff]  ;;  %7391 = vpow2.f32 %v2927_v10 }
 0x525   : > { %v2968_v31 = vmul.f32 %v7386_v18, %v2816_v29 }
 0x527   : > { %v4294_v38 = vpop.xlane.xlu1 %4293 }
 0x528   : > { %v4444_v12 = vadd.f32 %v4294_v38, %v2962_v47  ;;  %v13968_v47 = vsub.f32 %v13966_v6, %v13967_v48  ;;  %v13969_v38 = vld [vmem:[#allocation335_spill] sm:$0xff] }
 0x52a   : > { %4483 = vst.msk [vmem:[#allocation3 + $0xb8] sm:$0xff] %vm4459_vm1, %v4444_v12  ;;  %v2929_v8 = vmul.f32 1.442695, %v13968_v47  ;;  %v13970_v12 = vld [vmem:[#allocation336_spill] sm:$0xff] }
 0x52b   : > { %v13971_v46 = vsub.f32 %v13969_v38, %v13970_v12 }
 0x52c   : > { %7393 = vpow2.f32 %v2929_v8 }
 0x52d   : > { %v2931_v19 = vmul.f32 1.442695, %v13971_v46 }
 0x52f   : > { %7395 = vpow2.f32 %v2931_v19 }
 0x533   : > { %v4303_v55 = vpop.xlane.xlu0 %4302 }
 0x534   : > { %v4445_v35 = vadd.f32 %v4303_v55, %v2963_v14  ;;  %v7388_v14 = vpop.eup %7387  ;;  %v2933_v55 = vmul.f32 1.442695, %v13974_v2 }
 0x535   : > { %v2969_v41 = vmul.f32 %v7388_v14, %v2817_v36 }
 0x536   : > { %4484 = vst.msk [vmem:[#allocation3 + $0xc0] sm:$0xff] %vm4459_vm1, %v4445_v35  ;;  %v7390_v35 = vpop.eup %7389  ;;  %7397 = vpow2.f32 %v2933_v55 }
 0x537   : > { %v2970_v0 = vmul.f32 %v7390_v35, %v2818_v15 }
 0x539   : > { %v4312_v33 = vpop.xlane.xlu1 %4311 }
 0x53a   : > { %v4446_v17 = vadd.f32 %v4312_v33, %v2964_v43  ;;  %v13975_v43 = vld [vmem:[#allocation339_spill] sm:$0xff] }
 0x53b   : > { %v13977_v30 = vsub.f32 %v13975_v43, %v13976_v44 }
 0x53c   : > { %4485 = vst.msk [vmem:[#allocation3 + $0xc8] sm:$0xff] %vm4459_vm1, %v4446_v17  ;;  %v7392_v17 = vpop.eup %7391 }
 0x53d   : > { %v2935_v25 = vmul.f32 1.442695, %v13977_v30  ;;  %v2971_v62 = vmul.f32 %v7392_v17, %v2819_v37 }
 0x53f   : > { %7399 = vpow2.f32 %v2935_v25 }
 0x540   : > { %7401 = vpow2.f32 %v2937_v58 }
 0x545   : > { %v4321_v34 = vpop.xlane.xlu0 %4320 }
 0x546   : > { %v4447_v13 = vadd.f32 %v4321_v34, %v2965_v52 }
 0x548   : > { %4486 = vst.msk [vmem:[#allocation3 + $0xd0] sm:$0xff] %vm4459_vm1, %v4447_v13  ;;  %v7394_v13 = vpop.eup %7393 }
 0x549   : > { %v7396_v21 = vpop.eup %7395  ;;  %v2972_v40 = vmul.f32 %v7394_v13, %v2820_v5 }
 0x54a   : > { %v7398_v39 = vpop.eup %7397 }
 0x54b   : > { %v4330_v16 = vpop.xlane.xlu1 %4329  ;;  %v7400_v61 = vpop.eup %7399 }
 0x54c   : > { %v4448_v9 = vadd.f32 %v4330_v16, %v2966_v53  ;;  %v2821_v53 = vld [vmem:[#allocation3 + $0x110] sm:$0xff]  ;;  %v7402_v22 = vpop.eup %7401 }
 0x54d   : > { %v2973_v54 = vmul.f32 %v7396_v21, %v2821_v53 }
 0x54e   : > { %4487 = vst.msk [vmem:[#allocation3 + $0xd8] sm:$0xff] %vm4459_vm1, %v4448_v9 }
 0x553   : > { %v4339_v1 = vpop.xlane.xlu0 %4338 }
 0x554   : > { %v4449_v26 = vadd.f32 %v4339_v1, %v2967_v63  ;;  %v2974_v63 = vmul.f32 %v7398_v39, %v2822_v4  ;;  %v2823_v1 = vld [vmem:[#allocation3 + $0x120] sm:$0xff] }
 0x555   : > { %v2975_v42 = vmul.f32 %v7400_v61, %v2823_v1 }
 0x556   : > { %4488 = vst.msk [vmem:[#allocation3 + $0xe0] sm:$0xff] %vm4459_vm1, %v4449_v26  ;;  %v2824_v26 = vld [vmem:[#allocation3 + $0x128] sm:$0xff] }
 0x557   : > { %v2976_v45 = vmul.f32 %v7402_v22, %v2824_v26 }
 0x55b   : > { %v4348_v49 = vpop.xlane.xlu1 %4347 }
 0x55c   : > { %v4450_v59 = vadd.f32 %v4348_v49, %v2968_v31 }
 0x55e   : > { %4489 = vst.msk [vmem:[#allocation3 + $0xe8] sm:$0xff] %vm4459_vm1, %v4450_v59 }
 0x563   : > { %v4357_v27 = vpop.xlane.xlu0 %4356 }
 0x564   : > { %v4451_v33 = vadd.f32 %v4357_v27, %v2969_v41 }
 0x566   : > { %4490 = vst.msk [vmem:[#allocation3 + $0xf0] sm:$0xff] %vm4459_vm1, %v4451_v33  ;;  %v4366_v52 = vpop.xlane.xlu1 %4365 }
 0x567   : > { %v4452_v34 = vadd.f32 %v4366_v52, %v2970_v0 }
 0x569   : > { %4491 = vst.msk [vmem:[#allocation3 + $0xf8] sm:$0xff] %vm4459_vm1, %v4452_v34  ;;  %v4375_v51 = vpop.xlane.xlu0 %4374 }
 0x56a   : > { %v4453_v57 = vadd.f32 %v4375_v51, %v2971_v62 }
 0x56c   : > { %4492 = vst.msk [vmem:[#allocation3 + $0x100] sm:$0xff] %vm4459_vm1, %v4453_v57  ;;  %v4384_v16 = vpop.xlane.xlu1 %4383 }
 0x56d   : > { %v4454_v9 = vadd.f32 %v4384_v16, %v2972_v40 }
 0x56f   : > { %4493 = vst.msk [vmem:[#allocation3 + $0x108] sm:$0xff] %vm4459_vm1, %v4454_v9  ;;  %v4393_v24 = vpop.xlane.xlu0 %4392 }
 0x570   : > { %v4455_v50 = vadd.f32 %v4393_v24, %v2973_v54 }
 0x572   : > { %4494 = vst.msk [vmem:[#allocation3 + $0x110] sm:$0xff] %vm4459_vm1, %v4455_v50 }
 0x573   : > { %v4402_v3 = vpop.xlane.xlu1 %4401 }
 0x574   : > { %v4456_v32 = vadd.f32 %v4402_v3, %v2974_v63 }
 0x576   : > { %4495 = vst.msk [vmem:[#allocation3 + $0x118] sm:$0xff] %vm4459_vm1, %v4456_v32  ;;  %v4411_v18 = vpop.xlane.xlu0 %4410 }
 0x577   : > { %v4457_v20 = vadd.f32 %v4411_v18, %v2975_v42 }
 0x579   : > { %4496 = vst.msk [vmem:[#allocation3 + $0x120] sm:$0xff] %vm4459_vm1, %v4457_v20  ;;  %v4420_v28 = vpop.xlane.xlu1 %4419 }
 0x57a   : > { %v4458_v10 = vadd.f32 %v4420_v28, %v2976_v45 }
 0x57c   : > { %4497 = vst.msk [vmem:[#allocation3 + $0x128] sm:$0xff] %vm4459_vm1, %v4458_v10 }
 0x57d PF: > { %p4536_p3 = scmp.eq.s32.totalorder %s7714_s12, 1 }
 0x57e   : > { %v4579_v29 = vld [vmem:[#allocation3] sm:$0xff] (%p4536_p3)  ;;  %v4580_v6 = vld [vmem:[#allocation3 + $0x8] sm:$0xff] (%p4536_p3)  ;;  %v4581_v48 = vld [vmem:[#allocation3 + $0x10] sm:$0xff] (%p4536_p3)  ;;  %vm4731_vm2 = vcmask (%p4536_p3), 7168  }
 0x57f   : > { %4540 = sbr.rel (!%p4536_p3) target bundleno = 1460 (0x5b4), region = 56  ;;  %7500 = vlog2.f32 (%p4536_p3), %v4579_v29  ;;  %v4582_v47 = vld [vmem:[#allocation3 + $0x18] sm:$0xff] (%p4536_p3)  ;;  %v4583_v8 = vld [vmem:[#allocation3 + $0x20] sm:$0xff] (%p4536_p3)  ;;  %v4584_v31 = vld [vmem:[#allocation3 + $0x28] sm:$0xff] (%p4536_p3) }
 0x580   : > { %7502 = vlog2.f32 (%p4536_p3), %v4580_v6  ;;  %v4585_v49 = vld [vmem:[#allocation3 + $0x30] sm:$0xff] (%p4536_p3)  ;;  %v4586_v59 = vld [vmem:[#allocation3 + $0x38] sm:$0xff] (%p4536_p3)  ;;  %v4587_v38 = vld [vmem:[#allocation3 + $0x40] sm:$0xff] (%p4536_p3) }
 0x581   : > { %7504 = vlog2.f32 (%p4536_p3), %v4581_v48  ;;  %v4588_v12 = vld [vmem:[#allocation3 + $0x48] sm:$0xff] (%p4536_p3)  ;;  %v4589_v46 = vld [vmem:[#allocation3 + $0x50] sm:$0xff] (%p4536_p3)  ;;  %v4590_v19 = vld [vmem:[#allocation3 + $0x58] sm:$0xff] (%p4536_p3) }
 0x582   : > { %7506 = vlog2.f32 (%p4536_p3), %v4582_v47  ;;  %v4591_v14 = vld [vmem:[#allocation3 + $0x60] sm:$0xff] (%p4536_p3)  ;;  %v4541_v60 = vld [vmem:[#allocation2] sm:$0xff] (%p4536_p3)  ;;  %v4592_v7 = vld [vmem:[#allocation3 + $0x68] sm:$0xff] (%p4536_p3) }
 0x583   : > { %7508 = vlog2.f32 (%p4536_p3), %v4583_v8  ;;  %v4542_v35 = vld [vmem:[#allocation2 + $0x8] sm:$0xff] (%p4536_p3)  ;;  %v4593_v41 = vld [vmem:[#allocation3 + $0x70] sm:$0xff] (%p4536_p3)  ;;  %v4543_v44 = vld [vmem:[#allocation2 + $0x10] sm:$0xff] (%p4536_p3) }
 0x584   : > { %7510 = vlog2.f32 (%p4536_p3), %v4584_v31  ;;  %v4594_v30 = vld [vmem:[#allocation3 + $0x78] sm:$0xff] (%p4536_p3)  ;;  %v4544_v17 = vld [vmem:[#allocation2 + $0x18] sm:$0xff] (%p4536_p3)  ;;  %v4595_v0 = vld [vmem:[#allocation3 + $0x80] sm:$0xff] (%p4536_p3) }
 0x585   : > { %7512 = vlog2.f32 (%p4536_p3), %v4585_v49  ;;  %v4545_v56 = vld [vmem:[#allocation2 + $0x20] sm:$0xff] (%p4536_p3)  ;;  %v4596_v58 = vld [vmem:[#allocation3 + $0x88] sm:$0xff] (%p4536_p3)  ;;  %v4546_v62 = vld [vmem:[#allocation2 + $0x28] sm:$0xff] (%p4536_p3) }
 0x586   : > { %7514 = vlog2.f32 %v4586_v59  ;;  %v4597_v5 = vld [vmem:[#allocation3 + $0x90] sm:$0xff]  ;;  %v4547_v40 = vld [vmem:[#allocation2 + $0x30] sm:$0xff]  ;;  %v4598_v53 = vld [vmem:[#allocation3 + $0x98] sm:$0xff] }
 0x587   : > { %7516 = vlog2.f32 %v4587_v38  ;;  %v4548_v54 = vld [vmem:[#allocation2 + $0x38] sm:$0xff]  ;;  %v4599_v4 = vld [vmem:[#allocation3 + $0xa0] sm:$0xff]  ;;  %v4549_v63 = vld [vmem:[#allocation2 + $0x40] sm:$0xff] }
 0x588   : > { %7518 = vlog2.f32 %v4588_v12  ;;  %v4600_v1 = vld [vmem:[#allocation3 + $0xa8] sm:$0xff]  ;;  %v4550_v42 = vld [vmem:[#allocation2 + $0x48] sm:$0xff]  ;;  %v4601_v26 = vld [vmem:[#allocation3 + $0xb0] sm:$0xff] }
 0x589   : > { %v7501_v36 = vpop.eup %7500  ;;  %7520 = vlog2.f32 %v4589_v46  ;;  %v4551_v28 = vld [vmem:[#allocation2 + $0x50] sm:$0xff]  ;;  %v4602_v10 = vld [vmem:[#allocation3 + $0xb8] sm:$0xff]  ;;  %v4552_v47 = vld [vmem:[#allocation2 + $0x58] sm:$0xff] }
 0x58a   : > { %v7503_v2 = vpop.eup %7502  ;;  %v4618_v55 = vmul.f32 0.6931472, %v7501_v36  ;;  %7522 = vlog2.f32 %v4590_v19  ;;  %v4603_v8 = vld [vmem:[#allocation3 + $0xc0] sm:$0xff]  ;;  %v4553_v38 = vld [vmem:[#allocation2 + $0x60] sm:$0xff]  ;;  %v4604_v12 = vld [vmem:[#allocation3 + $0xc8] sm:$0xff] }
 0x58b   : > { %v7505_v15 = vpop.eup %7504  ;;  %v4620_v43 = vmul.f32 0.6931472, %v7503_v2  ;;  %7524 = vlog2.f32 %v4591_v14  ;;  %v4554_v36 = vld [vmem:[#allocation2 + $0x68] sm:$0xff] }
 0x58c   : > { %v7507_v25 = vpop.eup %7506  ;;  %v4693_v27 = vadd.f32 %v4618_v55, %v4541_v60  ;;  %v4622_v33 = vmul.f32 0.6931472, %v7505_v15  ;;  %7526 = vlog2.f32 %v4592_v7  ;;  %v4605_v60 = vld [vmem:[#allocation3 + $0xd0] sm:$0xff] }
 0x58d   : > { %v7509_v37 = vpop.eup %7508  ;;  %v4694_v11 = vadd.f32 %v4620_v43, %v4542_v35  ;;  %v4624_v23 = vmul.f32 0.6931472, %v7507_v25  ;;  %7528 = vlog2.f32 %v4593_v41  ;;  %v4555_v35 = vld [vmem:[#allocation2 + $0x70] sm:$0xff]  ;;  %v4606_v41 = vld [vmem:[#allocation3 + $0xd8] sm:$0xff] }
 0x58e   : > { %v7511_v52 = vpop.eup %7510  ;;  %4732 = vst.msk [vmem:[#allocation4] sm:$0xff] %vm4731_vm2, %v4693_v27  ;;  %v4695_v34 = vadd.f32 %v4622_v33, %v4543_v44  ;;  %v4626_v13 = vmul.f32 0.6931472, %v7509_v37  ;;  %7530 = vlog2.f32 %v4594_v30  ;;  %v4556_v30 = vld [vmem:[#allocation2 + $0x78] sm:$0xff]  ;;  %v4607_v25 = vld [vmem:[#allocation3 + $0xe0] sm:$0xff] }
 0x58f   : > { %v7513_v51 = vpop.eup %7512  ;;  %4733 = vst.msk [vmem:[#allocation4 + $0x8] sm:$0xff] %vm4731_vm2, %v4694_v11  ;;  %v4696_v57 = vadd.f32 %v4624_v23, %v4544_v17  ;;  %v4628_v21 = vmul.f32 0.6931472, %v7511_v52  ;;  %7532 = vlog2.f32 %v4595_v0  ;;  %v4557_v0 = vld [vmem:[#allocation2 + $0x80] sm:$0xff]  ;;  %v4608_v37 = vld [vmem:[#allocation3 + $0xe8] sm:$0xff] }
 0x590   : > { %v7515_v16 = vpop.eup %7514  ;;  %4734 = vst.msk [vmem:[#allocation4 + $0x10] sm:$0xff] %vm4731_vm2, %v4695_v34  ;;  %v4697_v9 = vadd.f32 %v4626_v13, %v4545_v56  ;;  %v4630_v39 = vmul.f32 0.6931472, %v7513_v51  ;;  %7534 = vlog2.f32 %v4596_v58  ;;  %v4558_v58 = vld [vmem:[#allocation2 + $0x88] sm:$0xff]  ;;  %v4609_v52 = vld [vmem:[#allocation3 + $0xf0] sm:$0xff] }
 0x591   : > { %v7517_v24 = vpop.eup %7516  ;;  %4735 = vst.msk [vmem:[#allocation4 + $0x18] sm:$0xff] %vm4731_vm2, %v4696_v57  ;;  %v4698_v50 = vadd.f32 %v4628_v21, %v4546_v62  ;;  %v4632_v61 = vmul.f32 0.6931472, %v7515_v16  ;;  %7536 = vlog2.f32 %v4597_v5  ;;  %v4559_v5 = vld [vmem:[#allocation2 + $0x90] sm:$0xff]  ;;  %v4610_v51 = vld [vmem:[#allocation3 + $0xf8] sm:$0xff] }
 0x592   : > { %v7519_v3 = vpop.eup %7518  ;;  %4736 = vst.msk [vmem:[#allocation4 + $0x20] sm:$0xff] %vm4731_vm2, %v4697_v9  ;;  %v4699_v32 = vadd.f32 %v4630_v39, %v4547_v40  ;;  %v4634_v22 = vmul.f32 0.6931472, %v7517_v24  ;;  %7538 = vlog2.f32 %v4598_v53  ;;  %v4560_v53 = vld [vmem:[#allocation2 + $0x98] sm:$0xff]  ;;  %v4611_v16 = vld [vmem:[#allocation3 + $0x100] sm:$0xff] }
 0x593   : > { %v7521_v18 = vpop.eup %7520  ;;  %4737 = vst.msk [vmem:[#allocation4 + $0x28] sm:$0xff] %vm4731_vm2, %v4698_v50  ;;  %v4700_v20 = vadd.f32 %v4632_v61, %v4548_v54  ;;  %v4636_v45 = vmul.f32 0.6931472, %v7519_v3  ;;  %7540 = vlog2.f32 %v4599_v4  ;;  %v4561_v4 = vld [vmem:[#allocation2 + $0xa0] sm:$0xff]  ;;  %v4612_v24 = vld [vmem:[#allocation3 + $0x108] sm:$0xff] }
 0x594   : > { %v7523_v29 = vpop.eup %7522  ;;  %4738 = vst.msk [vmem:[#allocation4 + $0x30] sm:$0xff] %vm4731_vm2, %v4699_v32  ;;  %v4701_v6 = vadd.f32 %v4634_v22, %v4549_v63  ;;  %v4638_v48 = vmul.f32 0.6931472, %v7521_v18  ;;  %7542 = vlog2.f32 %v4600_v1  ;;  %v4562_v1 = vld [vmem:[#allocation2 + $0xa8] sm:$0xff]  ;;  %v4613_v3 = vld [vmem:[#allocation3 + $0x110] sm:$0xff] }
 0x595   : > { %v7525_v31 = vpop.eup %7524  ;;  %4739 = vst.msk [vmem:[#allocation4 + $0x38] sm:$0xff] %vm4731_vm2, %v4700_v20  ;;  %v4702_v49 = vadd.f32 %v4636_v45, %v4550_v42  ;;  %v4640_v59 = vmul.f32 0.6931472, %v7523_v29  ;;  %7544 = vlog2.f32 %v4601_v26  ;;  %v4563_v26 = vld [vmem:[#allocation2 + $0xb0] sm:$0xff]  ;;  %v4614_v18 = vld [vmem:[#allocation3 + $0x118] sm:$0xff] }
 0x596   : > { %v7527_v46 = vpop.eup %7526  ;;  %4740 = vst.msk [vmem:[#allocation4 + $0x40] sm:$0xff] %vm4731_vm2, %v4701_v6  ;;  %v4703_v19 = vadd.f32 %v4638_v48, %v4551_v28  ;;  %v4642_v14 = vmul.f32 0.6931472, %v7525_v31  ;;  %7546 = vlog2.f32 %v4602_v10  ;;  %v4564_v10 = vld [vmem:[#allocation2 + $0xb8] sm:$0xff]  ;;  %v4615_v29 = vld [vmem:[#allocation3 + $0x120] sm:$0xff] }
 0x597   : > { %v7529_v7 = vpop.eup %7528  ;;  %4741 = vst.msk [vmem:[#allocation4 + $0x48] sm:$0xff] %vm4731_vm2, %v4702_v49  ;;  %v4704_v2 = vadd.f32 %v4640_v59, %v4552_v47  ;;  %v4644_v55 = vmul.f32 0.6931472, %v7527_v46  ;;  %7548 = vlog2.f32 %v4603_v8  ;;  %v4565_v8 = vld [vmem:[#allocation2 + $0xc0] sm:$0xff]  ;;  %v4616_v31 = vld [vmem:[#allocation3 + $0x128] sm:$0xff] }
 0x598   : > { %v7531_v15 = vpop.eup %7530  ;;  %4742 = vst.msk [vmem:[#allocation4 + $0x50] sm:$0xff] %vm4731_vm2, %v4703_v19  ;;  %v4705_v43 = vadd.f32 %v4642_v14, %v4553_v38  ;;  %v4646_v44 = vmul.f32 0.6931472, %v7529_v7  ;;  %7550 = vlog2.f32 %v4604_v12  ;;  %v4566_v12 = vld [vmem:[#allocation2 + $0xc8] sm:$0xff] }
 0x599   : > { %v7533_v27 = vpop.eup %7532  ;;  %4743 = vst.msk [vmem:[#allocation4 + $0x58] sm:$0xff] %vm4731_vm2, %v4704_v2  ;;  %v4706_v33 = vadd.f32 %v4644_v55, %v4554_v36  ;;  %v4648_v17 = vmul.f32 0.6931472, %v7531_v15  ;;  %7552 = vlog2.f32 %v4605_v60  ;;  %v4567_v36 = vld [vmem:[#allocation2 + $0xd0] sm:$0xff]  ;;  %v4568_v55 = vld [vmem:[#allocation2 + $0xd8] sm:$0xff] }
 0x59a   : > { %v7535_v11 = vpop.eup %7534  ;;  %4744 = vst.msk [vmem:[#allocation4 + $0x60] sm:$0xff] %vm4731_vm2, %v4705_v43  ;;  %v4707_v23 = vadd.f32 %v4646_v44, %v4555_v35  ;;  %v4650_v56 = vmul.f32 0.6931472, %v7533_v27  ;;  %7554 = vlog2.f32 %v4606_v41  ;;  %v4569_v43 = vld [vmem:[#allocation2 + $0xe0] sm:$0xff]  ;;  %v4570_v27 = vld [vmem:[#allocation2 + $0xe8] sm:$0xff] }
 0x59b   : > { %v7537_v34 = vpop.eup %7536  ;;  %4745 = vst.msk [vmem:[#allocation4 + $0x68] sm:$0xff] %vm4731_vm2, %v4706_v33  ;;  %v4708_v13 = vadd.f32 %v4648_v17, %v4556_v30  ;;  %v4652_v62 = vmul.f32 0.6931472, %v7535_v11  ;;  %7556 = vlog2.f32 %v4607_v25 }
 0x59c   : > { %v7539_v57 = vpop.eup %7538  ;;  %4746 = vst.msk [vmem:[#allocation4 + $0x70] sm:$0xff] %vm4731_vm2, %v4707_v23  ;;  %v4709_v21 = vadd.f32 %v4650_v56, %v4557_v0  ;;  %v4654_v40 = vmul.f32 0.6931472, %v7537_v34  ;;  %7558 = vlog2.f32 %v4608_v37  ;;  %v4571_v37 = vld [vmem:[#allocation2 + $0xf0] sm:$0xff] }
 0x59d   : > { %v7541_v9 = vpop.eup %7540  ;;  %4747 = vst.msk [vmem:[#allocation4 + $0x78] sm:$0xff] %vm4731_vm2, %v4708_v13  ;;  %v4710_v39 = vadd.f32 %v4652_v62, %v4558_v58  ;;  %v4656_v54 = vmul.f32 0.6931472, %v7539_v57  ;;  %7560 = vlog2.f32 %v4609_v52  ;;  %v4572_v58 = vld [vmem:[#allocation2 + $0xf8] sm:$0xff]  ;;  %v4573_v62 = vld [vmem:[#allocation2 + $0x100] sm:$0xff] }
 0x59e   : > { %v7543_v50 = vpop.eup %7542  ;;  %4748 = vst.msk [vmem:[#allocation4 + $0x80] sm:$0xff] %vm4731_vm2, %v4709_v21  ;;  %v4711_v61 = vadd.f32 %v4654_v40, %v4559_v5  ;;  %v4658_v63 = vmul.f32 0.6931472, %v7541_v9  ;;  %7562 = vlog2.f32 %v4610_v51  ;;  %v4574_v21 = vld [vmem:[#allocation2 + $0x108] sm:$0xff]  ;;  %v4575_v9 = vld [vmem:[#allocation2 + $0x110] sm:$0xff] }
 0x59f   : > { %v7545_v32 = vpop.eup %7544  ;;  %4749 = vst.msk [vmem:[#allocation4 + $0x88] sm:$0xff] %vm4731_vm2, %v4710_v39  ;;  %v4712_v22 = vadd.f32 %v4656_v54, %v4560_v53  ;;  %v4660_v42 = vmul.f32 0.6931472, %v7543_v50  ;;  %7564 = vlog2.f32 %v4611_v16 }
 0x5a0   : > { %v7547_v20 = vpop.eup %7546  ;;  %4750 = vst.msk [vmem:[#allocation4 + $0x90] sm:$0xff] %vm4731_vm2, %v4711_v61  ;;  %v4713_v45 = vadd.f32 %v4658_v63, %v4561_v4  ;;  %v4662_v28 = vmul.f32 0.6931472, %v7545_v32  ;;  %7566 = vlog2.f32 %v4612_v24  ;;  %v4576_v24 = vld [vmem:[#allocation2 + $0x118] sm:$0xff] }
 0x5a1   : > { %v7549_v6 = vpop.eup %7548  ;;  %4751 = vst.msk [vmem:[#allocation4 + $0x98] sm:$0xff] %vm4731_vm2, %v4712_v22  ;;  %v4714_v48 = vadd.f32 %v4660_v42, %v4562_v1  ;;  %v4664_v47 = vmul.f32 0.6931472, %v7547_v20  ;;  %7568 = vlog2.f32 %v4613_v3  ;;  %v4577_v1 = vld [vmem:[#allocation2 + $0x120] sm:$0xff]  ;;  %v4578_v42 = vld [vmem:[#allocation2 + $0x128] sm:$0xff] }
 0x5a2   : > { %v7551_v49 = vpop.eup %7550  ;;  %4752 = vst.msk [vmem:[#allocation4 + $0xa0] sm:$0xff] %vm4731_vm2, %v4713_v45  ;;  %v4715_v59 = vadd.f32 %v4662_v28, %v4563_v26  ;;  %v4666_v38 = vmul.f32 0.6931472, %v7549_v6  ;;  %7570 = vlog2.f32 %v4614_v18 }
 0x5a3   : > { %v7553_v46 = vpop.eup %7552  ;;  %4753 = vst.msk [vmem:[#allocation4 + $0xa8] sm:$0xff] %vm4731_vm2, %v4714_v48  ;;  %v4716_v19 = vadd.f32 %v4664_v47, %v4564_v10  ;;  %v4668_v14 = vmul.f32 0.6931472, %v7551_v49  ;;  %7572 = vlog2.f32 %v4615_v29 }
 0x5a4   : > { %v7555_v60 = vpop.eup %7554  ;;  %4754 = vst.msk [vmem:[#allocation4 + $0xb0] sm:$0xff] %vm4731_vm2, %v4715_v59  ;;  %v4717_v7 = vadd.f32 %v4666_v38, %v4565_v8  ;;  %v4670_v2 = vmul.f32 0.6931472, %v7553_v46  ;;  %7574 = vlog2.f32 %v4616_v31 }
 0x5a5   : > { %v7557_v35 = vpop.eup %7556  ;;  %4755 = vst.msk [vmem:[#allocation4 + $0xb8] sm:$0xff] %vm4731_vm2, %v4716_v19  ;;  %v4718_v41 = vadd.f32 %v4668_v14, %v4566_v12  ;;  %v4672_v15 = vmul.f32 0.6931472, %v7555_v60 }
 0x5a6   : > { %v7559_v44 = vpop.eup %7558  ;;  %4756 = vst.msk [vmem:[#allocation4 + $0xc0] sm:$0xff] %vm4731_vm2, %v4717_v7  ;;  %v4719_v30 = vadd.f32 %v4670_v2, %v4567_v36  ;;  %v4674_v25 = vmul.f32 0.6931472, %v7557_v35 }
 0x5a7   : > { %v7561_v33 = vpop.eup %7560  ;;  %4757 = vst.msk [vmem:[#allocation4 + $0xc8] sm:$0xff] %vm4731_vm2, %v4718_v41  ;;  %v4720_v17 = vadd.f32 %v4672_v15, %v4568_v55  ;;  %v4676_v0 = vmul.f32 0.6931472, %v7559_v44 }
 0x5a8   : > { %v7563_v11 = vpop.eup %7562  ;;  %4758 = vst.msk [vmem:[#allocation4 + $0xd0] sm:$0xff] %vm4731_vm2, %v4719_v30  ;;  %v4721_v23 = vadd.f32 %v4674_v25, %v4569_v43  ;;  %v4678_v56 = vmul.f32 0.6931472, %v7561_v33 }
 0x5a9   : > { %v7565_v52 = vpop.eup %7564  ;;  %4759 = vst.msk [vmem:[#allocation4 + $0xd8] sm:$0xff] %vm4731_vm2, %v4720_v17  ;;  %v4722_v34 = vadd.f32 %v4676_v0, %v4570_v27  ;;  %v4680_v13 = vmul.f32 0.6931472, %v7563_v11 }
 0x5aa   : > { %v7567_v5 = vpop.eup %7566  ;;  %4760 = vst.msk [vmem:[#allocation4 + $0xe0] sm:$0xff] %vm4731_vm2, %v4721_v23  ;;  %v4723_v51 = vadd.f32 %v4678_v56, %v4571_v37  ;;  %v4682_v57 = vmul.f32 0.6931472, %v7565_v52 }
 0x5ab   : > { %v7569_v40 = vpop.eup %7568  ;;  %4761 = vst.msk [vmem:[#allocation4 + $0xe8] sm:$0xff] %vm4731_vm2, %v4722_v34  ;;  %v4724_v53 = vadd.f32 %v4680_v13, %v4572_v58  ;;  %v4684_v16 = vmul.f32 0.6931472, %v7567_v5 }
 0x5ac   : > { %v7571_v39 = vpop.eup %7570  ;;  %4762 = vst.msk [vmem:[#allocation4 + $0xf0] sm:$0xff] %vm4731_vm2, %v4723_v51  ;;  %v4725_v54 = vadd.f32 %v4682_v57, %v4573_v62  ;;  %v4686_v4 = vmul.f32 0.6931472, %v7569_v40 }
 0x5ad   : > { %v7573_v50 = vpop.eup %7572  ;;  %4763 = vst.msk [vmem:[#allocation4 + $0xf8] sm:$0xff] %vm4731_vm2, %v4724_v53  ;;  %v4726_v61 = vadd.f32 %v4684_v16, %v4574_v21  ;;  %v4688_v63 = vmul.f32 0.6931472, %v7571_v39 }
 0x5ae   : > { %v7575_v3 = vpop.eup %7574  ;;  %4764 = vst.msk [vmem:[#allocation4 + $0x100] sm:$0xff] %vm4731_vm2, %v4725_v54  ;;  %v4727_v32 = vadd.f32 %v4686_v4, %v4575_v9  ;;  %v4690_v22 = vmul.f32 0.6931472, %v7573_v50 }
 0x5af   : > { %4765 = vst.msk [vmem:[#allocation4 + $0x108] sm:$0xff] %vm4731_vm2, %v4726_v61  ;;  %v4728_v26 = vadd.f32 %v4688_v63, %v4576_v24  ;;  %v4692_v18 = vmul.f32 0.6931472, %v7575_v3 }
 0x5b0   : > { %4766 = vst.msk [vmem:[#allocation4 + $0x110] sm:$0xff] %vm4731_vm2, %v4727_v32  ;;  %v4729_v20 = vadd.f32 %v4690_v22, %v4577_v1 }
 0x5b1   : > { %4767 = vst.msk [vmem:[#allocation4 + $0x118] sm:$0xff] %vm4731_vm2, %v4728_v26  ;;  %v4730_v45 = vadd.f32 %v4692_v18, %v4578_v42 }
 0x5b2   : > { %4768 = vst.msk [vmem:[#allocation4 + $0x120] sm:$0xff] %vm4731_vm2, %v4729_v20 }
 0x5b3   : > { %4769 = vst.msk [vmem:[#allocation4 + $0x128] sm:$0xff] %vm4731_vm2, %v4730_v45 }
 0x5b4 PF: > { %p6073_p1 = scmp.ne.s32.totalorder %s7714_s12, 1 }
 0x5b5   : > { %v5082_v28 = vld [vmem:[#allocation4 + $0x10] sm:$0xff] (!%p6073_p1)  ;;  %v5080_v10 = vld [vmem:[#allocation4] sm:$0xff] (!%p6073_p1)  ;;  %v7732_v29 = vmov (!%p6073_p1), 0   ;;  %v5083_v6 = vld [vmem:[#allocation4 + $0x18] sm:$0xff] (!%p6073_p1) }
 0x5b6   : > { %4772 = sbr.rel (%p6073_p1) target bundleno = 1745 (0x6d1), region = 60  ;;  %7577 = vset.pattern.permute.xlu1 (!%p6073_p1), %v7732_v29  ;;  %7576 = vset.pattern.permute.xlu0 (!%p6073_p1), %v7732_v29  ;;  %v5081_v48 = vld [vmem:[#allocation4 + $0x8] sm:$0xff] (!%p6073_p1)  ;;  %v5084_v8 = vld [vmem:[#allocation4 + $0x20] sm:$0xff] (!%p6073_p1)  ;;  %v5087_v31 = vld [vmem:[#allocation4 + $0x38] sm:$0xff] (!%p6073_p1) }
 0x5b7   : > { %5130 = vperm.xlu1 (!%p6073_p1), %7577, %v5082_v28   ;;  %5120 = vperm.xlu0 (!%p6073_p1), %7576, %v5080_v10   ;;  %v5085_v47 = vld [vmem:[#allocation4 + $0x28] sm:$0xff] (!%p6073_p1)  ;;  %v5086_v49 = vld [vmem:[#allocation4 + $0x30] sm:$0xff] (!%p6073_p1)  ;;  %v5088_v38 = vld [vmem:[#allocation4 + $0x40] sm:$0xff] (!%p6073_p1) }
 0x5b8   : > { %v5089_v59 = vld [vmem:[#allocation4 + $0x48] sm:$0xff] (!%p6073_p1)  ;;  %v5091_v12 = vld [vmem:[#allocation4 + $0x58] sm:$0xff] (!%p6073_p1)  ;;  %v5090_v46 = vld [vmem:[#allocation4 + $0x50] sm:$0xff] (!%p6073_p1) }
 0x5b9   : > { %v5093_v19 = vld [vmem:[#allocation4 + $0x68] sm:$0xff] (!%p6073_p1)  ;;  %v5092_v14 = vld [vmem:[#allocation4 + $0x60] sm:$0xff] (!%p6073_p1)  ;;  %v5095_v36 = vld [vmem:[#allocation4 + $0x78] sm:$0xff] (!%p6073_p1) }
 0x5ba   : > { %v5094_v60 = vld [vmem:[#allocation4 + $0x70] sm:$0xff] (!%p6073_p1)  ;;  %v5097_v7 = vld [vmem:[#allocation4 + $0x88] sm:$0xff] (!%p6073_p1)  ;;  %v5096_v2 = vld [vmem:[#allocation4 + $0x80] sm:$0xff] (!%p6073_p1) }
 0x5bb   : > { %5135 = vperm.xlu1 (!%p6073_p1), %7577, %v5083_v6   ;;  %5125 = vperm.xlu0 (!%p6073_p1), %7576, %v5081_v48   ;;  %v5099_v55 = vld [vmem:[#allocation4 + $0x98] sm:$0xff] (!%p6073_p1)  ;;  %v5098_v35 = vld [vmem:[#allocation4 + $0x90] sm:$0xff] (!%p6073_p1)  ;;  %v5101_v41 = vld [vmem:[#allocation4 + $0xa8] sm:$0xff] (!%p6073_p1) }
 0x5bc   : > { %v5100_v15 = vld [vmem:[#allocation4 + $0xa0] sm:$0xff] (!%p6073_p1)  ;;  %v5103_v43 = vld [vmem:[#allocation4 + $0xb8] sm:$0xff] (!%p6073_p1)  ;;  %v5102_v44 = vld [vmem:[#allocation4 + $0xb0] sm:$0xff] (!%p6073_p1) }
 0x5bd   : > { %v5105_v30 = vld [vmem:[#allocation4 + $0xc8] sm:$0xff]  ;;  %v5104_v25 = vld [vmem:[#allocation4 + $0xc0] sm:$0xff]  ;;  %v5107_v27 = vld [vmem:[#allocation4 + $0xd8] sm:$0xff] }
 0x5be   : > { %v5106_v33 = vld [vmem:[#allocation4 + $0xd0] sm:$0xff]  ;;  %v5109_v17 = vld [vmem:[#allocation4 + $0xe8] sm:$0xff]  ;;  %v5108_v0 = vld [vmem:[#allocation4 + $0xe0] sm:$0xff] }
 0x5bf   : > { %5145 = vperm.xlu1 %7577, %v5085_v47   ;;  %5140 = vperm.xlu0 %7576, %v5084_v8   ;;  %v5111_v37 = vld [vmem:[#allocation4 + $0xf8] sm:$0xff]  ;;  %v5110_v11 = vld [vmem:[#allocation4 + $0xf0] sm:$0xff]  ;;  %v5113_v23 = vld [vmem:[#allocation4 + $0x108] sm:$0xff] }
 0x5c0   : > { %v5112_v56 = vld [vmem:[#allocation4 + $0x100] sm:$0xff]  ;;  %v5115_v58 = vld [vmem:[#allocation4 + $0x118] sm:$0xff]  ;;  %v5114_v52 = vld [vmem:[#allocation4 + $0x110] sm:$0xff] }
 0x5c1   : > { %v5117_v34 = vld [vmem:[#allocation4 + $0x128] sm:$0xff]  ;;  %v5116_v13 = vld [vmem:[#allocation4 + $0x120] sm:$0xff]  ;;  %v4792_v62 = vld [vmem:[#allocation5 + $0x80] sm:$0xff] }
 0x5c2   : > { %v4793_v5 = vld [vmem:[#allocation5 + $0x88] sm:$0xff]  ;;  %v4794_v51 = vld [vmem:[#allocation5 + $0x90] sm:$0xff]  ;;  %v4795_v57 = vld [vmem:[#allocation5 + $0x98] sm:$0xff] }
 0x5c3   : > { %5155 = vperm.xlu1 %7577, %v5087_v31   ;;  %5150 = vperm.xlu0 %7576, %v5086_v49   ;;  %v4796_v21 = vld [vmem:[#allocation5 + $0xa0] sm:$0xff]  ;;  %v4797_v40 = vld [vmem:[#allocation5 + $0xa8] sm:$0xff]  ;;  %v4798_v53 = vld [vmem:[#allocation5 + $0xb0] sm:$0xff] }
 0x5c4   : > { %v4799_v16 = vld [vmem:[#allocation5 + $0xb8] sm:$0xff]  ;;  %v4776_v9 = vld [vmem:[#allocation5] sm:$0xff]  ;;  %v4777_v39 = vld [vmem:[#allocation5 + $0x8] sm:$0xff] }
 0x5c5   : > { %v4778_v54 = vld [vmem:[#allocation5 + $0x10] sm:$0xff]  ;;  %v4779_v4 = vld [vmem:[#allocation5 + $0x18] sm:$0xff]  ;;  %v11748_v24 = vld [vmem:[#allocation5 + $0x20] sm:$0xff] }
 0x5c6   : > { %v11750_v50 = vld [vmem:[#allocation5 + $0x28] sm:$0xff]  ;;  %v11752_v61 = vld [vmem:[#allocation5 + $0x30] sm:$0xff]  ;;  %v11754_v63 = vld [vmem:[#allocation5 + $0x38] sm:$0xff] }
 0x5c7   : > { %5165 = vperm.xlu1 %7577, %v5089_v59   ;;  %5160 = vperm.xlu0 %7576, %v5088_v38   ;;  %v11756_v32 = vld [vmem:[#allocation5 + $0xc0] sm:$0xff]  ;;  %v11758_v22 = vld [vmem:[#allocation5 + $0xc8] sm:$0xff]  ;;  %v11760_v42 = vld [vmem:[#allocation5 + $0xd0] sm:$0xff] }
 0x5c8   : > { %v11762_v26 = vld [vmem:[#allocation5 + $0xd8] sm:$0xff]  ;;  %v11764_v10 = vld [vmem:[#allocation5 + $0xe0] sm:$0xff]  ;;  %v11766_v29 = vld [vmem:[#allocation5 + $0xe8] sm:$0xff] }
 0x5c9   : > { %v11768_v6 = vld [vmem:[#allocation5 + $0xf0] sm:$0xff]  ;;  %v11770_v48 = vld [vmem:[#allocation5 + $0xf8] sm:$0xff]  ;;  %v11772_v59 = vld [vmem:[#allocation5 + $0x40] sm:$0xff] }
 0x5ca   : > { %v11774_v38 = vld [vmem:[#allocation5 + $0x48] sm:$0xff] }
 0x5cb   : > { %5175 = vperm.xlu1 %7577, %v5091_v12   ;;  %5170 = vperm.xlu0 %7576, %v5090_v46   ;;  %v11776_v12 = vld [vmem:[#allocation5 + $0x50] sm:$0xff]  ;;  %v11778_v46 = vld [vmem:[#allocation5 + $0x58] sm:$0xff] }
 0x5cf   : > { %5185 = vperm.xlu1 %7577, %v5093_v19   ;;  %5180 = vperm.xlu0 %7576, %v5092_v14  }
 0x5d3   : > { %5195 = vperm.xlu1 %7577, %v5095_v36   ;;  %5190 = vperm.xlu0 %7576, %v5094_v60  }
 0x5d7   : > { %5205 = vperm.xlu1 %7577, %v5097_v7   ;;  %5200 = vperm.xlu0 %7576, %v5096_v2   ;;  %v11780_v7 = vld [vmem:[#allocation5 + $0x60] sm:$0xff]  ;;  %v11782_v2 = vld [vmem:[#allocation5 + $0x68] sm:$0xff] }
 0x5db   : > { %5215 = vperm.xlu1 %7577, %v5099_v55   ;;  %5210 = vperm.xlu0 %7576, %v5098_v35   ;;  %v11784_v55 = vld [vmem:[#allocation5 + $0x70] sm:$0xff]  ;;  %v11786_v35 = vld [vmem:[#allocation5 + $0x78] sm:$0xff] }
 0x5df   : > { %5225 = vperm.xlu1 %7577, %v5101_v41   ;;  %5220 = vperm.xlu0 %7576, %v5100_v15  }
 0x5e3   : > { %5235 = vperm.xlu1 %7577, %v5103_v43   ;;  %5230 = vperm.xlu0 %7576, %v5102_v44  }
 0x5e7   : > { %5245 = vperm.xlu1 %7577, %v5105_v30   ;;  %5240 = vperm.xlu0 %7576, %v5104_v25  }
 0x5eb   : > { %5255 = vperm.xlu1 %7577, %v5107_v27   ;;  %5250 = vperm.xlu0 %7576, %v5106_v33   ;;  %v11794_v27 = vld [vmem:[#allocation5 + $0x140] sm:$0xff]  ;;  %v11796_v33 = vld [vmem:[#allocation5 + $0x148] sm:$0xff] }
 0x5ef   : > { %5265 = vperm.xlu1 %7577, %v5109_v17   ;;  %5260 = vperm.xlu0 %7576, %v5108_v0   ;;  %v11798_v17 = vld [vmem:[#allocation5 + $0x150] sm:$0xff]  ;;  %v11800_v0 = vld [vmem:[#allocation5 + $0x158] sm:$0xff] }
 0x5f3   : > { %5275 = vperm.xlu1 %7577, %v5111_v37   ;;  %5270 = vperm.xlu0 %7576, %v5110_v11  }
 0x5f7   : > { %5285 = vperm.xlu1 %7577, %v5113_v23   ;;  %5280 = vperm.xlu0 %7576, %v5112_v56  }
 0x5fb   : > { %5295 = vperm.xlu1 %7577, %v5115_v58   ;;  %5290 = vperm.xlu0 %7576, %v5114_v52   ;;  %v11806_v58 = vld [vmem:[#allocation5 + $0x160] sm:$0xff]  ;;  %v11808_v52 = vld [vmem:[#allocation5 + $0x168] sm:$0xff] }
 0x5ff   : > { %5305 = vperm.xlu1 %7577, %v5117_v34   ;;  %5300 = vperm.xlu0 %7576, %v5116_v13   ;;  %v11810_v34 = vld [vmem:[#allocation5 + $0x170] sm:$0xff]  ;;  %v11812_v13 = vld [vmem:[#allocation5 + $0x178] sm:$0xff] }
 0x636   : > { %v5131_v1 = vpop.permute.xlu1 %5130  ;;  %v5121_v3 = vpop.permute.xlu0 %5120 }
 0x637   : > { %v5324_v18 = vsub.f32 %v4792_v62, %v5131_v1  ;;  %v5325_v20 = vsub.f32 %v4793_v5, %v5131_v1  ;;  %v5326_v45 = vsub.f32 %v4794_v51, %v5131_v1  ;;  %v5327_v28 = vsub.f32 %v4795_v57, %v5131_v1 }
 0x638   : > { %v5328_v47 = vsub.f32 %v4796_v21, %v5131_v1  ;;  %v5329_v8 = vsub.f32 %v4797_v40, %v5131_v1  ;;  %v5330_v31 = vsub.f32 %v4798_v53, %v5131_v1  ;;  %v5331_v49 = vsub.f32 %v4799_v16, %v5131_v1  ;;  %v11818_v21 = vld [vmem:[#allocation5 + $0x100] sm:$0xff]  ;;  %v11820_v40 = vld [vmem:[#allocation5 + $0x108] sm:$0xff]  ;;  %v11822_v53 = vld [vmem:[#allocation5 + $0x110] sm:$0xff] }
 0x639   : > { %5628 = vst [vmem:[#allocation12 + $0x80] sm:$0xff] %v5324_v18  ;;  %5629 = vst [vmem:[#allocation12 + $0x88] sm:$0xff] %v5325_v20  ;;  %v5308_v19 = vsub.f32 %v4776_v9, %v5121_v3  ;;  %v5309_v14 = vsub.f32 %v4777_v39, %v5121_v3  ;;  %v5310_v36 = vsub.f32 %v4778_v54, %v5121_v3  ;;  %v11824_v16 = vld [vmem:[#allocation5 + $0x118] sm:$0xff]  ;;  %v11852_v18 = vld [vmem:[#allocation5 + $0x1c0] sm:$0xff] }
 0x63a   : > { %5630 = vst [vmem:[#allocation12 + $0x90] sm:$0xff] %v5326_v45  ;;  %5631 = vst [vmem:[#allocation12 + $0x98] sm:$0xff] %v5327_v28  ;;  %v5311_v60 = vsub.f32 %v4779_v4, %v5121_v3  ;;  %v5312_v41 = vsub.f32 %v11748_v24, %v5121_v3  ;;  %v5313_v15 = vsub.f32 %v11750_v50, %v5121_v3  ;;  %v5136_v30 = vpop.permute.xlu1 %5135  ;;  %v11792_v25 = vpop.permute.xlu0 %5125  ;;  %v11834_v24 = vld [vmem:[#allocation5 + $0x120] sm:$0xff]  ;;  %v11836_v50 = vld [vmem:[#allocation5 + $0x128] sm:$0xff] }
 0x63b   : > { %5632 = vst [vmem:[#allocation12 + $0xa0] sm:$0xff] %v5328_v47  ;;  %5633 = vst [vmem:[#allocation12 + $0xa8] sm:$0xff] %v5329_v8  ;;  %v5314_v43 = vsub.f32 %v11752_v61, %v5121_v3  ;;  %v5315_v44 = vsub.f32 %v11754_v63, %v5121_v3  ;;  %v5332_v37 = vsub.f32 %v11756_v32, %v5136_v30  ;;  %v11838_v61 = vld [vmem:[#allocation5 + $0x130] sm:$0xff]  ;;  %v11840_v63 = vld [vmem:[#allocation5 + $0x138] sm:$0xff] }
 0x63c   : > { %5634 = vst [vmem:[#allocation12 + $0xb0] sm:$0xff] %v5330_v31  ;;  %5635 = vst [vmem:[#allocation12 + $0xb8] sm:$0xff] %v5331_v49  ;;  %v5333_v11 = vsub.f32 %v11758_v22, %v5136_v30  ;;  %v5334_v23 = vsub.f32 %v11760_v42, %v5136_v30  ;;  %v5335_v56 = vsub.f32 %v11762_v26, %v5136_v30  ;;  %v11854_v20 = vld [vmem:[#allocation5 + $0x1c8] sm:$0xff]  ;;  %v11856_v45 = vld [vmem:[#allocation5 + $0x1d0] sm:$0xff] }
 0x63d   : > { %5612 = vst [vmem:[#allocation12] sm:$0xff] %v5308_v19  ;;  %5613 = vst [vmem:[#allocation12 + $0x8] sm:$0xff] %v5309_v14  ;;  %v5336_v62 = vsub.f32 %v11764_v10, %v5136_v30  ;;  %v5337_v5 = vsub.f32 %v11766_v29, %v5136_v30  ;;  %v5338_v51 = vsub.f32 %v11768_v6, %v5136_v30  ;;  %v11858_v28 = vld [vmem:[#allocation5 + $0x1d8] sm:$0xff]  ;;  %v11864_v47 = vld [vmem:[#allocation5 + $0x1e0] sm:$0xff] }
 0x63e   : > { %5614 = vst [vmem:[#allocation12 + $0x10] sm:$0xff] %v5310_v36  ;;  %5615 = vst [vmem:[#allocation12 + $0x18] sm:$0xff] %v5311_v60  ;;  %v5339_v57 = vsub.f32 %v11770_v48, %v5136_v30  ;;  %v5316_v9 = vsub.f32 %v11772_v59, %v11792_v25  ;;  %v5317_v39 = vsub.f32 %v11774_v38, %v11792_v25  ;;  %v5146_v42 = vpop.permute.xlu1 %5145  ;;  %v11850_v26 = vpop.permute.xlu0 %5140  ;;  %v11866_v8 = vld [vmem:[#allocation5 + $0x1e8] sm:$0xff]  ;;  %v11868_v31 = vld [vmem:[#allocation5 + $0x1f0] sm:$0xff] }
 0x63f   : > { %5616 = vst [vmem:[#allocation12 + $0x20] sm:$0xff] %v5312_v41  ;;  %5617 = vst [vmem:[#allocation12 + $0x28] sm:$0xff] %v5313_v15  ;;  %v5318_v54 = vsub.f32 %v11776_v12, %v11792_v25  ;;  %v5319_v4 = vsub.f32 %v11778_v46, %v11792_v25  ;;  %v5320_v1 = vsub.f32 %v11780_v7, %v11792_v25  ;;  %v11870_v49 = vld [vmem:[#allocation5 + $0x1f8] sm:$0xff]  ;;  %v11876_v19 = vld [vmem:[#allocation5 + $0x180] sm:$0xff] }
 0x640   : > { %5618 = vst [vmem:[#allocation12 + $0x30] sm:$0xff] %v5314_v43  ;;  %5619 = vst [vmem:[#allocation12 + $0x38] sm:$0xff] %v5315_v44  ;;  %v5321_v3 = vsub.f32 %v11782_v2, %v11792_v25  ;;  %v5322_v32 = vsub.f32 %v11784_v55, %v11792_v25  ;;  %v5323_v22 = vsub.f32 %v11786_v35, %v11792_v25  ;;  %v11878_v14 = vld [vmem:[#allocation5 + $0x188] sm:$0xff]  ;;  %v11880_v36 = vld [vmem:[#allocation5 + $0x190] sm:$0xff] }
 0x641   : > { %5636 = vst [vmem:[#allocation12 + $0xc0] sm:$0xff] %v5332_v37  ;;  %5637 = vst [vmem:[#allocation12 + $0xc8] sm:$0xff] %v5333_v11  ;;  %v5348_v10 = vsub.f32 %v11794_v27, %v5146_v42  ;;  %v5349_v29 = vsub.f32 %v11796_v33, %v5146_v42  ;;  %v5350_v6 = vsub.f32 %v11798_v17, %v5146_v42  ;;  %v11882_v60 = vld [vmem:[#allocation5 + $0x198] sm:$0xff]  ;;  %v11892_v41 = vld [vmem:[#allocation5 + $0x1a0] sm:$0xff] }
 0x642   : > { %5638 = vst [vmem:[#allocation12 + $0xd0] sm:$0xff] %v5334_v23  ;;  %5639 = vst [vmem:[#allocation12 + $0xd8] sm:$0xff] %v5335_v56  ;;  %v5351_v48 = vsub.f32 %v11800_v0, %v5146_v42  ;;  %v5352_v59 = vsub.f32 %v11806_v58, %v5146_v42  ;;  %v5353_v38 = vsub.f32 %v11808_v52, %v5146_v42  ;;  %v11894_v15 = vld [vmem:[#allocation5 + $0x1a8] sm:$0xff]  ;;  %v11896_v43 = vld [vmem:[#allocation5 + $0x1b0] sm:$0xff]  ;;  %v5156_v17 = vpop.permute.xlu1 %5155  ;;  %v11908_v0 = vpop.permute.xlu0 %5150 }
 0x643   : > { %5640 = vst [vmem:[#allocation12 + $0xe0] sm:$0xff] %v5336_v62  ;;  %5641 = vst [vmem:[#allocation12 + $0xe8] sm:$0xff] %v5337_v5  ;;  %v5354_v12 = vsub.f32 %v11810_v34, %v5146_v42  ;;  %v5355_v46 = vsub.f32 %v11812_v13, %v5146_v42  ;;  %v5340_v7 = vsub.f32 %v11818_v21, %v11850_v26  ;;  %v11898_v44 = vld [vmem:[#allocation5 + $0x1b8] sm:$0xff]  ;;  %v11910_v37 = vld [vmem:[#allocation5 + $0x240] sm:$0xff] }
 0x644   : > { %5642 = vst [vmem:[#allocation12 + $0xf0] sm:$0xff] %v5338_v51  ;;  %5643 = vst [vmem:[#allocation12 + $0xf8] sm:$0xff] %v5339_v57  ;;  %v5341_v2 = vsub.f32 %v11820_v40, %v11850_v26  ;;  %v5342_v55 = vsub.f32 %v11822_v53, %v11850_v26  ;;  %v5343_v35 = vsub.f32 %v11824_v16, %v11850_v26  ;;  %v11912_v11 = vld [vmem:[#allocation5 + $0x248] sm:$0xff]  ;;  %v11914_v23 = vld [vmem:[#allocation5 + $0x250] sm:$0xff] }
 0x645   : > { %5620 = vst [vmem:[#allocation12 + $0x40] sm:$0xff] %v5316_v9  ;;  %5621 = vst [vmem:[#allocation12 + $0x48] sm:$0xff] %v5317_v39  ;;  %v5344_v30 = vsub.f32 %v11834_v24, %v11850_v26  ;;  %v5345_v25 = vsub.f32 %v11836_v50, %v11850_v26  ;;  %v5346_v27 = vsub.f32 %v11838_v61, %v11850_v26  ;;  %v11916_v56 = vld [vmem:[#allocation5 + $0x258] sm:$0xff]  ;;  %v11922_v62 = vld [vmem:[#allocation5 + $0x260] sm:$0xff] }
 0x646   : > { %5622 = vst [vmem:[#allocation12 + $0x50] sm:$0xff] %v5318_v54  ;;  %5623 = vst [vmem:[#allocation12 + $0x58] sm:$0xff] %v5319_v4  ;;  %v5347_v33 = vsub.f32 %v11840_v63, %v11850_v26  ;;  %v5364_v58 = vsub.f32 %v11852_v18, %v5156_v17  ;;  %v5365_v52 = vsub.f32 %v11854_v20, %v5156_v17  ;;  %v11924_v5 = vld [vmem:[#allocation5 + $0x268] sm:$0xff]  ;;  %v11926_v51 = vld [vmem:[#allocation5 + $0x270] sm:$0xff] }
 0x647   : > { %5624 = vst [vmem:[#allocation12 + $0x60] sm:$0xff] %v5320_v1  ;;  %5625 = vst [vmem:[#allocation12 + $0x68] sm:$0xff] %v5321_v3  ;;  %v5366_v34 = vsub.f32 %v11856_v45, %v5156_v17  ;;  %v5367_v13 = vsub.f32 %v11858_v28, %v5156_v17  ;;  %v11928_v57 = vld [vmem:[#allocation5 + $0x278] sm:$0xff]  ;;  %v5368_v21 = vsub.f32 %v11864_v47, %v5156_v17  ;;  %v11934_v9 = vld [vmem:[#allocation5 + $0x200] sm:$0xff]  ;;  %v5166_v45 = vpop.permute.xlu1 %5165  ;;  %v11966_v28 = vpop.permute.xlu0 %5160 }
 0x648   : > { %5626 = vst [vmem:[#allocation12 + $0x70] sm:$0xff] %v5322_v32  ;;  %5627 = vst [vmem:[#allocation12 + $0x78] sm:$0xff] %v5323_v22  ;;  %v5369_v40 = vsub.f32 %v11866_v8, %v5156_v17  ;;  %v5370_v53 = vsub.f32 %v11868_v31, %v5156_v17  ;;  %v5371_v16 = vsub.f32 %v11870_v49, %v5156_v17  ;;  %v11936_v39 = vld [vmem:[#allocation5 + $0x208] sm:$0xff]  ;;  %v11938_v54 = vld [vmem:[#allocation5 + $0x210] sm:$0xff] }
 0x649   : > { %5652 = vst [vmem:[#allocation12 + $0x140] sm:$0xff] %v5348_v10  ;;  %5653 = vst [vmem:[#allocation12 + $0x148] sm:$0xff] %v5349_v29  ;;  %v11940_v4 = vld [vmem:[#allocation5 + $0x218] sm:$0xff]  ;;  %v5356_v24 = vsub.f32 %v11876_v19, %v11908_v0  ;;  %v5357_v50 = vsub.f32 %v11878_v14, %v11908_v0  ;;  %v5358_v61 = vsub.f32 %v11880_v36, %v11908_v0  ;;  %v11950_v1 = vld [vmem:[#allocation5 + $0x220] sm:$0xff] }
 0x64a   : > { %5654 = vst [vmem:[#allocation12 + $0x150] sm:$0xff] %v5350_v6  ;;  %5655 = vst [vmem:[#allocation12 + $0x158] sm:$0xff] %v5351_v48  ;;  %v5359_v63 = vsub.f32 %v11882_v60, %v11908_v0  ;;  %v11952_v3 = vld [vmem:[#allocation5 + $0x228] sm:$0xff]  ;;  %v11954_v32 = vld [vmem:[#allocation5 + $0x230] sm:$0xff]  ;;  %v5360_v42 = vsub.f32 %v11892_v41, %v11908_v0  ;;  %v5361_v26 = vsub.f32 %v11894_v15, %v11908_v0 }
 0x64b   : > { %5656 = vst [vmem:[#allocation12 + $0x160] sm:$0xff] %v5352_v59  ;;  %5657 = vst [vmem:[#allocation12 + $0x168] sm:$0xff] %v5353_v38  ;;  %v11956_v22 = vld [vmem:[#allocation5 + $0x238] sm:$0xff]  ;;  %v5362_v18 = vsub.f32 %v11896_v43, %v11908_v0  ;;  %v5363_v20 = vsub.f32 %v11898_v44, %v11908_v0  ;;  %v11968_v10 = vld [vmem:[#allocation5 + $0x2c0] sm:$0xff]  ;;  %v5380_v47 = vsub.f32 %v11910_v37, %v5166_v45 }
 0x64c   : > { %5658 = vst [vmem:[#allocation12 + $0x170] sm:$0xff] %v5354_v12  ;;  %5659 = vst [vmem:[#allocation12 + $0x178] sm:$0xff] %v5355_v46  ;;  %v11970_v29 = vld [vmem:[#allocation5 + $0x2c8] sm:$0xff]  ;;  %v11972_v6 = vld [vmem:[#allocation5 + $0x2d0] sm:$0xff]  ;;  %v5381_v8 = vsub.f32 %v11912_v11, %v5166_v45  ;;  %v5382_v31 = vsub.f32 %v11914_v23, %v5166_v45  ;;  %v5383_v49 = vsub.f32 %v11916_v56, %v5166_v45  ;;  %v5176_v23 = vpop.permute.xlu1 %5175  ;;  %v12024_v56 = vpop.permute.xlu0 %5170 }
 0x64d   : > { %5644 = vst [vmem:[#allocation12 + $0x100] sm:$0xff] %v5340_v7  ;;  %5645 = vst [vmem:[#allocation12 + $0x108] sm:$0xff] %v5341_v2  ;;  %v11974_v48 = vld [vmem:[#allocation5 + $0x2d8] sm:$0xff]  ;;  %v11980_v59 = vld [vmem:[#allocation5 + $0x2e0] sm:$0xff]  ;;  %v5384_v19 = vsub.f32 %v11922_v62, %v5166_v45  ;;  %v5385_v14 = vsub.f32 %v11924_v5, %v5166_v45  ;;  %v5386_v36 = vsub.f32 %v11926_v51, %v5166_v45 }
 0x64e   : > { %5646 = vst [vmem:[#allocation12 + $0x110] sm:$0xff] %v5342_v55  ;;  %5647 = vst [vmem:[#allocation12 + $0x118] sm:$0xff] %v5343_v35  ;;  %v11982_v38 = vld [vmem:[#allocation5 + $0x2e8] sm:$0xff]  ;;  %v11984_v12 = vld [vmem:[#allocation5 + $0x2f0] sm:$0xff]  ;;  %v5387_v60 = vsub.f32 %v11928_v57, %v5166_v45  ;;  %v5372_v41 = vsub.f32 %v11934_v9, %v11966_v28  ;;  %v5373_v15 = vsub.f32 %v11936_v39, %v11966_v28 }
 0x64f   : > { %5648 = vst [vmem:[#allocation12 + $0x120] sm:$0xff] %v5344_v30  ;;  %5649 = vst [vmem:[#allocation12 + $0x128] sm:$0xff] %v5345_v25  ;;  %v11986_v46 = vld [vmem:[#allocation5 + $0x2f8] sm:$0xff]  ;;  %v11992_v7 = vld [vmem:[#allocation5 + $0x280] sm:$0xff]  ;;  %v5374_v43 = vsub.f32 %v11938_v54, %v11966_v28  ;;  %v5375_v44 = vsub.f32 %v11940_v4, %v11966_v28  ;;  %v5376_v17 = vsub.f32 %v11950_v1, %v11966_v28 }
 0x650   : > { %5650 = vst [vmem:[#allocation12 + $0x130] sm:$0xff] %v5346_v27  ;;  %5651 = vst [vmem:[#allocation12 + $0x138] sm:$0xff] %v5347_v33  ;;  %v11994_v2 = vld [vmem:[#allocation5 + $0x288] sm:$0xff]  ;;  %v11996_v55 = vld [vmem:[#allocation5 + $0x290] sm:$0xff]  ;;  %v5377_v0 = vsub.f32 %v11952_v3, %v11966_v28  ;;  %v5378_v37 = vsub.f32 %v11954_v32, %v11966_v28  ;;  %v5379_v11 = vsub.f32 %v11956_v22, %v11966_v28 }
 0x651   : > { %5668 = vst [vmem:[#allocation12 + $0x1c0] sm:$0xff] %v5364_v58  ;;  %5669 = vst [vmem:[#allocation12 + $0x1c8] sm:$0xff] %v5365_v52  ;;  %v11998_v35 = vld [vmem:[#allocation5 + $0x298] sm:$0xff]  ;;  %v12008_v30 = vld [vmem:[#allocation5 + $0x2a0] sm:$0xff]  ;;  %v5396_v62 = vsub.f32 %v11968_v10, %v5176_v23  ;;  %v5397_v5 = vsub.f32 %v11970_v29, %v5176_v23  ;;  %v5398_v51 = vsub.f32 %v11972_v6, %v5176_v23  ;;  %v5186_v6 = vpop.permute.xlu1 %5185 }
 0x652   : > { %5670 = vst [vmem:[#allocation12 + $0x1d0] sm:$0xff] %v5366_v34  ;;  %5671 = vst [vmem:[#allocation12 + $0x1d8] sm:$0xff] %v5367_v13  ;;  %v12010_v25 = vld [vmem:[#allocation5 + $0x2a8] sm:$0xff]  ;;  %v12012_v27 = vld [vmem:[#allocation5 + $0x2b0] sm:$0xff]  ;;  %v5399_v57 = vsub.f32 %v11974_v48, %v5176_v23  ;;  %v5400_v9 = vsub.f32 %v11980_v59, %v5176_v23  ;;  %v5401_v39 = vsub.f32 %v11982_v38, %v5176_v23  ;;  %v12082_v48 = vpop.permute.xlu0 %5180 }
 0x653   : > { %5672 = vst [vmem:[#allocation12 + $0x1e0] sm:$0xff] %v5368_v21  ;;  %5673 = vst [vmem:[#allocation12 + $0x1e8] sm:$0xff] %v5369_v40  ;;  %v12014_v33 = vld [vmem:[#allocation5 + $0x2b8] sm:$0xff]  ;;  %v12026_v58 = vld [vmem:[#allocation5 + $0x340] sm:$0xff]  ;;  %v5402_v54 = vsub.f32 %v11984_v12, %v5176_v23  ;;  %v5403_v4 = vsub.f32 %v11986_v46, %v5176_v23  ;;  %v5388_v1 = vsub.f32 %v11992_v7, %v12024_v56 }
 0x654   : > { %5674 = vst [vmem:[#allocation12 + $0x1f0] sm:$0xff] %v5370_v53  ;;  %5675 = vst [vmem:[#allocation12 + $0x1f8] sm:$0xff] %v5371_v16  ;;  %v12028_v52 = vld [vmem:[#allocation5 + $0x348] sm:$0xff]  ;;  %v12030_v34 = vld [vmem:[#allocation5 + $0x350] sm:$0xff]  ;;  %v5389_v3 = vsub.f32 %v11994_v2, %v12024_v56  ;;  %v5390_v32 = vsub.f32 %v11996_v55, %v12024_v56  ;;  %v5391_v22 = vsub.f32 %v11998_v35, %v12024_v56 }
 0x655   : > { %5660 = vst [vmem:[#allocation12 + $0x180] sm:$0xff] %v5356_v24  ;;  %5661 = vst [vmem:[#allocation12 + $0x188] sm:$0xff] %v5357_v50  ;;  %v12032_v13 = vld [vmem:[#allocation5 + $0x358] sm:$0xff]  ;;  %v12038_v21 = vld [vmem:[#allocation5 + $0x360] sm:$0xff]  ;;  %v5392_v45 = vsub.f32 %v12008_v30, %v12024_v56  ;;  %v5393_v28 = vsub.f32 %v12010_v25, %v12024_v56  ;;  %v5394_v10 = vsub.f32 %v12012_v27, %v12024_v56 }
 0x656   : > { %5662 = vst [vmem:[#allocation12 + $0x190] sm:$0xff] %v5358_v61  ;;  %5663 = vst [vmem:[#allocation12 + $0x198] sm:$0xff] %v5359_v63  ;;  %v12040_v40 = vld [vmem:[#allocation5 + $0x368] sm:$0xff]  ;;  %v12042_v53 = vld [vmem:[#allocation5 + $0x370] sm:$0xff]  ;;  %v5395_v29 = vsub.f32 %v12014_v33, %v12024_v56  ;;  %v5412_v59 = vsub.f32 %v12026_v58, %v5186_v6  ;;  %v5413_v38 = vsub.f32 %v12028_v52, %v5186_v6 }
 0x657   : > { %5664 = vst [vmem:[#allocation12 + $0x1a0] sm:$0xff] %v5360_v42  ;;  %5665 = vst [vmem:[#allocation12 + $0x1a8] sm:$0xff] %v5361_v26  ;;  %v12044_v16 = vld [vmem:[#allocation5 + $0x378] sm:$0xff]  ;;  %v12050_v24 = vld [vmem:[#allocation5 + $0x300] sm:$0xff]  ;;  %v5414_v12 = vsub.f32 %v12030_v34, %v5186_v6  ;;  %v5415_v46 = vsub.f32 %v12032_v13, %v5186_v6  ;;  %v5416_v7 = vsub.f32 %v12038_v21, %v5186_v6  ;;  %v5196_v34 = vpop.permute.xlu1 %5195  ;;  %v12140_v13 = vpop.permute.xlu0 %5190 }
 0x658   : > { %5666 = vst [vmem:[#allocation12 + $0x1b0] sm:$0xff] %v5362_v18  ;;  %5667 = vst [vmem:[#allocation12 + $0x1b8] sm:$0xff] %v5363_v20  ;;  %v12052_v50 = vld [vmem:[#allocation5 + $0x308] sm:$0xff]  ;;  %v12054_v61 = vld [vmem:[#allocation5 + $0x310] sm:$0xff]  ;;  %v5417_v2 = vsub.f32 %v12040_v40, %v5186_v6  ;;  %v5418_v55 = vsub.f32 %v12042_v53, %v5186_v6  ;;  %v5419_v35 = vsub.f32 %v12044_v16, %v5186_v6 }
 0x659   : > { %5684 = vst [vmem:[#allocation12 + $0x240] sm:$0xff] %v5380_v47  ;;  %5685 = vst [vmem:[#allocation12 + $0x248] sm:$0xff] %v5381_v8  ;;  %v12056_v63 = vld [vmem:[#allocation5 + $0x318] sm:$0xff]  ;;  %v12066_v42 = vld [vmem:[#allocation5 + $0x320] sm:$0xff]  ;;  %v5404_v30 = vsub.f32 %v12050_v24, %v12082_v48  ;;  %v5405_v25 = vsub.f32 %v12052_v50, %v12082_v48  ;;  %v5406_v27 = vsub.f32 %v12054_v61, %v12082_v48 }
 0x65a   : > { %5686 = vst [vmem:[#allocation12 + $0x250] sm:$0xff] %v5382_v31  ;;  %5687 = vst [vmem:[#allocation12 + $0x258] sm:$0xff] %v5383_v49  ;;  %v12068_v26 = vld [vmem:[#allocation5 + $0x328] sm:$0xff]  ;;  %v12070_v18 = vld [vmem:[#allocation5 + $0x330] sm:$0xff]  ;;  %v5407_v33 = vsub.f32 %v12056_v63, %v12082_v48  ;;  %v5408_v23 = vsub.f32 %v12066_v42, %v12082_v48 }
 0x65b   : > { %5688 = vst [vmem:[#allocation12 + $0x260] sm:$0xff] %v5384_v19  ;;  %5689 = vst [vmem:[#allocation12 + $0x268] sm:$0xff] %v5385_v14  ;;  %v12072_v20 = vld [vmem:[#allocation5 + $0x338] sm:$0xff]  ;;  %v12084_v47 = vld [vmem:[#allocation5 + $0x3c0] sm:$0xff]  ;;  %v5409_v56 = vsub.f32 %v12068_v26, %v12082_v48  ;;  %v5410_v58 = vsub.f32 %v12070_v18, %v12082_v48 }
 0x65c   : > { %5690 = vst [vmem:[#allocation12 + $0x270] sm:$0xff] %v5386_v36  ;;  %5691 = vst [vmem:[#allocation12 + $0x278] sm:$0xff] %v5387_v60  ;;  %v12086_v8 = vld [vmem:[#allocation5 + $0x3c8] sm:$0xff]  ;;  %v12088_v31 = vld [vmem:[#allocation5 + $0x3d0] sm:$0xff]  ;;  %v5411_v52 = vsub.f32 %v12072_v20, %v12082_v48  ;;  %v5428_v21 = vsub.f32 %v12084_v47, %v5196_v34 }
 0x65d   : > { %5676 = vst [vmem:[#allocation12 + $0x200] sm:$0xff] %v5372_v41  ;;  %5677 = vst [vmem:[#allocation12 + $0x208] sm:$0xff] %v5373_v15  ;;  %v12090_v49 = vld [vmem:[#allocation5 + $0x3d8] sm:$0xff]  ;;  %v12096_v19 = vld [vmem:[#allocation5 + $0x3e0] sm:$0xff]  ;;  %v5429_v40 = vsub.f32 %v12086_v8, %v5196_v34  ;;  %v5430_v53 = vsub.f32 %v12088_v31, %v5196_v34  ;;  %v5206_v31 = vpop.permute.xlu1 %5205 }
 0x65e   : > { %5678 = vst [vmem:[#allocation12 + $0x210] sm:$0xff] %v5374_v43  ;;  %5679 = vst [vmem:[#allocation12 + $0x218] sm:$0xff] %v5375_v44  ;;  %v12098_v14 = vld [vmem:[#allocation5 + $0x3e8] sm:$0xff]  ;;  %v12100_v36 = vld [vmem:[#allocation5 + $0x3f0] sm:$0xff]  ;;  %v5431_v16 = vsub.f32 %v12090_v49, %v5196_v34  ;;  %v5432_v24 = vsub.f32 %v12096_v19, %v5196_v34  ;;  %v12198_v49 = vpop.permute.xlu0 %5200 }
 0x65f   : > { %5680 = vst [vmem:[#allocation12 + $0x220] sm:$0xff] %v5376_v17  ;;  %5681 = vst [vmem:[#allocation12 + $0x228] sm:$0xff] %v5377_v0  ;;  %v12102_v60 = vld [vmem:[#allocation5 + $0x3f8] sm:$0xff]  ;;  %v12108_v41 = vld [vmem:[#allocation5 + $0x380] sm:$0xff]  ;;  %v5433_v50 = vsub.f32 %v12098_v14, %v5196_v34  ;;  %v5434_v61 = vsub.f32 %v12100_v36, %v5196_v34 }
 0x660   : > { %5682 = vst [vmem:[#allocation12 + $0x230] sm:$0xff] %v5378_v37  ;;  %5683 = vst [vmem:[#allocation12 + $0x238] sm:$0xff] %v5379_v11  ;;  %v12110_v15 = vld [vmem:[#allocation5 + $0x388] sm:$0xff]  ;;  %v12112_v43 = vld [vmem:[#allocation5 + $0x390] sm:$0xff]  ;;  %v5435_v63 = vsub.f32 %v12102_v60, %v5196_v34  ;;  %v5420_v42 = vsub.f32 %v12108_v41, %v12140_v13 }
 0x661   : > { %5700 = vst [vmem:[#allocation12 + $0x2c0] sm:$0xff] %v5396_v62  ;;  %5701 = vst [vmem:[#allocation12 + $0x2c8] sm:$0xff] %v5397_v5  ;;  %v12114_v44 = vld [vmem:[#allocation5 + $0x398] sm:$0xff]  ;;  %v12124_v17 = vld [vmem:[#allocation5 + $0x3a0] sm:$0xff]  ;;  %v5421_v26 = vsub.f32 %v12110_v15, %v12140_v13  ;;  %v5422_v18 = vsub.f32 %v12112_v43, %v12140_v13 }
 0x662   : > { %5702 = vst [vmem:[#allocation12 + $0x2d0] sm:$0xff] %v5398_v51  ;;  %5703 = vst [vmem:[#allocation12 + $0x2d8] sm:$0xff] %v5399_v57  ;;  %v12126_v0 = vld [vmem:[#allocation5 + $0x3a8] sm:$0xff]  ;;  %v12128_v37 = vld [vmem:[#allocation5 + $0x3b0] sm:$0xff]  ;;  %v5423_v20 = vsub.f32 %v12114_v44, %v12140_v13  ;;  %v5424_v6 = vsub.f32 %v12124_v17, %v12140_v13 }
 0x663   : > { %5704 = vst [vmem:[#allocation12 + $0x2e0] sm:$0xff] %v5400_v9  ;;  %5705 = vst [vmem:[#allocation12 + $0x2e8] sm:$0xff] %v5401_v39  ;;  %v12130_v11 = vld [vmem:[#allocation5 + $0x3b8] sm:$0xff]  ;;  %v12142_v62 = vld [vmem:[#allocation5 + $0x440] sm:$0xff]  ;;  %v5425_v48 = vsub.f32 %v12126_v0, %v12140_v13  ;;  %v5426_v47 = vsub.f32 %v12128_v37, %v12140_v13 }
 0x664   : > { %5706 = vst [vmem:[#allocation12 + $0x2f0] sm:$0xff] %v5402_v54  ;;  %5707 = vst [vmem:[#allocation12 + $0x2f8] sm:$0xff] %v5403_v4  ;;  %v12144_v5 = vld [vmem:[#allocation5 + $0x448] sm:$0xff]  ;;  %v12146_v51 = vld [vmem:[#allocation5 + $0x450] sm:$0xff]  ;;  %v5427_v8 = vsub.f32 %v12130_v11, %v12140_v13  ;;  %v5444_v19 = vsub.f32 %v12142_v62, %v5206_v31 }
 0x665   : > { %5692 = vst [vmem:[#allocation12 + $0x280] sm:$0xff] %v5388_v1  ;;  %5693 = vst [vmem:[#allocation12 + $0x288] sm:$0xff] %v5389_v3  ;;  %v12148_v57 = vld [vmem:[#allocation5 + $0x458] sm:$0xff]  ;;  %v12154_v9 = vld [vmem:[#allocation5 + $0x460] sm:$0xff]  ;;  %v5445_v14 = vsub.f32 %v12144_v5, %v5206_v31  ;;  %v5446_v36 = vsub.f32 %v12146_v51, %v5206_v31  ;;  %v5216_v51 = vpop.permute.xlu1 %5215 }
 0x666   : > { %5694 = vst [vmem:[#allocation12 + $0x290] sm:$0xff] %v5390_v32  ;;  %5695 = vst [vmem:[#allocation12 + $0x298] sm:$0xff] %v5391_v22  ;;  %v12156_v39 = vld [vmem:[#allocation5 + $0x468] sm:$0xff]  ;;  %v12158_v54 = vld [vmem:[#allocation5 + $0x470] sm:$0xff]  ;;  %v5447_v60 = vsub.f32 %v12148_v57, %v5206_v31  ;;  %v5448_v41 = vsub.f32 %v12154_v9, %v5206_v31  ;;  %v12256_v57 = vpop.permute.xlu0 %5210 }
 0x667   : > { %5696 = vst [vmem:[#allocation12 + $0x2a0] sm:$0xff] %v5392_v45  ;;  %5697 = vst [vmem:[#allocation12 + $0x2a8] sm:$0xff] %v5393_v28  ;;  %v12160_v4 = vld [vmem:[#allocation5 + $0x478] sm:$0xff]  ;;  %v12166_v1 = vld [vmem:[#allocation5 + $0x400] sm:$0xff]  ;;  %v5449_v15 = vsub.f32 %v12156_v39, %v5206_v31  ;;  %v5450_v43 = vsub.f32 %v12158_v54, %v5206_v31 }
 0x668   : > { %5698 = vst [vmem:[#allocation12 + $0x2b0] sm:$0xff] %v5394_v10  ;;  %5699 = vst [vmem:[#allocation12 + $0x2b8] sm:$0xff] %v5395_v29  ;;  %v12168_v3 = vld [vmem:[#allocation5 + $0x408] sm:$0xff]  ;;  %v12170_v32 = vld [vmem:[#allocation5 + $0x410] sm:$0xff]  ;;  %v5451_v44 = vsub.f32 %v12160_v4, %v5206_v31  ;;  %v5436_v17 = vsub.f32 %v12166_v1, %v12198_v49 }
 0x669   : > { %5716 = vst [vmem:[#allocation12 + $0x340] sm:$0xff] %v5412_v59  ;;  %5717 = vst [vmem:[#allocation12 + $0x348] sm:$0xff] %v5413_v38  ;;  %v12172_v22 = vld [vmem:[#allocation5 + $0x418] sm:$0xff]  ;;  %v12182_v45 = vld [vmem:[#allocation5 + $0x420] sm:$0xff]  ;;  %v5437_v0 = vsub.f32 %v12168_v3, %v12198_v49  ;;  %v5438_v37 = vsub.f32 %v12170_v32, %v12198_v49 }
 0x66a   : > { %5718 = vst [vmem:[#allocation12 + $0x350] sm:$0xff] %v5414_v12  ;;  %5719 = vst [vmem:[#allocation12 + $0x358] sm:$0xff] %v5415_v46  ;;  %v12184_v28 = vld [vmem:[#allocation5 + $0x428] sm:$0xff]  ;;  %v12186_v10 = vld [vmem:[#allocation5 + $0x430] sm:$0xff]  ;;  %v5439_v11 = vsub.f32 %v12172_v22, %v12198_v49  ;;  %v5440_v34 = vsub.f32 %v12182_v45, %v12198_v49 }
 0x66b   : > { %5720 = vst [vmem:[#allocation12 + $0x360] sm:$0xff] %v5416_v7  ;;  %5721 = vst [vmem:[#allocation12 + $0x368] sm:$0xff] %v5417_v2  ;;  %v12188_v29 = vld [vmem:[#allocation5 + $0x438] sm:$0xff]  ;;  %v12200_v59 = vld [vmem:[#allocation5 + $0x4c0] sm:$0xff]  ;;  %v5441_v13 = vsub.f32 %v12184_v28, %v12198_v49  ;;  %v5442_v62 = vsub.f32 %v12186_v10, %v12198_v49 }
 0x66c   : > { %5722 = vst [vmem:[#allocation12 + $0x370] sm:$0xff] %v5418_v55  ;;  %5723 = vst [vmem:[#allocation12 + $0x378] sm:$0xff] %v5419_v35  ;;  %v12202_v38 = vld [vmem:[#allocation5 + $0x4c8] sm:$0xff]  ;;  %v12204_v12 = vld [vmem:[#allocation5 + $0x4d0] sm:$0xff]  ;;  %v5443_v5 = vsub.f32 %v12188_v29, %v12198_v49  ;;  %v5460_v9 = vsub.f32 %v12200_v59, %v5216_v51 }
 0x66d   : > { %5708 = vst [vmem:[#allocation12 + $0x300] sm:$0xff] %v5404_v30  ;;  %5709 = vst [vmem:[#allocation12 + $0x308] sm:$0xff] %v5405_v25  ;;  %v12206_v46 = vld [vmem:[#allocation5 + $0x4d8] sm:$0xff]  ;;  %v12212_v7 = vld [vmem:[#allocation5 + $0x4e0] sm:$0xff]  ;;  %v5461_v39 = vsub.f32 %v12202_v38, %v5216_v51  ;;  %v5462_v54 = vsub.f32 %v12204_v12, %v5216_v51  ;;  %v5226_v12 = vpop.permute.xlu1 %5225 }
 0x66e   : > { %5710 = vst [vmem:[#allocation12 + $0x310] sm:$0xff] %v5406_v27  ;;  %5711 = vst [vmem:[#allocation12 + $0x318] sm:$0xff] %v5407_v33  ;;  %v12214_v2 = vld [vmem:[#allocation5 + $0x4e8] sm:$0xff]  ;;  %v12216_v55 = vld [vmem:[#allocation5 + $0x4f0] sm:$0xff]  ;;  %v5463_v4 = vsub.f32 %v12206_v46, %v5216_v51  ;;  %v5464_v1 = vsub.f32 %v12212_v7, %v5216_v51  ;;  %v12314_v46 = vpop.permute.xlu0 %5220 }
 0x66f   : > { %5712 = vst [vmem:[#allocation12 + $0x320] sm:$0xff] %v5408_v23  ;;  %5713 = vst [vmem:[#allocation12 + $0x328] sm:$0xff] %v5409_v56  ;;  %v12218_v35 = vld [vmem:[#allocation5 + $0x4f8] sm:$0xff]  ;;  %v12224_v30 = vld [vmem:[#allocation5 + $0x480] sm:$0xff]  ;;  %v5465_v3 = vsub.f32 %v12214_v2, %v5216_v51  ;;  %v5466_v32 = vsub.f32 %v12216_v55, %v5216_v51 }
 0x670   : > { %5714 = vst [vmem:[#allocation12 + $0x330] sm:$0xff] %v5410_v58  ;;  %5715 = vst [vmem:[#allocation12 + $0x338] sm:$0xff] %v5411_v52  ;;  %v12226_v25 = vld [vmem:[#allocation5 + $0x488] sm:$0xff]  ;;  %v12228_v27 = vld [vmem:[#allocation5 + $0x490] sm:$0xff]  ;;  %v5467_v22 = vsub.f32 %v12218_v35, %v5216_v51  ;;  %v5452_v45 = vsub.f32 %v12224_v30, %v12256_v57 }
 0x671   : > { %5732 = vst [vmem:[#allocation12 + $0x3c0] sm:$0xff] %v5428_v21  ;;  %5733 = vst [vmem:[#allocation12 + $0x3c8] sm:$0xff] %v5429_v40  ;;  %v12230_v33 = vld [vmem:[#allocation5 + $0x498] sm:$0xff]  ;;  %v12240_v23 = vld [vmem:[#allocation5 + $0x4a0] sm:$0xff]  ;;  %v5453_v28 = vsub.f32 %v12226_v25, %v12256_v57  ;;  %v5454_v10 = vsub.f32 %v12228_v27, %v12256_v57 }
 0x672   : > { %5734 = vst [vmem:[#allocation12 + $0x3d0] sm:$0xff] %v5430_v53  ;;  %5735 = vst [vmem:[#allocation12 + $0x3d8] sm:$0xff] %v5431_v16  ;;  %v12242_v56 = vld [vmem:[#allocation5 + $0x4a8] sm:$0xff]  ;;  %v12244_v58 = vld [vmem:[#allocation5 + $0x4b0] sm:$0xff]  ;;  %v5455_v29 = vsub.f32 %v12230_v33, %v12256_v57  ;;  %v5456_v31 = vsub.f32 %v12240_v23, %v12256_v57 }
 0x673   : > { %5736 = vst [vmem:[#allocation12 + $0x3e0] sm:$0xff] %v5432_v24  ;;  %5737 = vst [vmem:[#allocation12 + $0x3e8] sm:$0xff] %v5433_v50  ;;  %v12246_v52 = vld [vmem:[#allocation5 + $0x4b8] sm:$0xff]  ;;  %v12258_v21 = vld [vmem:[#allocation5 + $0x540] sm:$0xff]  ;;  %v5457_v49 = vsub.f32 %v12242_v56, %v12256_v57  ;;  %v5458_v59 = vsub.f32 %v12244_v58, %v12256_v57 }
 0x674   : > { %5738 = vst [vmem:[#allocation12 + $0x3f0] sm:$0xff] %v5434_v61  ;;  %5739 = vst [vmem:[#allocation12 + $0x3f8] sm:$0xff] %v5435_v63  ;;  %v12260_v40 = vld [vmem:[#allocation5 + $0x548] sm:$0xff]  ;;  %v12262_v53 = vld [vmem:[#allocation5 + $0x550] sm:$0xff]  ;;  %v5459_v38 = vsub.f32 %v12246_v52, %v12256_v57  ;;  %v5476_v7 = vsub.f32 %v12258_v21, %v5226_v12 }
 0x675   : > { %5724 = vst [vmem:[#allocation12 + $0x380] sm:$0xff] %v5420_v42  ;;  %5725 = vst [vmem:[#allocation12 + $0x388] sm:$0xff] %v5421_v26  ;;  %v12264_v16 = vld [vmem:[#allocation5 + $0x558] sm:$0xff]  ;;  %v12270_v24 = vld [vmem:[#allocation5 + $0x560] sm:$0xff]  ;;  %v5477_v2 = vsub.f32 %v12260_v40, %v5226_v12  ;;  %v5478_v55 = vsub.f32 %v12262_v53, %v5226_v12  ;;  %v5236_v53 = vpop.permute.xlu1 %5235 }
 0x676   : > { %5726 = vst [vmem:[#allocation12 + $0x390] sm:$0xff] %v5422_v18  ;;  %5727 = vst [vmem:[#allocation12 + $0x398] sm:$0xff] %v5423_v20  ;;  %v12272_v50 = vld [vmem:[#allocation5 + $0x568] sm:$0xff]  ;;  %v12274_v61 = vld [vmem:[#allocation5 + $0x570] sm:$0xff]  ;;  %v5479_v35 = vsub.f32 %v12264_v16, %v5226_v12  ;;  %v5480_v30 = vsub.f32 %v12270_v24, %v5226_v12  ;;  %v12372_v16 = vpop.permute.xlu0 %5230 }
 0x677   : > { %5728 = vst [vmem:[#allocation12 + $0x3a0] sm:$0xff] %v5424_v6  ;;  %5729 = vst [vmem:[#allocation12 + $0x3a8] sm:$0xff] %v5425_v48  ;;  %v12276_v63 = vld [vmem:[#allocation5 + $0x578] sm:$0xff]  ;;  %v12282_v42 = vld [vmem:[#allocation5 + $0x500] sm:$0xff]  ;;  %v5481_v25 = vsub.f32 %v12272_v50, %v5226_v12  ;;  %v5482_v27 = vsub.f32 %v12274_v61, %v5226_v12 }
 0x678   : > { %5730 = vst [vmem:[#allocation12 + $0x3b0] sm:$0xff] %v5426_v47  ;;  %5731 = vst [vmem:[#allocation12 + $0x3b8] sm:$0xff] %v5427_v8  ;;  %v12284_v26 = vld [vmem:[#allocation5 + $0x508] sm:$0xff]  ;;  %v12286_v18 = vld [vmem:[#allocation5 + $0x510] sm:$0xff]  ;;  %v5483_v33 = vsub.f32 %v12276_v63, %v5226_v12  ;;  %v5468_v23 = vsub.f32 %v12282_v42, %v12314_v46 }
 0x679   : > { %5748 = vst [vmem:[#allocation12 + $0x440] sm:$0xff] %v5444_v19  ;;  %5749 = vst [vmem:[#allocation12 + $0x448] sm:$0xff] %v5445_v14  ;;  %v12288_v20 = vld [vmem:[#allocation5 + $0x518] sm:$0xff]  ;;  %v12298_v6 = vld [vmem:[#allocation5 + $0x520] sm:$0xff]  ;;  %v5469_v56 = vsub.f32 %v12284_v26, %v12314_v46  ;;  %v5470_v58 = vsub.f32 %v12286_v18, %v12314_v46 }
 0x67a   : > { %5750 = vst [vmem:[#allocation12 + $0x450] sm:$0xff] %v5446_v36  ;;  %5751 = vst [vmem:[#allocation12 + $0x458] sm:$0xff] %v5447_v60  ;;  %v12300_v48 = vld [vmem:[#allocation5 + $0x528] sm:$0xff]  ;;  %v12302_v47 = vld [vmem:[#allocation5 + $0x530] sm:$0xff]  ;;  %v5471_v52 = vsub.f32 %v12288_v20, %v12314_v46  ;;  %v5472_v51 = vsub.f32 %v12298_v6, %v12314_v46 }
 0x67b   : > { %5752 = vst [vmem:[#allocation12 + $0x460] sm:$0xff] %v5448_v41  ;;  %5753 = vst [vmem:[#allocation12 + $0x468] sm:$0xff] %v5449_v15  ;;  %v12304_v8 = vld [vmem:[#allocation5 + $0x538] sm:$0xff]  ;;  %v12316_v19 = vld [vmem:[#allocation5 + $0x5c0] sm:$0xff]  ;;  %v5473_v57 = vsub.f32 %v12300_v48, %v12314_v46  ;;  %v5474_v21 = vsub.f32 %v12302_v47, %v12314_v46 }
 0x67c   : > { %5754 = vst [vmem:[#allocation12 + $0x470] sm:$0xff] %v5450_v43  ;;  %5755 = vst [vmem:[#allocation12 + $0x478] sm:$0xff] %v5451_v44  ;;  %v12318_v14 = vld [vmem:[#allocation5 + $0x5c8] sm:$0xff]  ;;  %v12320_v36 = vld [vmem:[#allocation5 + $0x5d0] sm:$0xff]  ;;  %v5475_v40 = vsub.f32 %v12304_v8, %v12314_v46  ;;  %v5492_v24 = vsub.f32 %v12316_v19, %v5236_v53 }
 0x67d   : > { %5740 = vst [vmem:[#allocation12 + $0x400] sm:$0xff] %v5436_v17  ;;  %5741 = vst [vmem:[#allocation12 + $0x408] sm:$0xff] %v5437_v0  ;;  %v12322_v60 = vld [vmem:[#allocation5 + $0x5d8] sm:$0xff]  ;;  %v12328_v41 = vld [vmem:[#allocation5 + $0x5e0] sm:$0xff]  ;;  %v5493_v50 = vsub.f32 %v12318_v14, %v5236_v53  ;;  %v5494_v61 = vsub.f32 %v12320_v36, %v5236_v53  ;;  %v5246_v36 = vpop.permute.xlu1 %5245 }
 0x67e   : > { %5742 = vst [vmem:[#allocation12 + $0x410] sm:$0xff] %v5438_v37  ;;  %5743 = vst [vmem:[#allocation12 + $0x418] sm:$0xff] %v5439_v11  ;;  %v12330_v15 = vld [vmem:[#allocation5 + $0x5e8] sm:$0xff]  ;;  %v12332_v43 = vld [vmem:[#allocation5 + $0x5f0] sm:$0xff]  ;;  %v5495_v63 = vsub.f32 %v12322_v60, %v5236_v53  ;;  %v5496_v42 = vsub.f32 %v12328_v41, %v5236_v53  ;;  %v12430_v60 = vpop.permute.xlu0 %5240 }
 0x67f   : > { %5744 = vst [vmem:[#allocation12 + $0x420] sm:$0xff] %v5440_v34  ;;  %5745 = vst [vmem:[#allocation12 + $0x428] sm:$0xff] %v5441_v13  ;;  %v12334_v44 = vld [vmem:[#allocation5 + $0x5f8] sm:$0xff]  ;;  %v12340_v17 = vld [vmem:[#allocation5 + $0x580] sm:$0xff]  ;;  %v5497_v26 = vsub.f32 %v12330_v15, %v5236_v53  ;;  %v5498_v18 = vsub.f32 %v12332_v43, %v5236_v53 }
 0x680   : > { %5746 = vst [vmem:[#allocation12 + $0x430] sm:$0xff] %v5442_v62  ;;  %5747 = vst [vmem:[#allocation12 + $0x438] sm:$0xff] %v5443_v5  ;;  %v12342_v0 = vld [vmem:[#allocation5 + $0x588] sm:$0xff]  ;;  %v12344_v37 = vld [vmem:[#allocation5 + $0x590] sm:$0xff]  ;;  %v5499_v20 = vsub.f32 %v12334_v44, %v5236_v53  ;;  %v5484_v6 = vsub.f32 %v12340_v17, %v12372_v16 }
 0x681   : > { %5764 = vst [vmem:[#allocation12 + $0x4c0] sm:$0xff] %v5460_v9  ;;  %5765 = vst [vmem:[#allocation12 + $0x4c8] sm:$0xff] %v5461_v39  ;;  %v12346_v11 = vld [vmem:[#allocation5 + $0x598] sm:$0xff]  ;;  %v12356_v34 = vld [vmem:[#allocation5 + $0x5a0] sm:$0xff]  ;;  %v5485_v48 = vsub.f32 %v12342_v0, %v12372_v16  ;;  %v5486_v47 = vsub.f32 %v12344_v37, %v12372_v16 }
 0x682   : > { %5766 = vst [vmem:[#allocation12 + $0x4d0] sm:$0xff] %v5462_v54  ;;  %5767 = vst [vmem:[#allocation12 + $0x4d8] sm:$0xff] %v5463_v4  ;;  %v12358_v13 = vld [vmem:[#allocation5 + $0x5a8] sm:$0xff]  ;;  %v12360_v62 = vld [vmem:[#allocation5 + $0x5b0] sm:$0xff]  ;;  %v5487_v8 = vsub.f32 %v12346_v11, %v12372_v16  ;;  %v5488_v12 = vsub.f32 %v12356_v34, %v12372_v16 }
 0x683   : > { %5768 = vst [vmem:[#allocation12 + $0x4e0] sm:$0xff] %v5464_v1  ;;  %5769 = vst [vmem:[#allocation12 + $0x4e8] sm:$0xff] %v5465_v3  ;;  %v12362_v5 = vld [vmem:[#allocation5 + $0x5b8] sm:$0xff]  ;;  %v12374_v9 = vld [vmem:[#allocation5 + $0x640] sm:$0xff]  ;;  %v5489_v46 = vsub.f32 %v12358_v13, %v12372_v16  ;;  %v5490_v19 = vsub.f32 %v12360_v62, %v12372_v16 }
 0x684   : > { %5770 = vst [vmem:[#allocation12 + $0x4f0] sm:$0xff] %v5466_v32  ;;  %5771 = vst [vmem:[#allocation12 + $0x4f8] sm:$0xff] %v5467_v22  ;;  %v12376_v39 = vld [vmem:[#allocation5 + $0x648] sm:$0xff]  ;;  %v12378_v54 = vld [vmem:[#allocation5 + $0x650] sm:$0xff]  ;;  %v5491_v14 = vsub.f32 %v12362_v5, %v12372_v16  ;;  %v5508_v41 = vsub.f32 %v12374_v9, %v5246_v36 }
 0x685   : > { %5756 = vst [vmem:[#allocation12 + $0x480] sm:$0xff] %v5452_v45  ;;  %5757 = vst [vmem:[#allocation12 + $0x488] sm:$0xff] %v5453_v28  ;;  %v12380_v4 = vld [vmem:[#allocation5 + $0x658] sm:$0xff]  ;;  %v12386_v1 = vld [vmem:[#allocation5 + $0x660] sm:$0xff]  ;;  %v5509_v15 = vsub.f32 %v12376_v39, %v5246_v36  ;;  %v5510_v43 = vsub.f32 %v12378_v54, %v5246_v36  ;;  %v5256_v54 = vpop.permute.xlu1 %5255 }
 0x686   : > { %5758 = vst [vmem:[#allocation12 + $0x490] sm:$0xff] %v5454_v10  ;;  %5759 = vst [vmem:[#allocation12 + $0x498] sm:$0xff] %v5455_v29  ;;  %v12388_v3 = vld [vmem:[#allocation5 + $0x668] sm:$0xff]  ;;  %v12390_v32 = vld [vmem:[#allocation5 + $0x670] sm:$0xff]  ;;  %v5511_v44 = vsub.f32 %v12380_v4, %v5246_v36  ;;  %v5512_v17 = vsub.f32 %v12386_v1, %v5246_v36  ;;  %v12488_v4 = vpop.permute.xlu0 %5250 }
 0x687   : > { %5760 = vst [vmem:[#allocation12 + $0x4a0] sm:$0xff] %v5456_v31  ;;  %5761 = vst [vmem:[#allocation12 + $0x4a8] sm:$0xff] %v5457_v49  ;;  %v12392_v22 = vld [vmem:[#allocation5 + $0x678] sm:$0xff]  ;;  %v12398_v45 = vld [vmem:[#allocation5 + $0x600] sm:$0xff]  ;;  %v5513_v0 = vsub.f32 %v12388_v3, %v5246_v36  ;;  %v5514_v37 = vsub.f32 %v12390_v32, %v5246_v36 }
 0x688   : > { %5762 = vst [vmem:[#allocation12 + $0x4b0] sm:$0xff] %v5458_v59  ;;  %5763 = vst [vmem:[#allocation12 + $0x4b8] sm:$0xff] %v5459_v38  ;;  %v12400_v28 = vld [vmem:[#allocation5 + $0x608] sm:$0xff]  ;;  %v12402_v10 = vld [vmem:[#allocation5 + $0x610] sm:$0xff]  ;;  %v5515_v11 = vsub.f32 %v12392_v22, %v5246_v36  ;;  %v5500_v34 = vsub.f32 %v12398_v45, %v12430_v60 }
 0x689   : > { %5780 = vst [vmem:[#allocation12 + $0x540] sm:$0xff] %v5476_v7  ;;  %5781 = vst [vmem:[#allocation12 + $0x548] sm:$0xff] %v5477_v2  ;;  %v12404_v29 = vld [vmem:[#allocation5 + $0x618] sm:$0xff]  ;;  %v12414_v31 = vld [vmem:[#allocation5 + $0x620] sm:$0xff]  ;;  %v5501_v13 = vsub.f32 %v12400_v28, %v12430_v60  ;;  %v5502_v62 = vsub.f32 %v12402_v10, %v12430_v60 }
 0x68a   : > { %5782 = vst [vmem:[#allocation12 + $0x550] sm:$0xff] %v5478_v55  ;;  %5783 = vst [vmem:[#allocation12 + $0x558] sm:$0xff] %v5479_v35  ;;  %v12416_v49 = vld [vmem:[#allocation5 + $0x628] sm:$0xff]  ;;  %v12418_v59 = vld [vmem:[#allocation5 + $0x630] sm:$0xff]  ;;  %v5503_v5 = vsub.f32 %v12404_v29, %v12430_v60  ;;  %v5504_v53 = vsub.f32 %v12414_v31, %v12430_v60 }
 0x68b   : > { %5784 = vst [vmem:[#allocation12 + $0x560] sm:$0xff] %v5480_v30  ;;  %5785 = vst [vmem:[#allocation12 + $0x568] sm:$0xff] %v5481_v25  ;;  %v12420_v38 = vld [vmem:[#allocation5 + $0x638] sm:$0xff]  ;;  %v12432_v7 = vld [vmem:[#allocation5 + $0x6c0] sm:$0xff]  ;;  %v5505_v16 = vsub.f32 %v12416_v49, %v12430_v60  ;;  %v5506_v9 = vsub.f32 %v12418_v59, %v12430_v60 }
 0x68c   : > { %5786 = vst [vmem:[#allocation12 + $0x570] sm:$0xff] %v5482_v27  ;;  %5787 = vst [vmem:[#allocation12 + $0x578] sm:$0xff] %v5483_v33  ;;  %v12434_v2 = vld [vmem:[#allocation5 + $0x6c8] sm:$0xff]  ;;  %v12436_v55 = vld [vmem:[#allocation5 + $0x6d0] sm:$0xff]  ;;  %v5507_v39 = vsub.f32 %v12420_v38, %v12430_v60  ;;  %v5524_v1 = vsub.f32 %v12432_v7, %v5256_v54 }
 0x68d   : > { %5772 = vst [vmem:[#allocation12 + $0x500] sm:$0xff] %v5468_v23  ;;  %5773 = vst [vmem:[#allocation12 + $0x508] sm:$0xff] %v5469_v56  ;;  %v12438_v35 = vld [vmem:[#allocation5 + $0x6d8] sm:$0xff]  ;;  %v12444_v30 = vld [vmem:[#allocation5 + $0x6e0] sm:$0xff]  ;;  %v5525_v3 = vsub.f32 %v12434_v2, %v5256_v54  ;;  %v5526_v32 = vsub.f32 %v12436_v55, %v5256_v54  ;;  %v5266_v55 = vpop.permute.xlu1 %5265 }
 0x68e   : > { %5774 = vst [vmem:[#allocation12 + $0x510] sm:$0xff] %v5470_v58  ;;  %5775 = vst [vmem:[#allocation12 + $0x518] sm:$0xff] %v5471_v52  ;;  %v12446_v25 = vld [vmem:[#allocation5 + $0x6e8] sm:$0xff]  ;;  %v12448_v27 = vld [vmem:[#allocation5 + $0x6f0] sm:$0xff]  ;;  %v5527_v22 = vsub.f32 %v12438_v35, %v5256_v54  ;;  %v5528_v45 = vsub.f32 %v12444_v30, %v5256_v54  ;;  %v12546_v35 = vpop.permute.xlu0 %5260 }
 0x68f   : > { %5776 = vst [vmem:[#allocation12 + $0x520] sm:$0xff] %v5472_v51  ;;  %5777 = vst [vmem:[#allocation12 + $0x528] sm:$0xff] %v5473_v57  ;;  %v12450_v33 = vld [vmem:[#allocation5 + $0x6f8] sm:$0xff]  ;;  %v12456_v23 = vld [vmem:[#allocation5 + $0x680] sm:$0xff]  ;;  %v5529_v28 = vsub.f32 %v12446_v25, %v5256_v54  ;;  %v5530_v10 = vsub.f32 %v12448_v27, %v5256_v54 }
 0x690   : > { %5778 = vst [vmem:[#allocation12 + $0x530] sm:$0xff] %v5474_v21  ;;  %5779 = vst [vmem:[#allocation12 + $0x538] sm:$0xff] %v5475_v40  ;;  %v12458_v56 = vld [vmem:[#allocation5 + $0x688] sm:$0xff]  ;;  %v12460_v58 = vld [vmem:[#allocation5 + $0x690] sm:$0xff]  ;;  %v5531_v29 = vsub.f32 %v12450_v33, %v5256_v54  ;;  %v5516_v31 = vsub.f32 %v12456_v23, %v12488_v4 }
 0x691   : > { %5796 = vst [vmem:[#allocation12 + $0x5c0] sm:$0xff] %v5492_v24  ;;  %5797 = vst [vmem:[#allocation12 + $0x5c8] sm:$0xff] %v5493_v50  ;;  %v12462_v52 = vld [vmem:[#allocation5 + $0x698] sm:$0xff]  ;;  %v12472_v51 = vld [vmem:[#allocation5 + $0x6a0] sm:$0xff]  ;;  %v5517_v49 = vsub.f32 %v12458_v56, %v12488_v4  ;;  %v5518_v59 = vsub.f32 %v12460_v58, %v12488_v4 }
 0x692   : > { %5798 = vst [vmem:[#allocation12 + $0x5d0] sm:$0xff] %v5494_v61  ;;  %5799 = vst [vmem:[#allocation12 + $0x5d8] sm:$0xff] %v5495_v63  ;;  %v12474_v57 = vld [vmem:[#allocation5 + $0x6a8] sm:$0xff]  ;;  %v12476_v21 = vld [vmem:[#allocation5 + $0x6b0] sm:$0xff]  ;;  %v5519_v38 = vsub.f32 %v12462_v52, %v12488_v4  ;;  %v5520_v36 = vsub.f32 %v12472_v51, %v12488_v4 }
 0x693   : > { %5800 = vst [vmem:[#allocation12 + $0x5e0] sm:$0xff] %v5496_v42  ;;  %5801 = vst [vmem:[#allocation12 + $0x5e8] sm:$0xff] %v5497_v26  ;;  %v12478_v40 = vld [vmem:[#allocation5 + $0x6b8] sm:$0xff]  ;;  %v12490_v24 = vld [vmem:[#allocation5 + $0x740] sm:$0xff]  ;;  %v5521_v60 = vsub.f32 %v12474_v57, %v12488_v4  ;;  %v5522_v7 = vsub.f32 %v12476_v21, %v12488_v4 }
 0x694   : > { %5802 = vst [vmem:[#allocation12 + $0x5f0] sm:$0xff] %v5498_v18  ;;  %5803 = vst [vmem:[#allocation12 + $0x5f8] sm:$0xff] %v5499_v20  ;;  %v12492_v50 = vld [vmem:[#allocation5 + $0x748] sm:$0xff]  ;;  %v12494_v61 = vld [vmem:[#allocation5 + $0x750] sm:$0xff]  ;;  %v5523_v2 = vsub.f32 %v12478_v40, %v12488_v4  ;;  %v5540_v30 = vsub.f32 %v12490_v24, %v5266_v55 }
 0x695   : > { %5788 = vst [vmem:[#allocation12 + $0x580] sm:$0xff] %v5484_v6  ;;  %5789 = vst [vmem:[#allocation12 + $0x588] sm:$0xff] %v5485_v48  ;;  %v12496_v63 = vld [vmem:[#allocation5 + $0x758] sm:$0xff]  ;;  %v12502_v42 = vld [vmem:[#allocation5 + $0x760] sm:$0xff]  ;;  %v5541_v25 = vsub.f32 %v12492_v50, %v5266_v55  ;;  %v5542_v27 = vsub.f32 %v12494_v61, %v5266_v55  ;;  %v5276_v61 = vpop.permute.xlu1 %5275 }
 0x696   : > { %5790 = vst [vmem:[#allocation12 + $0x590] sm:$0xff] %v5486_v47  ;;  %5791 = vst [vmem:[#allocation12 + $0x598] sm:$0xff] %v5487_v8  ;;  %v12504_v26 = vld [vmem:[#allocation5 + $0x768] sm:$0xff]  ;;  %v12506_v18 = vld [vmem:[#allocation5 + $0x770] sm:$0xff]  ;;  %v5543_v33 = vsub.f32 %v12496_v63, %v5266_v55  ;;  %v5544_v23 = vsub.f32 %v12502_v42, %v5266_v55  ;;  %v12604_v63 = vpop.permute.xlu0 %5270 }
 0x697   : > { %5792 = vst [vmem:[#allocation12 + $0x5a0] sm:$0xff] %v5488_v12  ;;  %5793 = vst [vmem:[#allocation12 + $0x5a8] sm:$0xff] %v5489_v46  ;;  %v12508_v20 = vld [vmem:[#allocation5 + $0x778] sm:$0xff]  ;;  %v12514_v6 = vld [vmem:[#allocation5 + $0x700] sm:$0xff]  ;;  %v5545_v56 = vsub.f32 %v12504_v26, %v5266_v55  ;;  %v5546_v58 = vsub.f32 %v12506_v18, %v5266_v55 }
 0x698   : > { %5794 = vst [vmem:[#allocation12 + $0x5b0] sm:$0xff] %v5490_v19  ;;  %5795 = vst [vmem:[#allocation12 + $0x5b8] sm:$0xff] %v5491_v14  ;;  %v12516_v48 = vld [vmem:[#allocation5 + $0x708] sm:$0xff]  ;;  %v12518_v47 = vld [vmem:[#allocation5 + $0x710] sm:$0xff]  ;;  %v5547_v52 = vsub.f32 %v12508_v20, %v5266_v55  ;;  %v5532_v51 = vsub.f32 %v12514_v6, %v12546_v35 }
 0x699   : > { %5812 = vst [vmem:[#allocation12 + $0x640] sm:$0xff] %v5508_v41  ;;  %5813 = vst [vmem:[#allocation12 + $0x648] sm:$0xff] %v5509_v15  ;;  %v12520_v8 = vld [vmem:[#allocation5 + $0x718] sm:$0xff]  ;;  %v12530_v12 = vld [vmem:[#allocation5 + $0x720] sm:$0xff]  ;;  %v5533_v57 = vsub.f32 %v12516_v48, %v12546_v35  ;;  %v5534_v21 = vsub.f32 %v12518_v47, %v12546_v35 }
 0x69a   : > { %5814 = vst [vmem:[#allocation12 + $0x650] sm:$0xff] %v5510_v43  ;;  %5815 = vst [vmem:[#allocation12 + $0x658] sm:$0xff] %v5511_v44  ;;  %v12532_v46 = vld [vmem:[#allocation5 + $0x728] sm:$0xff]  ;;  %v12534_v19 = vld [vmem:[#allocation5 + $0x730] sm:$0xff]  ;;  %v5535_v40 = vsub.f32 %v12520_v8, %v12546_v35  ;;  %v5536_v54 = vsub.f32 %v12530_v12, %v12546_v35 }
 0x69b   : > { %5816 = vst [vmem:[#allocation12 + $0x660] sm:$0xff] %v5512_v17  ;;  %5817 = vst [vmem:[#allocation12 + $0x668] sm:$0xff] %v5513_v0  ;;  %v12536_v14 = vld [vmem:[#allocation5 + $0x738] sm:$0xff]  ;;  %v12548_v41 = vld [vmem:[#allocation5 + $0x7c0] sm:$0xff]  ;;  %v5537_v4 = vsub.f32 %v12532_v46, %v12546_v35  ;;  %v5538_v24 = vsub.f32 %v12534_v19, %v12546_v35 }
 0x69c   : > { %5818 = vst [vmem:[#allocation12 + $0x670] sm:$0xff] %v5514_v37  ;;  %5819 = vst [vmem:[#allocation12 + $0x678] sm:$0xff] %v5515_v11  ;;  %v12550_v15 = vld [vmem:[#allocation5 + $0x7c8] sm:$0xff]  ;;  %v12552_v43 = vld [vmem:[#allocation5 + $0x7d0] sm:$0xff]  ;;  %v5539_v50 = vsub.f32 %v12536_v14, %v12546_v35  ;;  %v5556_v42 = vsub.f32 %v12548_v41, %v5276_v61 }
 0x69d   : > { %5804 = vst [vmem:[#allocation12 + $0x600] sm:$0xff] %v5500_v34  ;;  %5805 = vst [vmem:[#allocation12 + $0x608] sm:$0xff] %v5501_v13  ;;  %v12554_v44 = vld [vmem:[#allocation5 + $0x7d8] sm:$0xff]  ;;  %v12560_v17 = vld [vmem:[#allocation5 + $0x7e0] sm:$0xff]  ;;  %v5557_v26 = vsub.f32 %v12550_v15, %v5276_v61  ;;  %v5558_v18 = vsub.f32 %v12552_v43, %v5276_v61  ;;  %v5286_v43 = vpop.permute.xlu1 %5285 }
 0x69e   : > { %5806 = vst [vmem:[#allocation12 + $0x610] sm:$0xff] %v5502_v62  ;;  %5807 = vst [vmem:[#allocation12 + $0x618] sm:$0xff] %v5503_v5  ;;  %v12562_v0 = vld [vmem:[#allocation5 + $0x7e8] sm:$0xff]  ;;  %v12564_v37 = vld [vmem:[#allocation5 + $0x7f0] sm:$0xff]  ;;  %v5559_v20 = vsub.f32 %v12554_v44, %v5276_v61  ;;  %v5560_v6 = vsub.f32 %v12560_v17, %v5276_v61  ;;  %v12662_v44 = vpop.permute.xlu0 %5280 }
 0x69f   : > { %5808 = vst [vmem:[#allocation12 + $0x620] sm:$0xff] %v5504_v53  ;;  %5809 = vst [vmem:[#allocation12 + $0x628] sm:$0xff] %v5505_v16  ;;  %v12566_v11 = vld [vmem:[#allocation5 + $0x7f8] sm:$0xff]  ;;  %v12572_v34 = vld [vmem:[#allocation5 + $0x780] sm:$0xff]  ;;  %v5561_v48 = vsub.f32 %v12562_v0, %v5276_v61  ;;  %v5562_v47 = vsub.f32 %v12564_v37, %v5276_v61 }
 0x6a0   : > { %5810 = vst [vmem:[#allocation12 + $0x630] sm:$0xff] %v5506_v9  ;;  %5811 = vst [vmem:[#allocation12 + $0x638] sm:$0xff] %v5507_v39  ;;  %v12574_v13 = vld [vmem:[#allocation5 + $0x788] sm:$0xff]  ;;  %v12576_v62 = vld [vmem:[#allocation5 + $0x790] sm:$0xff]  ;;  %v5563_v8 = vsub.f32 %v12566_v11, %v5276_v61  ;;  %v5548_v12 = vsub.f32 %v12572_v34, %v12604_v63 }
 0x6a1   : > { %5828 = vst [vmem:[#allocation12 + $0x6c0] sm:$0xff] %v5524_v1  ;;  %5829 = vst [vmem:[#allocation12 + $0x6c8] sm:$0xff] %v5525_v3  ;;  %v12578_v5 = vld [vmem:[#allocation5 + $0x798] sm:$0xff]  ;;  %v12588_v53 = vld [vmem:[#allocation5 + $0x7a0] sm:$0xff]  ;;  %v5549_v46 = vsub.f32 %v12574_v13, %v12604_v63  ;;  %v5550_v19 = vsub.f32 %v12576_v62, %v12604_v63 }
 0x6a2   : > { %5830 = vst [vmem:[#allocation12 + $0x6d0] sm:$0xff] %v5526_v32  ;;  %5831 = vst [vmem:[#allocation12 + $0x6d8] sm:$0xff] %v5527_v22  ;;  %v12590_v16 = vld [vmem:[#allocation5 + $0x7a8] sm:$0xff]  ;;  %v12592_v9 = vld [vmem:[#allocation5 + $0x7b0] sm:$0xff]  ;;  %v5551_v14 = vsub.f32 %v12578_v5, %v12604_v63  ;;  %v5552_v55 = vsub.f32 %v12588_v53, %v12604_v63 }
 0x6a3   : > { %5832 = vst [vmem:[#allocation12 + $0x6e0] sm:$0xff] %v5528_v45  ;;  %5833 = vst [vmem:[#allocation12 + $0x6e8] sm:$0xff] %v5529_v28  ;;  %v12594_v39 = vld [vmem:[#allocation5 + $0x7b8] sm:$0xff]  ;;  %v12606_v1 = vld [vmem:[#allocation5 + $0x840] sm:$0xff]  ;;  %v5553_v35 = vsub.f32 %v12590_v16, %v12604_v63  ;;  %v5554_v41 = vsub.f32 %v12592_v9, %v12604_v63 }
 0x6a4   : > { %5834 = vst [vmem:[#allocation12 + $0x6f0] sm:$0xff] %v5530_v10  ;;  %5835 = vst [vmem:[#allocation12 + $0x6f8] sm:$0xff] %v5531_v29  ;;  %v12608_v3 = vld [vmem:[#allocation5 + $0x848] sm:$0xff]  ;;  %v12610_v32 = vld [vmem:[#allocation5 + $0x850] sm:$0xff]  ;;  %v5555_v15 = vsub.f32 %v12594_v39, %v12604_v63  ;;  %v5572_v17 = vsub.f32 %v12606_v1, %v5286_v43  ;;  %v5296_v1 = vpop.permute.xlu1 %5295 }
 0x6a5   : > { %5820 = vst [vmem:[#allocation12 + $0x680] sm:$0xff] %v5516_v31  ;;  %5821 = vst [vmem:[#allocation12 + $0x688] sm:$0xff] %v5517_v49  ;;  %v12612_v22 = vld [vmem:[#allocation5 + $0x858] sm:$0xff]  ;;  %v12618_v45 = vld [vmem:[#allocation5 + $0x860] sm:$0xff]  ;;  %v5573_v0 = vsub.f32 %v12608_v3, %v5286_v43  ;;  %v5574_v37 = vsub.f32 %v12610_v32, %v5286_v43  ;;  %v12716_v3 = vpop.permute.xlu0 %5290 }
 0x6a6   : > { %5822 = vst [vmem:[#allocation12 + $0x690] sm:$0xff] %v5518_v59  ;;  %5823 = vst [vmem:[#allocation12 + $0x698] sm:$0xff] %v5519_v38  ;;  %v12620_v28 = vld [vmem:[#allocation5 + $0x868] sm:$0xff]  ;;  %v12622_v10 = vld [vmem:[#allocation5 + $0x870] sm:$0xff]  ;;  %v5575_v11 = vsub.f32 %v12612_v22, %v5286_v43  ;;  %v5576_v34 = vsub.f32 %v12618_v45, %v5286_v43 }
 0x6a7   : > { %5824 = vst [vmem:[#allocation12 + $0x6a0] sm:$0xff] %v5520_v36  ;;  %5825 = vst [vmem:[#allocation12 + $0x6a8] sm:$0xff] %v5521_v60  ;;  %v12624_v29 = vld [vmem:[#allocation5 + $0x878] sm:$0xff]  ;;  %v12630_v31 = vld [vmem:[#allocation5 + $0x800] sm:$0xff]  ;;  %v5577_v13 = vsub.f32 %v12620_v28, %v5286_v43  ;;  %v5578_v62 = vsub.f32 %v12622_v10, %v5286_v43 }
 0x6a8   : > { %5826 = vst [vmem:[#allocation12 + $0x6b0] sm:$0xff] %v5522_v7  ;;  %5827 = vst [vmem:[#allocation12 + $0x6b8] sm:$0xff] %v5523_v2  ;;  %v12632_v49 = vld [vmem:[#allocation5 + $0x808] sm:$0xff]  ;;  %v12634_v59 = vld [vmem:[#allocation5 + $0x810] sm:$0xff]  ;;  %v5579_v5 = vsub.f32 %v12624_v29, %v5286_v43 }
 0x6a9   : > { %5844 = vst [vmem:[#allocation12 + $0x740] sm:$0xff] %v5540_v30  ;;  %5845 = vst [vmem:[#allocation12 + $0x748] sm:$0xff] %v5541_v25  ;;  %v12636_v38 = vld [vmem:[#allocation5 + $0x818] sm:$0xff]  ;;  %v12646_v36 = vld [vmem:[#allocation5 + $0x820] sm:$0xff]  ;;  %v5565_v53 = vsub.f32 %v12632_v49, %v12662_v44  ;;  %v5566_v16 = vsub.f32 %v12634_v59, %v12662_v44 }
 0x6aa   : > { %5846 = vst [vmem:[#allocation12 + $0x750] sm:$0xff] %v5542_v27  ;;  %5847 = vst [vmem:[#allocation12 + $0x758] sm:$0xff] %v5543_v33  ;;  %v12648_v60 = vld [vmem:[#allocation5 + $0x828] sm:$0xff]  ;;  %v12650_v7 = vld [vmem:[#allocation5 + $0x830] sm:$0xff]  ;;  %v5567_v9 = vsub.f32 %v12636_v38, %v12662_v44 }
 0x6ab   : > { %5848 = vst [vmem:[#allocation12 + $0x760] sm:$0xff] %v5544_v23  ;;  %5849 = vst [vmem:[#allocation12 + $0x768] sm:$0xff] %v5545_v56  ;;  %v12652_v2 = vld [vmem:[#allocation5 + $0x838] sm:$0xff]  ;;  %v12664_v30 = vld [vmem:[#allocation5 + $0x8c0] sm:$0xff]  ;;  %v5570_v61 = vsub.f32 %v12650_v7, %v12662_v44 }
 0x6ac   : > { %5850 = vst [vmem:[#allocation12 + $0x770] sm:$0xff] %v5546_v58  ;;  %5851 = vst [vmem:[#allocation12 + $0x778] sm:$0xff] %v5547_v52  ;;  %v12666_v25 = vld [vmem:[#allocation5 + $0x8c8] sm:$0xff]  ;;  %v12668_v27 = vld [vmem:[#allocation5 + $0x8d0] sm:$0xff]  ;;  %v5571_v63 = vsub.f32 %v12652_v2, %v12662_v44 }
 0x6ad   : > { %5836 = vst [vmem:[#allocation12 + $0x700] sm:$0xff] %v5532_v51  ;;  %5837 = vst [vmem:[#allocation12 + $0x708] sm:$0xff] %v5533_v57  ;;  %v12670_v33 = vld [vmem:[#allocation5 + $0x8d8] sm:$0xff]  ;;  %v12676_v23 = vld [vmem:[#allocation5 + $0x8e0] sm:$0xff] }
 0x6ae   : > { %5838 = vst [vmem:[#allocation12 + $0x710] sm:$0xff] %v5534_v21  ;;  %5839 = vst [vmem:[#allocation12 + $0x718] sm:$0xff] %v5535_v40  ;;  %v12678_v56 = vld [vmem:[#allocation5 + $0x8e8] sm:$0xff]  ;;  %v12680_v58 = vld [vmem:[#allocation5 + $0x8f0] sm:$0xff]  ;;  %v5564_v40 = vsub.f32 %v12630_v31, %v12662_v44  ;;  %v5591_v45 = vsub.f32 %v12670_v33, %v5296_v1 }
 0x6af   : > { %5840 = vst [vmem:[#allocation12 + $0x720] sm:$0xff] %v5536_v54  ;;  %5841 = vst [vmem:[#allocation12 + $0x728] sm:$0xff] %v5537_v4  ;;  %v12682_v52 = vld [vmem:[#allocation5 + $0x8f8] sm:$0xff]  ;;  %v12688_v51 = vld [vmem:[#allocation5 + $0x880] sm:$0xff] }
 0x6b0   : > { %5842 = vst [vmem:[#allocation12 + $0x730] sm:$0xff] %v5538_v24  ;;  %5843 = vst [vmem:[#allocation12 + $0x738] sm:$0xff] %v5539_v50  ;;  %v12690_v57 = vld [vmem:[#allocation5 + $0x888] sm:$0xff]  ;;  %v12692_v21 = vld [vmem:[#allocation5 + $0x890] sm:$0xff]  ;;  %v5568_v24 = vsub.f32 %v12646_v36, %v12662_v44  ;;  %v5569_v50 = vsub.f32 %v12648_v60, %v12662_v44  ;;  %v5580_v38 = vsub.f32 %v12688_v51, %v12716_v3 }
 0x6b1   : > { %5860 = vst [vmem:[#allocation12 + $0x7c0] sm:$0xff] %v5556_v42  ;;  %5861 = vst [vmem:[#allocation12 + $0x7c8] sm:$0xff] %v5557_v26  ;;  %v12702_v39 = vld [vmem:[#allocation5 + $0x898] sm:$0xff]  ;;  %v12704_v54 = vld [vmem:[#allocation5 + $0x8a0] sm:$0xff]  ;;  %v5588_v26 = vsub.f32 %v12664_v30, %v5296_v1 }
 0x6b2   : > { %5862 = vst [vmem:[#allocation12 + $0x7d0] sm:$0xff] %v5558_v18  ;;  %5863 = vst [vmem:[#allocation12 + $0x7d8] sm:$0xff] %v5559_v20  ;;  %v12706_v4 = vld [vmem:[#allocation5 + $0x8a8] sm:$0xff]  ;;  %v5054_v32 = vld [vmem:[#allocation5 + $0x8b0] sm:$0xff]  ;;  %v5589_v18 = vsub.f32 %v12666_v25, %v5296_v1  ;;  %v5590_v20 = vsub.f32 %v12668_v27, %v5296_v1  ;;  %v5584_v7 = vsub.f32 %v12704_v54, %v12716_v3 }
 0x6b3   : > { %5864 = vst [vmem:[#allocation12 + $0x7e0] sm:$0xff] %v5560_v6  ;;  %5865 = vst [vmem:[#allocation12 + $0x7e8] sm:$0xff] %v5561_v48  ;;  %v5055_v22 = vld [vmem:[#allocation5 + $0x8b8] sm:$0xff]  ;;  %v12718_v42 = vld [vmem:[#allocation5 + $0x940] sm:$0xff]  ;;  %v5592_v6 = vsub.f32 %v12676_v23, %v5296_v1  ;;  %v5593_v48 = vsub.f32 %v12678_v56, %v5296_v1  ;;  %v5585_v2 = vsub.f32 %v12706_v4, %v12716_v3 }
 0x6b4   : > { %5866 = vst [vmem:[#allocation12 + $0x7f0] sm:$0xff] %v5562_v47  ;;  %5867 = vst [vmem:[#allocation12 + $0x7f8] sm:$0xff] %v5563_v8  ;;  %v5073_v28 = vld [vmem:[#allocation5 + $0x948] sm:$0xff]  ;;  %v5074_v10 = vld [vmem:[#allocation5 + $0x950] sm:$0xff]  ;;  %v5594_v47 = vsub.f32 %v12680_v58, %v5296_v1  ;;  %v5595_v8 = vsub.f32 %v12682_v52, %v5296_v1 }
 0x6b5   : > { %5852 = vst [vmem:[#allocation12 + $0x780] sm:$0xff] %v5548_v12  ;;  %5853 = vst [vmem:[#allocation12 + $0x788] sm:$0xff] %v5549_v46  ;;  %v5075_v29 = vld [vmem:[#allocation5 + $0x958] sm:$0xff]  ;;  %v5076_v31 = vld [vmem:[#allocation5 + $0x960] sm:$0xff]  ;;  %v5581_v12 = vsub.f32 %v12690_v57, %v12716_v3  ;;  %v5582_v46 = vsub.f32 %v12692_v21, %v12716_v3 }
 0x6b6   : > { %5854 = vst [vmem:[#allocation12 + $0x790] sm:$0xff] %v5550_v19  ;;  %5855 = vst [vmem:[#allocation12 + $0x798] sm:$0xff] %v5551_v14  ;;  %v5077_v49 = vld [vmem:[#allocation5 + $0x968] sm:$0xff]  ;;  %v5078_v59 = vld [vmem:[#allocation5 + $0x970] sm:$0xff]  ;;  %v5583_v19 = vsub.f32 %v12702_v39, %v12716_v3 }
 0x6b7   : > { %5856 = vst [vmem:[#allocation12 + $0x7a0] sm:$0xff] %v5552_v55  ;;  %5857 = vst [vmem:[#allocation12 + $0x7a8] sm:$0xff] %v5553_v35  ;;  %v5079_v14 = vld [vmem:[#allocation5 + $0x978] sm:$0xff]  ;;  %v5064_v36 = vld [vmem:[#allocation5 + $0x900] sm:$0xff]  ;;  %v5586_v55 = vsub.f32 %v5054_v32, %v12716_v3  ;;  %v5587_v35 = vsub.f32 %v5055_v22, %v12716_v3 }
 0x6b8   : > { %5858 = vst [vmem:[#allocation12 + $0x7b0] sm:$0xff] %v5554_v41  ;;  %5859 = vst [vmem:[#allocation12 + $0x7b8] sm:$0xff] %v5555_v15  ;;  %v5065_v60 = vld [vmem:[#allocation5 + $0x908] sm:$0xff]  ;;  %v5306_v41 = vpop.permute.xlu1 %5305  ;;  %v5301_v15 = vpop.permute.xlu0 %5300  ;;  %v5066_v43 = vld [vmem:[#allocation5 + $0x910] sm:$0xff] }
 0x6b9   : > { %5876 = vst [vmem:[#allocation12 + $0x840] sm:$0xff] %v5572_v17  ;;  %5877 = vst [vmem:[#allocation12 + $0x848] sm:$0xff] %v5573_v0  ;;  %v5067_v44 = vld [vmem:[#allocation5 + $0x918] sm:$0xff]  ;;  %v5068_v30 = vld [vmem:[#allocation5 + $0x920] sm:$0xff]  ;;  %v5604_v25 = vsub.f32 %v12718_v42, %v5306_v41  ;;  %v5605_v27 = vsub.f32 %v5073_v28, %v5306_v41  ;;  %v5606_v33 = vsub.f32 %v5074_v10, %v5306_v41 }
 0x6ba   : > { %5878 = vst [vmem:[#allocation12 + $0x850] sm:$0xff] %v5574_v37  ;;  %5879 = vst [vmem:[#allocation12 + $0x858] sm:$0xff] %v5575_v11  ;;  %v5607_v17 = vsub.f32 %v5075_v29, %v5306_v41  ;;  %v5069_v0 = vld [vmem:[#allocation5 + $0x928] sm:$0xff]  ;;  %v5070_v37 = vld [vmem:[#allocation5 + $0x930] sm:$0xff]  ;;  %v5608_v23 = vsub.f32 %v5076_v31, %v5306_v41  ;;  %v5609_v56 = vsub.f32 %v5077_v49, %v5306_v41 }
 0x6bb   : > { %5880 = vst [vmem:[#allocation12 + $0x860] sm:$0xff] %v5576_v34  ;;  %5881 = vst [vmem:[#allocation12 + $0x868] sm:$0xff] %v5577_v13  ;;  %v5071_v11 = vld [vmem:[#allocation5 + $0x938] sm:$0xff]  ;;  %v5610_v58 = vsub.f32 %v5078_v59, %v5306_v41  ;;  %v5611_v52 = vsub.f32 %v5079_v14, %v5306_v41  ;;  %v5596_v34 = vsub.f32 %v5064_v36, %v5301_v15 }
 0x6bc   : > { %5882 = vst [vmem:[#allocation12 + $0x870] sm:$0xff] %v5578_v62  ;;  %5883 = vst [vmem:[#allocation12 + $0x878] sm:$0xff] %v5579_v5  ;;  %v5597_v13 = vsub.f32 %v5065_v60, %v5301_v15  ;;  %v5598_v62 = vsub.f32 %v5066_v43, %v5301_v15  ;;  %v5599_v5 = vsub.f32 %v5067_v44, %v5301_v15 }
 0x6bd   : > { %5868 = vst [vmem:[#allocation12 + $0x800] sm:$0xff] %v5564_v40  ;;  %5869 = vst [vmem:[#allocation12 + $0x808] sm:$0xff] %v5565_v53  ;;  %v5600_v51 = vsub.f32 %v5068_v30, %v5301_v15  ;;  %v5601_v57 = vsub.f32 %v5069_v0, %v5301_v15  ;;  %v5602_v21 = vsub.f32 %v5070_v37, %v5301_v15 }
 0x6be   : > { %5870 = vst [vmem:[#allocation12 + $0x810] sm:$0xff] %v5566_v16  ;;  %5871 = vst [vmem:[#allocation12 + $0x818] sm:$0xff] %v5567_v9  ;;  %v5603_v40 = vsub.f32 %v5071_v11, %v5301_v15 }
 0x6bf   : > { %5872 = vst [vmem:[#allocation12 + $0x820] sm:$0xff] %v5568_v24  ;;  %5873 = vst [vmem:[#allocation12 + $0x828] sm:$0xff] %v5569_v50 }
 0x6c0   : > { %5874 = vst [vmem:[#allocation12 + $0x830] sm:$0xff] %v5570_v61  ;;  %5875 = vst [vmem:[#allocation12 + $0x838] sm:$0xff] %v5571_v63 }
 0x6c1   : > { %5892 = vst [vmem:[#allocation12 + $0x8c0] sm:$0xff] %v5588_v26  ;;  %5893 = vst [vmem:[#allocation12 + $0x8c8] sm:$0xff] %v5589_v18 }
 0x6c2   : > { %5894 = vst [vmem:[#allocation12 + $0x8d0] sm:$0xff] %v5590_v20  ;;  %5895 = vst [vmem:[#allocation12 + $0x8d8] sm:$0xff] %v5591_v45 }
 0x6c3   : > { %5896 = vst [vmem:[#allocation12 + $0x8e0] sm:$0xff] %v5592_v6  ;;  %5897 = vst [vmem:[#allocation12 + $0x8e8] sm:$0xff] %v5593_v48 }
 0x6c4   : > { %5898 = vst [vmem:[#allocation12 + $0x8f0] sm:$0xff] %v5594_v47  ;;  %5899 = vst [vmem:[#allocation12 + $0x8f8] sm:$0xff] %v5595_v8 }
 0x6c5   : > { %5884 = vst [vmem:[#allocation12 + $0x880] sm:$0xff] %v5580_v38  ;;  %5885 = vst [vmem:[#allocation12 + $0x888] sm:$0xff] %v5581_v12 }
 0x6c6   : > { %5886 = vst [vmem:[#allocation12 + $0x890] sm:$0xff] %v5582_v46  ;;  %5887 = vst [vmem:[#allocation12 + $0x898] sm:$0xff] %v5583_v19 }
 0x6c7   : > { %5888 = vst [vmem:[#allocation12 + $0x8a0] sm:$0xff] %v5584_v7  ;;  %5889 = vst [vmem:[#allocation12 + $0x8a8] sm:$0xff] %v5585_v2 }
 0x6c8   : > { %5890 = vst [vmem:[#allocation12 + $0x8b0] sm:$0xff] %v5586_v55  ;;  %5891 = vst [vmem:[#allocation12 + $0x8b8] sm:$0xff] %v5587_v35 }
 0x6c9   : > { %5908 = vst [vmem:[#allocation12 + $0x940] sm:$0xff] %v5604_v25  ;;  %5909 = vst [vmem:[#allocation12 + $0x948] sm:$0xff] %v5605_v27 }
 0x6ca   : > { %5910 = vst [vmem:[#allocation12 + $0x950] sm:$0xff] %v5606_v33  ;;  %5911 = vst [vmem:[#allocation12 + $0x958] sm:$0xff] %v5607_v17 }
 0x6cb   : > { %5912 = vst [vmem:[#allocation12 + $0x960] sm:$0xff] %v5608_v23  ;;  %5913 = vst [vmem:[#allocation12 + $0x968] sm:$0xff] %v5609_v56 }
 0x6cc   : > { %5914 = vst [vmem:[#allocation12 + $0x970] sm:$0xff] %v5610_v58  ;;  %5915 = vst [vmem:[#allocation12 + $0x978] sm:$0xff] %v5611_v52 }
 0x6cd   : > { %5900 = vst [vmem:[#allocation12 + $0x900] sm:$0xff] %v5596_v34  ;;  %5901 = vst [vmem:[#allocation12 + $0x908] sm:$0xff] %v5597_v13 }
 0x6ce   : > { %5902 = vst [vmem:[#allocation12 + $0x910] sm:$0xff] %v5598_v62  ;;  %5903 = vst [vmem:[#allocation12 + $0x918] sm:$0xff] %v5599_v5 }
 0x6cf   : > { %5904 = vst [vmem:[#allocation12 + $0x920] sm:$0xff] %v5600_v51  ;;  %5905 = vst [vmem:[#allocation12 + $0x928] sm:$0xff] %v5601_v57 }
 0x6d0   : > { %5906 = vst [vmem:[#allocation12 + $0x930] sm:$0xff] %v5602_v21  ;;  %5907 = vst [vmem:[#allocation12 + $0x938] sm:$0xff] %v5603_v40 }
 0x6d1 PF: > { %p6678_p2 = scmp.eq.s32.totalorder %s7809_s7, 1  ;;  %s7733_s12 = smov [#allocation12]  }
 0x6d2   : > { %s5934_s30 = sshll.u32 %s7733_s12, 4  ;;  %s5935_s30 = int_to_ptr.vmem [resolvable:$true] %s5934_s30 }
 0x6d3   : > { %s7662_s4 = scalar_lea.vmem %s5935_s30, 38912  ;;  %s7668_s9 = scalar_lea.vmem %s5935_s30, 77824 }
 0x6d4   : > { %p7663_p0 = scmp.ne.s32.totalorder %s5935_s30, %s7662_s4  ;;  %p7669_p9 = scmp.lt.s32.totalorder %s5935_s30, %s5935_s30 }
 0x6d5   : > { %p7670_p5 = scmp.lt.s32.totalorder %s7668_s9, %s7662_s4 }
 0x6d6   : > { %p7664_p4 = pnand %p7663_p0, %p6678_p2 }
 0x6d7   : > { %p7671_p8 = por %p7670_p5, %p7669_p9 }
 0x6d8   : > { %p7665_p6 = pneg %p7664_p4 }
 0x6da   : > { %p7672_p7 = pnand %p7671_p8, %p7665_p6 }
 0x6dc   : > { %7675 = shalt.err (!%p7672_p7)
}
 0x6dd   : > { %s7676_s28 = scalar_lea.hbm %s12778_s3, 38912 }
 0x6de   : > { %p7677_p10 = scmp.ne.s32.totalorder %s12778_s3, %s7676_s28  ;;  %p7682_p13 = scmp.lt.u32.totalorder %s7676_s28, %s12778_s3 }
 0x6e0   : > { %p7678_p12 = pnand %p7677_p10, %p6678_p2 }
 0x6e2   : > { %p7679_p11 = pneg %p7678_p12 }
 0x6e4   : > { %p7684_p3 = pnand %p7682_p13, %p7679_p11 }
 0x6e6   : > { %7687 = shalt.err (!%p7684_p3)
}
 0x6e7   : > { %s7734_s16 = smov 1024   ;;  %s7735_s21 = smov 64  }
 0x6e8   : > { %6653 = dma.vmem_to_hbm [thread:$0]  (%p6678_p2), %s5935_s30, 38912, %s12778_s3, [#allocation8], %s7734_s16, %s7734_s16, %s7735_s21  }
 0x6e9 PF: > { %p6680_p1 = scmp.eq.s32.totalorder %s6060_s15, 1  ;;  %p13981_p0 = scmp.ge.s32.totalorder %s7722_s14, 2 }
 0x6eb   : > { %p6668_p4 = pnand %p6680_p1, %p13981_p0 }
 0x6ed   : > { %7709 = dma.done.wait (!%p6668_p4), [#allocation8], 38912  }
 0x6ee   : > { %7711 = vsyncadd (!%p6668_p4), [#allocation8], 4294928384  ;;  %s20_s14 = sadd.s32 1, %s7722_s14   ;;  %s13982_s12 = smov %s7718_s13 }
 0x6ef   : > { %p17_p6 = scmp.ge.s32.totalorder %s20_s14, 4   ;;  %s13983_s13 = smov %s13985_s8 }
 0x6f1   :  { %19 = sbr.rel (!%p17_p6) target bundleno = 6 (0x6), region = 112 }
 0x6f8   :  { %5955 = vsyncpa [#allocation7], 1 }
 0x6f9   :  { %5957 = vsyncpa [#allocation7 + $0x1], 1 }
 0x6fa   :  { %5958 = vsyncpa [#allocation10], 1 }
 0x6fb   :  { %5960 = vsyncpa [#allocation10 + $0x1], 1 }
 0x6fc   :  { %5961 = vsyncpa [#allocation8], 1 }
 0x6fd   :  { %5963 = vsyncpa [#allocation8 + $0x1], 1 }

</bundles_post_ra>
